<compile_context>
chip_gen: v5e
topology: v5e:2x2
jax: 0.10.0
libtpu: 0.0.40
codegen_flags: <defaults>
</compile_context>

<pallas_src>
import functools

import jax
import jax.numpy as jnp
import numpy as np
from jax.experimental import pallas as pl
from jax.experimental.pallas import tpu as pltpu


def _round_up(x, m):
    return (x + m - 1) // m * m


def _pick_vmem_limit():
    # Raise the scoped-VMEM cap on v5e/v6e (128 MiB physical); stay conservative
    # on v7x (64 MiB physical).  Fall back to a safe value if the query fails.
    try:
        cap = pltpu.get_tpu_info().vmem_capacity_bytes
    except Exception:
        cap = 64 * 1024 * 1024
    return max(32 * 1024 * 1024, min(96 * 1024 * 1024, (cap * 3) // 4))


def _double_conv_kernel(x_ref, w1_ref, b1_ref, g1_ref, sc1_ref, sh1_ref,
                        w2_ref, b2_ref, g2_ref, sc2_ref, sh2_ref,
                        o_ref, plane2_ref, acc_ref,
                        *, H, W, C1_p, Cm_p, Co_p, R_pad, inv_n1, inv_n2, eps):
    """One batch element: (conv3x3 + GroupNorm + FiLM + SiLU) x 2, all in VMEM."""
    P = W + 2                       # row pitch of the flattened padded planes
    E = H * P                       # "extended" output rows (2 junk cols per row)
    HW = float(H * W)

    # extended row e = y*P + x is a real output pixel iff x < W
    rows = jax.lax.broadcasted_iota(jnp.int32, (E, 1), 0)
    valid = (rows % P < W).astype(jnp.float32)

    # The only stage-2-plane cells the taps read that the interior store never
    # covers are the first P+1 rows and the rows past (H+1)*P+1.  Zero just
    # those, every step (tiny; no cross-step / cross-core dependence).
    plane2_ref[:P + 1, :] = jnp.zeros((P + 1, Cm_p), plane2_ref.dtype)
    plane2_ref[(H + 1) * P + 1:R_pad, :] = jnp.zeros(
        (R_pad - (H + 1) * P - 1, Cm_p), plane2_ref.dtype)

    def stage(tap, ci_p, co, w_ref, b_ref, g_ref, sc_ref, sh_ref, inv_n):
        # --- conv3x3 as nine accumulated tap matmuls (no im2col buffer) ---
        for t in range(9):
            dy, dx = divmod(t, 3)
            d = jax.lax.dot_general(
                tap(dy * P + dx), w_ref[t * ci_p:(t + 1) * ci_p, :],
                (((1,), (0,)), ((), ())), preferred_element_type=jnp.float32)
            if t == 0:
                acc_ref[:, :co] = d
            else:
                acc_ref[:, :co] += d
        y = acc_ref[:, :co]                              # (E, co) f32, bias NOT added

        # --- GroupNorm stats: masked column sums, bias folded analytically ---
        ym = y * valid                                   # junk (wrap/halo) rows -> 0
        colsum = jnp.sum(ym, axis=0, keepdims=True)      # (1, co)
        colsq = jnp.sum(ym * ym, axis=0, keepdims=True)  # (1, co)
        b = b_ref[...]                                   # (1, co) conv bias
        s1 = colsum + HW * b
        s2 = colsq + 2.0 * b * colsum + HW * (b * b)
        gsum = jax.lax.dot_general(s1, g_ref[...], (((1,), (0,)), ((), ())),
                                   preferred_element_type=jnp.float32)
        gsq = jax.lax.dot_general(s2, g_ref[...], (((1,), (0,)), ((), ())),
                                  preferred_element_type=jnp.float32)
        mean = gsum * inv_n
        var = jnp.maximum(gsq * inv_n - mean * mean, 0.0)   # clamp (bf16 inputs)

        # --- conv bias + GN affine + FiLM folded into one scale/shift ---
        scale = jax.lax.rsqrt(var + eps) * sc_ref[0]
        shift = (b - mean) * scale + sh_ref[0]
        z = y * scale + shift
        return z * (0.5 * jnp.tanh(0.5 * z) + 0.5)          # SiLU, single EUP op

    # ---- stage 1: input plane arrives pre-padded & lane-dense from HBM ----
    h = stage(lambda off: x_ref[0, off:off + E, :], C1_p, Cm_p,
              w1_ref, b1_ref, g1_ref, sc1_ref, sh1_ref, inv_n1)
    # masked store: junk rows land exactly on the halo cells -> halo stays zero
    plane2_ref[P + 1:P + 1 + E, :] = (h * valid).astype(plane2_ref.dtype)

    # ---- stage 2: intermediate activation never leaves VMEM ----
    y2 = stage(lambda off: plane2_ref[off:off + E, :], Cm_p, Co_p,
               w2_ref, b2_ref, g2_ref, sc2_ref, sh2_ref, inv_n2)
    o_ref[...] = y2.reshape(1, E, Co_p).astype(o_ref.dtype)


def double_conv(x_nchw, params, gamma1=None, beta1=None, gamma2=None, beta2=None,
                eps=1e-5):
    """Equivalent of DoubleConv.forward. Input/output in PyTorch NCHW layout."""
    N, Cin, H, W = x_nchw.shape
    w1, w2 = params["w1"], params["w2"]
    Cmid, Cout = w1.shape[-1], w2.shape[-1]
    g1, g2 = params["groups1"], params["groups2"]
    dt = x_nchw.dtype

    if gamma1 is None or beta1 is None:                  # optional FiLM -> identity
        gamma1 = jnp.ones((N, Cmid), jnp.float32)
        beta1 = jnp.zeros((N, Cmid), jnp.float32)
    if gamma2 is None or beta2 is None:
        gamma2 = jnp.ones((N, Cout), jnp.float32)
        beta2 = jnp.zeros((N, Cout), jnp.float32)

    C1_p = _round_up(Cin, 128)
    Cm_p = _round_up(Cmid, 128)
    Co_p = _round_up(Cout, 128)
    P = W + 2
    E = H * P
    R = (H + 2) * P
    R_pad = _round_up(R + 2, 8)          # +2: taps of the last junk rows read past R

    # Lane-dense, pre-padded, flattened input plane: (N, R_pad, C1_p) bf16.
    x = jnp.transpose(x_nchw, (0, 2, 3, 1))              # NCHW -> NHWC
    xp = jnp.pad(x.astype(jnp.float32),
                 ((0, 0), (1, 1), (1, 1), (0, C1_p - Cin))).reshape(N, R, C1_p)
    xp = jnp.pad(xp, ((0, 0), (0, R_pad - R), (0, 0))).astype(jnp.bfloat16)

    # Weights: (3,3,Ci,Co) -> zero-pad channels -> (9*Ci_p, Co_p) bf16 (tap-major).
    def pack_w(w, ci, ci_p, co, co_p):
        wp = jnp.zeros((3, 3, ci_p, co_p), jnp.float32)
        wp = wp.at[:, :, :ci, :co].set(w.astype(jnp.float32))
        return wp.reshape(9 * ci_p, co_p).astype(jnp.bfloat16)

    w1p = pack_w(w1, Cin, C1_p, Cmid, Cm_p)
    w2p = pack_w(w2, Cmid, Cm_p, Cout, Co_p)

    def pad_vec(v, cp):                                  # (C,) -> (1, cp) f32
        return jnp.zeros((1, cp), jnp.float32).at[0, :v.shape[0]].set(
            v.astype(jnp.float32))

    b1p = pad_vec(params["b1"], Cm_p)
    b2p = pad_vec(params["b2"], Co_p)

    # Channel->same-group membership matrices (zero rows/cols for pad channels).
    def gmat(c, cp, groups):
        cg = c // groups
        ch = np.arange(cp)
        grp = ch // cg
        same = (grp[:, None] == grp[None, :]) & (ch[:, None] < c) & (ch[None, :] < c)
        return jnp.asarray(same, jnp.float32)

    G1 = gmat(Cmid, Cm_p, g1)
    G2 = gmat(Cout, Co_p, g2)

    # GroupNorm affine * FiLM folded into a single per-sample scale/shift.
    def pad_rows(a, cp):                                 # (N, C) -> (N, 1, cp) f32
        out = jnp.zeros((N, 1, cp), jnp.float32)
        return out.at[:, 0, :a.shape[1]].set(a.astype(jnp.float32))

    sc1 = pad_rows(params["gn1_w"][None, :] * gamma1, Cm_p)
    sh1 = pad_rows(params["gn1_b"][None, :] * gamma1 + beta1, Cm_p)
    sc2 = pad_rows(params["gn2_w"][None, :] * gamma2, Co_p)
    sh2 = pad_rows(params["gn2_b"][None, :] * gamma2 + beta2, Co_p)

    inv_n1 = 1.0 / float(H * W * (Cmid // g1))
    inv_n2 = 1.0 / float(H * W * (Cout // g2))

    kernel = functools.partial(_double_conv_kernel, H=H, W=W,
                               C1_p=C1_p, Cm_p=Cm_p, Co_p=Co_p, R_pad=R_pad,
                               inv_n1=inv_n1, inv_n2=inv_n2, eps=eps)

    out = pl.pallas_call(
        kernel,
        out_shape=jax.ShapeDtypeStruct((N, E, Co_p), jnp.bfloat16),
        grid_spec=pltpu.PrefetchScalarGridSpec(
            num_scalar_prefetch=0,
            grid=(N,),
            in_specs=[
                pl.BlockSpec((1, R_pad, C1_p), lambda n: (n, 0, 0)),    # x (flat plane)
                pl.BlockSpec((9 * C1_p, Cm_p), lambda n: (0, 0)),       # w1
                pl.BlockSpec((1, Cm_p), lambda n: (0, 0)),              # b1
                pl.BlockSpec((Cm_p, Cm_p), lambda n: (0, 0)),           # group mask 1
                pl.BlockSpec((1, 1, Cm_p), lambda n: (n, 0, 0)),        # scale1
                pl.BlockSpec((1, 1, Cm_p), lambda n: (n, 0, 0)),        # shift1
                pl.BlockSpec((9 * Cm_p, Co_p), lambda n: (0, 0)),       # w2
                pl.BlockSpec((1, Co_p), lambda n: (0, 0)),              # b2
                pl.BlockSpec((Co_p, Co_p), lambda n: (0, 0)),           # group mask 2
                pl.BlockSpec((1, 1, Co_p), lambda n: (n, 0, 0)),        # scale2
                pl.BlockSpec((1, 1, Co_p), lambda n: (n, 0, 0)),        # shift2
            ],
            out_specs=pl.BlockSpec((1, E, Co_p), lambda n: (n, 0, 0)),
            scratch_shapes=[
                pltpu.VMEM((R_pad, Cm_p), jnp.bfloat16),                # stage-2 plane
                pltpu.VMEM((E, max(Cm_p, Co_p)), jnp.float32),          # conv accumulator
            ]),
        compiler_params=pltpu.CompilerParams(
            dimension_semantics=("parallel",),
            vmem_limit_bytes=_pick_vmem_limit()),
    )(xp, w1p, b1p, G1, sc1, sh1, w2p, b2p, G2, sc2, sh2)

    # drop junk columns + pad lanes BEFORE the layout transpose
    out = out.reshape(N, H, P, Co_p)[:, :, :W, :Cout]
    return jnp.transpose(out, (0, 3, 1, 2)).astype(dt)   # NHWC -> NCHW


# ---------------- pure-JAX reference (for correctness check) ----------------
def _ref_forward(x_nchw, params, gamma1, beta1, gamma2, beta2, eps=1e-5):
    def conv(x, w, b):
        w_oihw = jnp.transpose(w, (3, 2, 0, 1))
        y = jax.lax.conv_general_dilated(
            x, w_oihw, (1, 1), ((1, 1), (1, 1)),
            dimension_numbers=("NCHW", "OIHW", "NCHW"))
        return y + b[None, :, None, None]

    def gn(x, g, w, b):
        N, C, H, W = x.shape
        xr = x.reshape(N, g, C // g, H, W)
        mu = xr.mean(axis=(2, 3, 4), keepdims=True)
        var = ((xr - mu) ** 2).mean(axis=(2, 3, 4), keepdims=True)
        xn = ((xr - mu) * jax.lax.rsqrt(var + eps)).reshape(N, C, H, W)
        return xn * w[None, :, None, None] + b[None, :, None, None]

    h = conv(x_nchw, params["w1"], params["b1"])
    h = gn(h, params["groups1"], params["gn1_w"], params["gn1_b"])
    h = gamma1[:, :, None, None] * h + beta1[:, :, None, None]
    h = jax.nn.silu(h)
    h = conv(h, params["w2"], params["b2"])
    h = gn(h, params["groups2"], params["gn2_w"], params["gn2_b"])
    h = gamma2[:, :, None, None] * h + beta2[:, :, None, None]
    return jax.nn.silu(h)


if __name__ == "__main__":
    key = jax.random.PRNGKey(0)
    N, Cin, H, W = 2, 4, 16, 16
    Cout = 16
    mid = Cout                                           # mid_channels defaults to out
    groups1 = min(8, mid) if mid >= 8 else mid
    groups2 = min(8, Cout) if Cout >= 8 else Cout

    ks = jax.random.split(key, 16)

    def uinit(k, shape, fan_in):
        bound = 1.0 / np.sqrt(fan_in)
        return jax.random.uniform(k, shape, jnp.float32, -bound, bound)

    params = dict(
        w1=uinit(ks[0], (3, 3, Cin, mid), 9 * Cin),
        b1=uinit(ks[1], (mid,), 9 * Cin),
        gn1_w=1.0 + 0.1 * jax.random.normal(ks[2], (mid,), jnp.float32),
        gn1_b=0.1 * jax.random.normal(ks[3], (mid,), jnp.float32),
        groups1=groups1,
        w2=uinit(ks[4], (3, 3, mid, Cout), 9 * mid),
        b2=uinit(ks[5], (Cout,), 9 * mid),
        gn2_w=1.0 + 0.1 * jax.random.normal(ks[6], (Cout,), jnp.float32),
        gn2_b=0.1 * jax.random.normal(ks[7], (Cout,), jnp.float32),
        groups2=groups2,
    )

    # FiLM conditioning (optional in the module; exercised here).
    gamma1 = 1.0 + 0.1 * jax.random.normal(ks[8], (N, mid), jnp.float32)
    beta1 = 0.1 * jax.random.normal(ks[9], (N, mid), jnp.float32)
    gamma2 = 1.0 + 0.1 * jax.random.normal(ks[10], (N, Cout), jnp.float32)
    beta2 = 0.1 * jax.random.normal(ks[11], (N, Cout), jnp.float32)

    x = jax.random.normal(ks[12], (N, Cin, H, W), jnp.float32)

    out = double_conv(x, params, gamma1, beta1, gamma2, beta2)
    out = jax.block_until_ready(out)

    ref = _ref_forward(x, params, gamma1, beta1, gamma2, beta2)
    # bf16 MXU inputs / bf16 intermediate+output vs f32 reference.
    np.testing.assert_allclose(np.asarray(out), np.asarray(ref), rtol=5e-2, atol=5e-2)

    print("KERNEL_OK")
</pallas_src>

<mosaic_0001>
module attributes {stable_mosaic.version = 11 : i64} {
  func.func @_double_conv_kernel(%arg0: i32, %arg1: memref<1x328x128xbf16, #tpu.memory_space<vmem>>, %arg2: memref<1152x128xbf16, #tpu.memory_space<vmem>>, %arg3: memref<1x128xf32, #tpu.memory_space<vmem>>, %arg4: memref<128x128xf32, #tpu.memory_space<vmem>>, %arg5: memref<1x1x128xf32, #tpu.memory_space<vmem>>, %arg6: memref<1x1x128xf32, #tpu.memory_space<vmem>>, %arg7: memref<1152x128xbf16, #tpu.memory_space<vmem>>, %arg8: memref<1x128xf32, #tpu.memory_space<vmem>>, %arg9: memref<128x128xf32, #tpu.memory_space<vmem>>, %arg10: memref<1x1x128xf32, #tpu.memory_space<vmem>>, %arg11: memref<1x1x128xf32, #tpu.memory_space<vmem>>, %arg12: memref<1x288x128xbf16, #tpu.memory_space<vmem>>, %arg13: memref<328x128xbf16, #tpu.memory_space<vmem>>, %arg14: memref<288x128xf32, #tpu.memory_space<vmem>>) attributes {dimension_semantics = [#tpu.dimension_semantics<parallel>], iteration_bounds = array<i64: 2>, scalar_prefetch = 0 : i64, scratch_operands = 2 : i64, tpu.core_type = #tpu.core_type<tc>, window_params = [{transform_indices = @transform_0, window_bounds = array<i64: 1, 328, 128>}, {pipeline_mode = #tpu.pipeline_mode<synchronous>, transform_indices = @transform_1, window_bounds = array<i64: 1152, 128>}, {pipeline_mode = #tpu.pipeline_mode<synchronous>, transform_indices = @transform_2, window_bounds = array<i64: 1, 128>}, {pipeline_mode = #tpu.pipeline_mode<synchronous>, transform_indices = @transform_3, window_bounds = array<i64: 128, 128>}, {transform_indices = @transform_4, window_bounds = array<i64: 1, 1, 128>}, {transform_indices = @transform_5, window_bounds = array<i64: 1, 1, 128>}, {pipeline_mode = #tpu.pipeline_mode<synchronous>, transform_indices = @transform_6, window_bounds = array<i64: 1152, 128>}, {pipeline_mode = #tpu.pipeline_mode<synchronous>, transform_indices = @transform_7, window_bounds = array<i64: 1, 128>}, {pipeline_mode = #tpu.pipeline_mode<synchronous>, transform_indices = @transform_8, window_bounds = array<i64: 128, 128>}, {transform_indices = @transform_9, window_bounds = array<i64: 1, 1, 128>}, {transform_indices = @transform_10, window_bounds = array<i64: 1, 1, 128>}, {transform_indices = @transform_11, window_bounds = array<i64: 1, 288, 128>}]} {
    %0 = tpu.iota {dimensions = array<i32: 0>} : vector<288x1xi32>
    %c18_i32 = arith.constant 18 : i32
    %c0_i32 = arith.constant 0 : i32
    %1 = arith.cmpi eq, %c18_i32, %c0_i32 : i32
    %c1_i32 = arith.constant 1 : i32
    %2 = arith.select %1, %c1_i32, %c18_i32 : i32
    %3 = vector.broadcast %2 : i32 to vector<288x1xi32>
    %4 = arith.remsi %0, %3 : vector<288x1xi32>
    %c0_i32_0 = arith.constant 0 : i32
    %5 = vector.broadcast %c0_i32_0 : i32 to vector<288x1xi32>
    %6 = arith.cmpi ne, %4, %5 : vector<288x1xi32>
    %c0_i32_1 = arith.constant 0 : i32
    %7 = vector.broadcast %c0_i32_1 : i32 to vector<288x1xi32>
    %8 = arith.cmpi slt, %4, %7 : vector<288x1xi32>
    %c0_i32_2 = arith.constant 0 : i32
    %9 = arith.cmpi slt, %2, %c0_i32_2 : i32
    %10 = vector.broadcast %9 : i1 to vector<288x1xi1>
    %11 = vector.broadcast %10 : vector<288x1xi1> to vector<288x1xi1>
    %12 = arith.xori %8, %11 : vector<288x1xi1>
    %13 = arith.andi %12, %6 : vector<288x1xi1>
    %14 = vector.broadcast %2 : i32 to vector<288x1xi32>
    %15 = arith.addi %4, %14 : vector<288x1xi32>
    %16 = arith.select %13, %15, %4 : vector<288x1xi1>, vector<288x1xi32>
    %c16_i32 = arith.constant 16 : i32
    %17 = vector.broadcast %c16_i32 : i32 to vector<288x1xi32>
    %18 = arith.cmpi slt, %16, %17 : vector<288x1xi32>
    %19 = arith.extui %18 : vector<288x1xi1> to vector<288x1xi32>
    %20 = arith.sitofp %19 : vector<288x1xi32> to vector<288x1xf32>
    %cst = arith.constant 0.000000e+00 : bf16
    %21 = vector.broadcast %cst : bf16 to vector<19x128xbf16>
    %c0 = arith.constant 0 : index
    %c0_3 = arith.constant 0 : index
    %22 = vector.load %arg13[%c0, %c0_3] : memref<328x128xbf16, #tpu.memory_space<vmem>>, vector<19x128xbf16>
    tpu.vector_store %arg13[%c0, %c0_3], %21 {strides = array<i32>} : memref<328x128xbf16, #tpu.memory_space<vmem>>, vector<19x128xbf16>,
    %cst_4 = arith.constant 0.000000e+00 : bf16
    %23 = vector.broadcast %cst_4 : bf16 to vector<21x128xbf16>
    %c307 = arith.constant 307 : index
    %c0_5 = arith.constant 0 : index
    %24 = vector.load %arg13[%c307, %c0_5] : memref<328x128xbf16, #tpu.memory_space<vmem>>, vector<21x128xbf16>
    tpu.vector_store %arg13[%c307, %c0_5], %23 {strides = array<i32>} : memref<328x128xbf16, #tpu.memory_space<vmem>>, vector<21x128xbf16>,
    %c0_6 = arith.constant 0 : index
    %c0_7 = arith.constant 0 : index
    %c0_8 = arith.constant 0 : index
    %25 = vector.load %arg1[%c0_6, %c0_7, %c0_8] : memref<1x328x128xbf16, #tpu.memory_space<vmem>>, vector<1x288x128xbf16>
    %26 = vector.shape_cast %25 : vector<1x288x128xbf16> to vector<288x128xbf16>
    %c0_9 = arith.constant 0 : index
    %c0_10 = arith.constant 0 : index
    %27 = vector.load %arg2[%c0_9, %c0_10] : memref<1152x128xbf16, #tpu.memory_space<vmem>>, vector<128x128xbf16>
    %cst_11 = arith.constant dense<0.000000e+00> : vector<288x128xf32>
    %28 = tpu.matmul %26, %27, %cst_11 {dimension_numbers = #tpu.dot_dimension_numbers<[1], [0], [0], [1], [0, 0, 1, 1], [], []>} : vector<288x128xbf16>, vector<128x128xbf16>, vector<288x128xf32> -> vector<288x128xf32>
    %c0_12 = arith.constant 0 : index
    %c0_13 = arith.constant 0 : index
    %29 = vector.load %arg14[%c0_12, %c0_13] : memref<288x128xf32, #tpu.memory_space<vmem>>, vector<288x128xf32>
    tpu.vector_store %arg14[%c0_12, %c0_13], %28 {strides = array<i32>} : memref<288x128xf32, #tpu.memory_space<vmem>>, vector<288x128xf32>,
    %c0_14 = arith.constant 0 : index
    %c1 = arith.constant 1 : index
    %c0_15 = arith.constant 0 : index
    %30 = vector.load %arg1[%c0_14, %c1, %c0_15] : memref<1x328x128xbf16, #tpu.memory_space<vmem>>, vector<1x288x128xbf16>
    %31 = vector.shape_cast %30 : vector<1x288x128xbf16> to vector<288x128xbf16>
    %c128 = arith.constant 128 : index
    %c0_16 = arith.constant 0 : index
    %32 = vector.load %arg2[%c128, %c0_16] : memref<1152x128xbf16, #tpu.memory_space<vmem>>, vector<128x128xbf16>
    %cst_17 = arith.constant dense<0.000000e+00> : vector<288x128xf32>
    %33 = tpu.matmul %31, %32, %cst_17 {dimension_numbers = #tpu.dot_dimension_numbers<[1], [0], [0], [1], [0, 0, 1, 1], [], []>} : vector<288x128xbf16>, vector<128x128xbf16>, vector<288x128xf32> -> vector<288x128xf32>
    %c0_18 = arith.constant 0 : index
    %c0_19 = arith.constant 0 : index
    %34 = vector.load %arg14[%c0_18, %c0_19] : memref<288x128xf32, #tpu.memory_space<vmem>>, vector<288x128xf32>
    %35 = arith.addf %34, %33 : vector<288x128xf32>
    %c0_20 = arith.constant 0 : index
    %c0_21 = arith.constant 0 : index
    %36 = vector.load %arg14[%c0_20, %c0_21] : memref<288x128xf32, #tpu.memory_space<vmem>>, vector<288x128xf32>
    tpu.vector_store %arg14[%c0_20, %c0_21], %35 {strides = array<i32>} : memref<288x128xf32, #tpu.memory_space<vmem>>, vector<288x128xf32>,
    %c0_22 = arith.constant 0 : index
    %c2 = arith.constant 2 : index
    %c0_23 = arith.constant 0 : index
    %37 = vector.load %arg1[%c0_22, %c2, %c0_23] : memref<1x328x128xbf16, #tpu.memory_space<vmem>>, vector<1x288x128xbf16>
    %38 = vector.shape_cast %37 : vector<1x288x128xbf16> to vector<288x128xbf16>
    %c256 = arith.constant 256 : index
    %c0_24 = arith.constant 0 : index
    %39 = vector.load %arg2[%c256, %c0_24] : memref<1152x128xbf16, #tpu.memory_space<vmem>>, vector<128x128xbf16>
    %cst_25 = arith.constant dense<0.000000e+00> : vector<288x128xf32>
    %40 = tpu.matmul %38, %39, %cst_25 {dimension_numbers = #tpu.dot_dimension_numbers<[1], [0], [0], [1], [0, 0, 1, 1], [], []>} : vector<288x128xbf16>, vector<128x128xbf16>, vector<288x128xf32> -> vector<288x128xf32>
    %c0_26 = arith.constant 0 : index
    %c0_27 = arith.constant 0 : index
    %41 = vector.load %arg14[%c0_26, %c0_27] : memref<288x128xf32, #tpu.memory_space<vmem>>, vector<288x128xf32>
    %42 = arith.addf %41, %40 : vector<288x128xf32>
    %c0_28 = arith.constant 0 : index
    %c0_29 = arith.constant 0 : index
    %43 = vector.load %arg14[%c0_28, %c0_29] : memref<288x128xf32, #tpu.memory_space<vmem>>, vector<288x128xf32>
    tpu.vector_store %arg14[%c0_28, %c0_29], %42 {strides = array<i32>} : memref<288x128xf32, #tpu.memory_space<vmem>>, vector<288x128xf32>,
    %c0_30 = arith.constant 0 : index
    %c18 = arith.constant 18 : index
    %c0_31 = arith.constant 0 : index
    %44 = vector.load %arg1[%c0_30, %c18, %c0_31] : memref<1x328x128xbf16, #tpu.memory_space<vmem>>, vector<1x288x128xbf16>
    %45 = vector.shape_cast %44 : vector<1x288x128xbf16> to vector<288x128xbf16>
    %c384 = arith.constant 384 : index
    %c0_32 = arith.constant 0 : index
    %46 = vector.load %arg2[%c384, %c0_32] : memref<1152x128xbf16, #tpu.memory_space<vmem>>, vector<128x128xbf16>
    %cst_33 = arith.constant dense<0.000000e+00> : vector<288x128xf32>
    %47 = tpu.matmul %45, %46, %cst_33 {dimension_numbers = #tpu.dot_dimension_numbers<[1], [0], [0], [1], [0, 0, 1, 1], [], []>} : vector<288x128xbf16>, vector<128x128xbf16>, vector<288x128xf32> -> vector<288x128xf32>
    %c0_34 = arith.constant 0 : index
    %c0_35 = arith.constant 0 : index
    %48 = vector.load %arg14[%c0_34, %c0_35] : memref<288x128xf32, #tpu.memory_space<vmem>>, vector<288x128xf32>
    %49 = arith.addf %48, %47 : vector<288x128xf32>
    %c0_36 = arith.constant 0 : index
    %c0_37 = arith.constant 0 : index
    %50 = vector.load %arg14[%c0_36, %c0_37] : memref<288x128xf32, #tpu.memory_space<vmem>>, vector<288x128xf32>
    tpu.vector_store %arg14[%c0_36, %c0_37], %49 {strides = array<i32>} : memref<288x128xf32, #tpu.memory_space<vmem>>, vector<288x128xf32>,
    %c0_38 = arith.constant 0 : index
    %c19 = arith.constant 19 : index
    %c0_39 = arith.constant 0 : index
    %51 = vector.load %arg1[%c0_38, %c19, %c0_39] : memref<1x328x128xbf16, #tpu.memory_space<vmem>>, vector<1x288x128xbf16>
    %52 = vector.shape_cast %51 : vector<1x288x128xbf16> to vector<288x128xbf16>
    %c512 = arith.constant 512 : index
    %c0_40 = arith.constant 0 : index
    %53 = vector.load %arg2[%c512, %c0_40] : memref<1152x128xbf16, #tpu.memory_space<vmem>>, vector<128x128xbf16>
    %cst_41 = arith.constant dense<0.000000e+00> : vector<288x128xf32>
    %54 = tpu.matmul %52, %53, %cst_41 {dimension_numbers = #tpu.dot_dimension_numbers<[1], [0], [0], [1], [0, 0, 1, 1], [], []>} : vector<288x128xbf16>, vector<128x128xbf16>, vector<288x128xf32> -> vector<288x128xf32>
    %c0_42 = arith.constant 0 : index
    %c0_43 = arith.constant 0 : index
    %55 = vector.load %arg14[%c0_42, %c0_43] : memref<288x128xf32, #tpu.memory_space<vmem>>, vector<288x128xf32>
    %56 = arith.addf %55, %54 : vector<288x128xf32>
    %c0_44 = arith.constant 0 : index
    %c0_45 = arith.constant 0 : index
    %57 = vector.load %arg14[%c0_44, %c0_45] : memref<288x128xf32, #tpu.memory_space<vmem>>, vector<288x128xf32>
    tpu.vector_store %arg14[%c0_44, %c0_45], %56 {strides = array<i32>} : memref<288x128xf32, #tpu.memory_space<vmem>>, vector<288x128xf32>,
    %c0_46 = arith.constant 0 : index
    %c20 = arith.constant 20 : index
    %c0_47 = arith.constant 0 : index
    %58 = vector.load %arg1[%c0_46, %c20, %c0_47] : memref<1x328x128xbf16, #tpu.memory_space<vmem>>, vector<1x288x128xbf16>
    %59 = vector.shape_cast %58 : vector<1x288x128xbf16> to vector<288x128xbf16>
    %c640 = arith.constant 640 : index
    %c0_48 = arith.constant 0 : index
    %60 = vector.load %arg2[%c640, %c0_48] : memref<1152x128xbf16, #tpu.memory_space<vmem>>, vector<128x128xbf16>
    %cst_49 = arith.constant dense<0.000000e+00> : vector<288x128xf32>
    %61 = tpu.matmul %59, %60, %cst_49 {dimension_numbers = #tpu.dot_dimension_numbers<[1], [0], [0], [1], [0, 0, 1, 1], [], []>} : vector<288x128xbf16>, vector<128x128xbf16>, vector<288x128xf32> -> vector<288x128xf32>
    %c0_50 = arith.constant 0 : index
    %c0_51 = arith.constant 0 : index
    %62 = vector.load %arg14[%c0_50, %c0_51] : memref<288x128xf32, #tpu.memory_space<vmem>>, vector<288x128xf32>
    %63 = arith.addf %62, %61 : vector<288x128xf32>
    %c0_52 = arith.constant 0 : index
    %c0_53 = arith.constant 0 : index
    %64 = vector.load %arg14[%c0_52, %c0_53] : memref<288x128xf32, #tpu.memory_space<vmem>>, vector<288x128xf32>
    tpu.vector_store %arg14[%c0_52, %c0_53], %63 {strides = array<i32>} : memref<288x128xf32, #tpu.memory_space<vmem>>, vector<288x128xf32>,
    %c0_54 = arith.constant 0 : index
    %c36 = arith.constant 36 : index
    %c0_55 = arith.constant 0 : index
    %65 = vector.load %arg1[%c0_54, %c36, %c0_55] : memref<1x328x128xbf16, #tpu.memory_space<vmem>>, vector<1x288x128xbf16>
    %66 = vector.shape_cast %65 : vector<1x288x128xbf16> to vector<288x128xbf16>
    %c768 = arith.constant 768 : index
    %c0_56 = arith.constant 0 : index
    %67 = vector.load %arg2[%c768, %c0_56] : memref<1152x128xbf16, #tpu.memory_space<vmem>>, vector<128x128xbf16>
    %cst_57 = arith.constant dense<0.000000e+00> : vector<288x128xf32>
    %68 = tpu.matmul %66, %67, %cst_57 {dimension_numbers = #tpu.dot_dimension_numbers<[1], [0], [0], [1], [0, 0, 1, 1], [], []>} : vector<288x128xbf16>, vector<128x128xbf16>, vector<288x128xf32> -> vector<288x128xf32>
    %c0_58 = arith.constant 0 : index
    %c0_59 = arith.constant 0 : index
    %69 = vector.load %arg14[%c0_58, %c0_59] : memref<288x128xf32, #tpu.memory_space<vmem>>, vector<288x128xf32>
    %70 = arith.addf %69, %68 : vector<288x128xf32>
    %c0_60 = arith.constant 0 : index
    %c0_61 = arith.constant 0 : index
    %71 = vector.load %arg14[%c0_60, %c0_61] : memref<288x128xf32, #tpu.memory_space<vmem>>, vector<288x128xf32>
    tpu.vector_store %arg14[%c0_60, %c0_61], %70 {strides = array<i32>} : memref<288x128xf32, #tpu.memory_space<vmem>>, vector<288x128xf32>,
    %c0_62 = arith.constant 0 : index
    %c37 = arith.constant 37 : index
    %c0_63 = arith.constant 0 : index
    %72 = vector.load %arg1[%c0_62, %c37, %c0_63] : memref<1x328x128xbf16, #tpu.memory_space<vmem>>, vector<1x288x128xbf16>
    %73 = vector.shape_cast %72 : vector<1x288x128xbf16> to vector<288x128xbf16>
    %c896 = arith.constant 896 : index
    %c0_64 = arith.constant 0 : index
    %74 = vector.load %arg2[%c896, %c0_64] : memref<1152x128xbf16, #tpu.memory_space<vmem>>, vector<128x128xbf16>
    %cst_65 = arith.constant dense<0.000000e+00> : vector<288x128xf32>
    %75 = tpu.matmul %73, %74, %cst_65 {dimension_numbers = #tpu.dot_dimension_numbers<[1], [0], [0], [1], [0, 0, 1, 1], [], []>} : vector<288x128xbf16>, vector<128x128xbf16>, vector<288x128xf32> -> vector<288x128xf32>
    %c0_66 = arith.constant 0 : index
    %c0_67 = arith.constant 0 : index
    %76 = vector.load %arg14[%c0_66, %c0_67] : memref<288x128xf32, #tpu.memory_space<vmem>>, vector<288x128xf32>
    %77 = arith.addf %76, %75 : vector<288x128xf32>
    %c0_68 = arith.constant 0 : index
    %c0_69 = arith.constant 0 : index
    %78 = vector.load %arg14[%c0_68, %c0_69] : memref<288x128xf32, #tpu.memory_space<vmem>>, vector<288x128xf32>
    tpu.vector_store %arg14[%c0_68, %c0_69], %77 {strides = array<i32>} : memref<288x128xf32, #tpu.memory_space<vmem>>, vector<288x128xf32>,
    %c0_70 = arith.constant 0 : index
    %c38 = arith.constant 38 : index
    %c0_71 = arith.constant 0 : index
    %79 = vector.load %arg1[%c0_70, %c38, %c0_71] : memref<1x328x128xbf16, #tpu.memory_space<vmem>>, vector<1x288x128xbf16>
    %80 = vector.shape_cast %79 : vector<1x288x128xbf16> to vector<288x128xbf16>
    %c1024 = arith.constant 1024 : index
    %c0_72 = arith.constant 0 : index
    %81 = vector.load %arg2[%c1024, %c0_72] : memref<1152x128xbf16, #tpu.memory_space<vmem>>, vector<128x128xbf16>
    %cst_73 = arith.constant dense<0.000000e+00> : vector<288x128xf32>
    %82 = tpu.matmul %80, %81, %cst_73 {dimension_numbers = #tpu.dot_dimension_numbers<[1], [0], [0], [1], [0, 0, 1, 1], [], []>} : vector<288x128xbf16>, vector<128x128xbf16>, vector<288x128xf32> -> vector<288x128xf32>
    %c0_74 = arith.constant 0 : index
    %c0_75 = arith.constant 0 : index
    %83 = vector.load %arg14[%c0_74, %c0_75] : memref<288x128xf32, #tpu.memory_space<vmem>>, vector<288x128xf32>
    %84 = arith.addf %83, %82 : vector<288x128xf32>
    %c0_76 = arith.constant 0 : index
    %c0_77 = arith.constant 0 : index
    %85 = vector.load %arg14[%c0_76, %c0_77] : memref<288x128xf32, #tpu.memory_space<vmem>>, vector<288x128xf32>
    tpu.vector_store %arg14[%c0_76, %c0_77], %84 {strides = array<i32>} : memref<288x128xf32, #tpu.memory_space<vmem>>, vector<288x128xf32>,
    %c0_78 = arith.constant 0 : index
    %c0_79 = arith.constant 0 : index
    %86 = vector.load %arg14[%c0_78, %c0_79] : memref<288x128xf32, #tpu.memory_space<vmem>>, vector<288x128xf32>
    %87 = vector.broadcast %20 : vector<288x1xf32> to vector<288x128xf32>
    %88 = arith.mulf %86, %87 : vector<288x128xf32>
    %cst_80 = arith.constant dense<0.000000e+00> : vector<128xf32>
    %89 = vector.multi_reduction <add>, %88, %cst_80 [0] : vector<288x128xf32> to vector<128xf32>
    %90 = vector.shape_cast %89 : vector<128xf32> to vector<1x128xf32>
    %91 = arith.mulf %88, %88 : vector<288x128xf32>
    %cst_81 = arith.constant dense<0.000000e+00> : vector<128xf32>
    %92 = vector.multi_reduction <add>, %91, %cst_81 [0] : vector<288x128xf32> to vector<128xf32>
    %93 = vector.shape_cast %92 : vector<128xf32> to vector<1x128xf32>
    %c0_82 = arith.constant 0 : index
    %c0_83 = arith.constant 0 : index
    %94 = vector.load %arg3[%c0_82, %c0_83] : memref<1x128xf32, #tpu.memory_space<vmem>>, vector<1x128xf32>
    %cst_84 = arith.constant 2.560000e+02 : f32
    %95 = vector.broadcast %cst_84 : f32 to vector<1x128xf32>
    %96 = arith.mulf %95, %94 : vector<1x128xf32>
    %97 = arith.addf %90, %96 : vector<1x128xf32>
    %cst_85 = arith.constant 2.000000e+00 : f32
    %98 = vector.broadcast %cst_85 : f32 to vector<1x128xf32>
    %99 = arith.mulf %98, %94 : vector<1x128xf32>
    %100 = arith.mulf %99, %90 : vector<1x128xf32>
    %101 = arith.addf %93, %100 : vector<1x128xf32>
    %102 = arith.mulf %94, %94 : vector<1x128xf32>
    %cst_86 = arith.constant 2.560000e+02 : f32
    %103 = vector.broadcast %cst_86 : f32 to vector<1x128xf32>
    %104 = arith.mulf %103, %102 : vector<1x128xf32>
    %105 = arith.addf %101, %104 : vector<1x128xf32>
    %c0_87 = arith.constant 0 : index
    %c0_88 = arith.constant 0 : index
    %106 = vector.load %arg4[%c0_87, %c0_88] : memref<128x128xf32, #tpu.memory_space<vmem>>, vector<128x128xf32>
    %cst_89 = arith.constant dense<0.000000e+00> : vector<1x128xf32>
    %107 = tpu.matmul %97, %106, %cst_89 {dimension_numbers = #tpu.dot_dimension_numbers<[1], [0], [0], [1], [0, 0, 1, 1], [], []>} : vector<1x128xf32>, vector<128x128xf32>, vector<1x128xf32> -> vector<1x128xf32>
    %c0_90 = arith.constant 0 : index
    %c0_91 = arith.constant 0 : index
    %108 = vector.load %arg4[%c0_90, %c0_91] : memref<128x128xf32, #tpu.memory_space<vmem>>, vector<128x128xf32>
    %cst_92 = arith.constant dense<0.000000e+00> : vector<1x128xf32>
    %109 = tpu.matmul %105, %108, %cst_92 {dimension_numbers = #tpu.dot_dimension_numbers<[1], [0], [0], [1], [0, 0, 1, 1], [], []>} : vector<1x128xf32>, vector<128x128xf32>, vector<1x128xf32> -> vector<1x128xf32>
    %cst_93 = arith.constant 0.001953125 : f32
    %110 = vector.broadcast %cst_93 : f32 to vector<1x128xf32>
    %111 = arith.mulf %107, %110 : vector<1x128xf32>
    %cst_94 = arith.constant 0.001953125 : f32
    %112 = vector.broadcast %cst_94 : f32 to vector<1x128xf32>
    %113 = arith.mulf %109, %112 : vector<1x128xf32>
    %114 = arith.mulf %111, %111 : vector<1x128xf32>
    %115 = arith.subf %113, %114 : vector<1x128xf32>
    %cst_95 = arith.constant 0.000000e+00 : f32
    %116 = vector.broadcast %cst_95 : f32 to vector<1x128xf32>
    %117 = arith.maximumf %115, %116 : vector<1x128xf32>
    %cst_96 = arith.constant 9.99999974E-6 : f32
    %118 = vector.broadcast %cst_96 : f32 to vector<1x128xf32>
    %119 = arith.addf %117, %118 : vector<1x128xf32>
    %120 = math.rsqrt %119 : vector<1x128xf32>
    %c0_97 = arith.constant 0 : index
    %c0_98 = arith.constant 0 : index
    %c0_99 = arith.constant 0 : index
    %121 = vector.load %arg5[%c0_97, %c0_98, %c0_99] : memref<1x1x128xf32, #tpu.memory_space<vmem>>, vector<1x1x128xf32>
    %122 = vector.shape_cast %121 : vector<1x1x128xf32> to vector<1x128xf32>
    %123 = arith.mulf %120, %122 : vector<1x128xf32>
    %124 = arith.subf %94, %111 : vector<1x128xf32>
    %125 = arith.mulf %124, %123 : vector<1x128xf32>
    %c0_100 = arith.constant 0 : index
    %c0_101 = arith.constant 0 : index
    %c0_102 = arith.constant 0 : index
    %126 = vector.load %arg6[%c0_100, %c0_101, %c0_102] : memref<1x1x128xf32, #tpu.memory_space<vmem>>, vector<1x1x128xf32>
    %127 = vector.shape_cast %126 : vector<1x1x128xf32> to vector<1x128xf32>
    %128 = arith.addf %125, %127 : vector<1x128xf32>
    %129 = vector.broadcast %123 : vector<1x128xf32> to vector<288x128xf32>
    %130 = arith.mulf %86, %129 : vector<288x128xf32>
    %131 = vector.broadcast %128 : vector<1x128xf32> to vector<288x128xf32>
    %132 = arith.addf %130, %131 : vector<288x128xf32>
    %cst_103 = arith.constant 5.000000e-01 : f32
    %133 = vector.broadcast %cst_103 : f32 to vector<288x128xf32>
    %134 = arith.mulf %133, %132 : vector<288x128xf32>
    %135 = math.tanh %134 : vector<288x128xf32>
    %cst_104 = arith.constant 5.000000e-01 : f32
    %136 = vector.broadcast %cst_104 : f32 to vector<288x128xf32>
    %137 = arith.mulf %136, %135 : vector<288x128xf32>
    %cst_105 = arith.constant 5.000000e-01 : f32
    %138 = vector.broadcast %cst_105 : f32 to vector<288x128xf32>
    %139 = arith.addf %137, %138 : vector<288x128xf32>
    %140 = arith.mulf %132, %139 : vector<288x128xf32>
    %141 = vector.broadcast %20 : vector<288x1xf32> to vector<288x128xf32>
    %142 = arith.mulf %140, %141 : vector<288x128xf32>
    %143 = arith.truncf %142 : vector<288x128xf32> to vector<288x128xbf16>
    %c19_106 = arith.constant 19 : index
    %c0_107 = arith.constant 0 : index
    %144 = vector.load %arg13[%c19_106, %c0_107] : memref<328x128xbf16, #tpu.memory_space<vmem>>, vector<288x128xbf16>
    tpu.vector_store %arg13[%c19_106, %c0_107], %143 {strides = array<i32>} : memref<328x128xbf16, #tpu.memory_space<vmem>>, vector<288x128xbf16>,
    %c0_108 = arith.constant 0 : index
    %c0_109 = arith.constant 0 : index
    %145 = vector.load %arg13[%c0_108, %c0_109] : memref<328x128xbf16, #tpu.memory_space<vmem>>, vector<288x128xbf16>
    %c0_110 = arith.constant 0 : index
    %c0_111 = arith.constant 0 : index
    %146 = vector.load %arg7[%c0_110, %c0_111] : memref<1152x128xbf16, #tpu.memory_space<vmem>>, vector<128x128xbf16>
    %cst_112 = arith.constant dense<0.000000e+00> : vector<288x128xf32>
    %147 = tpu.matmul %145, %146, %cst_112 {dimension_numbers = #tpu.dot_dimension_numbers<[1], [0], [0], [1], [0, 0, 1, 1], [], []>} : vector<288x128xbf16>, vector<128x128xbf16>, vector<288x128xf32> -> vector<288x128xf32>
    %c0_113 = arith.constant 0 : index
    %c0_114 = arith.constant 0 : index
    %148 = vector.load %arg14[%c0_113, %c0_114] : memref<288x128xf32, #tpu.memory_space<vmem>>, vector<288x128xf32>
    tpu.vector_store %arg14[%c0_113, %c0_114], %147 {strides = array<i32>} : memref<288x128xf32, #tpu.memory_space<vmem>>, vector<288x128xf32>,
    %c1_115 = arith.constant 1 : index
    %c0_116 = arith.constant 0 : index
    %149 = vector.load %arg13[%c1_115, %c0_116] : memref<328x128xbf16, #tpu.memory_space<vmem>>, vector<288x128xbf16>
    %c128_117 = arith.constant 128 : index
    %c0_118 = arith.constant 0 : index
    %150 = vector.load %arg7[%c128_117, %c0_118] : memref<1152x128xbf16, #tpu.memory_space<vmem>>, vector<128x128xbf16>
    %cst_119 = arith.constant dense<0.000000e+00> : vector<288x128xf32>
    %151 = tpu.matmul %149, %150, %cst_119 {dimension_numbers = #tpu.dot_dimension_numbers<[1], [0], [0], [1], [0, 0, 1, 1], [], []>} : vector<288x128xbf16>, vector<128x128xbf16>, vector<288x128xf32> -> vector<288x128xf32>
    %c0_120 = arith.constant 0 : index
    %c0_121 = arith.constant 0 : index
    %152 = vector.load %arg14[%c0_120, %c0_121] : memref<288x128xf32, #tpu.memory_space<vmem>>, vector<288x128xf32>
    %153 = arith.addf %152, %151 : vector<288x128xf32>
    %c0_122 = arith.constant 0 : index
    %c0_123 = arith.constant 0 : index
    %154 = vector.load %arg14[%c0_122, %c0_123] : memref<288x128xf32, #tpu.memory_space<vmem>>, vector<288x128xf32>
    tpu.vector_store %arg14[%c0_122, %c0_123], %153 {strides = array<i32>} : memref<288x128xf32, #tpu.memory_space<vmem>>, vector<288x128xf32>,
    %c2_124 = arith.constant 2 : index
    %c0_125 = arith.constant 0 : index
    %155 = vector.load %arg13[%c2_124, %c0_125] : memref<328x128xbf16, #tpu.memory_space<vmem>>, vector<288x128xbf16>
    %c256_126 = arith.constant 256 : index
    %c0_127 = arith.constant 0 : index
    %156 = vector.load %arg7[%c256_126, %c0_127] : memref<1152x128xbf16, #tpu.memory_space<vmem>>, vector<128x128xbf16>
    %cst_128 = arith.constant dense<0.000000e+00> : vector<288x128xf32>
    %157 = tpu.matmul %155, %156, %cst_128 {dimension_numbers = #tpu.dot_dimension_numbers<[1], [0], [0], [1], [0, 0, 1, 1], [], []>} : vector<288x128xbf16>, vector<128x128xbf16>, vector<288x128xf32> -> vector<288x128xf32>
    %c0_129 = arith.constant 0 : index
    %c0_130 = arith.constant 0 : index
    %158 = vector.load %arg14[%c0_129, %c0_130] : memref<288x128xf32, #tpu.memory_space<vmem>>, vector<288x128xf32>
    %159 = arith.addf %158, %157 : vector<288x128xf32>
    %c0_131 = arith.constant 0 : index
    %c0_132 = arith.constant 0 : index
    %160 = vector.load %arg14[%c0_131, %c0_132] : memref<288x128xf32, #tpu.memory_space<vmem>>, vector<288x128xf32>
    tpu.vector_store %arg14[%c0_131, %c0_132], %159 {strides = array<i32>} : memref<288x128xf32, #tpu.memory_space<vmem>>, vector<288x128xf32>,
    %c18_133 = arith.constant 18 : index
    %c0_134 = arith.constant 0 : index
    %161 = vector.load %arg13[%c18_133, %c0_134] : memref<328x128xbf16, #tpu.memory_space<vmem>>, vector<288x128xbf16>
    %c384_135 = arith.constant 384 : index
    %c0_136 = arith.constant 0 : index
    %162 = vector.load %arg7[%c384_135, %c0_136] : memref<1152x128xbf16, #tpu.memory_space<vmem>>, vector<128x128xbf16>
    %cst_137 = arith.constant dense<0.000000e+00> : vector<288x128xf32>
    %163 = tpu.matmul %161, %162, %cst_137 {dimension_numbers = #tpu.dot_dimension_numbers<[1], [0], [0], [1], [0, 0, 1, 1], [], []>} : vector<288x128xbf16>, vector<128x128xbf16>, vector<288x128xf32> -> vector<288x128xf32>
    %c0_138 = arith.constant 0 : index
    %c0_139 = arith.constant 0 : index
    %164 = vector.load %arg14[%c0_138, %c0_139] : memref<288x128xf32, #tpu.memory_space<vmem>>, vector<288x128xf32>
    %165 = arith.addf %164, %163 : vector<288x128xf32>
    %c0_140 = arith.constant 0 : index
    %c0_141 = arith.constant 0 : index
    %166 = vector.load %arg14[%c0_140, %c0_141] : memref<288x128xf32, #tpu.memory_space<vmem>>, vector<288x128xf32>
    tpu.vector_store %arg14[%c0_140, %c0_141], %165 {strides = array<i32>} : memref<288x128xf32, #tpu.memory_space<vmem>>, vector<288x128xf32>,
    %c19_142 = arith.constant 19 : index
    %c0_143 = arith.constant 0 : index
    %167 = vector.load %arg13[%c19_142, %c0_143] : memref<328x128xbf16, #tpu.memory_space<vmem>>, vector<288x128xbf16>
    %c512_144 = arith.constant 512 : index
    %c0_145 = arith.constant 0 : index
    %168 = vector.load %arg7[%c512_144, %c0_145] : memref<1152x128xbf16, #tpu.memory_space<vmem>>, vector<128x128xbf16>
    %cst_146 = arith.constant dense<0.000000e+00> : vector<288x128xf32>
    %169 = tpu.matmul %167, %168, %cst_146 {dimension_numbers = #tpu.dot_dimension_numbers<[1], [0], [0], [1], [0, 0, 1, 1], [], []>} : vector<288x128xbf16>, vector<128x128xbf16>, vector<288x128xf32> -> vector<288x128xf32>
    %c0_147 = arith.constant 0 : index
    %c0_148 = arith.constant 0 : index
    %170 = vector.load %arg14[%c0_147, %c0_148] : memref<288x128xf32, #tpu.memory_space<vmem>>, vector<288x128xf32>
    %171 = arith.addf %170, %169 : vector<288x128xf32>
    %c0_149 = arith.constant 0 : index
    %c0_150 = arith.constant 0 : index
    %172 = vector.load %arg14[%c0_149, %c0_150] : memref<288x128xf32, #tpu.memory_space<vmem>>, vector<288x128xf32>
    tpu.vector_store %arg14[%c0_149, %c0_150], %171 {strides = array<i32>} : memref<288x128xf32, #tpu.memory_space<vmem>>, vector<288x128xf32>,
    %c20_151 = arith.constant 20 : index
    %c0_152 = arith.constant 0 : index
    %173 = vector.load %arg13[%c20_151, %c0_152] : memref<328x128xbf16, #tpu.memory_space<vmem>>, vector<288x128xbf16>
    %c640_153 = arith.constant 640 : index
    %c0_154 = arith.constant 0 : index
    %174 = vector.load %arg7[%c640_153, %c0_154] : memref<1152x128xbf16, #tpu.memory_space<vmem>>, vector<128x128xbf16>
    %cst_155 = arith.constant dense<0.000000e+00> : vector<288x128xf32>
    %175 = tpu.matmul %173, %174, %cst_155 {dimension_numbers = #tpu.dot_dimension_numbers<[1], [0], [0], [1], [0, 0, 1, 1], [], []>} : vector<288x128xbf16>, vector<128x128xbf16>, vector<288x128xf32> -> vector<288x128xf32>
    %c0_156 = arith.constant 0 : index
    %c0_157 = arith.constant 0 : index
    %176 = vector.load %arg14[%c0_156, %c0_157] : memref<288x128xf32, #tpu.memory_space<vmem>>, vector<288x128xf32>
    %177 = arith.addf %176, %175 : vector<288x128xf32>
    %c0_158 = arith.constant 0 : index
    %c0_159 = arith.constant 0 : index
    %178 = vector.load %arg14[%c0_158, %c0_159] : memref<288x128xf32, #tpu.memory_space<vmem>>, vector<288x128xf32>
    tpu.vector_store %arg14[%c0_158, %c0_159], %177 {strides = array<i32>} : memref<288x128xf32, #tpu.memory_space<vmem>>, vector<288x128xf32>,
    %c36_160 = arith.constant 36 : index
    %c0_161 = arith.constant 0 : index
    %179 = vector.load %arg13[%c36_160, %c0_161] : memref<328x128xbf16, #tpu.memory_space<vmem>>, vector<288x128xbf16>
    %c768_162 = arith.constant 768 : index
    %c0_163 = arith.constant 0 : index
    %180 = vector.load %arg7[%c768_162, %c0_163] : memref<1152x128xbf16, #tpu.memory_space<vmem>>, vector<128x128xbf16>
    %cst_164 = arith.constant dense<0.000000e+00> : vector<288x128xf32>
    %181 = tpu.matmul %179, %180, %cst_164 {dimension_numbers = #tpu.dot_dimension_numbers<[1], [0], [0], [1], [0, 0, 1, 1], [], []>} : vector<288x128xbf16>, vector<128x128xbf16>, vector<288x128xf32> -> vector<288x128xf32>
    %c0_165 = arith.constant 0 : index
    %c0_166 = arith.constant 0 : index
    %182 = vector.load %arg14[%c0_165, %c0_166] : memref<288x128xf32, #tpu.memory_space<vmem>>, vector<288x128xf32>
    %183 = arith.addf %182, %181 : vector<288x128xf32>
    %c0_167 = arith.constant 0 : index
    %c0_168 = arith.constant 0 : index
    %184 = vector.load %arg14[%c0_167, %c0_168] : memref<288x128xf32, #tpu.memory_space<vmem>>, vector<288x128xf32>
    tpu.vector_store %arg14[%c0_167, %c0_168], %183 {strides = array<i32>} : memref<288x128xf32, #tpu.memory_space<vmem>>, vector<288x128xf32>,
    %c37_169 = arith.constant 37 : index
    %c0_170 = arith.constant 0 : index
    %185 = vector.load %arg13[%c37_169, %c0_170] : memref<328x128xbf16, #tpu.memory_space<vmem>>, vector<288x128xbf16>
    %c896_171 = arith.constant 896 : index
    %c0_172 = arith.constant 0 : index
    %186 = vector.load %arg7[%c896_171, %c0_172] : memref<1152x128xbf16, #tpu.memory_space<vmem>>, vector<128x128xbf16>
    %cst_173 = arith.constant dense<0.000000e+00> : vector<288x128xf32>
    %187 = tpu.matmul %185, %186, %cst_173 {dimension_numbers = #tpu.dot_dimension_numbers<[1], [0], [0], [1], [0, 0, 1, 1], [], []>} : vector<288x128xbf16>, vector<128x128xbf16>, vector<288x128xf32> -> vector<288x128xf32>
    %c0_174 = arith.constant 0 : index
    %c0_175 = arith.constant 0 : index
    %188 = vector.load %arg14[%c0_174, %c0_175] : memref<288x128xf32, #tpu.memory_space<vmem>>, vector<288x128xf32>
    %189 = arith.addf %188, %187 : vector<288x128xf32>
    %c0_176 = arith.constant 0 : index
    %c0_177 = arith.constant 0 : index
    %190 = vector.load %arg14[%c0_176, %c0_177] : memref<288x128xf32, #tpu.memory_space<vmem>>, vector<288x128xf32>
    tpu.vector_store %arg14[%c0_176, %c0_177], %189 {strides = array<i32>} : memref<288x128xf32, #tpu.memory_space<vmem>>, vector<288x128xf32>,
    %c38_178 = arith.constant 38 : index
    %c0_179 = arith.constant 0 : index
    %191 = vector.load %arg13[%c38_178, %c0_179] : memref<328x128xbf16, #tpu.memory_space<vmem>>, vector<288x128xbf16>
    %c1024_180 = arith.constant 1024 : index
    %c0_181 = arith.constant 0 : index
    %192 = vector.load %arg7[%c1024_180, %c0_181] : memref<1152x128xbf16, #tpu.memory_space<vmem>>, vector<128x128xbf16>
    %cst_182 = arith.constant dense<0.000000e+00> : vector<288x128xf32>
    %193 = tpu.matmul %191, %192, %cst_182 {dimension_numbers = #tpu.dot_dimension_numbers<[1], [0], [0], [1], [0, 0, 1, 1], [], []>} : vector<288x128xbf16>, vector<128x128xbf16>, vector<288x128xf32> -> vector<288x128xf32>
    %c0_183 = arith.constant 0 : index
    %c0_184 = arith.constant 0 : index
    %194 = vector.load %arg14[%c0_183, %c0_184] : memref<288x128xf32, #tpu.memory_space<vmem>>, vector<288x128xf32>
    %195 = arith.addf %194, %193 : vector<288x128xf32>
    %c0_185 = arith.constant 0 : index
    %c0_186 = arith.constant 0 : index
    %196 = vector.load %arg14[%c0_185, %c0_186] : memref<288x128xf32, #tpu.memory_space<vmem>>, vector<288x128xf32>
    tpu.vector_store %arg14[%c0_185, %c0_186], %195 {strides = array<i32>} : memref<288x128xf32, #tpu.memory_space<vmem>>, vector<288x128xf32>,
    %c0_187 = arith.constant 0 : index
    %c0_188 = arith.constant 0 : index
    %197 = vector.load %arg14[%c0_187, %c0_188] : memref<288x128xf32, #tpu.memory_space<vmem>>, vector<288x128xf32>
    %198 = vector.broadcast %20 : vector<288x1xf32> to vector<288x128xf32>
    %199 = arith.mulf %197, %198 : vector<288x128xf32>
    %cst_189 = arith.constant dense<0.000000e+00> : vector<128xf32>
    %200 = vector.multi_reduction <add>, %199, %cst_189 [0] : vector<288x128xf32> to vector<128xf32>
    %201 = vector.shape_cast %200 : vector<128xf32> to vector<1x128xf32>
    %202 = arith.mulf %199, %199 : vector<288x128xf32>
    %cst_190 = arith.constant dense<0.000000e+00> : vector<128xf32>
    %203 = vector.multi_reduction <add>, %202, %cst_190 [0] : vector<288x128xf32> to vector<128xf32>
    %204 = vector.shape_cast %203 : vector<128xf32> to vector<1x128xf32>
    %c0_191 = arith.constant 0 : index
    %c0_192 = arith.constant 0 : index
    %205 = vector.load %arg8[%c0_191, %c0_192] : memref<1x128xf32, #tpu.memory_space<vmem>>, vector<1x128xf32>
    %cst_193 = arith.constant 2.560000e+02 : f32
    %206 = vector.broadcast %cst_193 : f32 to vector<1x128xf32>
    %207 = arith.mulf %206, %205 : vector<1x128xf32>
    %208 = arith.addf %201, %207 : vector<1x128xf32>
    %cst_194 = arith.constant 2.000000e+00 : f32
    %209 = vector.broadcast %cst_194 : f32 to vector<1x128xf32>
    %210 = arith.mulf %209, %205 : vector<1x128xf32>
    %211 = arith.mulf %210, %201 : vector<1x128xf32>
    %212 = arith.addf %204, %211 : vector<1x128xf32>
    %213 = arith.mulf %205, %205 : vector<1x128xf32>
    %cst_195 = arith.constant 2.560000e+02 : f32
    %214 = vector.broadcast %cst_195 : f32 to vector<1x128xf32>
    %215 = arith.mulf %214, %213 : vector<1x128xf32>
    %216 = arith.addf %212, %215 : vector<1x128xf32>
    %c0_196 = arith.constant 0 : index
    %c0_197 = arith.constant 0 : index
    %217 = vector.load %arg9[%c0_196, %c0_197] : memref<128x128xf32, #tpu.memory_space<vmem>>, vector<128x128xf32>
    %cst_198 = arith.constant dense<0.000000e+00> : vector<1x128xf32>
    %218 = tpu.matmul %208, %217, %cst_198 {dimension_numbers = #tpu.dot_dimension_numbers<[1], [0], [0], [1], [0, 0, 1, 1], [], []>} : vector<1x128xf32>, vector<128x128xf32>, vector<1x128xf32> -> vector<1x128xf32>
    %c0_199 = arith.constant 0 : index
    %c0_200 = arith.constant 0 : index
    %219 = vector.load %arg9[%c0_199, %c0_200] : memref<128x128xf32, #tpu.memory_space<vmem>>, vector<128x128xf32>
    %cst_201 = arith.constant dense<0.000000e+00> : vector<1x128xf32>
    %220 = tpu.matmul %216, %219, %cst_201 {dimension_numbers = #tpu.dot_dimension_numbers<[1], [0], [0], [1], [0, 0, 1, 1], [], []>} : vector<1x128xf32>, vector<128x128xf32>, vector<1x128xf32> -> vector<1x128xf32>
    %cst_202 = arith.constant 0.001953125 : f32
    %221 = vector.broadcast %cst_202 : f32 to vector<1x128xf32>
    %222 = arith.mulf %218, %221 : vector<1x128xf32>
    %cst_203 = arith.constant 0.001953125 : f32
    %223 = vector.broadcast %cst_203 : f32 to vector<1x128xf32>
    %224 = arith.mulf %220, %223 : vector<1x128xf32>
    %225 = arith.mulf %222, %222 : vector<1x128xf32>
    %226 = arith.subf %224, %225 : vector<1x128xf32>
    %cst_204 = arith.constant 0.000000e+00 : f32
    %227 = vector.broadcast %cst_204 : f32 to vector<1x128xf32>
    %228 = arith.maximumf %226, %227 : vector<1x128xf32>
    %cst_205 = arith.constant 9.99999974E-6 : f32
    %229 = vector.broadcast %cst_205 : f32 to vector<1x128xf32>
    %230 = arith.addf %228, %229 : vector<1x128xf32>
    %231 = math.rsqrt %230 : vector<1x128xf32>
    %c0_206 = arith.constant 0 : index
    %c0_207 = arith.constant 0 : index
    %c0_208 = arith.constant 0 : index
    %232 = vector.load %arg10[%c0_206, %c0_207, %c0_208] : memref<1x1x128xf32, #tpu.memory_space<vmem>>, vector<1x1x128xf32>
    %233 = vector.shape_cast %232 : vector<1x1x128xf32> to vector<1x128xf32>
    %234 = arith.mulf %231, %233 : vector<1x128xf32>
    %235 = arith.subf %205, %222 : vector<1x128xf32>
    %236 = arith.mulf %235, %234 : vector<1x128xf32>
    %c0_209 = arith.constant 0 : index
    %c0_210 = arith.constant 0 : index
    %c0_211 = arith.constant 0 : index
    %237 = vector.load %arg11[%c0_209, %c0_210, %c0_211] : memref<1x1x128xf32, #tpu.memory_space<vmem>>, vector<1x1x128xf32>
    %238 = vector.shape_cast %237 : vector<1x1x128xf32> to vector<1x128xf32>
    %239 = arith.addf %236, %238 : vector<1x128xf32>
    %240 = vector.broadcast %234 : vector<1x128xf32> to vector<288x128xf32>
    %241 = arith.mulf %197, %240 : vector<288x128xf32>
    %242 = vector.broadcast %239 : vector<1x128xf32> to vector<288x128xf32>
    %243 = arith.addf %241, %242 : vector<288x128xf32>
    %cst_212 = arith.constant 5.000000e-01 : f32
    %244 = vector.broadcast %cst_212 : f32 to vector<288x128xf32>
    %245 = arith.mulf %244, %243 : vector<288x128xf32>
    %246 = math.tanh %245 : vector<288x128xf32>
    %cst_213 = arith.constant 5.000000e-01 : f32
    %247 = vector.broadcast %cst_213 : f32 to vector<288x128xf32>
    %248 = arith.mulf %247, %246 : vector<288x128xf32>
    %cst_214 = arith.constant 5.000000e-01 : f32
    %249 = vector.broadcast %cst_214 : f32 to vector<288x128xf32>
    %250 = arith.addf %248, %249 : vector<288x128xf32>
    %251 = arith.mulf %243, %250 : vector<288x128xf32>
    %252 = vector.shape_cast %251 : vector<288x128xf32> to vector<1x288x128xf32>
    %253 = arith.truncf %252 : vector<1x288x128xf32> to vector<1x288x128xbf16>
    %c0_215 = arith.constant 0 : index
    %c0_216 = arith.constant 0 : index
    %c0_217 = arith.constant 0 : index
    %254 = vector.load %arg12[%c0_215, %c0_216, %c0_217] : memref<1x288x128xbf16, #tpu.memory_space<vmem>>, vector<1x288x128xbf16>
    tpu.vector_store %arg12[%c0_215, %c0_216, %c0_217], %253 {strides = array<i32>} : memref<1x288x128xbf16, #tpu.memory_space<vmem>>, vector<1x288x128xbf16>,
    return
  }
  func.func @transform_0(%arg0: i32) -> (i32, i32, i32) {
    %c0_i32 = arith.constant 0 : i32
    %c0_i32_0 = arith.constant 0 : i32
    %c0_i32_1 = arith.constant 0 : i32
    return %arg0, %c0_i32, %c0_i32_0 : i32, i32, i32
  }
  func.func @transform_1(%arg0: i32) -> (i32, i32) {
    %c0_i32 = arith.constant 0 : i32
    %c0_i32_0 = arith.constant 0 : i32
    %c0_i32_1 = arith.constant 0 : i32
    return %c0_i32, %c0_i32_0 : i32, i32
  }
  func.func @transform_2(%arg0: i32) -> (i32, i32) {
    %c0_i32 = arith.constant 0 : i32
    %c0_i32_0 = arith.constant 0 : i32
    %c0_i32_1 = arith.constant 0 : i32
    return %c0_i32, %c0_i32_0 : i32, i32
  }
  func.func @transform_3(%arg0: i32) -> (i32, i32) {
    %c0_i32 = arith.constant 0 : i32
    %c0_i32_0 = arith.constant 0 : i32
    %c0_i32_1 = arith.constant 0 : i32
    return %c0_i32, %c0_i32_0 : i32, i32
  }
  func.func @transform_4(%arg0: i32) -> (i32, i32, i32) {
    %c0_i32 = arith.constant 0 : i32
    %c0_i32_0 = arith.constant 0 : i32
    %c0_i32_1 = arith.constant 0 : i32
    return %arg0, %c0_i32, %c0_i32_0 : i32, i32, i32
  }
  func.func @transform_5(%arg0: i32) -> (i32, i32, i32) {
    %c0_i32 = arith.constant 0 : i32
    %c0_i32_0 = arith.constant 0 : i32
    %c0_i32_1 = arith.constant 0 : i32
    return %arg0, %c0_i32, %c0_i32_0 : i32, i32, i32
  }
  func.func @transform_6(%arg0: i32) -> (i32, i32) {
    %c0_i32 = arith.constant 0 : i32
    %c0_i32_0 = arith.constant 0 : i32
    %c0_i32_1 = arith.constant 0 : i32
    return %c0_i32, %c0_i32_0 : i32, i32
  }
  func.func @transform_7(%arg0: i32) -> (i32, i32) {
    %c0_i32 = arith.constant 0 : i32
    %c0_i32_0 = arith.constant 0 : i32
    %c0_i32_1 = arith.constant 0 : i32
    return %c0_i32, %c0_i32_0 : i32, i32
  }
  func.func @transform_8(%arg0: i32) -> (i32, i32) {
    %c0_i32 = arith.constant 0 : i32
    %c0_i32_0 = arith.constant 0 : i32
    %c0_i32_1 = arith.constant 0 : i32
    return %c0_i32, %c0_i32_0 : i32, i32
  }
  func.func @transform_9(%arg0: i32) -> (i32, i32, i32) {
    %c0_i32 = arith.constant 0 : i32
    %c0_i32_0 = arith.constant 0 : i32
    %c0_i32_1 = arith.constant 0 : i32
    return %arg0, %c0_i32, %c0_i32_0 : i32, i32, i32
  }
  func.func @transform_10(%arg0: i32) -> (i32, i32, i32) {
    %c0_i32 = arith.constant 0 : i32
    %c0_i32_0 = arith.constant 0 : i32
    %c0_i32_1 = arith.constant 0 : i32
    return %arg0, %c0_i32, %c0_i32_0 : i32, i32, i32
  }
  func.func @transform_11(%arg0: i32) -> (i32, i32, i32) {
    %c0_i32 = arith.constant 0 : i32
    %c0_i32_0 = arith.constant 0 : i32
    %c0_i32_1 = arith.constant 0 : i32
    return %arg0, %c0_i32, %c0_i32_0 : i32, i32, i32
  }
}

</mosaic_0001>

<bundles_post_ra>
// kernel: tpu_custom_call.1
= control target key start
LH: loop header
LB: loop body
LE: loop exit
PB: predicated region body
PF: predicated region fallthrough
CT: control target
= control target key end

     0   :  { %s20582_s0 = inlined_call_operand.hbm [shape: bf16[2,328,128], index: 0, kind: input, shape index: {}]   ;;  %s20583_s1 = inlined_call_operand.hbm [shape: bf16[1152,128], index: 1, kind: input, shape index: {}]   ;;  %s20584_s2 = inlined_call_operand.hbm [shape: f32[1,128], index: 2, kind: input, shape index: {}]   ;;  %s20585_s3 = inlined_call_operand.hbm [shape: f32[128,128], index: 3, kind: input, shape index: {}]   ;;  %s20586_s4 = inlined_call_operand.vmem [shape: f32[2,1,128], index: 4, kind: input, shape index: {}]   ;;  %s20587_s5 = inlined_call_operand.vmem [shape: f32[2,1,128], index: 5, kind: input, shape index: {}]   ;;  %s20588_s6 = inlined_call_operand.hbm [shape: bf16[1152,128], index: 6, kind: input, shape index: {}]   ;;  %s20589_s7 = inlined_call_operand.hbm [shape: f32[1,128], index: 7, kind: input, shape index: {}]   ;;  %s20590_s8 = inlined_call_operand.hbm [shape: f32[128,128], index: 8, kind: input, shape index: {}]   ;;  %s20591_s9 = inlined_call_operand.vmem [shape: f32[2,1,128], index: 9, kind: input, shape index: {}]   ;;  %s20592_s10 = inlined_call_operand.vmem [shape: f32[2,1,128], index: 10, kind: input, shape index: {}]   ;;  %s20593_s11 = inlined_call_operand.hbm [shape: bf16[2,288,128], index: 11, kind: output, shape index: {}]  }
   0x1   :  { %20754 = sst [smem:[#allocation86_spill]] %s20583_s1 }
   0x2   :  { %20755 = sst [smem:[#allocation87_spill]] %s20584_s2 }
   0x3   :  { %20756 = sst [smem:[#allocation88_spill]] %s20585_s3 }
   0x4   :  { %20757 = sst [smem:[#allocation89_spill]] %s20588_s6 }
   0x5   :  { %20758 = sst [smem:[#allocation90_spill]] %s20589_s7 }
   0x6   :  { %20759 = sst [smem:[#allocation91_spill]] %s20592_s10 }
   0x7   :  { %20760 = sst [smem:[#allocation92_spill]] %s20593_s11 }
   0x8   :  { %16 = vsyncpa [#allocation5], 0 }
   0x9   :  { %18 = vsyncpa [#allocation5 + $0x1], 0 }
   0xa   :  { %19 = vsyncpa [#allocation8], 0 }
   0xb   :  { %20 = vsyncpa [#allocation11], 0 }
   0xc   :  { %21 = vsyncpa [#allocation14], 0 }
   0xd   :  { %22 = vsyncpa [#allocation6], 0 }
   0xe   :  { %24 = vsyncpa [#allocation6 + $0x1], 0  ;;  %s15668_s17 = smov 0   ;;  %s15670_s18 = smov 0  }
   0xf   :  { %s15672_s19 = smov 0   ;;  %s15674_s20 = smov 0  }
  0x10 LB: > { %s20761_s1 = sld [smem:[#allocation86_spill]]  ;;  %s15692_s24 = sadd.s32 4294967295, %s15592_s20   ;;  %s15592_s20 = sphi %s15674_s20, %s21412_s20   ;;  %s15588_s19 = sphi %s15672_s19, %s21411_s19   ;;  %s15584_s18 = sphi %s15670_s18, %s21410_s18   ;;  %s15580_s17 = sphi %s15668_s17, %s21409_s17  }
  0x11   : > { %p12518_p0 = scmp.ge.s32.totalorder %s15592_s20, 1  ;;  %p51_p1 = scmp.eq.s32.totalorder %s15692_s24, 0 }
  0x12   : > { %p317_p2 = scmp.lt.s32.totalorder %s15592_s20, 3  ;;  %s15594_s26 = smov [#allocation7]  }
  0x13   : > { %s330_s27 = sshll.u32 %s15594_s26, 4  ;;  %s20763_s3 = sld [smem:[#allocation88_spill]]  ;;  %s331_s27 = int_to_ptr.vmem [resolvable:$true] %s330_s27 }
  0x14   : > { %p15697_p3 = pnand %p12518_p0, %p317_p2  ;;  %s15595_s13 = smov [#allocation10]  }
  0x15   : > { %s356_s14 = sshll.u32 %s15595_s13, 4  ;;  %s20595_s15 = smov 64   ;;  %s357_s14 = int_to_ptr.vmem [resolvable:$true] %s356_s14 }
  0x16   : > { %s328_s23 = sshll.u32 %s20761_s1, 4  ;;  %p15069_p4 = pneg %p15697_p3  ;;  %s329_s23 = int_to_ptr.hbm [resolvable:$true] %s328_s23 }
  0x17   : > { %s20596_s16 = smov 4   ;;  %s15598_s21 = smov 128  }
  0x18   : > { %p15709_p6 = pnand %p15069_p4, %p51_p1  ;;  %s15599_s22 = smov 8  }
  0x19   : > { %s354_s30 = sshll.u32 %s20763_s3, 4  ;;  %s20765_s7 = sld [smem:[#allocation90_spill]]  ;;  %s355_s30 = int_to_ptr.hbm [resolvable:$true] %s354_s30 }
  0x1a   : > { %15072 = dma.hbm_to_vmem [thread:$0]  (!%p15709_p6), %s329_s23, 9216, %s331_s27, [#allocation8], %s20595_s15, %s20595_s15, %s20596_s16  }
  0x1b   : > { %15078 = dma.hbm_to_vmem [thread:$0]  (!%p15709_p6), %s355_s30, 2048, %s357_s14, [#allocation11], %s15598_s21, %s15598_s21, %s15599_s22  }
  0x1c   : > { %s15600_s1 = smov [#allocation13]   ;;  %s20766_s2 = sld [smem:[#allocation87_spill]] }
  0x1d   : > { %s385_s13 = sshll.u32 %s15600_s1, 4  ;;  %s15601_s23 = smov [#allocation9]   ;;  %s386_s13 = int_to_ptr.vmem [resolvable:$true] %s385_s13 }
  0x1e   : > { %s345_s27 = sshll.u32 %s15601_s23, 4  ;;  %s20767_s6 = sld [smem:[#allocation89_spill]]  ;;  %s346_s27 = int_to_ptr.vmem [resolvable:$true] %s345_s27 }
  0x1f   : > { %s383_s29 = sshll.u32 %s20765_s7, 4  ;;  %s394_s11 = sshll.u32 %s20590_s8, 4  ;;  %s384_s29 = int_to_ptr.hbm [resolvable:$true] %s383_s29  ;;  %s395_s11 = int_to_ptr.hbm [resolvable:$true] %s394_s11 }
  0x20   : > { %15084 = dma.hbm_to_vmem [thread:$0]  (!%p15709_p6), %s384_s29, 16, %s386_s13, [#allocation14]  }
  0x21   : > { %s15602_s28 = smov [#allocation12]   ;;  %s12517_s23 = sadd.s32 4294967294, %s15592_s20  }
  0x22   : > { %s343_s10 = sshll.u32 %s20766_s2, 4  ;;  %s370_s29 = sshll.u32 %s15602_s28, 4  ;;  %s344_s10 = int_to_ptr.hbm [resolvable:$true] %s343_s10  ;;  %s371_s29 = int_to_ptr.vmem [resolvable:$true] %s370_s29 }
  0x23   : > { %15075 = dma.hbm_to_vmem [thread:$0]  (!%p15709_p6), %s344_s10, 16, %s346_s27, [#allocation8]  }
  0x24   : > { %s368_s26 = sshll.u32 %s20767_s6, 4  ;;  %s15603_s10 = smov [#allocation15]   ;;  %s369_s26 = int_to_ptr.hbm [resolvable:$true] %s368_s26 }
  0x25   : > { %15081 = dma.hbm_to_vmem [thread:$0]  (!%p15709_p6), %s369_s26, 9216, %s371_s29, [#allocation11], %s20595_s15, %s20595_s15, %s20596_s16  }
  0x26   : > { %s396_s13 = sshll.u32 %s15603_s10, 4  ;;  %s15745_s27 = sadd.s32 1, %s15592_s20   ;;  %s397_s13 = int_to_ptr.vmem [resolvable:$true] %s396_s13 }
  0x27   : > { %15087 = dma.hbm_to_vmem [thread:$0]  (!%p15709_p6), %s395_s11, 2048, %s397_s13, [#allocation14], %s15598_s21, %s15598_s21, %s15599_s22  }
  0x28   : > { %s34_s30 = ssub.s32 %s15592_s20, %s15745_s27  ;;  %s37_s14 = sadd.s32 1, %s15588_s19 }
  0x29   : > { %p35_p7 = scmp.eq.s32.totalorder %s34_s30, 0  ;;  %p44_p8 = scmp.ne.s32.totalorder %s15588_s19, %s15584_s18 }
  0x2a   : > { %p45_p9 = scmp.eq.s32.totalorder %s15592_s20, 0  ;;  %p50_p10 = scmp.ne.s32.totalorder %s15584_s18, %s15580_s17 }
  0x2b   : > { %s15756_s26 = scalar_select %p35_p7, %s15588_s19, %s37_s14  }
  0x2c   : > { %p46_p11 = por %p45_p9, %p44_p8  ;;  %p15760_p12 = por %p51_p1, %p50_p10 }
  0x2d   : > { %p304_p13 = scmp.eq.s32.totalorder %s15692_s24, 1  ;;  %p310_p0 = scmp.eq.s32.totalorder %s12517_s23, 1 }
  0x2e   : > { %p15102_p2 = scmp.lt.s32.totalorder %s15592_s20, 2  ;;  %s410_s12 = sand.u32 1, %s15588_s19  }
  0x2f   : > { %p15767_p4 = por %p304_p13, %p44_p8  ;;  %p15771_p6 = por %p310_p0, %p50_p10 }
  0x30   : > { %s15036_s3 = smul.u32 164, %s410_s12  ;;  %p15776_p7 = pnand %p15102_p2, %p46_p11 }
  0x31   : > { %s15037_s11 = smul.u32 164, %s15592_s20  ;;  %s411_s15 = scalar_lea.sflag [#allocation5], %s410_s12 }
  0x32   : > { %s414_s23 = scalar_lea.vmem [#allocation4], %s15036_s3  ;;  %p15488_p9 = pneg %p15776_p7 }
  0x33   : > { %s419_s13 = scalar_lea.hbm %s20582_s0, %s15037_s11  ;;  %s422_s30 = sshll.u32 %s414_s23, 4  ;;  %s423_s30 = int_to_ptr.vmem [resolvable:$true] %s422_s30 }
  0x34   : > { %s420_s14 = sshll.u32 %s419_s13, 4  ;;  %s15491_s29 = scalar_lea.hbm %s20582_s0, 328  ;;  %s421_s14 = int_to_ptr.hbm [resolvable:$true] %s420_s14 }
  0x35   : > { %s15484_s16 = sshra.s32 %s421_s14, 4  ;;  %s15485_s16 = int_to_ptr.hbm [resolvable:$true] %s15484_s16 }
  0x36   : > { %s15486_s2 = scalar_lea.hbm %s15485_s16, 164  ;;  %p15492_p13 = scmp.lt.s32.totalorder %s15485_s16, %s20582_s0 }
  0x37   : > { %p15487_p8 = scmp.ne.s32.totalorder %s15485_s16, %s15486_s2  ;;  %p15493_p0 = scmp.lt.s32.totalorder %s15491_s29, %s15486_s2 }
  0x39   : > { %p15489_p10 = pnand %p15488_p9, %p15487_p8  ;;  %p15494_p2 = por %p15493_p0, %p15492_p13 }
  0x3b   : > { %p15490_p11 = pneg %p15489_p10 }
  0x3d   : > { %p15495_p5 = pnand %p15494_p2, %p15490_p11 }
  0x3f   : > { %15498 = shalt.err (!%p15495_p5)
}
  0x40   : > { %s20772_s12 = smov 4   ;;  %s20773_s3 = smov 64  }
  0x41   : > { %15091 = dma.hbm_to_vmem [thread:$0]  (!%p15776_p7), %s421_s14, 2624, %s423_s30, %s411_s15, %s20773_s3, %s20773_s3, %s20772_s12  }
  0x42   : > { %458 = sbr.rel (%p15697_p3) target bundleno = 2600 (0xa28), region = 64 }
  0x47   : > { %s15799_s6 = sand.u32 1, %s15584_s18  }
  0x48   : > { %s15038_s7 = smul.u32 164, %s15799_s6  ;;  %s461_s2 = scalar_lea.sflag [#allocation5], %s15799_s6 }
  0x4a   : > { %s15803_s16 = scalar_lea.vmem [#allocation4], %s15038_s7 }
  0x4b   : > { %15559 = dma.done.wait (%p15760_p12), %s461_s2, 2624  }
  0x4c   : > { %15561 = vsyncadd (%p15760_p12), %s461_s2, 4294964672 }
  0x4d   : > { %15563 = dma.done.wait (%p51_p1), [#allocation8], 9232  }
  0x4e   : > { %15565 = vsyncadd (%p51_p1), [#allocation8], 4294958064 }
  0x4f   : > { %15567 = dma.done.wait (%p51_p1), [#allocation11], 11264  }
  0x50   : > { %15569 = vsyncadd (%p51_p1), [#allocation11], 4294956032 }
  0x51   : > { %15571 = dma.done.wait (%p51_p1), [#allocation14], 2064  }
  0x52   : > { %15573 = vsyncadd (%p51_p1), [#allocation14], 4294965232  ;;  %v14470_v0 = vld [vmem:[#allocation7 + $0x38] sm:$0xff]  ;;  %v14469_v2 = vld [vmem:[#allocation7 + $0x30] sm:$0xff]  ;;  %vm3001_vm0 = vcmask 1046528   ;;  %vm4504_vm4 = vcmask 1045504  }
  0x53   : > { %v14522_v1 = vld [vmem:[#allocation7 + $0xb8] sm:$0xff]  ;;  %2152 = vmatpush.bf16.msra.mxu0 %v14470_v0  ;;  %15020 = vmatpush.bf16.msra.mxu1 %v14470_v0  ;;  %v14521_v3 = vld [vmem:[#allocation7 + $0xb0] sm:$0xff]  ;;  %v14468_v4 = vld [vmem:[#allocation7 + $0x28] sm:$0xff]  ;;  %vm2433_vm1 = vsmask.f32 7424  ;;  %vm6007_vm5 = vcmask 1044480  }
  0x54   : > { %3105 = vmatpush.bf16.msra.mxu2 %v14522_v1  ;;  %v14520_v5 = vld [vmem:[#allocation7 + $0xa8] sm:$0xff]  ;;  %v14467_v6 = vld [vmem:[#allocation7 + $0x20] sm:$0xff]  ;;  %v14466_v8 = vld [vmem:[#allocation7 + $0x18] sm:$0xff]  ;;  %vm3914_vm2 = vsmask.f32 6400  ;;  %vm1930_vm9 = vcmask 1041408  }
  0x55   : > { %v14519_v7 = vld [vmem:[#allocation7 + $0xa0] sm:$0xff]  ;;  %v14518_v9 = vld [vmem:[#allocation7 + $0x98] sm:$0xff]  ;;  %v14465_v10 = vld [vmem:[#allocation7 + $0x10] sm:$0xff]  ;;  %vm20644_vm3 = vsmask.f32 5376  ;;  %vm1936_vm12 = vcmask 1043457  }
  0x56   : > { %v14517_v11 = vld [vmem:[#allocation7 + $0x90] sm:$0xff]  ;;  %v12780_v12 = vld [vmem:[%s15803_s16] sm:$0xe]  ;;  %v14497_v13 = vld [vmem:[%s15803_s16] sm:$0xf0]  ;;  %p546_p1 = scmp.lt.s32.totalorder %s15692_s24, 1 }
  0x57   : > { %2153 = vmatpush.bf16.msra.mxu0 %v14469_v2  ;;  %15021 = vmatpush.bf16.msra.mxu1 %v14469_v2  ;;  %v14464_v14 = vld [vmem:[#allocation7 + $0x8] sm:$0xff]  ;;  %v12781_v17 = vor.u32 %v14497_v13, %v12780_v12  ;;  %v14463_v18 = vld [vmem:[#allocation7] sm:$0xff]  ;;  %v14574_v22 = vld [vmem:[#allocation7 + $0x138] sm:$0xff]  ;;  %vm1931_vm10 = vsmask.f32 1280  ;;  %s21361_s3 = sld [smem:[#allocation91_spill]] }
  0x58   : > { %3106 = vmatpush.bf16.msra.mxu2 %v14521_v3  ;;  %v14516_v15 = vld [vmem:[#allocation7 + $0x88] sm:$0xff]  ;;  %v14515_v19 = vld [vmem:[#allocation7 + $0x80] sm:$0xff]  ;;  %v14456_v24 = vld [vmem:[%s15803_s16 + $0x58] sm:$0xff]  ;;  %vm1937_vm13 = vsmask.f32 7942  ;;  %s18673_s25 = scalar_select %p546_p1, %s15692_s24, 1 }
  0x59   : > { %v14498_v16 = vld [vmem:[%s15803_s16 + $0x8] sm:$0xff]  ;;  %v3002_v20 = vrot.slane %v12781_v17, 1  ;;  %v14445_v23 = vld [vmem:[%s15803_s16] sm:$0xff]  ;;  %v14573_v26 = vld [vmem:[#allocation7 + $0x130] sm:$0xff]  ;;  %s15039_s2 = smul.u32 144, %s15799_s6  ;;  %s21407_s1 = sld [smem:[#allocation92_spill]] }
  0x5a   : > { %v3003_v21 = vrot.slane %v14498_v16, 1  ;;  %v14572_v27 = vld [vmem:[#allocation7 + $0x128] sm:$0xff]  ;;  %v14457_v31 = vld [vmem:[%s15803_s16 + $0x60] sm:$0xff]  ;;  %v14500_v35 = vld [vmem:[%s15803_s16 + $0x18] sm:$0xff]  ;;  %s548_s28 = scalar_lea.vmem %s20586_s4, %s18673_s25  ;;  %s551_s30 = scalar_lea.vmem %s20587_s5, %s18673_s25 }
  0x5b   : > { %2154 = vmatpush.bf16.msra.mxu0 %v14468_v4  ;;  %15022 = vmatpush.bf16.msra.mxu1 %v14468_v4  ;;  %v14499_v28 = vld [vmem:[%s15803_s16 + $0x10] sm:$0xff]  ;;  %v14446_v30 = vld [vmem:[%s15803_s16 + $0x8] sm:$0xff]  ;;  %v14548_v33 = vld [vmem:[#allocation7 + $0xf8] sm:$0xff]  ;;  %v3007_v36 = vrot.slane %v14500_v35, 1  ;;  %s554_s10 = scalar_lea.vmem %s20591_s9, %s18673_s25 }
  0x5c   : > { %3107 = vmatpush.bf16.msra.mxu2 %v14520_v5  ;;  %v3004_v25 = vsel %vm3001_vm0, %v3002_v20, %v3003_v21  ;;  %v3005_v29 = vrot.slane %v14499_v28, 1  ;;  %v14496_v34 = vld [vmem:[#allocation7 + $0x78] sm:$0xff]  ;;  %15028 = vmatpush.bf16.msra.mxu3 %v14548_v33  ;;  %v14447_v37 = vld [vmem:[%s15803_s16 + $0x10] sm:$0xff]  ;;  %v14458_v38 = vld [vmem:[%s15803_s16 + $0x68] sm:$0xff] }
  0x5d   : > { %v14571_v40 = vld [vmem:[#allocation7 + $0x120] sm:$0xff]  ;;  %v14495_v41 = vld [vmem:[#allocation7 + $0x70] sm:$0xff]  ;;  %v14494_v47 = vld [vmem:[#allocation7 + $0x68] sm:$0xff]  ;;  %s557_s7 = scalar_lea.vmem %s21361_s3, %s18673_s25  ;;  %s15040_s25 = smul.u32 144, %s15692_s24 }
  0x5e   : > { %v3006_v32 = vsel %vm3001_vm0, %v3003_v21, %v3005_v29  ;;  %v3008_v39 = vsel %vm3001_vm0, %v3005_v29, %v3007_v36  ;;  %v14501_v42 = vld [vmem:[%s15803_s16 + $0x20] sm:$0xff]  ;;  %v14448_v44 = vld [vmem:[%s15803_s16 + $0x18] sm:$0xff]  ;;  %v14459_v45 = vld [vmem:[%s15803_s16 + $0x70] sm:$0xff] }
  0x5f   : > { %2155 = vmatpush.bf16.msra.mxu0 %v14467_v6  ;;  %15023 = vmatpush.bf16.msra.mxu1 %v14467_v6  ;;  %v3009_v43 = vrot.slane %v14501_v42, 1  ;;  %v14570_v48 = vld [vmem:[#allocation7 + $0x118] sm:$0xff]  ;;  %v14547_v49 = vld [vmem:[#allocation7 + $0xf0] sm:$0xff]  ;;  %v14493_v50 = vld [vmem:[#allocation7 + $0x60] sm:$0xff]  ;;  %s15534_s12 = scalar_lea.hbm %s21407_s1, 288 }
  0x60   : > { %3108 = vmatpush.bf16.msra.mxu2 %v14519_v7  ;;  %15029 = vmatpush.bf16.msra.mxu3 %v14547_v49  ;;  %v14502_v51 = vld [vmem:[%s15803_s16 + $0x28] sm:$0xff]  ;;  %v14449_v53 = vld [vmem:[%s15803_s16 + $0x20] sm:$0xff]  ;;  %v14460_v54 = vld [vmem:[%s15803_s16 + $0x78] sm:$0xff] }
  0x61   : > { %v3010_v46 = vsel %vm3001_vm0, %v3007_v36, %v3009_v43  ;;  %v3011_v52 = vrot.slane %v14502_v51, 1  ;;  %v14492_v56 = vld [vmem:[#allocation7 + $0x58] sm:$0xff]  ;;  %v14491_v57 = vld [vmem:[#allocation7 + $0x50] sm:$0xff]  ;;  %v14490_v60 = vld [vmem:[#allocation7 + $0x48] sm:$0xff] }
  0x62   : > { %v14569_v58 = vld [vmem:[#allocation7 + $0x110] sm:$0xff]  ;;  %v14489_v62 = vld [vmem:[#allocation7 + $0x40] sm:$0xff]  ;;  %v14546_v7 = vld [vmem:[#allocation7 + $0xe8] sm:$0xff] }
  0x63   : > { %2156 = vmatpush.bf16.msra.mxu0 %v14466_v8  ;;  %15024 = vmatpush.bf16.msra.mxu1 %v14466_v8  ;;  %v3012_v55 = vsel %vm3001_vm0, %v3009_v43, %v3011_v52  ;;  %v14503_v59 = vld [vmem:[%s15803_s16 + $0x30] sm:$0xff]  ;;  %v14450_v63 = vld [vmem:[%s15803_s16 + $0x28] sm:$0xff]  ;;  %v14461_v0 = vld [vmem:[%s15803_s16 + $0x80] sm:$0xff] }
  0x64   : > { %3109 = vmatpush.bf16.msra.mxu2 %v14518_v9  ;;  %v3013_v61 = vrot.slane %v14503_v59, 1  ;;  %v14504_v2 = vld [vmem:[%s15803_s16 + $0x38] sm:$0xff]  ;;  %v14451_v4 = vld [vmem:[%s15803_s16 + $0x30] sm:$0xff]  ;;  %v14462_v5 = vld [vmem:[%s15803_s16 + $0x88] sm:$0xff]  ;;  %15030 = vmatpush.bf16.msra.mxu3 %v14546_v7 }
  0x65   : > { %v3015_v3 = vrot.slane %v14504_v2, 1  ;;  %v14471_v6 = vld [vmem:[%s15803_s16] sm:$0xff]  ;;  %v14472_v9 = vld [vmem:[%s15803_s16 + $0x8] sm:$0xff]  ;;  %v14474_v35 = vld [vmem:[%s15803_s16 + $0x18] sm:$0xff] }
  0x66   : > { %v3014_v1 = vsel %vm3001_vm0, %v3011_v52, %v3013_v61  ;;  %v2435_v12 = vshrl.u32 %v14471_v6, 16  ;;  %v14545_v36 = vld [vmem:[#allocation7 + $0xe0] sm:$0xff]  ;;  %v14600_v42 = vld [vmem:[#allocation7 + $0x178] sm:$0xff]  ;;  %v14507_v43 = vld [vmem:[%s15803_s16 + $0x50] sm:$0xff] }
  0x67   : > { %2157 = vmatpush.bf16.msra.mxu0 %v14465_v10  ;;  %15025 = vmatpush.bf16.msra.mxu1 %v14465_v10  ;;  %v3016_v8 = vsel %vm3001_vm0, %v3013_v61, %v3015_v3  ;;  %v2437_v10 = vshll.u32 %v14471_v6, 16  ;;  %vm16781_vm11 = vmand %vm1930_vm9, %vm1931_vm10 }
  0x68   : > { %3110 = vmatpush.bf16.msra.mxu2 %v14517_v11  ;;  %v14568_v11 = vld [vmem:[#allocation7 + $0x108] sm:$0xff]  ;;  %15031 = vmatpush.bf16.msra.mxu3 %v14545_v36  ;;  %vm16793_vm14 = vmand %vm1936_vm12, %vm1937_vm13 }
  0x69   : > { %v2439_v13 = vrot.slane %v2437_v10, 1  ;;  %v14476_v10 = vld [vmem:[%s15803_s16 + $0x28] sm:$0xff] }
  0x6b   : > { %2158 = vmatpush.bf16.msra.mxu0 %v14464_v14  ;;  %15026 = vmatpush.bf16.msra.mxu1 %v14464_v14  ;;  %v2442_v14 = vshll.u32 %v14472_v9, 16  ;;  %v2440_v16 = vor.u32 %v2439_v13, %v2435_v12 }
  0x6c   : > { %3111 = vmatpush.bf16.msra.mxu2 %v14516_v15  ;;  %v14505_v15 = vld [vmem:[%s15803_s16 + $0x40] sm:$0xff] }
  0x6d   : > { %v2444_v17 = vrot.slane %v2442_v14, 1 }
  0x6f   : > { %2159 = vmatpush.bf16.msra.mxu0 %v14463_v18  ;;  %15027 = vmatpush.bf16.msra.mxu1 %v14463_v18  ;;  %v3017_v18 = vrot.slane %v14505_v15, 1  ;;  %v2445_v20 = vsel %vm2433_vm1, %v2440_v16, %v2444_v17 }
  0x70   : > { %3112 = vmatpush.bf16.msra.mxu2 %v14515_v19  ;;  %v14452_v19 = vld [vmem:[%s15803_s16 + $0x38] sm:$0xff] }
  0x71   : > { %v3018_v21 = vsel %vm3001_vm0, %v3015_v3, %v3017_v18  ;;  %v14455_v3 = vld [vmem:[%s15803_s16 + $0x50] sm:$0xff] }
  0x72   : > { %2160 = vmatmul.bf16.vlgmr.msra.gmra.mxu0 %v14445_v23  ;;  %2215 = vmatmul.bf16.vlgmr.msra.gmra.mxu1 %v14456_v24  ;;  %v2446_v23 = vshrl.u32 %v14472_v9, 16 }
  0x73   : > { %4151 = vmatpush.bf16.msrb.mxu0 %v14574_v22  ;;  %3113 = vmatmul.bf16.vlgmr.msra.gmra.mxu2 %v3004_v25  ;;  %v14473_v22 = vld [vmem:[%s15803_s16 + $0x10] sm:$0xff]  ;;  %v14567_v25 = vld [vmem:[#allocation7 + $0x100] sm:$0xff] }
  0x74   : > { %3561 = vmatpush.bf16.msrb.mxu2 %v14548_v33  ;;  %2648 = vmatpush.bf16.msrb.mxu1 %v14496_v34  ;;  %v2450_v24 = vshll.u32 %v14473_v22, 16 }
  0x76   : > { %v2452_v28 = vrot.slane %v2450_v24, 1  ;;  %v14544_v24 = vld [vmem:[#allocation7 + $0xd8] sm:$0xff] }
  0x77   : > { %4152 = vmatpush.bf16.msrb.mxu0 %v14573_v26  ;;  %v14506_v26 = vld [vmem:[%s15803_s16 + $0x48] sm:$0xff]  ;;  %15032 = vmatpush.bf16.msra.mxu3 %v14544_v24 }
  0x78   : > { %2649 = vmatpush.bf16.msrb.mxu1 %v14495_v41  ;;  %3562 = vmatpush.bf16.msrb.mxu2 %v14547_v49  ;;  %v3019_v29 = vrot.slane %v14506_v26, 1  ;;  %v2458_v41 = vshll.u32 %v14474_v35, 16 }
  0x7a   : > { %v3020_v34 = vsel %vm3001_vm0, %v3017_v18, %v3019_v29 }
  0x7b   : > { %4153 = vmatpush.bf16.msrb.mxu0 %v14572_v27  ;;  %v2448_v27 = vor.u32 %v2446_v23, %v2444_v17  ;;  %v2474_v17 = vshll.u32 %v14476_v10, 16 }
  0x7c   : > { %2650 = vmatpush.bf16.msrb.mxu1 %v14494_v47  ;;  %3563 = vmatpush.bf16.msrb.mxu2 %v14546_v7  ;;  %v14550_v7 = vld [vmem:[%s15803_s16 + $0x10] sm:$0xff] }
  0x7d   : > { %v2453_v33 = vsel %vm2433_vm1, %v2448_v27, %v2452_v28  ;;  %v3924_v13 = vshrl.u32 %v14550_v7, 16  ;;  %v3927_v14 = vshll.u32 %v14550_v7, 16  ;;  %v2476_v27 = vrot.slane %v2474_v17, 1  ;;  %v14541_v7 = vld [vmem:[#allocation7 + $0xc0] sm:$0xff] }
  0x7f   : > { %4154 = vmatpush.bf16.msrb.mxu0 %v14571_v40  ;;  %v2454_v40 = vshrl.u32 %v14473_v22, 16  ;;  %v3926_v22 = vrot.slane %v3924_v13, 1  ;;  %v3929_v23 = vrot.slane %v3927_v14, 2 }
  0x80   : > { %2651 = vmatpush.bf16.msrb.mxu1 %v14493_v50  ;;  %3564 = vmatpush.bf16.msrb.mxu2 %v14545_v36 }
  0x82   : > { %2165 = vmatmul.bf16.gmra.mxu0 %v14446_v30  ;;  %2220 = vmatmul.bf16.gmra.mxu1 %v14457_v31  ;;  %v14453_v30 = vld [vmem:[%s15803_s16 + $0x40] sm:$0xff] }
  0x83   : > { %3118 = vmatmul.bf16.gmra.mxu2 %v3006_v32  ;;  %4155 = vmatpush.bf16.msrb.mxu0 %v14570_v48  ;;  %v14454_v48 = vld [vmem:[%s15803_s16 + $0x48] sm:$0xff] }
  0x84   : > { %2652 = vmatpush.bf16.msrb.mxu1 %v14492_v56  ;;  %3565 = vmatpush.bf16.msrb.mxu2 %v14544_v24 }
  0x87   : > { %4156 = vmatpush.bf16.msrb.mxu0 %v14569_v58  ;;  %v2462_v58 = vshrl.u32 %v14474_v35, 16 }
  0x88   : > { %2653 = vmatpush.bf16.msrb.mxu1 %v14491_v57 }
  0x8b   : > { %4157 = vmatpush.bf16.msrb.mxu0 %v14568_v11 }
  0x8c   : > { %2654 = vmatpush.bf16.msrb.mxu1 %v14490_v60  ;;  %v14508_v60 = vld [vmem:[%s15803_s16 + $0x58] sm:$0xff] }
  0x8f   : > { %4158 = vmatpush.bf16.msrb.mxu0 %v14567_v25  ;;  %v14509_v25 = vld [vmem:[%s15803_s16 + $0x60] sm:$0xff] }
  0x90   : > { %2655 = vmatpush.bf16.msrb.mxu1 %v14489_v62 }
  0x92   : > { %2170 = vmatmul.bf16.gmra.mxu0 %v14447_v37  ;;  %2225 = vmatmul.bf16.gmra.mxu1 %v14458_v38 }
  0x93   : > { %3123 = vmatmul.bf16.gmra.mxu2 %v3008_v39 }
  0x94   : > { %4608 = vmatpush.bf16.msra.mxu1 %v14600_v42  ;;  %v14599_v42 = vld [vmem:[#allocation7 + $0x170] sm:$0xff] }
  0x98   : > { %4609 = vmatpush.bf16.msra.mxu1 %v14599_v42 }
  0xa2   : > { %2175 = vmatmul.bf16.gmra.mxu0 %v14448_v44  ;;  %2230 = vmatmul.bf16.gmra.mxu1 %v14459_v45  ;;  %v2456_v44 = vor.u32 %v2454_v40, %v2452_v28  ;;  %v2460_v45 = vrot.slane %v2458_v41, 1  ;;  %v14551_v41 = vld [vmem:[%s15803_s16 + $0x18] sm:$0xff] }
  0xa3   : > { %3128 = vmatmul.bf16.gmra.mxu2 %v3010_v46  ;;  %v3021_v46 = vrot.slane %v14507_v43, 1 }
  0xa4   : > { %v2461_v51 = vsel %vm2433_vm1, %v2456_v44, %v2460_v45  ;;  %v2464_v61 = vor.u32 %v2462_v58, %v2460_v45  ;;  %v14477_v44 = vld [vmem:[%s15803_s16 + $0x30] sm:$0xff]  ;;  %v3933_v45 = vshrl.u32 %v14551_v41, 16  ;;  %v2478_v58 = vshrl.u32 %v14476_v10, 16 }
  0xa5   : > { %v3022_v52 = vsel %vm3001_vm0, %v3019_v29, %v3021_v46  ;;  %v3930_v29 = vor.u32 %v3929_v23, %v3926_v22  ;;  %v14478_v23 = vld [vmem:[%s15803_s16 + $0x38] sm:$0xff] }
  0xb2   : > { %2180 = vmatmul.bf16.gmra.mxu0 %v14449_v53  ;;  %2235 = vmatmul.bf16.gmra.mxu1 %v14460_v54  ;;  %v14475_v53 = vld [vmem:[%s15803_s16 + $0x20] sm:$0xff] }
  0xb3   : > { %3133 = vmatmul.bf16.gmra.mxu2 %v3012_v55  ;;  %v14678_v54 = vld [vmem:[#allocation7 + $0x238] sm:$0xff]  ;;  %v2466_v59 = vshll.u32 %v14475_v53, 16  ;;  %v2470_v16 = vshrl.u32 %v14475_v53, 16 }
  0xb4   : > { %6111 = vmatpush.bf16.msra.mxu0 %v14678_v54 }
  0xb5   : > { %v2468_v62 = vrot.slane %v2466_v59, 1  ;;  %v2482_v59 = vshll.u32 %v14477_v44, 16 }
  0xb7   : > { %v2469_v6 = vsel %vm2433_vm1, %v2464_v61, %v2468_v62  ;;  %v2472_v26 = vor.u32 %v2470_v16, %v2468_v62  ;;  %v14542_v62 = vld [vmem:[#allocation7 + $0xc8] sm:$0xff] }
  0xb9   : > { %v2477_v36 = vsel %vm2433_vm1, %v2472_v26, %v2476_v27 }
  0xc2   : > { %2185 = vmatmul.bf16.gmra.mxu0 %v14450_v63  ;;  %2240 = vmatmul.bf16.gmra.mxu1 %v14461_v0  ;;  %v3023_v63 = vrot.slane %v14508_v60, 1  ;;  %v12988_v0 = vld [vmem:[%s15803_s16 + $0x8] sm:$0xe]  ;;  %v3935_v60 = vrot.slane %v3933_v45, 1 }
  0xc3   : > { %3138 = vmatmul.bf16.gmra.mxu2 %v3014_v1  ;;  %v14549_v1 = vld [vmem:[%s15803_s16 + $0x8] sm:$0xf0] }
  0xc4   : > { %v3024_v9 = vsel %vm3001_vm0, %v3021_v46, %v3023_v63  ;;  %v3936_v46 = vshll.u32 %v14551_v41, 16  ;;  %v14511_v41 = vld [vmem:[%s15803_s16 + $0x70] sm:$0xff] }
  0xc6   : > { %v3938_v61 = vrot.slane %v3936_v46, 2  ;;  %v3029_v46 = vrot.slane %v14511_v41, 1  ;;  %v14533_v41 = vld [vmem:[%s15803_s16 + $0x58] sm:$0xff] }
  0xd2   : > { %2190 = vmatmul.bf16.gmra.mxu0 %v14451_v4  ;;  %2245 = vmatmul.bf16.gmra.mxu1 %v14462_v5 }
  0xd3   : > { %3143 = vmatmul.bf16.gmra.mxu2 %v3016_v8  ;;  %v12989_v8 = vor.u32 %v14549_v1, %v12988_v0  ;;  %v2480_v0 = vor.u32 %v2478_v58, %v2476_v27  ;;  %v2484_v1 = vrot.slane %v2482_v59, 1 }
  0xd5   : > { %v3916_v11 = vshrl.u32 %v12989_v8, 16  ;;  %v3919_v12 = vshll.u32 %v12989_v8, 16  ;;  %v15930_v8 = vld [vmem:[%s15803_s16 + $0x40] sm:$0xff]  ;;  %v2485_v16 = vsel %vm2433_vm1, %v2480_v0, %v2484_v1 }
  0xd6   : > { %v20597_v10 = vrot.slane %v15930_v8, 1 }
  0xe2   : > { %2195 = vmatmul.bf16.gmra.mxu0 %v14452_v19  ;;  %2656 = vmatmul.bf16.vlgmr.msrb.gmra.mxu1 %v2445_v20  ;;  %v3918_v20 = vrot.slane %v3916_v11, 1 }
  0xe3   : > { %3148 = vmatmul.bf16.gmra.mxu2 %v3018_v21  ;;  %v3921_v21 = vrot.slane %v3919_v12, 2 }
  0xe5   : > { %v3922_v28 = vor.u32 %v3921_v21, %v3918_v20  ;;  %v14552_v20 = vld [vmem:[%s15803_s16 + $0x20] sm:$0xff] }
  0xe6   : > { %v3942_v24 = vshrl.u32 %v14552_v20, 16 }
  0xe7   : > { %v3931_v40 = vsel %vm3914_vm2, %v3922_v28, %v3930_v29 }
  0xef   : > { %v15860_v31 = vpop.f32.mrf.mxu0  ;;  %v15862_v32 = vpop.f32.mrf.mxu1 }
  0xf2   : > { %2200 = vmatmul.bf16.gmra.mxu0 %v14453_v30  ;;  %2661 = vmatmul.bf16.gmra.mxu1 %v2453_v33  ;;  %v3025_v30 = vrot.slane %v14509_v25, 1  ;;  %v3945_v25 = vshll.u32 %v14552_v20, 16 }
  0xf3   : > { %3153 = vmatmul.bf16.gmra.mxu2 %v3020_v34 }
  0xf4   : > { %v3026_v43 = vsel %vm3001_vm0, %v3023_v63, %v3025_v30  ;;  %v14510_v63 = vld [vmem:[%s15803_s16 + $0x68] sm:$0xff] }
  0xf6   : > { %v15867_v37 = vpop.f32.mrf.mxu2 }
  0xf7   : > { %v15869_v38 = vpop.f32.mrf.mxu0  ;;  %v15871_v39 = vpop.f32.mrf.mxu1 }
  0xfe   : > { %v15874_v47 = vpop.f32.mrf.mxu2 }
  0xff   : > { %v15877_v49 = vpop.f32.mrf.mxu0  ;;  %v15879_v50 = vpop.f32.mrf.mxu1 }
 0x102   : > { %2205 = vmatmul.bf16.gmra.mxu0 %v14454_v48  ;;  %2666 = vmatmul.bf16.gmra.mxu1 %v2461_v51  ;;  %v14543_v48 = vld [vmem:[#allocation7 + $0xd0] sm:$0xff] }
 0x103   : > { %3158 = vmatmul.bf16.gmra.mxu2 %v3022_v52  ;;  %15033 = vmatpush.bf16.msra.mxu3 %v14543_v48  ;;  %v14677_v52 = vld [vmem:[#allocation7 + $0x230] sm:$0xff] }
 0x104   : > { %3566 = vmatpush.bf16.msrb.mxu2 %v14543_v48  ;;  %6112 = vmatpush.bf16.msra.mxu0 %v14677_v52  ;;  %v14532_v48 = vld [vmem:[%s15803_s16 + $0x50] sm:$0xff] }
 0x105   : > { %v3475_v58 = vrot.slane %v14532_v48, 1  ;;  %v3477_v48 = vrot.slane %v14533_v41, 1 }
 0x106   : > { %v15884_v55 = vpop.f32.mrf.mxu2 }
 0x107   : > { %v15886_v56 = vpop.f32.mrf.mxu0  ;;  %v15888_v57 = vpop.f32.mrf.mxu1  ;;  %15034 = vmatpush.bf16.msra.mxu3 %v14542_v62 }
 0x108   : > { %3567 = vmatpush.bf16.msrb.mxu2 %v14542_v62  ;;  %v14553_v62 = vld [vmem:[%s15803_s16 + $0x28] sm:$0xff] }
 0x10b   : > { %15035 = vmatpush.bf16.msra.mxu3 %v14541_v7 }
 0x10c   : > { %3568 = vmatpush.bf16.msrb.mxu2 %v14541_v7  ;;  %v3951_v7 = vshrl.u32 %v14553_v62, 16 }
 0x10e   : > { %v15893_v2 = vpop.f32.mrf.mxu2 }
 0x10f   : > { %20774 = vst [vmem:[#allocation22_spill] sm:$0xff] %v15893_v2  ;;  %v15896_v4 = vpop.f32.mrf.mxu0  ;;  %v15898_v5 = vpop.f32.mrf.mxu1 }
 0x110   : > { %20775 = vst [vmem:[#allocation23_spill] sm:$0xff] %v15896_v4 }
 0x111   : > { %20776 = vst [vmem:[#allocation24_spill] sm:$0xff] %v15898_v5 }
 0x112   : > { %2210 = vmatmul.bf16.gmra.mxu0 %v14455_v3  ;;  %2671 = vmatmul.bf16.gmra.mxu1 %v2469_v6  ;;  %v3939_v3 = vor.u32 %v3938_v61, %v3935_v60  ;;  %v3027_v6 = vrot.slane %v14510_v63, 1 }
 0x113   : > { %3163 = vmatmul.bf16.gmra.mxu2 %v3024_v9  ;;  %v14531_v9 = vld [vmem:[%s15803_s16 + $0x48] sm:$0xff] }
 0x114   : > { %v3473_v12 = vrot.slane %v14531_v9, 1  ;;  %v3940_v17 = vsel %vm3914_vm2, %v3930_v29, %v3939_v3  ;;  %v3028_v21 = vsel %vm3001_vm0, %v3025_v30, %v3027_v6  ;;  %v2486_v29 = vshrl.u32 %v14477_v44, 16 }
 0x115   : > { %v2490_v30 = vshll.u32 %v14478_v23, 16  ;;  %v3030_v63 = vsel %vm3001_vm0, %v3027_v6, %v3029_v46  ;;  %v3954_v9 = vshll.u32 %v14553_v62, 16  ;;  %v2494_v6 = vshrl.u32 %v14478_v23, 16 }
 0x116   : > { %v15904_v15 = vpop.f32.mrf.mxu2  ;;  %v3474_v22 = vsel %vm3001_vm0, %v20597_v10, %v3473_v12  ;;  %v2488_v42 = vor.u32 %v2486_v29, %v2484_v1  ;;  %v3476_v0 = vsel %vm3001_vm0, %v3473_v12, %v3475_v58  ;;  %v14479_v1 = vld [vmem:[%s15803_s16 + $0x40] sm:$0xff]  ;;  %v3953_v12 = vrot.slane %v3951_v7, 1  ;;  %v14480_v7 = vld [vmem:[%s15803_s16 + $0x48] sm:$0xff] }
 0x117   : > { %20777 = vst [vmem:[#allocation25_spill] sm:$0xff] %v15904_v15  ;;  %v15906_v18 = vpop.f32.mrf.mxu0  ;;  %v15908_v19 = vpop.f32.mrf.mxu1  ;;  %3604 = vmatmul.bf16.vlgmr.msra.gmra.mxu3 %v3474_v22  ;;  %v3956_v22 = vrot.slane %v3954_v9, 2 }
 0x118   : > { %20778 = vst [vmem:[#allocation26_spill] sm:$0xff] %v15906_v18 }
 0x119   : > { %20779 = vst [vmem:[#allocation27_spill] sm:$0xff] %v15908_v19  ;;  %v14540_v19 = vld [vmem:[%s15803_s16 + $0x90] sm:$0xff] }
 0x11e   : > { %v15911_v33 = vpop.f32.mrf.mxu2 }
 0x11f   : > { %20780 = vst [vmem:[#allocation28_spill] sm:$0xff] %v15911_v33  ;;  %v15913_v34 = vpop.f32.mrf.mxu0  ;;  %v15915_v35 = vpop.f32.mrf.mxu1 }
 0x120   : > { %20781 = vst [vmem:[#allocation29_spill] sm:$0xff] %v15913_v34 }
 0x121   : > { %20782 = vst [vmem:[#allocation30_spill] sm:$0xff] %v15915_v35 }
 0x122   : > { %2676 = vmatmul.bf16.gmra.mxu1 %v2477_v36  ;;  %4159 = vmatmul.bf16.vlgmr.msrb.gmra.mxu0 %v3931_v40  ;;  %v3944_v36 = vrot.slane %v3942_v24, 1  ;;  %v3947_v40 = vrot.slane %v3945_v25, 2  ;;  %v14512_v24 = vld [vmem:[%s15803_s16 + $0x78] sm:$0xff]  ;;  %v14676_v25 = vld [vmem:[#allocation7 + $0x228] sm:$0xff] }
 0x123   : > { %3168 = vmatmul.bf16.gmra.mxu2 %v3026_v43  ;;  %v2492_v43 = vrot.slane %v2490_v30, 1  ;;  %6113 = vmatpush.bf16.msra.mxu0 %v14676_v25 }
 0x124   : > { %v3948_v45 = vor.u32 %v3947_v40, %v3944_v36  ;;  %v3957_v36 = vor.u32 %v3956_v22, %v3953_v12  ;;  %v3031_v40 = vrot.slane %v14512_v24, 1 }
 0x125   : > { %v2493_v44 = vsel %vm2433_vm1, %v2488_v42, %v2492_v43  ;;  %v2496_v29 = vor.u32 %v2494_v6, %v2492_v43  ;;  %v3478_v43 = vsel %vm3001_vm0, %v3475_v58, %v3477_v48  ;;  %v14513_v58 = vld [vmem:[%s15803_s16 + $0x80] sm:$0xff] }
 0x126   : > { %v15922_v51 = vpop.f32.mrf.mxu2  ;;  %v3949_v61 = vsel %vm3914_vm2, %v3939_v3, %v3948_v45  ;;  %v3958_v62 = vsel %vm3914_vm2, %v3948_v45, %v3957_v36  ;;  %v2502_v45 = vshrl.u32 %v14479_v1, 16 }
 0x127   : > { %20783 = vst [vmem:[#allocation31_spill] sm:$0xff] %v15922_v51  ;;  %v15924_v53 = vpop.f32.mrf.mxu0  ;;  %v15926_v54 = vpop.f32.mrf.mxu1  ;;  %3609 = vmatmul.bf16.gmra.mxu3 %v3476_v0  ;;  %v3032_v0 = vsel %vm3001_vm0, %v3029_v46, %v3031_v40  ;;  %v2506_v46 = vshll.u32 %v14480_v7, 16 }
 0x128   : > { %20784 = vst [vmem:[#allocation32_spill] sm:$0xff] %v15924_v53 }
 0x129   : > { %20785 = vst [vmem:[#allocation33_spill] sm:$0xff] %v15926_v54 }
 0x12e   : > { %v15933_v11 = vpop.f32.mrf.mxu2 }
 0x12f   : > { %20786 = vst [vmem:[#allocation34_spill] sm:$0xff] %v15933_v11  ;;  %v15936_v13 = vpop.f32.mrf.mxu0  ;;  %v15938_v14 = vpop.f32.mrf.mxu1 }
 0x130   : > { %20787 = vst [vmem:[#allocation35_spill] sm:$0xff] %v15936_v13 }
 0x131   : > { %20788 = vst [vmem:[#allocation36_spill] sm:$0xff] %v15938_v14  ;;  %v14537_v14 = vld [vmem:[%s15803_s16 + $0x78] sm:$0xff] }
 0x132   : > { %2681 = vmatmul.bf16.gmra.mxu1 %v2485_v16  ;;  %4164 = vmatmul.bf16.gmra.mxu0 %v3940_v17  ;;  %v14598_v16 = vld [vmem:[#allocation7 + $0x168] sm:$0xff]  ;;  %v3485_v53 = vrot.slane %v14537_v14, 1 }
 0x133   : > { %3173 = vmatmul.bf16.gmra.mxu2 %v3028_v21  ;;  %4610 = vmatpush.bf16.msra.mxu1 %v14598_v16  ;;  %v2498_v21 = vshll.u32 %v14479_v1, 16 }
 0x135   : > { %v2500_v30 = vrot.slane %v2498_v21, 1 }
 0x136   : > { %v15948_v26 = vpop.f32.mrf.mxu2 }
 0x137   : > { %20789 = vst [vmem:[#allocation37_spill] sm:$0xff] %v15948_v26  ;;  %v15950_v27 = vpop.f32.mrf.mxu0  ;;  %v15952_v28 = vpop.f32.mrf.mxu1  ;;  %v2501_v23 = vsel %vm2433_vm1, %v2496_v29, %v2500_v30  ;;  %3614 = vmatmul.bf16.gmra.mxu3 %v3478_v43  ;;  %v2504_v25 = vor.u32 %v2502_v45, %v2500_v30  ;;  %v2508_v29 = vrot.slane %v2506_v46, 1  ;;  %v14481_v45 = vld [vmem:[%s15803_s16 + $0x50] sm:$0xff] }
 0x138   : > { %20790 = vst [vmem:[#allocation38_spill] sm:$0xff] %v15950_v27  ;;  %v14524_v27 = vld [vmem:[%s15803_s16 + $0x10] sm:$0xff] }
 0x139   : > { %20791 = vst [vmem:[#allocation39_spill] sm:$0xff] %v15952_v28  ;;  %v2509_v1 = vsel %vm2433_vm1, %v2504_v25, %v2508_v29  ;;  %v3459_v13 = vrot.slane %v14524_v27, 1  ;;  %v14484_v27 = vld [vmem:[%s15803_s16 + $0x68] sm:$0xff] }
 0x13e   : > { %v15956_v52 = vpop.f32.mrf.mxu2 }
 0x13f   : > { %20792 = vst [vmem:[#allocation40_spill] sm:$0xff] %v15956_v52  ;;  %v15958_v59 = vpop.f32.mrf.mxu0  ;;  %v15960_v60 = vpop.f32.mrf.mxu1 }
 0x140   : > { %20793 = vst [vmem:[#allocation41_spill] sm:$0xff] %v15958_v59  ;;  %v14536_v59 = vld [vmem:[%s15803_s16 + $0x70] sm:$0xff] }
 0x141   : > { %20794 = vst [vmem:[#allocation42_spill] sm:$0xff] %v15960_v60 }
 0x142   : > { %2686 = vmatmul.bf16.gmra.mxu1 %v2493_v44  ;;  %4169 = vmatmul.bf16.gmra.mxu0 %v3949_v61 }
 0x143   : > { %3178 = vmatmul.bf16.gmra.mxu2 %v3030_v63  ;;  %v14554_v63 = vld [vmem:[%s15803_s16 + $0x30] sm:$0xff] }
 0x144   : > { %v3960_v9 = vshrl.u32 %v14554_v63, 16  ;;  %v3963_v16 = vshll.u32 %v14554_v63, 16 }
 0x146   : > { %v15968_v17 = vpop.f32.mrf.mxu2  ;;  %v3962_v22 = vrot.slane %v3960_v9, 1  ;;  %v3965_v24 = vrot.slane %v3963_v16, 2  ;;  %v14555_v9 = vld [vmem:[%s15803_s16 + $0x38] sm:$0xff] }
 0x147   : > { %20795 = vst [vmem:[#allocation43_spill] sm:$0xff] %v15968_v17  ;;  %v15970_v20 = vpop.f32.mrf.mxu0  ;;  %v15972_v3 = vpop.f32.mrf.mxu1  ;;  %v3969_v46 = vshrl.u32 %v14555_v9, 16 }
 0x148   : > { %20796 = vst [vmem:[#allocation44_spill] sm:$0xff] %v15970_v20  ;;  %v3966_v41 = vor.u32 %v3965_v24, %v3962_v22  ;;  %v3972_v22 = vshll.u32 %v14555_v9, 16 }
 0x149   : > { %20797 = vst [vmem:[#allocation45_spill] sm:$0xff] %v15972_v3 }
 0x14e   : > { %v15976_v42 = vpop.f32.mrf.mxu2 }
 0x14f   : > { %20798 = vst [vmem:[#allocation46_spill] sm:$0xff] %v15976_v42  ;;  %v15978_v44 = vpop.f32.mrf.mxu0  ;;  %v15980_v61 = vpop.f32.mrf.mxu1 }
 0x150   : > { %20799 = vst [vmem:[#allocation47_spill] sm:$0xff] %v15978_v44 }
 0x151   : > { %20800 = vst [vmem:[#allocation48_spill] sm:$0xff] %v15980_v61  ;;  %v14675_v61 = vld [vmem:[#allocation7 + $0x220] sm:$0xff] }
 0x152   : > { %2691 = vmatmul.bf16.gmra.mxu1 %v2501_v23  ;;  %4174 = vmatmul.bf16.gmra.mxu0 %v3958_v62  ;;  %v3033_v23 = vrot.slane %v14513_v58, 1  ;;  %v14534_v62 = vld [vmem:[%s15803_s16 + $0x60] sm:$0xff] }
 0x153   : > { %3183 = vmatmul.bf16.gmra.mxu2 %v3032_v0  ;;  %v3479_v63 = vrot.slane %v14534_v62, 1  ;;  %v2514_v62 = vshll.u32 %v14481_v45, 16  ;;  %6114 = vmatpush.bf16.msra.mxu0 %v14675_v61 }
 0x154   : > { %v3034_v16 = vsel %vm3001_vm0, %v3031_v40, %v3033_v23  ;;  %v3971_v40 = vrot.slane %v3969_v46, 1 }
 0x155   : > { %v3480_v30 = vsel %vm3001_vm0, %v3477_v48, %v3479_v63  ;;  %v14597_v48 = vld [vmem:[#allocation7 + $0x160] sm:$0xff]  ;;  %v2516_v9 = vrot.slane %v2514_v62, 1 }
 0x156   : > { %v15988_v6 = vpop.f32.mrf.mxu2  ;;  %3619 = vmatmul.bf16.gmra.mxu3 %v3480_v30  ;;  %4611 = vmatpush.bf16.msra.mxu1 %v14597_v48 }
 0x157   : > { %20801 = vst [vmem:[#allocation49_spill] sm:$0xff] %v15988_v6  ;;  %v15990_v21 = vpop.f32.mrf.mxu0  ;;  %v15992_v12 = vpop.f32.mrf.mxu1  ;;  %v14535_v6 = vld [vmem:[%s15803_s16 + $0x68] sm:$0xff] }
 0x158   : > { %20802 = vst [vmem:[#allocation50_spill] sm:$0xff] %v15990_v21  ;;  %v3967_v21 = vsel %vm3914_vm2, %v3957_v36, %v3966_v41  ;;  %v2510_v36 = vshrl.u32 %v14480_v7, 16  ;;  %v3481_v7 = vrot.slane %v14535_v6, 1  ;;  %v14482_v6 = vld [vmem:[%s15803_s16 + $0x58] sm:$0xff] }
 0x159   : > { %20803 = vst [vmem:[#allocation51_spill] sm:$0xff] %v15992_v12  ;;  %v14514_v12 = vld [vmem:[%s15803_s16 + $0x88] sm:$0xff]  ;;  %v2522_v61 = vshll.u32 %v14482_v6, 16 }
 0x15a   : > { %v3035_v30 = vrot.slane %v14514_v12, 1  ;;  %v3482_v12 = vsel %vm3001_vm0, %v3479_v63, %v3481_v7 }
 0x15e   : > { %v15996_v0 = vpop.f32.mrf.mxu2 }
 0x15f   : > { %20804 = vst [vmem:[#allocation52_spill] sm:$0xff] %v15996_v0  ;;  %v15998_v43 = vpop.f32.mrf.mxu0  ;;  %v16000_v10 = vpop.f32.mrf.mxu1  ;;  %v3974_v0 = vrot.slane %v3972_v22, 2 }
 0x162   : > { %2696 = vmatmul.bf16.gmra.mxu1 %v2509_v1  ;;  %4179 = vmatmul.bf16.gmra.mxu0 %v3967_v21  ;;  %v14652_v1 = vld [vmem:[#allocation7 + $0x1f8] sm:$0xff]  ;;  %v2512_v21 = vor.u32 %v2510_v36, %v2508_v29  ;;  %v3036_v29 = vsel %vm3001_vm0, %v3033_v23, %v3035_v30  ;;  %v2518_v23 = vshrl.u32 %v14481_v45, 16 }
 0x163   : > { %3188 = vmatmul.bf16.gmra.mxu2 %v3034_v16  ;;  %5654 = vmatpush.bf16.msrb.mxu3 %v14652_v1  ;;  %v3975_v16 = vor.u32 %v3974_v0, %v3971_v40  ;;  %v14556_v1 = vld [vmem:[%s15803_s16 + $0x40] sm:$0xff]  ;;  %v2891_v0 = vld [vmem:[%s15803_s16 + $0x90] sm:$0x1] }
 0x164   : > { %v2517_v22 = vsel %vm2433_vm1, %v2512_v21, %v2516_v9  ;;  %v3978_v36 = vshrl.u32 %v14556_v1, 16  ;;  %v3981_v62 = vshll.u32 %v14556_v1, 16  ;;  %v2981_v40 = vunpack.c.l.b16 %v2891_v0 }
 0x165   : > { %v3976_v48 = vsel %vm3914_vm2, %v3966_v41, %v3975_v16  ;;  %v3483_v0 = vrot.slane %v14536_v59, 1  ;;  %v14483_v59 = vld [vmem:[%s15803_s16 + $0x60] sm:$0xff] }
 0x166   : > { %v16008_v24 = vpop.f32.mrf.mxu2  ;;  %3624 = vmatmul.bf16.gmra.mxu3 %v3482_v12  ;;  %v3980_v63 = vrot.slane %v3978_v36, 1  ;;  %v3983_v3 = vrot.slane %v3981_v62, 2  ;;  %v3000_v12 = vpack.c.b16 %v2981_v40, %v2981_v40  ;;  %v14557_v62 = vld [vmem:[%s15803_s16 + $0x48] sm:$0xff]  ;;  %v14651_v40 = vld [vmem:[#allocation7 + $0x1f0] sm:$0xff] }
 0x167   : > { %v16010_v58 = vpop.f32.mrf.mxu0  ;;  %v16012_v25 = vpop.f32.mrf.mxu1  ;;  %5655 = vmatpush.bf16.msrb.mxu3 %v14651_v40 }
 0x168   : > { %v3037_v17 = vrot.slane %v3000_v12, 1  ;;  %v14523_v12 = vld [vmem:[%s15803_s16 + $0x8] sm:$0xf0] }
 0x16e   : > { %v16016_v44 = vpop.f32.mrf.mxu2 }
 0x16f   : > { %v16018_v42 = vpop.f32.mrf.mxu0  ;;  %v16020_v46 = vpop.f32.mrf.mxu1 }
 0x172   : > { %2701 = vmatmul.bf16.gmra.mxu1 %v2517_v22  ;;  %4184 = vmatmul.bf16.gmra.mxu0 %v3976_v48  ;;  %v2520_v22 = vor.u32 %v2518_v23, %v2516_v9  ;;  %v2524_v48 = vrot.slane %v2522_v61, 1  ;;  %v3038_v9 = vsel %vm3001_vm0, %v3035_v30, %v3037_v17  ;;  %v3987_v23 = vshrl.u32 %v14557_v62, 16 }
 0x173   : > { %3193 = vmatmul.bf16.gmra.mxu2 %v3036_v29  ;;  %v3984_v29 = vor.u32 %v3983_v3, %v3980_v63  ;;  %v3484_v3 = vsel %vm3001_vm0, %v3481_v7, %v3483_v0  ;;  %v3990_v61 = vshll.u32 %v14557_v62, 16  ;;  %v12884_v63 = vld [vmem:[%s15803_s16 + $0x8] sm:$0xe]  ;;  %v2526_v30 = vshrl.u32 %v14482_v6, 16 }
 0x174   : > { %v2525_v45 = vsel %vm2433_vm1, %v2520_v22, %v2524_v48  ;;  %v2530_v7 = vshll.u32 %v14483_v59, 16 }
 0x175   : > { %v3985_v36 = vsel %vm3914_vm2, %v3975_v16, %v3984_v29  ;;  %v2528_v62 = vor.u32 %v2526_v30, %v2524_v48 }
 0x176   : > { %v16029_v20 = vpop.f32.mrf.mxu2  ;;  %3629 = vmatmul.bf16.gmra.mxu3 %v3484_v3  ;;  %v3989_v3 = vrot.slane %v3987_v23, 1  ;;  %v2532_v40 = vrot.slane %v2530_v7, 1  ;;  %v14674_v7 = vld [vmem:[#allocation7 + $0x218] sm:$0xff] }
 0x177   : > { %v16031_v21 = vpop.f32.mrf.mxu0  ;;  %v16033_v41 = vpop.f32.mrf.mxu1  ;;  %6115 = vmatpush.bf16.msra.mxu0 %v14674_v7  ;;  %v14538_v7 = vld [vmem:[%s15803_s16 + $0x80] sm:$0xff] }
 0x178   : > { %v2533_v23 = vsel %vm2433_vm1, %v2528_v62, %v2532_v40 }
 0x17e   : > { %v16036_v1 = vpop.f32.mrf.mxu2 }
 0x17f   : > { %v16038_v60 = vpop.f32.mrf.mxu0  ;;  %v16040_v52 = vpop.f32.mrf.mxu1 }
 0x180   : > { %20805 = vst [vmem:[#allocation53_spill] sm:$0xff] %v16040_v52 }
 0x182   : > { %2706 = vmatmul.bf16.gmra.mxu1 %v2525_v45  ;;  %4189 = vmatmul.bf16.gmra.mxu0 %v3985_v36  ;;  %v3992_v45 = vrot.slane %v3990_v61, 2  ;;  %v12885_v36 = vor.u32 %v14523_v12, %v12884_v63  ;;  %v14558_v63 = vld [vmem:[%s15803_s16 + $0x50] sm:$0xff]  ;;  %v3486_v12 = vsel %vm3001_vm0, %v3483_v0, %v3485_v53  ;;  %v2538_v0 = vshll.u32 %v14484_v27, 16 }
 0x183   : > { %3198 = vmatmul.bf16.gmra.mxu2 %v3038_v9  ;;  %v14596_v9 = vld [vmem:[#allocation7 + $0x158] sm:$0xff]  ;;  %v3996_v14 = vshrl.u32 %v14558_v63, 16  ;;  %v3999_v30 = vshll.u32 %v14558_v63, 16 }
 0x184   : > { %4612 = vmatpush.bf16.msra.mxu1 %v14596_v9  ;;  %v3993_v28 = vor.u32 %v3992_v45, %v3989_v3  ;;  %v3458_v26 = vrot.slane %v12885_v36, 1  ;;  %v14650_v45 = vld [vmem:[#allocation7 + $0x1e8] sm:$0xff] }
 0x185   : > { %v3998_v9 = vrot.slane %v3996_v14, 1  ;;  %v4001_v62 = vrot.slane %v3999_v30, 2  ;;  %5656 = vmatpush.bf16.msrb.mxu3 %v14650_v45  ;;  %v14559_v30 = vld [vmem:[%s15803_s16 + $0x58] sm:$0xff] }
 0x186   : > { %v16050_v22 = vpop.f32.mrf.mxu2  ;;  %v3994_v61 = vsel %vm3914_vm2, %v3984_v29, %v3993_v28  ;;  %v3460_v48 = vsel %vm3001_vm0, %v3458_v26, %v3459_v13  ;;  %3634 = vmatmul.bf16.gmra.mxu3 %v3486_v12  ;;  %v2534_v26 = vshrl.u32 %v14483_v59, 16 }
 0x187   : > { %v16052_v16 = vpop.f32.mrf.mxu0  ;;  %v16054_v17 = vpop.f32.mrf.mxu1  ;;  %v4002_v63 = vor.u32 %v4001_v62, %v3998_v9  ;;  %v4008_v9 = vshll.u32 %v14559_v30, 16 }
 0x188   : > { %20806 = vst [vmem:[#allocation54_spill] sm:$0xff] %v16054_v17  ;;  %v14560_v17 = vld [vmem:[%s15803_s16 + $0x60] sm:$0xff] }
 0x189   : > { %v4003_v14 = vsel %vm3914_vm2, %v3993_v28, %v4002_v63  ;;  %v2542_v28 = vshrl.u32 %v14484_v27, 16 }
 0x18e   : > { %v16058_v11 = vpop.f32.mrf.mxu2 }
 0x18f   : > { %v16060_v54 = vpop.f32.mrf.mxu0  ;;  %v16062_v6 = vpop.f32.mrf.mxu1 }
 0x190   : > { %20807 = vst [vmem:[#allocation55_spill] sm:$0xff] %v16062_v6  ;;  %v3487_v6 = vrot.slane %v14538_v7, 1 }
 0x192   : > { %2711 = vmatmul.bf16.gmra.mxu1 %v2533_v23  ;;  %4194 = vmatmul.bf16.gmra.mxu0 %v3994_v61  ;;  %v14525_v23 = vld [vmem:[%s15803_s16 + $0x18] sm:$0xff]  ;;  %v2536_v61 = vor.u32 %v2534_v26, %v2532_v40  ;;  %v3488_v40 = vsel %vm3001_vm0, %v3485_v53, %v3487_v6  ;;  %v14485_v26 = vld [vmem:[%s15803_s16 + $0x70] sm:$0xff] }
 0x193   : > { %3569 = vmatmul.bf16.vlgmr.msrb.gmra.mxu2 %v3460_v48  ;;  %v2540_v48 = vrot.slane %v2538_v0, 1  ;;  %v3461_v12 = vrot.slane %v14525_v23, 1  ;;  %v4005_v0 = vshrl.u32 %v14559_v30, 16  ;;  %v2546_v7 = vshll.u32 %v14485_v26, 16  ;;  %v14626_v53 = vld [vmem:[#allocation7 + $0x1b8] sm:$0xff] }
 0x194   : > { %5064 = vmatpush.bf16.msra.mxu2 %v14626_v53 }
 0x195   : > { %v2541_v59 = vsel %vm2433_vm1, %v2536_v61, %v2540_v48  ;;  %v3462_v45 = vsel %vm3001_vm0, %v3459_v13, %v3461_v12  ;;  %v4007_v13 = vrot.slane %v4005_v0, 1 }
 0x196   : > { %v16070_v3 = vpop.f32.mrf.mxu2  ;;  %3639 = vmatmul.bf16.gmra.mxu3 %v3488_v40 }
 0x197   : > { %v16072_v29 = vpop.f32.mrf.mxu0  ;;  %v16074_v36 = vpop.f32.mrf.mxu1 }
 0x198   : > { %20808 = vst [vmem:[#allocation56_spill] sm:$0xff] %v16074_v36  ;;  %v14539_v36 = vld [vmem:[%s15803_s16 + $0x88] sm:$0xff] }
 0x19e   : > { %v16078_v51 = vpop.f32.mrf.mxu2 }
 0x19f   : > { %v16080_v34 = vpop.f32.mrf.mxu1  ;;  %v16082_v35 = vpop.f32.mrf.mxu0 }
 0x1a0   : > { %20809 = vst [vmem:[#allocation57_spill] sm:$0xff] %v16080_v34  ;;  %v14526_v34 = vld [vmem:[%s15803_s16 + $0x20] sm:$0xff] }
 0x1a1   : > { %20810 = vst [vmem:[#allocation58_spill] sm:$0xff] %v16082_v35  ;;  %v4010_v35 = vrot.slane %v4008_v9, 2  ;;  %v3463_v40 = vrot.slane %v14526_v34, 1  ;;  %v14486_v34 = vld [vmem:[%s15803_s16 + $0x78] sm:$0xff] }
 0x1a2   : > { %2716 = vmatmul.bf16.gmra.mxu1 %v2541_v59  ;;  %4199 = vmatmul.bf16.gmra.mxu0 %v4003_v14  ;;  %v14649_v59 = vld [vmem:[#allocation7 + $0x1e0] sm:$0xff]  ;;  %v2544_v14 = vor.u32 %v2542_v28, %v2540_v48  ;;  %v4017_v28 = vshll.u32 %v14560_v17, 16 }
 0x1a3   : > { %3574 = vmatmul.bf16.gmra.mxu2 %v3462_v45  ;;  %5657 = vmatpush.bf16.msrb.mxu3 %v14649_v59  ;;  %v2548_v45 = vrot.slane %v2546_v7, 1  ;;  %v4011_v30 = vor.u32 %v4010_v35, %v4007_v13  ;;  %v3464_v53 = vsel %vm3001_vm0, %v3461_v12, %v3463_v40  ;;  %v14595_v35 = vld [vmem:[#allocation7 + $0x150] sm:$0xff]  ;;  %v16110_v7 = vpop.f32.mrf.mxu3 }
 0x1a4   : > { %4613 = vmatpush.bf16.msra.mxu1 %v14595_v35  ;;  %v14673_v59 = vld [vmem:[#allocation7 + $0x210] sm:$0xff] }
 0x1a5   : > { %v2549_v0 = vsel %vm2433_vm1, %v2544_v14, %v2548_v45  ;;  %v4012_v9 = vsel %vm3914_vm2, %v4002_v63, %v4011_v30  ;;  %v14625_v63 = vld [vmem:[#allocation7 + $0x1b0] sm:$0xff]  ;;  %v2550_v14 = vshrl.u32 %v14485_v26, 16  ;;  %6116 = vmatpush.bf16.msra.mxu0 %v14673_v59 }
 0x1a6   : > { %v16090_v62 = vpop.f32.mrf.mxu2  ;;  %5065 = vmatpush.bf16.msra.mxu2 %v14625_v63  ;;  %v14561_v63 = vld [vmem:[%s15803_s16 + $0x68] sm:$0xff] }
 0x1a7   : > { %v16092_v23 = vpop.f32.mrf.mxu1  ;;  %v16094_v61 = vpop.f32.mrf.mxu0 }
 0x1a8   : > { %20811 = vst [vmem:[#allocation59_spill] sm:$0xff] %v16092_v23  ;;  %v3489_v23 = vrot.slane %v14539_v36, 1  ;;  %v4014_v36 = vshrl.u32 %v14560_v17, 16  ;;  %v2552_v17 = vor.u32 %v2550_v14, %v2548_v45  ;;  %v16134_v14 = vld [vmem:[%s15803_s16 + $0x80] sm:$0xff] }
 0x1a9   : > { %20812 = vst [vmem:[#allocation60_spill] sm:$0xff] %v16094_v61 }
 0x1aa   : > { %v3490_v48 = vsel %vm3001_vm0, %v3487_v6, %v3489_v23 }
 0x1ab   : > { %3644 = vmatmul.bf16.gmra.mxu3 %v3490_v48  ;;  %v4019_v48 = vrot.slane %v4017_v28, 2  ;;  %v16119_v18 = vpop.f32.mrf.mxu3 }
 0x1ae   : > { %v16098_v33 = vpop.f32.mrf.mxu2 }
 0x1af   : > { %v16100_v61 = vpop.f32.mrf.mxu1  ;;  %v16102_v27 = vpop.f32.mrf.mxu0 }
 0x1b0   : > { %20813 = vst [vmem:[#allocation61_spill] sm:$0xff] %v16100_v61 }
 0x1b1   : > { %20814 = vst [vmem:[#allocation62_spill] sm:$0xff] %v16102_v27 }
 0x1b2   : > { %2721 = vmatmul.bf16.gmra.mxu1 %v2549_v0  ;;  %4204 = vmatmul.bf16.gmra.mxu0 %v4012_v9  ;;  %v2554_v0 = vshll.u32 %v14486_v34, 16  ;;  %v4016_v9 = vrot.slane %v4014_v36, 1 }
 0x1b3   : > { %3579 = vmatmul.bf16.gmra.mxu2 %v3464_v53  ;;  %v14527_v53 = vld [vmem:[%s15803_s16 + $0x28] sm:$0xff] }
 0x1b4   : > { %v2556_v35 = vrot.slane %v2554_v0, 1  ;;  %v4020_v27 = vor.u32 %v4019_v48, %v4016_v9  ;;  %v3465_v61 = vrot.slane %v14527_v53, 1  ;;  %v4026_v0 = vshll.u32 %v14561_v63, 16  ;;  %v14648_v9 = vld [vmem:[#allocation7 + $0x1d8] sm:$0xff]  ;;  %v16136_v48 = vpop.f32.mrf.mxu3  ;;  %v14624_v53 = vld [vmem:[#allocation7 + $0x1a8] sm:$0xff] }
 0x1b5   : > { %5658 = vmatpush.bf16.msrb.mxu3 %v14648_v9  ;;  %5066 = vmatpush.bf16.msra.mxu2 %v14624_v53 }
 0x1b6   : > { %v16112_v13 = vpop.f32.mrf.mxu2  ;;  %v2557_v36 = vsel %vm2433_vm1, %v2552_v17, %v2556_v35  ;;  %v4021_v28 = vsel %vm3914_vm2, %v4011_v30, %v4020_v27  ;;  %v3466_v45 = vsel %vm3001_vm0, %v3463_v40, %v3465_v61  ;;  %v2558_v17 = vshrl.u32 %v14486_v34, 16  ;;  %v14623_v34 = vld [vmem:[#allocation7 + $0x1a0] sm:$0xff] }
 0x1b7   : > { %v16114_v12 = vpop.f32.mrf.mxu1  ;;  %v16116_v6 = vpop.f32.mrf.mxu0 }
 0x1b8   : > { %20815 = vst [vmem:[#allocation63_spill] sm:$0xff] %v16114_v12  ;;  %v3491_v12 = vrot.slane %v14540_v19, 1  ;;  %v4023_v19 = vshrl.u32 %v14561_v63, 16  ;;  %v3348_v63 = vld [vmem:[%s15803_s16 + $0x98] sm:$0x1] }
 0x1b9   : > { %20816 = vst [vmem:[#allocation64_spill] sm:$0xff] %v16116_v6  ;;  %5067 = vmatpush.bf16.msra.mxu2 %v14623_v34  ;;  %v14621_v34 = vld [vmem:[#allocation7 + $0x190] sm:$0xff] }
 0x1ba   : > { %v3492_v59 = vsel %vm3001_vm0, %v3489_v23, %v3491_v12 }
 0x1bb   : > { %3649 = vmatmul.bf16.gmra.mxu3 %v3492_v59  ;;  %v16146_v59 = vld [vmem:[%s15803_s16 + $0x30] sm:$0xff] }
 0x1bc   : > { %v20598_v53 = vrot.slane %v16146_v59, 1 }
 0x1be   : > { %v16122_v15 = vpop.f32.mrf.mxu2 }
 0x1bf   : > { %20817 = vst [vmem:[#allocation65_spill] sm:$0xff] %v16122_v15  ;;  %v16124_v6 = vpop.f32.mrf.mxu1  ;;  %v16126_v26 = vpop.f32.mrf.mxu0 }
 0x1c0   : > { %20818 = vst [vmem:[#allocation66_spill] sm:$0xff] %v16124_v6  ;;  %v2560_v6 = vor.u32 %v2558_v17, %v2556_v35  ;;  %v14562_v17 = vld [vmem:[%s15803_s16 + $0x70] sm:$0xff] }
 0x1c1   : > { %20819 = vst [vmem:[#allocation67_spill] sm:$0xff] %v16126_v26  ;;  %v3438_v26 = vunpack.c.l.b16 %v3348_v63  ;;  %v4035_v63 = vshll.u32 %v14562_v17, 16 }
 0x1c2   : > { %2726 = vmatmul.bf16.gmra.mxu1 %v2557_v36  ;;  %4209 = vmatmul.bf16.gmra.mxu0 %v4021_v28  ;;  %v2562_v36 = vshll.u32 %v16134_v14, 16  ;;  %v4025_v28 = vrot.slane %v4023_v19, 1 }
 0x1c3   : > { %3584 = vmatmul.bf16.gmra.mxu2 %v3466_v45  ;;  %v4028_v45 = vrot.slane %v4026_v0, 2 }
 0x1c4   : > { %v2564_v52 = vrot.slane %v2562_v36, 1 }
 0x1c5   : > { %v16149_v9 = vor.u32 %v4028_v45, %v4025_v28  ;;  %v16169_v45 = vld [vmem:[%s15803_s16 + $0x88] sm:$0xff] }
 0x1c6   : > { %v16138_v30 = vpop.f32.mrf.mxu2  ;;  %v2565_v5 = vsel %vm2433_vm1, %v2560_v6, %v2564_v52  ;;  %v14622_v6 = vld [vmem:[#allocation7 + $0x198] sm:$0xff] }
 0x1c7   : > { %20820 = vst [vmem:[#allocation68_spill] sm:$0xff] %v16138_v30  ;;  %v16140_v40 = vpop.f32.mrf.mxu1  ;;  %v16142_v23 = vpop.f32.mrf.mxu0  ;;  %v4030_v35 = vsel %vm3914_vm2, %v4020_v27, %v16149_v9  ;;  %v4032_v27 = vshrl.u32 %v14562_v17, 16  ;;  %5068 = vmatpush.bf16.msra.mxu2 %v14622_v6 }
 0x1c8   : > { %20821 = vst [vmem:[#allocation69_spill] sm:$0xff] %v16140_v40  ;;  %v16152_v30 = vpop.f32.mrf.mxu3  ;;  %v3457_v40 = vpack.c.b16 %v3438_v26, %v3438_v26  ;;  %v3468_v26 = vsel %vm3001_vm0, %v3465_v61, %v20598_v53  ;;  %v14594_v61 = vld [vmem:[#allocation7 + $0x148] sm:$0xff] }
 0x1c9   : > { %20822 = vst [vmem:[#allocation70_spill] sm:$0xff] %v16142_v23  ;;  %4614 = vmatpush.bf16.msra.mxu1 %v14594_v61  ;;  %v4034_v17 = vrot.slane %v4032_v27, 1  ;;  %v14620_v53 = vld [vmem:[#allocation7 + $0x188] sm:$0xff] }
 0x1ca   : > { %v3493_v19 = vrot.slane %v3457_v40, 1  ;;  %v2323_v27 = vld [vmem:[%s15803_s16 + $0x90] sm:$0x1] }
 0x1cb   : > { %5069 = vmatpush.bf16.msra.mxu2 %v14621_v34 }
 0x1cc   : > { %v3494_v28 = vsel %vm3001_vm0, %v3491_v12, %v3493_v19 }
 0x1cd   : > { %3654 = vmatmul.bf16.gmra.mxu3 %v3494_v28  ;;  %v14647_v28 = vld [vmem:[#allocation7 + $0x1d0] sm:$0xff] }
 0x1ce   : > { %v16154_v23 = vpop.f32.mrf.mxu2  ;;  %5659 = vmatpush.bf16.msrb.mxu3 %v14647_v28  ;;  %v14619_v28 = vld [vmem:[#allocation7 + $0x180] sm:$0xff] }
 0x1cf   : > { %20823 = vst [vmem:[#allocation71_spill] sm:$0xff] %v16154_v23  ;;  %v2692_v0 = vpop.f32.mrf.mxu1  ;;  %v16156_v4 = vpop.f32.mrf.mxu0  ;;  %5070 = vmatpush.bf16.msra.mxu2 %v14620_v53  ;;  %v14563_v53 = vld [vmem:[%s15803_s16 + $0x78] sm:$0xff] }
 0x1d0   : > { %20824 = vst [vmem:[#allocation72_spill] sm:$0xff] %v16156_v4  ;;  %v2797_v36 = vadd.f32 %v2692_v0, %v15998_v43  ;;  %v16174_v0 = vpop.f32.mrf.mxu3  ;;  %v13300_v4 = vld [vmem:[%s15803_s16 + $0x10] sm:$0xc]  ;;  %v4044_v15 = vshll.u32 %v14563_v53, 16 }
 0x1d2   : > { %2731 = vmatmul.bf16.gmra.mxu1 %v2565_v5  ;;  %4214 = vmatmul.bf16.gmra.mxu0 %v4030_v35  ;;  %v3254_v40 = vadd.f32 %v16008_v24, %v2797_v36  ;;  %v2566_v5 = vshrl.u32 %v16134_v14, 16  ;;  %v2570_v24 = vshll.u32 %v16169_v45, 16 }
 0x1d3   : > { %3589 = vmatmul.bf16.gmra.mxu2 %v3468_v26  ;;  %v16184_v26 = vld [vmem:[%s15803_s16 + $0x38] sm:$0xff] }
 0x1d4   : > { %v16172_v43 = vadd.f32 %v16110_v7, %v3254_v40  ;;  %v4037_v7 = vrot.slane %v4035_v63, 2  ;;  %v14672_v40 = vld [vmem:[#allocation7 + $0x208] sm:$0xff]  ;;  %v2568_v6 = vor.u32 %v2566_v5, %v2564_v52  ;;  %v2572_v61 = vrot.slane %v2570_v24, 1  ;;  %v14628_v52 = vld [vmem:[%s15803_s16 + $0x18] sm:$0xff]  ;;  %5071 = vmatpush.bf16.msra.mxu2 %v14619_v28 }
 0x1d5   : > { %6117 = vmatpush.bf16.msra.mxu0 %v14672_v40  ;;  %v14627_v63 = vld [vmem:[%s15803_s16 + $0x10] sm:$0xf0]  ;;  %v5427_v23 = vshrl.u32 %v14628_v52, 16 }
 0x1d6   : > { %v16176_v12 = vpop.f32.mrf.mxu2  ;;  %v13301_v5 = vor.u32 %v14627_v63, %v13300_v4  ;;  %v5430_v4 = vshll.u32 %v14628_v52, 16  ;;  %v4041_v52 = vshrl.u32 %v14563_v53, 16 }
 0x1d7   : > { %20825 = vst [vmem:[#allocation73_spill] sm:$0xff] %v16176_v12  ;;  %v2694_v19 = vpop.f32.mrf.mxu1  ;;  %v16180_v35 = vpop.f32.mrf.mxu0 }
 0x1d8   : > { %20826 = vst [vmem:[#allocation74_spill] sm:$0xff] %v16180_v35  ;;  %v2798_v36 = vadd.f32 %v2694_v19, %v16010_v58  ;;  %v16187_v35 = vor.u32 %v4037_v7, %v4034_v17  ;;  %v16196_v19 = vpop.f32.mrf.mxu3  ;;  %v2573_v17 = vsel %vm2433_vm1, %v2568_v6, %v2572_v61  ;;  %v2413_v7 = vunpack.c.l.b16 %v2323_v27 }
 0x1d9   : > { %v5419_v40 = vshrl.u32 %v13301_v5, 16  ;;  %v5422_v12 = vshll.u32 %v13301_v5, 16  ;;  %v20829_v6 = vrot.slane %v16184_v26, 1  ;;  %v20830_v27 = vrot.slane %v16146_v59, 1 }
 0x1da   : > { %v3255_v14 = vadd.f32 %v16016_v44, %v2798_v36  ;;  %v14646_v44 = vld [vmem:[#allocation7 + $0x1c8] sm:$0xff]  ;;  %v14593_v36 = vld [vmem:[#allocation7 + $0x140] sm:$0xff]  ;;  %v4039_v34 = vsel %vm3914_vm2, %v16149_v9, %v16187_v35  ;;  %v2432_v2 = vpack.c.b16 %v2413_v7, %v2413_v7 }
 0x1db   : > { %5660 = vmatpush.bf16.msrb.mxu3 %v14646_v44  ;;  %v3470_v44 = vsel %vm3001_vm0, %v20830_v27, %v20829_v6  ;;  %4615 = vmatpush.bf16.msra.mxu1 %v14593_v36  ;;  %v5424_v5 = vrot.slane %v5422_v12, 3 }
 0x1dc   : > { %v16193_v58 = vadd.f32 %v16119_v18, %v3255_v14  ;;  %v2578_v7 = vshll.u32 %v2432_v2, 16 }
 0x1de   : > { %v16199_v24 = vpop.f32.mrf.mxu2 }
 0x1df   : > { %20827 = vst [vmem:[#allocation75_spill] sm:$0xff] %v16199_v24  ;;  %v2697_v18 = vpop.f32.mrf.mxu1  ;;  %v16202_v14 = vpop.f32.mrf.mxu0  ;;  %v14645_v24 = vld [vmem:[#allocation7 + $0x1c0] sm:$0xff] }
 0x1e0   : > { %20828 = vst [vmem:[#allocation76_spill] sm:$0xff] %v16202_v14  ;;  %v2799_v63 = vadd.f32 %v2697_v18, %v16018_v42  ;;  %v5421_v14 = vrot.slane %v5419_v40, 2  ;;  %5661 = vmatpush.bf16.msrb.mxu3 %v14645_v24  ;;  %v5429_v42 = vrot.slane %v5427_v23, 2  ;;  %v5432_v18 = vrot.slane %v5430_v4, 3  ;;  %v16218_v6 = vpop.f32.mrf.mxu3 }
 0x1e1   : > { %v4043_v24 = vrot.slane %v4041_v52, 1  ;;  %v4046_v23 = vrot.slane %v4044_v15, 2  ;;  %v2580_v4 = vrot.slane %v2578_v7, 1 }
 0x1e2   : > { %2736 = vmatmul.bf16.gmra.mxu1 %v2573_v17  ;;  %4219 = vmatmul.bf16.gmra.mxu0 %v4039_v34  ;;  %v3256_v9 = vadd.f32 %v16029_v20, %v2799_v63  ;;  %v5425_v36 = vor.u32 %v5424_v5, %v5421_v14  ;;  %v5433_v28 = vor.u32 %v5432_v18, %v5429_v42  ;;  %v2574_v20 = vshrl.u32 %v16169_v45, 16 }
 0x1e3   : > { %3594 = vmatmul.bf16.gmra.mxu2 %v3470_v44  ;;  %v4047_v63 = vor.u32 %v4046_v23, %v4043_v24  ;;  %v14629_v44 = vld [vmem:[%s15803_s16 + $0x20] sm:$0xff]  ;;  %v20831_v42 = vrot.slane %v15930_v8, 1  ;;  %v20832_v18 = vrot.slane %v16184_v26, 1  ;;  %v13092_v8 = vld [vmem:[%s15803_s16 + $0x8] sm:$0xc] }
 0x1e4   : > { %v16216_v59 = vadd.f32 %v16136_v48, %v3256_v9  ;;  %v5434_v40 = vsel %vm20644_vm3, %v5425_v36, %v5433_v28  ;;  %v2576_v53 = vor.u32 %v2574_v20, %v2572_v61  ;;  %v5436_v15 = vshrl.u32 %v14629_v44, 16  ;;  %v14564_v61 = vld [vmem:[%s15803_s16 + $0x80] sm:$0xff]  ;;  %v14575_v26 = vld [vmem:[%s15803_s16 + $0x8] sm:$0xf0] }
 0x1e5   : > { %5662 = vmatmul.bf16.vlgmr.msrb.gmra.mxu3 %v5434_v40  ;;  %v5439_v9 = vshll.u32 %v14629_v44, 16  ;;  %v3472_v36 = vsel %vm3001_vm0, %v20832_v18, %v20831_v42  ;;  %v4053_v24 = vshll.u32 %v14564_v61, 16 }
 0x1e6   : > { %v16220_v17 = vpop.f32.mrf.mxu2  ;;  %v5438_v20 = vrot.slane %v5436_v15, 2 }
 0x1e7   : > { %v2699_v12 = vpop.f32.mrf.mxu1  ;;  %v16223_v34 = vpop.f32.mrf.mxu0 }
 0x1e8   : > { %v2800_v48 = vadd.f32 %v2699_v12, %v16031_v21  ;;  %v16231_v45 = vpop.f32.mrf.mxu3  ;;  %v2581_v21 = vsel %vm2433_vm1, %v2576_v53, %v2580_v4  ;;  %v5441_v12 = vrot.slane %v5439_v9, 3  ;;  %v4055_v9 = vrot.slane %v4053_v24, 2 }
 0x1ea   : > { %v3257_v14 = vadd.f32 %v16036_v1, %v2800_v48  ;;  %v4048_v1 = vsel %vm3914_vm2, %v16187_v35, %v4047_v63  ;;  %v4050_v35 = vshrl.u32 %v14564_v61, 16  ;;  %v5442_v23 = vor.u32 %v5441_v12, %v5438_v20  ;;  %v13196_v48 = vld [vmem:[%s15803_s16 + $0x10] sm:$0xc] }
 0x1ec   : > { %v16229_v27 = vadd.f32 %v16152_v30, %v3257_v14  ;;  %v14601_v14 = vld [vmem:[%s15803_s16 + $0x10] sm:$0xf0]  ;;  %v5443_v53 = vsel %vm20644_vm3, %v5433_v28, %v5442_v23  ;;  %v4052_v15 = vrot.slane %v4050_v35, 1 }
 0x1ed   : > { %v13197_v61 = vor.u32 %v14601_v14, %v13196_v48 }
 0x1ee   : > { %v16234_v2 = vpop.f32.mrf.mxu2  ;;  %v4056_v28 = vor.u32 %v4055_v9, %v4052_v15 }
 0x1ef   : > { %v2702_v5 = vpop.f32.mrf.mxu1  ;;  %v16236_v52 = vpop.f32.mrf.mxu0  ;;  %v4961_v20 = vrot.slane %v13197_v61, 2 }
 0x1f0   : > { %v2801_v30 = vadd.f32 %v2702_v5, %v16038_v60  ;;  %v16254_v40 = vpop.f32.mrf.mxu3  ;;  %v16264_v5 = vld [vmem:[%s15803_s16 + $0x10] sm:$0xff]  ;;  %v4057_v48 = vsel %vm3914_vm2, %v4047_v63, %v4056_v28 }
 0x1f1   : > { %v4506_v18 = vrot.slane %v16264_v5, 2 }
 0x1f2   : > { %2741 = vmatmul.bf16.gmra.mxu1 %v2581_v21  ;;  %4224 = vmatmul.bf16.gmra.mxu0 %v4048_v1  ;;  %v3258_v7 = vadd.f32 %v16050_v22, %v2801_v30  ;;  %v16268_v1 = vld [vmem:[%s15803_s16 + $0x18] sm:$0xff] }
 0x1f3   : > { %3599 = vmatmul.bf16.gmra.mxu2 %v3472_v36  ;;  %v4962_v12 = vrot.slane %v16268_v1, 2 }
 0x1f4   : > { %v16250_v60 = vadd.f32 %v16174_v0, %v3258_v7  ;;  %v13093_v0 = vor.u32 %v14575_v26, %v13092_v8 }
 0x1f5   : > { %5667 = vmatmul.bf16.gmra.mxu3 %v5443_v53  ;;  %v14671_v53 = vld [vmem:[#allocation7 + $0x200] sm:$0xff]  ;;  %v4963_v15 = vsel %vm4504_vm4, %v4961_v20, %v4962_v12 }
 0x1f6   : > { %v16259_v4 = vpop.f32.mrf.mxu2  ;;  %v4505_v42 = vrot.slane %v13093_v0, 2  ;;  %6118 = vmatpush.bf16.msra.mxu0 %v14671_v53 }
 0x1f7   : > { %v2704_v22 = vpop.f32.mrf.mxu1  ;;  %v16261_v44 = vpop.f32.mrf.mxu0 }
 0x1f8   : > { %v2802_v21 = vadd.f32 %v2704_v22, %v16052_v16  ;;  %v16276_v7 = vpop.f32.mrf.mxu3  ;;  %v14630_v16 = vld [vmem:[%s15803_s16 + $0x28] sm:$0xff]  ;;  %v4507_v14 = vsel %vm4504_vm4, %v4505_v42, %v4506_v18 }
 0x1f9   : > { %v5445_v24 = vshrl.u32 %v14630_v16, 16  ;;  %v5448_v8 = vshll.u32 %v14630_v16, 16 }
 0x1fa   : > { %v3259_v30 = vadd.f32 %v16058_v11, %v2802_v21 }
 0x1fb   : > { %v5447_v9 = vrot.slane %v5445_v24, 2  ;;  %v5450_v5 = vrot.slane %v5448_v8, 3 }
 0x1fc   : > { %v16273_v36 = vadd.f32 %v16196_v19, %v3259_v30  ;;  %v14565_v19 = vld [vmem:[%s15803_s16 + $0x88] sm:$0xff] }
 0x1fd   : > { %v4059_v21 = vshrl.u32 %v14565_v19, 16  ;;  %v4062_v63 = vshll.u32 %v14565_v19, 16  ;;  %v5451_v1 = vor.u32 %v5450_v5, %v5447_v9 }
 0x1fe   : > { %v16279_v35 = vpop.f32.mrf.mxu2 }
 0x1ff   : > { %v2707_v11 = vpop.f32.mrf.mxu1  ;;  %v16281_v26 = vpop.f32.mrf.mxu0  ;;  %v4061_v24 = vrot.slane %v4059_v21, 1  ;;  %v4064_v8 = vrot.slane %v4062_v63, 2 }
 0x200   : > { %v2803_v22 = vadd.f32 %v2707_v11, %v16060_v54  ;;  %v16292_v30 = vpop.f32.mrf.mxu3  ;;  %v5452_v54 = vsel %vm20644_vm3, %v5442_v23, %v5451_v1 }
 0x202   : > { %4229 = vmatmul.bf16.gmra.mxu0 %v4057_v48  ;;  %4616 = vmatmul.bf16.vlgmr.msra.gmra.mxu1 %v4507_v14  ;;  %v3260_v0 = vadd.f32 %v16070_v3, %v2803_v22  ;;  %v16300_v3 = vld [vmem:[%s15803_s16 + $0x18] sm:$0xff]  ;;  %v16304_v48 = vld [vmem:[%s15803_s16 + $0x20] sm:$0xff]  ;;  %v4065_v14 = vor.u32 %v4064_v8, %v4061_v24  ;;  %v2783_v8 = vadd.f32 %v16000_v10, %v15860_v31 }
 0x203   : > { %5072 = vmatmul.bf16.vlgmr.msra.gmra.mxu2 %v4963_v15  ;;  %v4508_v23 = vrot.slane %v16300_v3, 2  ;;  %v4964_v53 = vrot.slane %v16304_v48, 2  ;;  %v14631_v15 = vld [vmem:[%s15803_s16 + $0x30] sm:$0xff] }
 0x204   : > { %v16290_v61 = vadd.f32 %v16218_v6, %v3260_v0  ;;  %v5457_v5 = vshll.u32 %v14631_v15, 16  ;;  %v4066_v63 = vsel %vm3914_vm2, %v4056_v28, %v4065_v14  ;;  %v3240_v31 = vadd.f32 %v15867_v37, %v2783_v8  ;;  %v3804_v37 = vld [vmem:[%s15803_s16 + $0x98] sm:$0x3] }
 0x205   : > { %5672 = vmatmul.bf16.gmra.mxu3 %v5452_v54  ;;  %v14566_v54 = vld [vmem:[%s15803_s16 + $0x90] sm:$0xff]  ;;  %v4965_v24 = vsel %vm4504_vm4, %v4962_v12, %v4964_v53  ;;  %v3894_v8 = vunpack.c.l.b16 %v3804_v37 }
 0x206   : > { %v16295_v42 = vpop.f32.mrf.mxu2  ;;  %v4071_v48 = vshll.u32 %v14566_v54, 16 }
 0x207   : > { %v2709_v20 = vpop.f32.mrf.mxu1  ;;  %v16297_v16 = vpop.f32.mrf.mxu0 }
 0x208   : > { %20833 = vst [vmem:[#allocation77_spill] sm:$0xff] %v16297_v16  ;;  %v2804_v11 = vadd.f32 %v2709_v20, %v16072_v29  ;;  %v16312_v22 = vpop.f32.mrf.mxu3  ;;  %v5454_v29 = vshrl.u32 %v14631_v15, 16 }
 0x20a   : > { %v3261_v6 = vadd.f32 %v16078_v51, %v2804_v11  ;;  %v4509_v51 = vsel %vm4504_vm4, %v4506_v18, %v4508_v23  ;;  %v5456_v3 = vrot.slane %v5454_v29, 2  ;;  %v5459_v11 = vrot.slane %v5457_v5, 3 }
 0x20b   : > { %v4068_v18 = vshrl.u32 %v14566_v54, 16 }
 0x20c   : > { %v16309_v19 = vadd.f32 %v16231_v45, %v3261_v6 }
 0x20d   : > { %v4070_v5 = vrot.slane %v4068_v18, 1 }
 0x20e   : > { %v16315_v9 = vpop.f32.mrf.mxu2 }
 0x20f   : > { %v2712_v0 = vpop.f32.mrf.mxu1  ;;  %v4195_v21 = vpop.f32.mrf.mxu0 }
 0x210   : > { %v2805_v20 = vadd.f32 %v2712_v0, %v15862_v32  ;;  %v16322_v45 = vadd.f32 %v4195_v21, %v16172_v43  ;;  %v5460_v32 = vor.u32 %v5459_v11, %v5456_v3  ;;  %v16331_v12 = vpop.f32.mrf.mxu3  ;;  %v4073_v0 = vrot.slane %v4071_v48, 2  ;;  %v16338_v21 = vld [vmem:[%s15803_s16 + $0x20] sm:$0xff]  ;;  %v14632_v11 = vld [vmem:[%s15803_s16 + $0x38] sm:$0xff] }
 0x211   : > { %v5463_v48 = vshrl.u32 %v14632_v11, 16 }
 0x212   : > { %20834 = vst [vmem:[#allocation78_spill] sm:$0xff] %v16322_v45  ;;  %4234 = vmatmul.bf16.gmra.mxu0 %v4066_v63  ;;  %4621 = vmatmul.bf16.gmra.mxu1 %v4509_v51  ;;  %v3262_v28 = vadd.f32 %v16090_v62, %v2805_v20  ;;  %v5461_v10 = vsel %vm20644_vm3, %v5451_v1, %v5460_v32  ;;  %v16345_v51 = vld [vmem:[%s15803_s16 + $0x28] sm:$0xff] }
 0x213   : > { %5077 = vmatmul.bf16.gmra.mxu2 %v4965_v24  ;;  %v2784_v1 = vadd.f32 %v16012_v25, %v15869_v38  ;;  %v4074_v20 = vor.u32 %v4073_v0, %v4070_v5  ;;  %v4510_v24 = vrot.slane %v16338_v21, 2  ;;  %v5465_v0 = vrot.slane %v5463_v48, 2 }
 0x214   : > { %v16329_v43 = vadd.f32 %v16254_v40, %v3262_v28 }
 0x215   : > { %5677 = vmatmul.bf16.gmra.mxu3 %v5461_v10  ;;  %v3241_v28 = vadd.f32 %v15874_v47, %v2784_v1  ;;  %v4075_v10 = vsel %vm3914_vm2, %v4065_v14, %v4074_v20  ;;  %v2785_v47 = vadd.f32 %v16020_v46, %v15877_v49 }
 0x216   : > { %v3570_v6 = vpop.f32.mrf.mxu2 }
 0x217   : > { %v16335_v15 = vadd.f32 %v3570_v6, %v3240_v31  ;;  %v2714_v29 = vpop.f32.mrf.mxu1  ;;  %v4197_v62 = vpop.f32.mrf.mxu0  ;;  %v5466_v31 = vshll.u32 %v14632_v11, 16  ;;  %v4511_v6 = vsel %vm4504_vm4, %v4508_v23, %v4510_v24  ;;  %v16382_v11 = vld [vmem:[%s15803_s16 + $0x28] sm:$0xff] }
 0x218   : > { %v2806_v63 = vadd.f32 %v2714_v29, %v15871_v39  ;;  %v16342_v40 = vadd.f32 %v4197_v62, %v16193_v58  ;;  %v4966_v39 = vrot.slane %v16345_v51, 2  ;;  %v16356_v58 = vpop.f32.mrf.mxu3  ;;  %v3242_v51 = vadd.f32 %v15884_v55, %v2785_v47 }
 0x219   : > { %v5468_v14 = vrot.slane %v5466_v31, 3  ;;  %v2786_v55 = vadd.f32 %v16033_v41, %v15886_v56 }
 0x21a   : > { %20835 = vst [vmem:[#allocation79_spill] sm:$0xff] %v16342_v40  ;;  %v3263_v54 = vadd.f32 %v16098_v33, %v2806_v63  ;;  %v4967_v5 = vsel %vm4504_vm4, %v4964_v53, %v4966_v39 }
 0x21b   : > { %v5469_v53 = vor.u32 %v5468_v14, %v5465_v0  ;;  %v20840_v14 = vld [vmem:[#allocation24_spill] sm:$0xff] }
 0x21c   : > { %v16353_v3 = vadd.f32 %v16276_v7, %v3263_v54  ;;  %v3913_v7 = vpack.c.b16 %v3894_v8, %v3894_v8 }
 0x21d   : > { %v5470_v46 = vsel %vm20644_vm3, %v5460_v32, %v5469_v53  ;;  %v20838_v32 = vld [vmem:[#allocation65_spill] sm:$0xff] }
 0x21e   : > { %v3572_v18 = vpop.f32.mrf.mxu2  ;;  %v4077_v23 = vshrl.u32 %v3913_v7, 16  ;;  %v4080_v63 = vshll.u32 %v3913_v7, 16 }
 0x21f   : > { %v16360_v38 = vadd.f32 %v3572_v18, %v3241_v28  ;;  %v2717_v33 = vpop.f32.mrf.mxu1  ;;  %v4200_v25 = vpop.f32.mrf.mxu0  ;;  %v16389_v18 = vld [vmem:[%s15803_s16 + $0x30] sm:$0xff] }
 0x220   : > { %v2807_v29 = vadd.f32 %v2717_v33, %v15879_v50  ;;  %v16366_v62 = vadd.f32 %v4200_v25, %v16216_v59  ;;  %v16375_v59 = vpop.f32.mrf.mxu3  ;;  %v4079_v54 = vrot.slane %v4077_v23, 1  ;;  %v4082_v8 = vrot.slane %v4080_v63, 2 }
 0x221   : > { %v4512_v33 = vrot.slane %v16382_v11, 2 }
 0x222   : > { %20836 = vst [vmem:[#allocation80_spill] sm:$0xff] %v16366_v62  ;;  %4239 = vmatmul.bf16.gmra.mxu0 %v4075_v10  ;;  %4626 = vmatmul.bf16.gmra.mxu1 %v4511_v6  ;;  %v3264_v21 = vadd.f32 %v16112_v13, %v2807_v29  ;;  %v4083_v31 = vor.u32 %v4082_v8, %v4079_v54  ;;  %v4968_v10 = vrot.slane %v16389_v18, 2  ;;  %v20839_v6 = vld [vmem:[#allocation22_spill] sm:$0xff]  ;;  %v20844_v8 = vld [vmem:[#allocation68_spill] sm:$0xff]  ;;  %v20845_v18 = vld [vmem:[#allocation25_spill] sm:$0xff] }
 0x223   : > { %5082 = vmatmul.bf16.gmra.mxu2 %v4967_v5  ;;  %v3243_v7 = vadd.f32 %v20839_v6, %v2786_v55 }
 0x224   : > { %v16373_v50 = vadd.f32 %v16292_v30, %v3264_v21  ;;  %v4084_v21 = vsel %vm3914_vm2, %v4074_v20, %v4083_v31 }
 0x225   : > { %5682 = vmatmul.bf16.gmra.mxu3 %v5470_v46  ;;  %v20843_v46 = vld [vmem:[#allocation53_spill] sm:$0xff] }
 0x226   : > { %v3575_v49 = vpop.f32.mrf.mxu2 }
 0x227   : > { %v16379_v37 = vadd.f32 %v3575_v49, %v3242_v51  ;;  %v2719_v13 = vpop.f32.mrf.mxu1  ;;  %v4202_v1 = vpop.f32.mrf.mxu0  ;;  %v4969_v51 = vsel %vm4504_vm4, %v4966_v39, %v4968_v10  ;;  %v20842_v49 = vld [vmem:[#allocation23_spill] sm:$0xff] }
 0x228   : > { %v2808_v30 = vadd.f32 %v2719_v13, %v15888_v57  ;;  %v16386_v28 = vadd.f32 %v4202_v1, %v16229_v27  ;;  %v16399_v57 = vpop.f32.mrf.mxu3  ;;  %v14633_v27 = vld [vmem:[%s15803_s16 + $0x40] sm:$0xff]  ;;  %v2787_v13 = vadd.f32 %v20843_v46, %v20842_v49 }
 0x229   : > { %v5472_v5 = vshrl.u32 %v14633_v27, 16  ;;  %v5475_v47 = vshll.u32 %v14633_v27, 16 }
 0x22a   : > { %20837 = vst [vmem:[#allocation81_spill] sm:$0xff] %v16386_v28  ;;  %v3265_v48 = vadd.f32 %v20838_v32, %v2808_v30  ;;  %v14653_v30 = vld [vmem:[%s15803_s16 + $0x10] sm:$0xf0]  ;;  %v3244_v55 = vadd.f32 %v20845_v18, %v2787_v13 }
 0x22b   : > { %v5474_v1 = vrot.slane %v5472_v5, 2  ;;  %v5477_v54 = vrot.slane %v5475_v47, 3  ;;  %v20846_v5 = vld [vmem:[#allocation27_spill] sm:$0xff] }
 0x22c   : > { %v16396_v25 = vadd.f32 %v16312_v22, %v3265_v48  ;;  %v4513_v22 = vsel %vm4504_vm4, %v4510_v24, %v4512_v33 }
 0x22d   : > { %v5478_v24 = vor.u32 %v5477_v54, %v5474_v1  ;;  %v14634_v54 = vld [vmem:[%s15803_s16 + $0x48] sm:$0xff] }
 0x22e   : > { %v3577_v29 = vpop.f32.mrf.mxu2  ;;  %v5484_v18 = vshll.u32 %v14634_v54, 16 }
 0x22f   : > { %v16403_v0 = vadd.f32 %v3577_v29, %v3243_v7  ;;  %v2722_v56 = vpop.f32.mrf.mxu1  ;;  %v4205_v41 = vpop.f32.mrf.mxu0  ;;  %v5479_v32 = vsel %vm20644_vm3, %v5469_v53, %v5478_v24  ;;  %v16427_v7 = vld [vmem:[%s15803_s16 + $0x30] sm:$0xff]  ;;  %v16430_v29 = vld [vmem:[%s15803_s16 + $0x18] sm:$0xff] }
 0x230   : > { %v2809_v23 = vadd.f32 %v2722_v56, %v20840_v14  ;;  %v16409_v63 = vadd.f32 %v4205_v41, %v16250_v60  ;;  %v13404_v60 = vld [vmem:[%s15803_s16 + $0x10] sm:$0x8]  ;;  %v16420_v39 = vpop.f32.mrf.mxu3  ;;  %v16437_v41 = vld [vmem:[%s15803_s16 + $0x38] sm:$0xff]  ;;  %v6009_v46 = vrot.slane %v16430_v29, 3 }
 0x231   : > { %v20848_v53 = vld [vmem:[#allocation26_spill] sm:$0xff]  ;;  %v20850_v14 = vld [vmem:[#allocation71_spill] sm:$0xff]  ;;  %v4970_v1 = vrot.slane %v16437_v41, 2 }
 0x232   : > { %20841 = vst [vmem:[#allocation65_spill] sm:$0xff] %v16409_v63  ;;  %4244 = vmatmul.bf16.gmra.mxu0 %v4084_v21  ;;  %4631 = vmatmul.bf16.gmra.mxu1 %v4513_v22  ;;  %v3266_v20 = vadd.f32 %v20844_v8, %v2809_v23  ;;  %v20849_v21 = vld [vmem:[#allocation54_spill] sm:$0xff]  ;;  %v20851_v8 = vld [vmem:[#allocation28_spill] sm:$0xff] }
 0x233   : > { %5087 = vmatmul.bf16.gmra.mxu2 %v4969_v51  ;;  %v2788_v22 = vadd.f32 %v20849_v21, %v20848_v53  ;;  %v4514_v51 = vrot.slane %v16427_v7, 2  ;;  %v5486_v21 = vrot.slane %v5484_v18, 3  ;;  %v16474_v18 = vld [vmem:[%s15803_s16 + $0x38] sm:$0xff] }
 0x234   : > { %v16416_v11 = vadd.f32 %v16331_v12, %v3266_v20  ;;  %v13405_v12 = vor.u32 %v14653_v30, %v13404_v60  ;;  %v5481_v30 = vshrl.u32 %v14634_v54, 16 }
 0x235   : > { %5687 = vmatmul.bf16.gmra.mxu3 %v5479_v32  ;;  %v3245_v20 = vadd.f32 %v20851_v8, %v2788_v22  ;;  %v20856_v22 = vld [vmem:[#allocation73_spill] sm:$0xff] }
 0x236   : > { %v3580_v48 = vpop.f32.mrf.mxu2  ;;  %v6008_v49 = vrot.slane %v13405_v12, 3  ;;  %v4971_v12 = vsel %vm4504_vm4, %v4968_v10, %v4970_v1  ;;  %v5483_v53 = vrot.slane %v5481_v30, 2  ;;  %v20857_v10 = vld [vmem:[#allocation31_spill] sm:$0xff] }
 0x237   : > { %v16424_v31 = vadd.f32 %v3580_v48, %v3244_v55  ;;  %v2724_v27 = vpop.f32.mrf.mxu1  ;;  %v4207_v6 = vpop.f32.mrf.mxu0 }
 0x238   : > { %v2810_v47 = vadd.f32 %v2724_v27, %v20846_v5  ;;  %v16434_v56 = vadd.f32 %v4207_v6, %v16273_v36  ;;  %v16448_v36 = vpop.f32.mrf.mxu3  ;;  %v4515_v27 = vsel %vm4504_vm4, %v4512_v33, %v4514_v51  ;;  %v20852_v6 = vld [vmem:[#allocation30_spill] sm:$0xff]  ;;  %v20854_v5 = vld [vmem:[#allocation29_spill] sm:$0xff] }
 0x23a   : > { %20847 = vst [vmem:[#allocation22_spill] sm:$0xff] %v16434_v56  ;;  %v3267_v23 = vadd.f32 %v20850_v14, %v2810_v47  ;;  %v20855_v47 = vld [vmem:[#allocation55_spill] sm:$0xff]  ;;  %v5487_v14 = vor.u32 %v5486_v21, %v5483_v53 }
 0x23b   : > { %v2789_v41 = vadd.f32 %v20855_v47, %v20854_v5  ;;  %v4516_v47 = vrot.slane %v16474_v18, 2  ;;  %v14640_v56 = vld [vmem:[%s15803_s16 + $0x78] sm:$0xff] }
 0x23c   : > { %v16445_v13 = vadd.f32 %v16356_v58, %v3267_v23  ;;  %v6010_v58 = vsel %vm6007_vm5, %v6008_v49, %v6009_v46  ;;  %v5488_v54 = vsel %vm20644_vm3, %v5478_v24, %v5487_v14  ;;  %v20861_v24 = vld [vmem:[#allocation56_spill] sm:$0xff] }
 0x23d   : > { %v3246_v49 = vadd.f32 %v20857_v10, %v2789_v41  ;;  %v4517_v18 = vsel %vm4504_vm4, %v4514_v51, %v4516_v47 }
 0x23e   : > { %v3582_v60 = vpop.f32.mrf.mxu2 }
 0x23f   : > { %v16452_v55 = vadd.f32 %v3582_v60, %v3245_v20  ;;  %v2727_v32 = vpop.f32.mrf.mxu1  ;;  %v4210_v48 = vpop.f32.mrf.mxu0 }
 0x240   : > { %v2811_v7 = vadd.f32 %v2727_v32, %v20852_v6  ;;  %v16458_v29 = vadd.f32 %v4210_v48, %v16290_v61  ;;  %v16467_v61 = vpop.f32.mrf.mxu3  ;;  %v16477_v32 = vld [vmem:[%s15803_s16 + $0x20] sm:$0xff] }
 0x241   : > { %v20858_v48 = vld [vmem:[#allocation33_spill] sm:$0xff]  ;;  %v20860_v6 = vld [vmem:[#allocation32_spill] sm:$0xff]  ;;  %v6011_v41 = vrot.slane %v16477_v32, 3 }
 0x242   : > { %20853 = vst [vmem:[#allocation24_spill] sm:$0xff] %v16458_v29  ;;  %4636 = vmatmul.bf16.gmra.mxu1 %v4515_v27  ;;  %6119 = vmatmul.bf16.vlgmr.msra.gmra.mxu0 %v6010_v58  ;;  %v3268_v33 = vadd.f32 %v20856_v22, %v2811_v7  ;;  %v16484_v58 = vld [vmem:[%s15803_s16 + $0x40] sm:$0xff]  ;;  %v2790_v7 = vadd.f32 %v20861_v24, %v20860_v6  ;;  %v14635_v22 = vld [vmem:[%s15803_s16 + $0x50] sm:$0xff] }
 0x243   : > { %5092 = vmatmul.bf16.gmra.mxu2 %v4971_v12  ;;  %v20862_v12 = vld [vmem:[#allocation75_spill] sm:$0xff]  ;;  %v4972_v21 = vrot.slane %v16484_v58, 2  ;;  %v6012_v32 = vsel %vm6007_vm5, %v6009_v46, %v6011_v41 }
 0x244   : > { %v16465_v23 = vadd.f32 %v16375_v59, %v3268_v33  ;;  %v20866_v24 = vld [vmem:[#allocation35_spill] sm:$0xff] }
 0x245   : > { %5692 = vmatmul.bf16.gmra.mxu3 %v5488_v54  ;;  %v5490_v54 = vshrl.u32 %v14635_v22, 16  ;;  %v4973_v6 = vsel %vm4504_vm4, %v4970_v1, %v4972_v21 }
 0x246   : > { %v3585_v8 = vpop.f32.mrf.mxu2 }
 0x247   : > { %v16471_v20 = vadd.f32 %v3585_v8, %v3246_v49  ;;  %v2729_v60 = vpop.f32.mrf.mxu1  ;;  %v4212_v30 = vpop.f32.mrf.mxu0  ;;  %v5493_v8 = vshll.u32 %v14635_v22, 16 }
 0x248   : > { %v2812_v27 = vadd.f32 %v2729_v60, %v20858_v48  ;;  %v16481_v59 = vadd.f32 %v4212_v30, %v16309_v19  ;;  %v20863_v19 = vld [vmem:[#allocation34_spill] sm:$0xff]  ;;  %v16497_v49 = vpop.f32.mrf.mxu3 }
 0x249   : > { %v3247_v33 = vadd.f32 %v20863_v19, %v2790_v7  ;;  %v20867_v7 = vld [vmem:[#allocation57_spill] sm:$0xff]  ;;  %v5495_v22 = vrot.slane %v5493_v8, 3 }
 0x24a   : > { %20859 = vst [vmem:[#allocation23_spill] sm:$0xff] %v16481_v59  ;;  %v3269_v5 = vadd.f32 %v20862_v12, %v2812_v27  ;;  %v2791_v12 = vadd.f32 %v20867_v7, %v20866_v24  ;;  %v5535_v59 = vshrl.u32 %v14640_v56, 16 }
 0x24c   : > { %v16492_v53 = vadd.f32 %v16399_v57, %v3269_v5  ;;  %v20864_v57 = vld [vmem:[#allocation36_spill] sm:$0xff]  ;;  %v5492_v5 = vrot.slane %v5490_v54, 2 }
 0x24e   : > { %v3587_v10 = vpop.f32.mrf.mxu2  ;;  %v5496_v46 = vor.u32 %v5495_v22, %v5492_v5 }
 0x24f   : > { %v16499_v60 = vadd.f32 %v3587_v10, %v3247_v33  ;;  %v2732_v30 = vpop.f32.mrf.mxu1  ;;  %v4215_v48 = vpop.f32.mrf.mxu0 }
 0x250   : > { %v2813_v27 = vadd.f32 %v2732_v30, %v20864_v57  ;;  %v16505_v58 = vadd.f32 %v4215_v48, %v16329_v43  ;;  %v20868_v43 = vld [vmem:[#allocation37_spill] sm:$0xff]  ;;  %v5497_v1 = vsel %vm20644_vm3, %v5487_v14, %v5496_v46  ;;  %v16531_v24 = vpop.f32.mrf.mxu3 }
 0x251   : > { %v3248_v33 = vadd.f32 %v20868_v43, %v2791_v12  ;;  %v16519_v48 = vld [vmem:[%s15803_s16 + $0x40] sm:$0xff]  ;;  %v14636_v43 = vld [vmem:[%s15803_s16 + $0x58] sm:$0xff] }
 0x252   : > { %20865 = vst [vmem:[#allocation53_spill] sm:$0xff] %v16505_v58  ;;  %4641 = vmatmul.bf16.gmra.mxu1 %v4517_v18  ;;  %6124 = vmatmul.bf16.gmra.mxu0 %v6012_v32  ;;  %v3270_v51 = vadd.f32 %v16220_v17, %v2813_v27  ;;  %v16522_v18 = vld [vmem:[%s15803_s16 + $0x28] sm:$0xff]  ;;  %v20869_v17 = vld [vmem:[#allocation39_spill] sm:$0xff]  ;;  %v4518_v12 = vrot.slane %v16519_v48, 2 }
 0x253   : > { %5097 = vmatmul.bf16.gmra.mxu2 %v4973_v6  ;;  %v20871_v27 = vld [vmem:[#allocation38_spill] sm:$0xff]  ;;  %v20872_v6 = vld [vmem:[#allocation59_spill] sm:$0xff]  ;;  %v6013_v5 = vrot.slane %v16522_v18, 3 }
 0x254   : > { %v16512_v19 = vadd.f32 %v16420_v39, %v3270_v51  ;;  %v14608_v39 = vld [vmem:[%s15803_s16 + $0x48] sm:$0xff]  ;;  %v2792_v14 = vadd.f32 %v20872_v6, %v20871_v27 }
 0x255   : > { %5697 = vmatmul.bf16.gmra.mxu3 %v5497_v1  ;;  %v4974_v51 = vrot.slane %v14608_v39, 2  ;;  %v5499_v1 = vshrl.u32 %v14636_v43, 16  ;;  %v6014_v48 = vsel %vm6007_vm5, %v6011_v41, %v6013_v5  ;;  %v20876_v6 = vld [vmem:[#allocation41_spill] sm:$0xff] }
 0x256   : > { %v3590_v10 = vpop.f32.mrf.mxu2 }
 0x257   : > { %v16516_v30 = vadd.f32 %v3590_v10, %v3248_v33  ;;  %v2734_v54 = vpop.f32.mrf.mxu1  ;;  %v4217_v8 = vpop.f32.mrf.mxu0  ;;  %v4975_v39 = vsel %vm4504_vm4, %v4972_v21, %v4974_v51  ;;  %v20878_v21 = vld [vmem:[#allocation43_spill] sm:$0xff] }
 0x258   : > { %v2814_v32 = vadd.f32 %v2734_v54, %v20869_v17  ;;  %v16526_v57 = vadd.f32 %v4217_v8, %v16353_v3  ;;  %v20873_v3 = vld [vmem:[#allocation40_spill] sm:$0xff]  ;;  %v5502_v54 = vshll.u32 %v14636_v43, 16  ;;  %v5501_v43 = vrot.slane %v5499_v1, 2  ;;  %v16553_v41 = vpop.f32.mrf.mxu3 }
 0x259   : > { %v3249_v33 = vadd.f32 %v20873_v3, %v2792_v14  ;;  %v20877_v14 = vld [vmem:[#allocation61_spill] sm:$0xff] }
 0x25a   : > { %20870 = vst [vmem:[#allocation68_spill] sm:$0xff] %v16526_v57  ;;  %v3271_v7 = vadd.f32 %v16234_v2, %v2814_v32  ;;  %v4519_v2 = vsel %vm4504_vm4, %v4516_v47, %v4518_v12  ;;  %v20874_v32 = vld [vmem:[#allocation42_spill] sm:$0xff]  ;;  %v5504_v3 = vrot.slane %v5502_v54, 3 }
 0x25c   : > { %v16537_v22 = vadd.f32 %v16448_v36, %v3271_v7  ;;  %v2793_v7 = vadd.f32 %v20877_v14, %v20876_v6  ;;  %v20881_v6 = vld [vmem:[#allocation44_spill] sm:$0xff] }
 0x25e   : > { %v3592_v10 = vpop.f32.mrf.mxu2 }
 0x25f   : > { %v16541_v8 = vadd.f32 %v3592_v10, %v3249_v33  ;;  %v2737_v17 = vpop.f32.mrf.mxu1  ;;  %v4220_v27 = vpop.f32.mrf.mxu0  ;;  %v5505_v33 = vor.u32 %v5504_v3, %v5501_v43  ;;  %v3250_v10 = vadd.f32 %v20878_v21, %v2793_v7 }
 0x260   : > { %v2815_v18 = vadd.f32 %v2737_v17, %v20874_v32  ;;  %v16547_v36 = vadd.f32 %v4220_v27, %v16373_v50 }
 0x261   : > { %v5506_v17 = vsel %vm20644_vm3, %v5496_v46, %v5505_v33  ;;  %v20882_v46 = vld [vmem:[#allocation63_spill] sm:$0xff] }
 0x262   : > { %20875 = vst [vmem:[#allocation25_spill] sm:$0xff] %v16547_v36  ;;  %4646 = vmatmul.bf16.gmra.mxu1 %v4519_v2  ;;  %6129 = vmatmul.bf16.gmra.mxu0 %v6014_v48  ;;  %v3272_v47 = vadd.f32 %v16259_v4, %v2815_v18  ;;  %v16563_v2 = vld [vmem:[%s15803_s16 + $0x48] sm:$0xff]  ;;  %v16566_v4 = vld [vmem:[%s15803_s16 + $0x50] sm:$0xff]  ;;  %v2794_v14 = vadd.f32 %v20882_v46, %v20881_v6 }
 0x263   : > { %5102 = vmatmul.bf16.gmra.mxu2 %v4975_v39  ;;  %v16569_v48 = vld [vmem:[%s15803_s16 + $0x30] sm:$0xff]  ;;  %v20879_v18 = vld [vmem:[#allocation45_spill] sm:$0xff]  ;;  %v4520_v43 = vrot.slane %v16563_v2, 2  ;;  %v4976_v3 = vrot.slane %v16566_v4, 2 }
 0x264   : > { %v16556_v50 = vadd.f32 %v16467_v61, %v3272_v47  ;;  %v6015_v47 = vrot.slane %v16569_v48, 3  ;;  %v20884_v48 = vld [vmem:[#allocation48_spill] sm:$0xff] }
 0x265   : > { %5702 = vmatmul.bf16.gmra.mxu3 %v5506_v17  ;;  %v14637_v17 = vld [vmem:[%s15803_s16 + $0x60] sm:$0xff]  ;;  %v4977_v2 = vsel %vm4504_vm4, %v4974_v51, %v4976_v3 }
 0x266   : > { %v3595_v27 = vpop.f32.mrf.mxu2  ;;  %v6016_v4 = vsel %vm6007_vm5, %v6013_v5, %v6015_v47 }
 0x267   : > { %v16560_v1 = vadd.f32 %v3595_v27, %v3250_v10  ;;  %v2739_v54 = vpop.f32.mrf.mxu1  ;;  %v4222_v32 = vpop.f32.mrf.mxu0  ;;  %v20883_v27 = vld [vmem:[#allocation46_spill] sm:$0xff] }
 0x268   : > { %v2816_v39 = vadd.f32 %v2739_v54, %v20879_v18  ;;  %v16573_v61 = vadd.f32 %v4222_v32, %v16396_v25  ;;  %v16581_v21 = vpop.f32.mrf.mxu3  ;;  %v3251_v25 = vadd.f32 %v20883_v27, %v2794_v14  ;;  %v20886_v14 = vld [vmem:[#allocation47_spill] sm:$0xff]  ;;  %v20887_v27 = vld [vmem:[#allocation66_spill] sm:$0xff] }
 0x26a   : > { %20880 = vst [vmem:[#allocation27_spill] sm:$0xff] %v16573_v61  ;;  %v3273_v7 = vadd.f32 %v16279_v35, %v2816_v39  ;;  %v4521_v35 = vsel %vm4504_vm4, %v4518_v12, %v4520_v43 }
 0x26c   : > { %v16584_v10 = vadd.f32 %v16497_v49, %v3273_v7  ;;  %v5508_v49 = vshrl.u32 %v14637_v17, 16  ;;  %v5511_v7 = vshll.u32 %v14637_v17, 16 }
 0x26e   : > { %v3597_v54 = vpop.f32.mrf.mxu2  ;;  %v5510_v5 = vrot.slane %v5508_v49, 2 }
 0x26f   : > { %v16588_v32 = vadd.f32 %v3597_v54, %v3251_v25  ;;  %v2742_v18 = vpop.f32.mrf.mxu1  ;;  %v4225_v6 = vpop.f32.mrf.mxu0  ;;  %v2795_v25 = vadd.f32 %v20887_v27, %v20886_v14  ;;  %v5513_v54 = vrot.slane %v5511_v7, 3  ;;  %v14584_v27 = vld [vmem:[%s15803_s16 + $0x50] sm:$0xff] }
 0x270   : > { %v2817_v39 = vadd.f32 %v2742_v18, %v20884_v48  ;;  %v16595_v46 = vadd.f32 %v4225_v6, %v16416_v11  ;;  %v16600_v51 = vpop.f32.mrf.mxu3  ;;  %v20888_v18 = vld [vmem:[#allocation49_spill] sm:$0xff] }
 0x271   : > { %v3252_v17 = vadd.f32 %v20888_v18, %v2795_v25  ;;  %v5514_v6 = vor.u32 %v5513_v54, %v5510_v5  ;;  %v20892_v25 = vld [vmem:[#allocation69_spill] sm:$0xff]  ;;  %v4522_v54 = vrot.slane %v14584_v27, 2 }
 0x272   : > { %20885 = vst [vmem:[#allocation26_spill] sm:$0xff] %v16595_v46  ;;  %4651 = vmatmul.bf16.gmra.mxu1 %v4521_v35  ;;  %6134 = vmatmul.bf16.gmra.mxu0 %v6016_v4  ;;  %v3274_v12 = vadd.f32 %v16295_v42, %v2817_v39  ;;  %v14610_v4 = vld [vmem:[%s15803_s16 + $0x58] sm:$0xff] }
 0x273   : > { %5107 = vmatmul.bf16.gmra.mxu2 %v4977_v2  ;;  %v14658_v42 = vld [vmem:[%s15803_s16 + $0x38] sm:$0xff]  ;;  %v5515_v2 = vsel %vm20644_vm3, %v5505_v33, %v5514_v6  ;;  %v4978_v18 = vrot.slane %v14610_v4, 2 }
 0x274   : > { %v16603_v11 = vadd.f32 %v16531_v24, %v3274_v12  ;;  %v20889_v39 = vld [vmem:[#allocation51_spill] sm:$0xff]  ;;  %v20891_v24 = vld [vmem:[#allocation50_spill] sm:$0xff]  ;;  %v20893_v33 = vld [vmem:[#allocation52_spill] sm:$0xff] }
 0x275   : > { %5707 = vmatmul.bf16.gmra.mxu3 %v5515_v2  ;;  %v2796_v12 = vadd.f32 %v20892_v25, %v20891_v24  ;;  %v14638_v2 = vld [vmem:[%s15803_s16 + $0x68] sm:$0xff]  ;;  %v4979_v27 = vsel %vm4504_vm4, %v4976_v3, %v4978_v18 }
 0x276   : > { %v3600_v48 = vpop.f32.mrf.mxu2 }
 0x277   : > { %v16606_v46 = vadd.f32 %v3600_v48, %v3252_v17  ;;  %v2744_v14 = vpop.f32.mrf.mxu1  ;;  %v4227_v35 = vpop.f32.mrf.mxu0  ;;  %v6017_v17 = vrot.slane %v14658_v42, 3  ;;  %v3253_v36 = vadd.f32 %v20893_v33, %v2796_v12  ;;  %v20896_v33 = vld [vmem:[#allocation60_spill] sm:$0xff] }
 0x278   : > { %v2818_v49 = vadd.f32 %v2744_v14, %v20889_v39  ;;  %v16614_v7 = vadd.f32 %v4227_v35, %v16445_v13  ;;  %v16619_v48 = vpop.f32.mrf.mxu3  ;;  %v20894_v13 = vld [vmem:[#allocation58_spill] sm:$0xff] }
 0x279   : > { %v4286_v35 = vadd.f32 %v20894_v13, %v16335_v15  ;;  %v5520_v15 = vshll.u32 %v14638_v2, 16  ;;  %v16649_v13 = vld [vmem:[%s15803_s16 + $0x40] sm:$0xff] }
 0x27a   : > { %20890 = vst [vmem:[#allocation54_spill] sm:$0xff] %v16614_v7  ;;  %v3275_v5 = vadd.f32 %v16315_v9, %v2818_v49  ;;  %v4523_v9 = vsel %vm4504_vm4, %v4520_v43, %v4522_v54  ;;  %v5517_v49 = vshrl.u32 %v14638_v2, 16 }
 0x27b   : > { %v5522_v43 = vrot.slane %v5520_v15, 3 }
 0x27c   : > { %v16622_v61 = vadd.f32 %v16553_v41, %v3275_v5  ;;  %v6018_v41 = vsel %vm6007_vm5, %v6015_v47, %v6017_v17  ;;  %v4287_v47 = vadd.f32 %v20896_v33, %v16360_v38 }
 0x27e   : > { %v3602_v14 = vpop.f32.mrf.mxu2 }
 0x27f   : > { %v16628_v39 = vadd.f32 %v3602_v14, %v3253_v36  ;;  %v4230_v24 = vpop.f32.mrf.mxu0  ;;  %v4617_v25 = vpop.f32.mrf.mxu1  ;;  %v5519_v36 = vrot.slane %v5517_v49, 2  ;;  %v16643_v14 = vld [vmem:[%s15803_s16 + $0x58] sm:$0xff] }
 0x280   : > { %v16634_v4 = vadd.f32 %v4230_v24, %v16465_v23  ;;  %v4743_v42 = vadd.f32 %v4617_v25, %v4286_v35  ;;  %v16636_v12 = vpop.f32.mrf.mxu3  ;;  %v16646_v23 = vld [vmem:[%s15803_s16 + $0x60] sm:$0xff]  ;;  %v559_v35 = vlaneseq  ;;  %v20599_v15 = vrot.slane %v16643_v14, 2 }
 0x281   : > { %v16638_v5 = vor.u32 %v5522_v43, %v5519_v36  ;;  %v20601_v36 = vrot.slane %v16649_v13, 3 }
 0x282   : > { %20895 = vst [vmem:[#allocation71_spill] sm:$0xff] %v16634_v4  ;;  %4656 = vmatmul.bf16.gmra.mxu1 %v4523_v9  ;;  %6139 = vmatmul.bf16.gmra.mxu0 %v6018_v41  ;;  %v16656_v38 = vshrl.u32 %v559_v35, 7 }
 0x283   : > { %5112 = vmatmul.bf16.gmra.mxu2 %v4979_v27  ;;  %v5524_v9 = vsel %vm20644_vm3, %v5514_v6, %v16638_v5 }
 0x284   : > { %v599_v43 = vand.u32 65535, %v16656_v38 }
 0x285   : > { %5712 = vmatmul.bf16.gmra.mxu3 %v5524_v9 }
 0x286   : > { %v5073_v3 = vpop.f32.mrf.mxu2  ;;  %v602_v7 = vmul.u32 14564, %v599_v43 }
 0x287   : > { %v5199_v2 = vadd.f32 %v5073_v3, %v4743_v42  ;;  %v4232_v24 = vpop.f32.mrf.mxu0  ;;  %v4619_v25 = vpop.f32.mrf.mxu1  ;;  %v20600_v42 = vrot.slane %v16646_v23, 2  ;;  %v16668_v3 = vmul.u32 58254, %v599_v43 }
 0x288   : > { %v16654_v27 = vadd.f32 %v4232_v24, %v16492_v53  ;;  %v4744_v41 = vadd.f32 %v4619_v25, %v4287_v47  ;;  %v16665_v6 = vpop.f32.mrf.mxu3  ;;  %v600_v53 = vshrl.u32 %v16656_v38, 16  ;;  %v20898_v47 = vld [vmem:[#allocation62_spill] sm:$0xff]  ;;  %v6020_v24 = vsel %vm6007_vm5, %v6017_v17, %v20601_v36 }
 0x289   : > { %v16659_v49 = vadd.f32 %v16581_v21, %v5199_v2  ;;  %v4288_v35 = vadd.f32 %v20898_v47, %v16379_v37  ;;  %v4525_v21 = vsel %vm4504_vm4, %v4522_v54, %v20599_v15  ;;  %v4981_v2 = vsel %vm4504_vm4, %v4978_v18, %v20600_v42  ;;  %v14639_v25 = vld [vmem:[%s15803_s16 + $0x70] sm:$0xff] }
 0x28a   : > { %20897 = vst [vmem:[#allocation28_spill] sm:$0xff] %v16654_v27  ;;  %v16682_v57 = vmul.u32 14564, %v600_v53  ;;  %v606_v37 = vshll.u32 %v16668_v3, 16  ;;  %v5526_v15 = vshrl.u32 %v14639_v25, 16  ;;  %v5529_v18 = vshll.u32 %v14639_v25, 16  ;;  %v16708_v25 = vld [vmem:[%s15803_s16 + $0x68] sm:$0xff] }
 0x28c   : > { %v5528_v17 = vrot.slane %v5526_v15, 2  ;;  %v5531_v43 = vrot.slane %v5529_v18, 3  ;;  %vm610_vm6 = vc.u32 %v602_v7, %v606_v37  ;;  %v605_v18 = vmul.u32 58254, %v600_v53 }
 0x28e   : > { %v5075_v33 = vpop.f32.mrf.mxu2 }
 0x28f   : > { %v5200_v9 = vadd.f32 %v5075_v33, %v4744_v41  ;;  %v4235_v27 = vpop.f32.mrf.mxu0  ;;  %v4622_v4 = vpop.f32.mrf.mxu1  ;;  %v16694_v33 = vadd.s32 8, %v16656_v38 }
 0x290   : > { %v16686_v54 = vadd.f32 %v4235_v27, %v16512_v19  ;;  %v4745_v47 = vadd.f32 %v4622_v4, %v4288_v35  ;;  %v16691_v41 = vpop.f32.mrf.mxu3  ;;  %v16697_v19 = vld [vmem:[%s15803_s16 + $0x60] sm:$0xff]  ;;  %v608_v4 = vshll.u32 %v16682_v57, 16  ;;  %v612_v27 = vadd.s32 %v606_v37, %v602_v7 }
 0x291   : > { %v16689_v42 = vadd.f32 %v16600_v51, %v5200_v9  ;;  %v20602_v51 = vmov 0   ;;  %v16701_v35 = vor.u32 %v5531_v43, %v5528_v17  ;;  %v628_v15 = vand.u32 65535, %v16694_v33  ;;  %v16711_v9 = vld [vmem:[%s15803_s16 + $0x48] sm:$0xff] }
 0x292   : > { %20899 = vst [vmem:[#allocation30_spill] sm:$0xff] %v16686_v54  ;;  %4661 = vmatmul.bf16.gmra.mxu1 %v4525_v21  ;;  %6144 = vmatmul.bf16.gmra.mxu0 %v6020_v24  ;;  %v611_v7 = vsel %vm610_vm6, 1, %v20602_v51  ;;  %v20604_v58 = vrot.slane %v16697_v19, 2  ;;  %vm614_vm7 = vc.u32 %v612_v27, %v608_v4 }
 0x293   : > { %5117 = vmatmul.bf16.gmra.mxu2 %v4981_v2  ;;  %1928 = vst [vmem:[#allocation2] sm:$0xf] %v20602_v51  ;;  %v20900_v2 = vld [vmem:[#allocation64_spill] sm:$0xff]  ;;  %v5533_v36 = vsel %vm20644_vm3, %v16638_v5, %v16701_v35 }
 0x294   : > { %1929 = vst [vmem:[#allocation2 + $0x4] sm:$0xf] %v20602_v51  ;;  %v4289_v24 = vadd.f32 %v20900_v2, %v16403_v0  ;;  %v629_v0 = vshrl.u32 %v16694_v33, 16  ;;  %v16720_v2 = vmul.u32 58254, %v628_v15 }
 0x295   : > { %1942 = vst [vmem:[#allocation2 + $0x9c] sm:$0xf] %v20602_v51  ;;  %5717 = vmatmul.bf16.gmra.mxu3 %v5533_v36 }
 0x296   : > { %v5078_v21 = vpop.f32.mrf.mxu2  ;;  %1943 = vst [vmem:[#allocation2 + $0xa0] sm:$0xf] %v20602_v51  ;;  %v635_v5 = vshll.u32 %v16720_v2, 16  ;;  %v16731_v51 = vadd.s32 16, %v16656_v38  ;;  %v16738_v4 = vmul.u32 14564, %v629_v0  ;;  %v634_v40 = vmul.u32 58254, %v629_v0 }
 0x297   : > { %v5201_v37 = vadd.f32 %v5078_v21, %v4745_v47  ;;  %v4237_v17 = vpop.f32.mrf.mxu0  ;;  %v4624_v43 = vpop.f32.mrf.mxu1  ;;  %v631_v21 = vmul.u32 14564, %v628_v15  ;;  %v20904_v15 = vrot.slane %v16643_v14, 2  ;;  %v20910_v14 = vrot.slane %v16649_v13, 3  ;;  %v1933_v0 = vld [vmem:[#allocation2 + $0x8] sm:$0x3] }
 0x298   : > { %v16723_v54 = vadd.f32 %v4237_v17, %v16537_v22  ;;  %v4746_v53 = vadd.f32 %v4624_v43, %v4289_v24  ;;  %v613_v17 = vadd.s32 %v611_v7, %v605_v18  ;;  %v16735_v24 = vpop.f32.mrf.mxu3  ;;  %v20902_v43 = vmov 0  }
 0x299   : > { %v16727_v47 = vadd.f32 %v16619_v48, %v5201_v37  ;;  %v615_v36 = vsel %vm614_vm7, 1, %v20902_v43  ;;  %v20903_v48 = vld [vmem:[#allocation67_spill] sm:$0xff]  ;;  %v4527_v37 = vsel %vm4504_vm4, %v20904_v15, %v20604_v58  ;;  %vm16747_vm8 = vc.u32 %v631_v21, %v635_v5 }
 0x29a   : > { %20901 = vst [vmem:[#allocation29_spill] sm:$0xff] %v16723_v54  ;;  %v4290_v27 = vadd.f32 %v20903_v48, %v16424_v31  ;;  %v657_v18 = vand.u32 65535, %v16731_v51  ;;  %v20907_v22 = vrot.slane %v16708_v25, 2  ;;  %v20908_v54 = vrot.slane %v16646_v23, 2 }
 0x29b   : > { %v20909_v48 = vrot.slane %v16711_v9, 3  ;;  %v607_v58 = vshrl.u32 %v16668_v3, 16  ;;  %v617_v29 = vadd.s32 %v615_v36, %v613_v17  ;;  %v637_v45 = vshll.u32 %v16738_v4, 16 }
 0x29c   : > { %v4983_v31 = vsel %vm4504_vm4, %v20908_v54, %v20907_v22  ;;  %v641_v16 = vadd.s32 %v635_v5, %v631_v21  ;;  %v16769_v22 = vld [vmem:[%s15803_s16 + $0x68] sm:$0xff]  ;;  %v640_v13 = vsel %vm16747_vm8, 1, %v20902_v43  ;;  %v658_v3 = vshrl.u32 %v16731_v51, 16 }
 0x29d   : > { %v6022_v15 = vsel %vm6007_vm5, %v20910_v14, %v20909_v48  ;;  %v16778_v21 = vmul.u32 58254, %v657_v18  ;;  %v618_v5 = vadd.s32 %v617_v29, %v607_v58  ;;  %v1934_v17 = vsel %vm16781_vm11, 0, %v1933_v0 }
 0x29e   : > { %v5080_v7 = vpop.f32.mrf.mxu2  ;;  %v20914_v36 = vmov 0  ;;  %vm643_vm15 = vc.u32 %v641_v16, %v637_v45  ;;  %1935 = vst [vmem:[#allocation2 + $0x8] sm:$0x3] %v1934_v17  ;;  %v642_v29 = vadd.s32 %v640_v13, %v634_v40  ;;  %v660_v58 = vmul.u32 14564, %v657_v18 }
 0x29f   : > { %v5202_v63 = vadd.f32 %v5080_v7, %v4746_v53  ;;  %v4240_v28 = vpop.f32.mrf.mxu0  ;;  %v4627_v62 = vpop.f32.mrf.mxu1  ;;  %v20915_v36 = vsel %vm16793_vm14, 4294967295, %v20914_v36  ;;  %v20917_v7 = vld [vmem:[#allocation70_spill] sm:$0xff]  ;;  %v4528_v14 = vrot.slane %v16769_v22, 2  ;;  %v5538_v16 = vshll.u32 %v14640_v56, 16 }
 0x2a0   : > { %v16766_v23 = vadd.f32 %v4240_v28, %v16556_v50  ;;  %v4747_v54 = vadd.f32 %v4627_v62, %v4290_v27  ;;  %v20911_v62 = vmov 0  ;;  %v1939_v28 = vld [vmem:[#allocation2 + $0x98] sm:$0xe]  ;;  %20916 = vst [vmem:[#allocation73_spill] sm:$0xff] %v20915_v36  ;;  %v644_v45 = vsel %vm643_vm15, 1, %v20902_v43 }
 0x2a1   : > { %v16776_v53 = vadd.f32 %v16636_v12, %v5202_v63  ;;  %v20912_v62 = vsel %vm16781_vm11, 4294967295, %v20911_v62  ;;  %v16786_v50 = vld [vmem:[%s15803_s16 + $0x70] sm:$0xff]  ;;  %v16788_v63 = vpop.f32.mrf.mxu3  ;;  %v609_v12 = vshrl.u32 %v16682_v57, 16  ;;  %v1940_v27 = vsel %vm16793_vm14, 0, %v1939_v28 }
 0x2a2   : > { %4666 = vmatmul.bf16.gmra.mxu1 %v4527_v37  ;;  %6149 = vmatmul.bf16.gmra.mxu0 %v6022_v15  ;;  %20913 = vst [vmem:[#allocation55_spill] sm:$0xff] %v20912_v62  ;;  %v16799_v37 = vmul.u32 14564, %v658_v3  ;;  %v664_v57 = vshll.u32 %v16778_v21, 16  ;;  %v5537_v15 = vrot.slane %v5535_v59, 2  ;;  %v16808_v36 = vld [vmem:[%s15803_s16 + $0x50] sm:$0xff]  ;;  %v5540_v13 = vrot.slane %v5538_v16, 3 }
 0x2a3   : > { %5122 = vmatmul.bf16.gmra.mxu2 %v4983_v31  ;;  %v4291_v31 = vadd.f32 %v20917_v7, %v16452_v55  ;;  %1941 = vst [vmem:[#allocation2 + $0x98] sm:$0xe] %v1940_v27  ;;  %v619_v55 = vadd.s32 %v618_v5, %v609_v12  ;;  %v663_v27 = vmul.u32 58254, %v658_v3  ;;  %v646_v59 = vadd.s32 %v644_v45, %v642_v29 }
 0x2a4   : > { %v666_v7 = vshll.u32 %v16799_v37, 16  ;;  %vm668_vm6 = vc.u32 %v660_v58, %v664_v57  ;;  %v670_v12 = vadd.s32 %v664_v57, %v660_v58  ;;  %v16822_v3 = vadd.s32 24, %v16656_v38 }
 0x2a5   : > { %v669_v62 = vsel %vm668_vm6, 1, %v20902_v43  ;;  %v620_v5 = vshrl.u32 %v619_v55, 4  ;;  %v20919_v57 = vrot.slane %v16697_v19, 2  ;;  %v665_v45 = vshrl.u32 %v16778_v21, 16 }
 0x2a6   : > { %v5083_v48 = vpop.f32.mrf.mxu2  ;;  %vm672_vm7 = vc.u32 %v670_v12, %v666_v7  ;;  %v686_v29 = vand.u32 65535, %v16822_v3  ;;  %v20922_v21 = vrot.slane %v16711_v9, 3 }
 0x2a7   : > { %v5203_v0 = vadd.f32 %v5083_v48, %v4747_v54  ;;  %v4242_v28 = vpop.f32.mrf.mxu0  ;;  %v4629_v17 = vpop.f32.mrf.mxu1  ;;  %v636_v54 = vshrl.u32 %v16720_v2, 16  ;;  %v16818_v48 = vor.u32 %v5540_v13, %v5537_v15  ;;  %v20918_v15 = vld [vmem:[#allocation72_spill] sm:$0xff]  ;;  %v4529_v16 = vsel %vm4504_vm4, %v20919_v57, %v4528_v14 }
 0x2a8   : > { %v16811_v40 = vadd.f32 %v4242_v28, %v16584_v10  ;;  %v4748_v18 = vadd.f32 %v4629_v17, %v4291_v31  ;;  %v20607_v10 = vrot.slane %v16808_v36, 3  ;;  %v4292_v58 = vadd.f32 %v20918_v15, %v16471_v20  ;;  %v14641_v13 = vld [vmem:[%s15803_s16 + $0x80] sm:$0xff] }
 0x2a9   : > { %v16815_v56 = vadd.f32 %v16665_v6, %v5203_v0  ;;  %v16825_v31 = vpop.f32.mrf.mxu3  ;;  %v671_v6 = vadd.s32 %v669_v62, %v663_v27  ;;  %v5542_v2 = vsel %vm20644_vm3, %v16701_v35, %v16818_v48  ;;  %v673_v62 = vsel %vm672_vm7, 1, %v20902_v43 }
 0x2aa   : > { %5722 = vmatmul.bf16.gmra.mxu3 %v5542_v2  ;;  %v20920_v35 = vrot.slane %v16786_v50, 2  ;;  %v20921_v28 = vrot.slane %v16708_v25, 2  ;;  %v638_v20 = vshrl.u32 %v16738_v4, 16  ;;  %v647_v55 = vadd.s32 %v646_v59, %v636_v54 }
 0x2ab   : > { %v675_v27 = vadd.s32 %v673_v62, %v671_v6  ;;  %v6024_v2 = vsel %vm6007_vm5, %v20922_v21, %v20607_v10  ;;  %v621_v25 = vmul.u32 18, %v620_v5  ;;  %v687_v15 = vshrl.u32 %v16822_v3, 16  ;;  %v20924_v5 = vld [vmem:[#allocation74_spill] sm:$0xff] }
 0x2ac   : > { %v4985_v17 = vsel %vm4504_vm4, %v20921_v28, %v20920_v35  ;;  %v5544_v59 = vshrl.u32 %v14641_v13, 16  ;;  %v667_v57 = vshrl.u32 %v16799_v37, 16  ;;  %v16863_v62 = vadd.s32 32, %v16656_v38  ;;  %v16874_v35 = vld [vmem:[%s15803_s16 + $0x58] sm:$0xff] }
 0x2ad   : > { %v676_v9 = vadd.s32 %v675_v27, %v665_v45  ;;  %v648_v28 = vadd.s32 %v647_v55, %v638_v20  ;;  %v689_v20 = vmul.u32 14564, %v686_v29 }
 0x2ae   : > { %v5085_v0 = vpop.f32.mrf.mxu2  ;;  %v5546_v27 = vrot.slane %v5544_v59, 2 }
 0x2af   : > { %v5204_v19 = vadd.f32 %v5085_v0, %v4748_v18  ;;  %v4245_v7 = vpop.f32.mrf.mxu0  ;;  %v4632_v12 = vpop.f32.mrf.mxu1  ;;  %v16856_v18 = vmul.u32 58254, %v686_v29  ;;  %v4293_v0 = vadd.f32 %v20924_v5, %v16499_v60  ;;  %v16886_v60 = vadd.f32 %v16223_v34, %v16541_v8 }
 0x2b0   : > { %v16854_v4 = vadd.f32 %v4245_v7, %v16603_v11  ;;  %v4749_v54 = vadd.f32 %v4632_v12, %v4292_v58  ;;  %v16868_v11 = vld [vmem:[%s15803_s16 + $0x70] sm:$0xff]  ;;  %v16871_v58 = vld [vmem:[%s15803_s16 + $0x78] sm:$0xff]  ;;  %v16890_v7 = vadd.f32 %v16236_v52, %v16560_v1  ;;  %v677_v55 = vadd.s32 %v676_v9, %v667_v57 }
 0x2b1   : > { %v16859_v6 = vadd.f32 %v16691_v41, %v5204_v19  ;;  %v20925_v41 = vld [vmem:[#allocation76_spill] sm:$0xff]  ;;  %v16880_v45 = vpop.f32.mrf.mxu3  ;;  %v16882_v19 = vmul.u32 14564, %v687_v15  ;;  %v20609_v34 = vrot.slane %v16871_v58, 2  ;;  %v20608_v8 = vrot.slane %v16874_v35, 3 }
 0x2b2   : > { %20923 = vst [vmem:[#allocation31_spill] sm:$0xff] %v16854_v4  ;;  %4671 = vmatmul.bf16.gmra.mxu1 %v4529_v16  ;;  %6154 = vmatmul.bf16.gmra.mxu0 %v6024_v2  ;;  %v16878_v37 = vadd.f32 %v20925_v41, %v16516_v30  ;;  %v5547_v16 = vshll.u32 %v14641_v13, 16  ;;  %v16894_v30 = vsub.s32 %v16656_v38, %v621_v25  ;;  %v715_v13 = vand.u32 65535, %v16863_v62  ;;  %v6532_v52 = vld [vmem:[#allocation10 + $0x78] sm:$0xff] }
 0x2b3   : > { %5127 = vmatmul.bf16.gmra.mxu2 %v4985_v17  ;;  %v693_v17 = vshll.u32 %v16856_v18, 16  ;;  %v20610_v2 = vrot.slane %v16868_v11, 2  ;;  %v649_v59 = vshrl.u32 %v648_v28, 4  ;;  %6533 = vmatpush.msrb.mxu1 %v6532_v52  ;;  %v695_v25 = vshll.u32 %v16882_v19, 16 }
 0x2b4   : > { %v5549_v12 = vrot.slane %v5547_v16, 3  ;;  %6553 = vmatpush.msrb.mxu2 %v6532_v52  ;;  %v716_v57 = vshrl.u32 %v16863_v62, 16  ;;  %vm1640_vm9 = vcmp.ne.s32.totalorder %v16894_v30, 0  ;;  %vm1676_vm12 = vcmp.lt.s32.totalorder %v16894_v30, 0 }
 0x2b5   : > { %vm697_vm8 = vc.u32 %v689_v20, %v693_v17  ;;  %v699_v10 = vadd.s32 %v693_v17, %v689_v20  ;;  %v650_v52 = vmul.u32 18, %v649_v59  ;;  %v20929_v59 = vrot.slane %v16786_v50, 2  ;;  %vm16950_vm15 = vmand %vm1676_vm12, %vm1640_vm9 }
 0x2b6   : > { %v5088_v21 = vpop.f32.mrf.mxu2  ;;  %v16900_v41 = vor.u32 %v5549_v12, %v5546_v27  ;;  %v692_v12 = vmul.u32 58254, %v687_v15  ;;  %v698_v20 = vsel %vm697_vm8, 1, %v20902_v43  ;;  %v16980_v15 = vld [vmem:[%s15803_s16 + $0x80] sm:$0xff] }
 0x2b7   : > { %v5205_v1 = vadd.f32 %v5088_v21, %v4749_v54  ;;  %v4247_v29 = vpop.f32.mrf.mxu0  ;;  %v4634_v5 = vpop.f32.mrf.mxu1  ;;  %v678_v54 = vshrl.u32 %v677_v55, 4  ;;  %v16911_v21 = vmul.u32 58254, %v715_v13  ;;  %v16924_v55 = vadd.s32 18, %v16894_v30 }
 0x2b8   : > { %v16905_v9 = vadd.f32 %v4247_v29, %v16622_v61  ;;  %v4750_v16 = vadd.f32 %v4634_v5, %v4293_v0  ;;  %v5551_v27 = vsel %vm20644_vm3, %v16818_v48, %v16900_v41  ;;  %v718_v61 = vmul.u32 14564, %v715_v13 }
 0x2b9   : > { %v16908_v28 = vadd.f32 %v16735_v24, %v5205_v1  ;;  %v16917_v0 = vpop.f32.mrf.mxu3  ;;  %v16920_v24 = vmul.u32 14564, %v716_v57  ;;  %v722_v17 = vshll.u32 %v16911_v21, 16  ;;  %v4531_v48 = vsel %vm4504_vm4, %v4528_v14, %v20610_v2 }
 0x2ba   : > { %20926 = vst [vmem:[#allocation33_spill] sm:$0xff] %v16905_v9  ;;  %vm16931_vm13 = vc.u32 %v699_v10, %v695_v25  ;;  %v721_v13 = vmul.u32 58254, %v716_v57  ;;  %v4987_v1 = vsel %vm4504_vm4, %v20929_v59, %v20609_v34  ;;  %v20930_v29 = vrot.slane %v16808_v36, 3  ;;  %5727 = vmatmul.bf16.gmra.mxu3 %v5551_v27  ;;  %v14642_v36 = vld [vmem:[%s15803_s16 + $0x88] sm:$0xff] }
 0x2bb   : > { %v679_v22 = vmul.u32 18, %v678_v54  ;;  %v724_v14 = vshll.u32 %v16920_v24, 16  ;;  %v700_v50 = vadd.s32 %v698_v20, %v692_v12  ;;  %vm726_vm6 = vc.u32 %v718_v61, %v722_v17 }
 0x2bc   : > { %v6026_v5 = vsel %vm6007_vm5, %v20930_v29, %v20608_v8  ;;  %v728_v57 = vadd.s32 %v722_v17, %v718_v61  ;;  %v16956_v54 = vadd.s32 40, %v16656_v38  ;;  %v16959_v8 = vsub.s32 %v16694_v33, %v650_v52  ;;  %v16977_v52 = vld [vmem:[%s15803_s16 + $0x78] sm:$0xff] }
 0x2bd   : > { %v702_v34 = vsel %vm16931_vm13, 1, %v20902_v43  ;;  %v727_v12 = vsel %vm726_vm6, 1, %v20902_v43  ;;  %v1784_v33 = vsel %vm16950_vm15, %v16924_v55, %v16894_v30  ;;  %v5556_v30 = vshll.u32 %v14642_v36, 16 }
 0x2be   : > { %v5090_v10 = vpop.f32.mrf.mxu2  ;;  %v729_v17 = vadd.s32 %v727_v12, %v721_v13  ;;  %vm730_vm7 = vc.u32 %v728_v57, %v724_v14  ;;  %v704_v13 = vadd.s32 %v702_v34, %v700_v50  ;;  %v744_v14 = vand.u32 65535, %v16956_v54 }
 0x2bf   : > { %v5206_v27 = vadd.f32 %v5090_v10, %v4750_v16  ;;  %v4637_v59 = vpop.f32.mrf.mxu1  ;;  %v6120_v29 = vpop.f32.mrf.mxu0  ;;  %v731_v10 = vsel %vm730_vm7, 1, %v20902_v43  ;;  %vm1641_vm8 = vcmp.ne.s32.totalorder %v16959_v8, 0  ;;  %vm1677_vm9 = vcmp.lt.s32.totalorder %v16959_v8, 0 }
 0x2c0   : > { %v4751_v20 = vadd.f32 %v4637_v59, %v16878_v37  ;;  %v16967_v61 = vadd.f32 %v6120_v29, %v16659_v49  ;;  %v5553_v37 = vshrl.u32 %v14642_v36, 16  ;;  %v16984_v49 = vsub.s32 %v16731_v51, %v679_v22  ;;  %v17003_v36 = vld [vmem:[%s15803_s16 + $0x60] sm:$0xff]  ;;  %vm17023_vm15 = vmand %vm1677_vm9, %vm1641_vm8 }
 0x2c1   : > { %v16970_v16 = vadd.f32 %v16788_v63, %v5206_v27  ;;  %v694_v63 = vshrl.u32 %v16856_v18, 16  ;;  %v745_v55 = vshrl.u32 %v16956_v54, 16  ;;  %v723_v51 = vshrl.u32 %v16911_v21, 16  ;;  %v6531_v59 = vld [vmem:[#allocation10 + $0x70] sm:$0xff] }
 0x2c2   : > { %20933 = vst [vmem:[#allocation32_spill] sm:$0xff] %v16967_v61  ;;  %4676 = vmatmul.bf16.gmra.mxu1 %v4531_v48  ;;  %6159 = vmatmul.bf16.gmra.mxu0 %v6026_v5  ;;  %v16992_v48 = vadd.s32 18, %v16959_v8  ;;  %v16994_v5 = vpop.f32.mrf.mxu3  ;;  %v733_v18 = vadd.s32 %v731_v10, %v729_v17  ;;  %v5555_v34 = vrot.slane %v5553_v37, 2  ;;  %v4532_v22 = vrot.slane %v16977_v52, 2 }
 0x2c3   : > { %5132 = vmatmul.bf16.gmra.mxu2 %v4987_v1  ;;  %v696_v25 = vshrl.u32 %v16882_v19, 16  ;;  %v5558_v50 = vrot.slane %v5556_v30, 3  ;;  %vm1642_vm12 = vcmp.ne.s32.totalorder %v16984_v49, 0  ;;  %vm1678_vm13 = vcmp.lt.s32.totalorder %v16984_v49, 0  ;;  %6534 = vmatpush.msrb.mxu1 %v6531_v59 }
 0x2c4   : > { %v705_v27 = vadd.s32 %v704_v13, %v694_v63  ;;  %v17005_v29 = vmul.u32 58254, %v744_v14  ;;  %v725_v10 = vshrl.u32 %v16920_v24, 16  ;;  %6554 = vmatpush.msrb.mxu2 %v6531_v59  ;;  %v747_v19 = vmul.u32 14564, %v744_v14  ;;  %vm17044_vm7 = vmand %vm1678_vm13, %vm1642_vm12 }
 0x2c5   : > { %v17008_v37 = vmul.u32 14564, %v745_v55  ;;  %v734_v2 = vadd.s32 %v733_v18, %v723_v51  ;;  %v17014_v63 = vor.u32 %v5558_v50, %v5555_v34  ;;  %v1750_v14 = vadd.s32 18, %v16984_v49 }
 0x2c6   : > { %v5093_v57 = vpop.f32.mrf.mxu2  ;;  %vm17036_vm6 = vcmp.lt.s32.totalorder %v1784_v33, 16  ;;  %v20941_v33 = vrot.slane %v16868_v11, 2  ;;  %v20943_v11 = vrot.slane %v16871_v58, 2 }
 0x2c7   : > { %v5207_v21 = vadd.f32 %v5093_v57, %v4751_v20  ;;  %v4639_v12 = vpop.f32.mrf.mxu1  ;;  %v6122_v17 = vpop.f32.mrf.mxu0  ;;  %v750_v20 = vmul.u32 58254, %v745_v55  ;;  %v5560_v18 = vsel %vm20644_vm3, %v16900_v41, %v17014_v63  ;;  %v753_v50 = vshll.u32 %v17008_v37, 16 }
 0x2c8   : > { %v4752_v30 = vadd.f32 %v4639_v12, %v16886_v60  ;;  %v17012_v1 = vadd.f32 %v6122_v17, %v16689_v42  ;;  %v751_v60 = vshll.u32 %v17005_v29, 16  ;;  %v17029_v42 = vadd.s32 48, %v16656_v38 }
 0x2c9   : > { %v17017_v13 = vadd.f32 %v16825_v31, %v5207_v21  ;;  %v706_v31 = vadd.s32 %v705_v27, %v696_v25  ;;  %v1785_v41 = vsel %vm17023_vm15, %v16992_v48, %v16959_v8  ;;  %v4533_v25 = vsel %vm4504_vm4, %v20941_v33, %v4532_v22 }
 0x2ca   : > { %20934 = vst [vmem:[#allocation56_spill] sm:$0xff] %v17012_v1  ;;  %vm755_vm8 = vc.u32 %v747_v19, %v751_v60  ;;  %v735_v57 = vadd.s32 %v734_v2, %v725_v10  ;;  %5732 = vmatmul.bf16.gmra.mxu3 %v5560_v18  ;;  %v757_v59 = vadd.s32 %v751_v60, %v747_v19  ;;  %v773_v12 = vand.u32 65535, %v17029_v42  ;;  %v17074_v60 = vpop.f32.mrf.mxu3 }
 0x2cb   : > { %v756_v27 = vsel %vm755_vm8, 1, %v20902_v43  ;;  %v774_v17 = vshrl.u32 %v17029_v42, 16  ;;  %v1786_v8 = vsel %vm17044_vm7, %v1750_v14, %v16984_v49  ;;  %v20942_v48 = vrot.slane %v16980_v15, 2 }
 0x2cc   : > { %v758_v21 = vadd.s32 %v756_v27, %v750_v20  ;;  %v20944_v10 = vrot.slane %v17003_v36, 3  ;;  %v20945_v19 = vrot.slane %v16874_v35, 3  ;;  %v707_v20 = vshrl.u32 %v706_v31, 4 }
 0x2cd   : > { %v4989_v2 = vsel %vm4504_vm4, %v20943_v11, %v20942_v48  ;;  %v752_v49 = vshrl.u32 %v17005_v29, 16  ;;  %vm759_vm9 = vc.u32 %v757_v59, %v753_v50  ;;  %v17077_v14 = vmul.u32 58254, %v773_v12 }
 0x2ce   : > { %v5095_v51 = vpop.f32.mrf.mxu2  ;;  %v6028_v24 = vsel %vm6007_vm5, %v20945_v19, %v20944_v10  ;;  %v760_v35 = vsel %vm759_vm9, 1, %v20902_v43  ;;  %v776_v31 = vmul.u32 14564, %v773_v12  ;;  %v17087_v11 = vmul.u32 14564, %v774_v17 }
 0x2cf   : > { %v5208_v18 = vadd.f32 %v5095_v51, %v4752_v30  ;;  %v4642_v33 = vpop.f32.mrf.mxu1  ;;  %v6125_v27 = vpop.f32.mrf.mxu0  ;;  %v736_v30 = vshrl.u32 %v735_v57, 4  ;;  %v762_v51 = vadd.s32 %v760_v35, %v758_v21  ;;  %vm17089_vm12 = vcmp.lt.s32.totalorder %v1785_v41, 16  ;;  %v17104_v41 = vld [vmem:[%s15803_s16 + $0x80] sm:$0xff] }
 0x2d0   : > { %v4753_v58 = vadd.f32 %v4642_v33, %v16890_v7  ;;  %v17081_v55 = vadd.f32 %v6125_v27, %v16727_v47  ;;  %v708_v47 = vmul.u32 18, %v707_v20  ;;  %v780_v7 = vshll.u32 %v17077_v14, 16  ;;  %v14643_v20 = vld [vmem:[%s15803_s16 + $0x90] sm:$0xff] }
 0x2d1   : > { %v17085_v48 = vadd.f32 %v16880_v45, %v5208_v18  ;;  %v20611_v50 = vmov 0.0   ;;  %vm17099_vm13 = vcmp.lt.s32.totalorder %v1786_v8, 16  ;;  %v779_v59 = vmul.u32 58254, %v774_v17 }
 0x2d2   : > { %20946 = vst [vmem:[#allocation75_spill] sm:$0xff] %v17081_v55  ;;  %4681 = vmatmul.bf16.gmra.mxu1 %v4533_v25  ;;  %6164 = vmatmul.bf16.gmra.mxu0 %v6028_v24  ;;  %v17097_v45 = vsel %vm17036_vm6, 1.0, %v20611_v50  ;;  %v17107_v25 = vld [vmem:[%s15803_s16 + $0x88] sm:$0xff]  ;;  %v782_v21 = vshll.u32 %v17087_v11, 16  ;;  %v754_v12 = vshrl.u32 %v17008_v37, 16  ;;  %v763_v10 = vadd.s32 %v762_v51, %v752_v49 }
 0x2d3   : > { %20949 = vst [vmem:[#allocation34_spill] sm:$0xff] %v17097_v45  ;;  %5137 = vmatmul.bf16.gmra.mxu2 %v4989_v2  ;;  %vm784_vm15 = vc.u32 %v776_v31, %v780_v7  ;;  %v786_v34 = vadd.s32 %v780_v7, %v776_v31  ;;  %v17114_v8 = vsel %vm17089_vm12, 1.0, %v20611_v50  ;;  %v4297_v2 = vadd.f32 %v16261_v44, %v16588_v32  ;;  %v17119_v24 = vld [vmem:[%s15803_s16 + $0x68] sm:$0xff] }
 0x2d4   : > { %20952 = vst [vmem:[#allocation36_spill] sm:$0xff] %v17114_v8  ;;  %v737_v19 = vmul.u32 18, %v736_v30  ;;  %v785_v17 = vsel %vm784_vm15, 1, %v20902_v43  ;;  %v17125_v37 = vmul.f32 %v17097_v45, %v16967_v61  ;;  %v17130_v18 = vsel %vm17099_vm13, 1.0, %v20611_v50  ;;  %v6530_v44 = vld [vmem:[#allocation10 + $0x68] sm:$0xff]  ;;  %v17140_v50 = vpop.f32.mrf.mxu3 }
 0x2d5   : > { %20953 = vst [vmem:[#allocation35_spill] sm:$0xff] %v17130_v18  ;;  %v17133_v27 = vsub.s32 %v16822_v3, %v708_v47  ;;  %vm788_vm6 = vc.u32 %v786_v34, %v782_v21  ;;  %v20615_v31 = vrot.slane %v17104_v41, 2  ;;  %v20614_v30 = vrot.slane %v17107_v25, 2  ;;  %6555 = vmatpush.msrb.mxu2 %v6530_v44  ;;  %6535 = vmatpush.msrb.mxu1 %v6530_v44 }
 0x2d6   : > { %v5098_v33 = vpop.f32.mrf.mxu2  ;;  %v787_v51 = vadd.s32 %v785_v17, %v779_v59  ;;  %v764_v57 = vadd.s32 %v763_v10, %v754_v12  ;;  %v789_v3 = vsel %vm788_vm6, 1, %v20902_v43  ;;  %v17147_v47 = vsub.s32 %v16863_v62, %v737_v19 }
 0x2d7   : > { %v5209_v32 = vadd.f32 %v5098_v33, %v4753_v58  ;;  %v4644_v49 = vpop.f32.mrf.mxu1  ;;  %v6127_v35 = vpop.f32.mrf.mxu0  ;;  %v20613_v21 = vrot.slane %v17119_v24, 3  ;;  %v5562_v59 = vshrl.u32 %v14643_v20, 16  ;;  %vm1643_vm7 = vcmp.ne.s32.totalorder %v17133_v27, 0 }
 0x2d8   : > { %v4754_v29 = vadd.f32 %v4644_v49, %v4297_v2  ;;  %v17138_v7 = vadd.f32 %v6127_v35, %v16776_v53  ;;  %vm1679_vm8 = vcmp.lt.s32.totalorder %v17133_v27, 0  ;;  %v5565_v53 = vshll.u32 %v14643_v20, 16 }
 0x2d9   : > { %v17144_v58 = vadd.f32 %v16917_v0, %v5209_v32  ;;  %v17153_v12 = vadd.s32 56, %v16656_v38  ;;  %v4535_v0 = vsel %vm4504_vm4, %v4532_v22, %v20615_v31  ;;  %v781_v62 = vshrl.u32 %v17077_v14, 16  ;;  %vm17169_vm9 = vmand %vm1679_vm8, %vm1643_vm7 }
 0x2da   : > { %v791_v10 = vadd.s32 %v789_v3, %v787_v51  ;;  %v5564_v34 = vrot.slane %v5562_v59, 2  ;;  %v1751_v2 = vadd.s32 18, %v17133_v27  ;;  %v20954_v19 = vrot.slane %v16980_v15, 2 }
 0x2db   : > { %v765_v20 = vshrl.u32 %v764_v57, 4  ;;  %v5567_v33 = vrot.slane %v5565_v53, 3  ;;  %v6355_v44 = vmul.f32 %v17114_v8, %v17012_v1  ;;  %vm1644_vm12 = vcmp.ne.s32.totalorder %v17147_v47, 0 }
 0x2dc   : > { %v4991_v17 = vsel %vm4504_vm4, %v20954_v19, %v20614_v30  ;;  %v20957_v22 = vrot.slane %v17003_v36, 3  ;;  %v802_v15 = vand.u32 65535, %v17153_v12  ;;  %vm1680_vm13 = vcmp.lt.s32.totalorder %v17147_v47, 0  ;;  %v17218_v52 = vpop.f32.mrf.mxu3  ;;  %v17246_v30 = vld [vmem:[%s15803_s16 + $0x90] sm:$0xff] }
 0x2dd   : > { %v783_v49 = vshrl.u32 %v17087_v11, 16  ;;  %v17182_v35 = vor.u32 %v5567_v33, %v5564_v34  ;;  %v803_v51 = vshrl.u32 %v17153_v12, 16  ;;  %v792_v53 = vadd.s32 %v791_v10, %v781_v62  ;;  %vm17205_vm15 = vmand %vm1680_vm13, %vm1644_vm12 }
 0x2de   : > { %v6030_v14 = vsel %vm6007_vm5, %v20957_v22, %v20613_v21  ;;  %v5100_v32 = vpop.f32.mrf.mxu2  ;;  %v17187_v19 = vmul.u32 58254, %v802_v15  ;;  %v17190_v36 = vadd.s32 64, %v16656_v38  ;;  %v1787_v22 = vsel %vm17169_vm9, %v1751_v2, %v17133_v27 }
 0x2df   : > { %v17185_v57 = vadd.f32 %v5100_v32, %v4754_v29  ;;  %v4647_v3 = vpop.f32.mrf.mxu1  ;;  %v6130_v59 = vpop.f32.mrf.mxu0  ;;  %v1752_v11 = vadd.s32 18, %v17147_v47  ;;  %v766_v33 = vmul.u32 18, %v765_v20  ;;  %v4298_v29 = vadd.f32 %v16281_v26, %v16606_v46  ;;  %v20960_v26 = vld [vmem:[#allocation77_spill] sm:$0xff] }
 0x2e0   : > { %v17197_v34 = vadd.f32 %v6130_v59, %v16815_v56  ;;  %v5569_v27 = vsel %vm20644_vm3, %v17014_v63, %v17182_v35  ;;  %v805_v10 = vmul.u32 14564, %v802_v15  ;;  %v17212_v2 = vmul.u32 14564, %v803_v51 }
 0x2e1   : > { %v6431_v56 = vmul.f32 %v17125_v37, %v17125_v37  ;;  %v6432_v20 = vmul.f32 %v6355_v44, %v6355_v44  ;;  %v4299_v46 = vadd.f32 %v20960_v26, %v16628_v39  ;;  %v809_v32 = vshll.u32 %v17187_v19, 16  ;;  %5737 = vmatmul.bf16.gmra.mxu3 %v5569_v27 }
 0x2e2   : > { %4686 = vmatmul.bf16.gmra.mxu1 %v4535_v0  ;;  %6169 = vmatmul.bf16.gmra.mxu0 %v6030_v14  ;;  %v6356_v63 = vmul.f32 %v17130_v18, %v17081_v55  ;;  %vm1823_vm6 = vcmp.lt.s32.totalorder %v1787_v22, 16  ;;  %v793_v15 = vadd.s32 %v792_v53, %v783_v49  ;;  %v831_v59 = vand.u32 65535, %v17190_v36  ;;  %v17233_v22 = vld [vmem:[%s15803_s16 + $0x88] sm:$0xff] }
 0x2e3   : > { %5142 = vmatmul.bf16.gmra.mxu2 %v4991_v17  ;;  %v6390_v0 = vadd.f32 %v6355_v44, %v17125_v37  ;;  %v1788_v14 = vsel %vm17205_vm15, %v1752_v11, %v17147_v47  ;;  %v17229_v39 = vsub.s32 %v16956_v54, %v766_v33  ;;  %v811_v26 = vshll.u32 %v17212_v2, 16 }
 0x2e4   : > { %v4755_v21 = vadd.f32 %v4647_v3, %v4298_v29  ;;  %vm813_vm7 = vc.u32 %v805_v10, %v809_v32  ;;  %v815_v17 = vadd.s32 %v809_v32, %v805_v10  ;;  %v832_v49 = vshrl.u32 %v17190_v36, 16  ;;  %v17249_v10 = vld [vmem:[%s15803_s16 + $0x70] sm:$0xff] }
 0x2e5   : > { %v17236_v53 = vadd.f32 %v6432_v20, %v6431_v56  ;;  %v20961_v37 = vmov 0.0   ;;  %v808_v11 = vmul.u32 58254, %v803_v51  ;;  %v17241_v54 = vmul.u32 58254, %v831_v59  ;;  %v6529_v20 = vld [vmem:[#allocation10 + $0x60] sm:$0xff] }
 0x2e6   : > { %v17239_v44 = vsel %vm1823_vm6, 1.0, %v20961_v37  ;;  %v5103_v47 = vpop.f32.mrf.mxu2  ;;  %v17243_v33 = vadd.f32 %v6390_v0, %v6356_v63  ;;  %v794_v27 = vshrl.u32 %v793_v15, 4  ;;  %v814_v56 = vsel %vm813_vm7, 1, %v20902_v43  ;;  %6556 = vmatpush.msrb.mxu2 %v6529_v20  ;;  %6536 = vmatpush.msrb.mxu1 %v6529_v20  ;;  %v17336_v32 = vld [vmem:[%s15803_s16 + $0x90] sm:$0xff] }
 0x2e7   : > { %20962 = vst [vmem:[#allocation57_spill] sm:$0xff] %v17239_v44  ;;  %v5211_v62 = vadd.f32 %v5103_v47, %v4755_v21  ;;  %v4649_v3 = vpop.f32.mrf.mxu1  ;;  %v6132_v29 = vpop.f32.mrf.mxu0  ;;  %vm17252_vm8 = vcmp.lt.s32.totalorder %v1788_v14, 16  ;;  %vm817_vm9 = vc.u32 %v815_v17, %v811_v26  ;;  %v834_v21 = vmul.u32 14564, %v831_v59 }
 0x2e8   : > { %v4756_v51 = vadd.f32 %v4649_v3, %v4299_v46  ;;  %v17257_v31 = vadd.f32 %v6132_v29, %v16859_v6  ;;  %vm1645_vm12 = vcmp.ne.s32.totalorder %v17229_v39, 0  ;;  %v20624_v0 = vrot.slane %v17233_v22, 2  ;;  %v17273_v29 = vpop.f32.mrf.mxu3 }
 0x2e9   : > { %v17260_v15 = vadd.f32 %v17074_v60, %v5211_v62  ;;  %v17264_v47 = vmul.u32 14564, %v832_v49  ;;  %vm1681_vm13 = vcmp.lt.s32.totalorder %v17229_v39, 0  ;;  %v816_v14 = vadd.s32 %v814_v56, %v808_v11 }
 0x2ea   : > { %20965 = vst [vmem:[#allocation37_spill] sm:$0xff] %v17257_v31  ;;  %v837_v46 = vmul.u32 58254, %v832_v49  ;;  %v838_v6 = vshll.u32 %v17241_v54, 16  ;;  %v818_v60 = vsel %vm817_vm9, 1, %v20902_v43  ;;  %v1753_v62 = vadd.s32 18, %v17229_v39  ;;  %vm17277_vm6 = vmand %vm1681_vm13, %vm1645_vm12 }
 0x2eb   : > { %v840_v17 = vshll.u32 %v17264_v47, 16  ;;  %v795_v3 = vmul.u32 18, %v794_v27  ;;  %v6433_v11 = vmul.f32 %v6356_v63, %v6356_v63  ;;  %v20968_v56 = vrot.slane %v17104_v41, 2  ;;  %v14644_v27 = vld [vmem:[%s15803_s16 + $0x98] sm:$0xff] }
 0x2ec   : > { %vm842_vm15 = vc.u32 %v834_v21, %v838_v6  ;;  %v844_v20 = vadd.s32 %v838_v6, %v834_v21  ;;  %v17289_v18 = vadd.s32 72, %v16656_v38  ;;  %v810_v63 = vshrl.u32 %v17187_v19, 16 }
 0x2ed   : > { %v4537_v26 = vsel %vm4504_vm4, %v20968_v56, %v20624_v0  ;;  %v843_v59 = vsel %vm842_vm15, 1, %v20902_v43  ;;  %v820_v6 = vadd.s32 %v818_v60, %v816_v14  ;;  %v20969_v41 = vrot.slane %v17246_v30, 2 }
 0x2ee   : > { %v5105_v21 = vpop.f32.mrf.mxu2  ;;  %v845_v8 = vadd.s32 %v843_v59, %v837_v46  ;;  %vm846_vm7 = vc.u32 %v844_v20, %v840_v17  ;;  %v20970_v56 = vrot.slane %v17107_v25, 2  ;;  %v20971_v61 = vrot.slane %v17249_v10, 3 }
 0x2ef   : > { %v17292_v45 = vadd.f32 %v5105_v21, %v4756_v51  ;;  %v4652_v55 = vpop.f32.mrf.mxu1  ;;  %v6135_v1 = vpop.f32.mrf.mxu0  ;;  %v20972_v9 = vrot.slane %v17119_v24, 3  ;;  %v847_v19 = vsel %vm846_vm7, 1, %v20902_v43  ;;  %v6357_v51 = vmul.f32 %v17239_v44, %v17138_v7 }
 0x2f0   : > { %v4993_v0 = vsel %vm4504_vm4, %v20970_v56, %v20969_v41  ;;  %v1789_v14 = vsel %vm17277_vm6, %v1753_v62, %v17229_v39  ;;  %v17311_v46 = vsub.s32 %v17029_v42, %v795_v3  ;;  %v17314_v25 = vadd.f32 %v6135_v1, %v16908_v28 }
 0x2f1   : > { %v6032_v4 = vsel %vm6007_vm5, %v20972_v9, %v20971_v61  ;;  %v812_v59 = vshrl.u32 %v17212_v2, 16  ;;  %v839_v24 = vshrl.u32 %v17241_v54, 16  ;;  %v5571_v9 = vshrl.u32 %v14644_v27, 16 }
 0x2f2   : > { %20973 = vst [vmem:[#allocation39_spill] sm:$0xff] %v17314_v25  ;;  %v5574_v61 = vshll.u32 %v14644_v27, 16  ;;  %4691 = vmatmul.bf16.gmra.mxu1 %v4537_v26  ;;  %6174 = vmatmul.bf16.gmra.mxu0 %v6032_v4  ;;  %v821_v60 = vadd.s32 %v820_v6, %v810_v63  ;;  %v849_v17 = vadd.s32 %v847_v19, %v845_v8  ;;  %v860_v39 = vand.u32 65535, %v17289_v18  ;;  %v20977_v26 = vld [vmem:[#allocation78_spill] sm:$0xff]  ;;  %v17343_v27 = vpop.f32.mrf.mxu3 }
 0x2f3   : > { %v861_v42 = vshrl.u32 %v17289_v18, 16  ;;  %v6468_v62 = vadd.f32 %v17236_v53, %v6433_v11  ;;  %v17324_v28 = vsel %vm17252_vm8, 1.0, %v20961_v37  ;;  %5147 = vmatmul.bf16.gmra.mxu2 %v4993_v0  ;;  %v5573_v1 = vrot.slane %v5571_v9, 2  ;;  %v17339_v0 = vld [vmem:[%s15803_s16 + $0x78] sm:$0xff] }
 0x2f4   : > { %20974 = vst [vmem:[#allocation38_spill] sm:$0xff] %v17324_v28  ;;  %v5576_v2 = vrot.slane %v5574_v61, 3  ;;  %v6392_v4 = vadd.f32 %v17243_v33, %v6357_v51  ;;  %v6434_v54 = vmul.f32 %v6357_v51, %v6357_v51  ;;  %vm17327_vm9 = vcmp.lt.s32.totalorder %v1789_v14, 16  ;;  %v17363_v61 = vld [vmem:[%s15803_s16 + $0x98] sm:$0xff] }
 0x2f5   : > { %vm1646_vm12 = vcmp.ne.s32.totalorder %v17311_v46, 0  ;;  %v4757_v3 = vadd.f32 %v4652_v55, %v20977_v26  ;;  %vm1682_vm13 = vcmp.lt.s32.totalorder %v17311_v46, 0  ;;  %v841_v53 = vshrl.u32 %v17264_v47, 16 }
 0x2f6   : > { %v17341_v20 = vor.u32 %v5576_v2, %v5573_v1  ;;  %v5108_v33 = vpop.f32.mrf.mxu2  ;;  %v822_v11 = vadd.s32 %v821_v60, %v812_v59  ;;  %v850_v49 = vadd.s32 %v849_v17, %v839_v24  ;;  %v17345_v21 = vmul.u32 58254, %v860_v39  ;;  %v20978_v59 = vld [vmem:[#allocation79_spill] sm:$0xff]  ;;  %vm17375_vm8 = vmand %vm1682_vm13, %vm1646_vm12 }
 0x2f7   : > { %v17347_v63 = vmul.u32 14564, %v861_v42  ;;  %v5213_v55 = vadd.f32 %v5108_v33, %v4757_v3  ;;  %v4654_v6 = vpop.f32.mrf.mxu1  ;;  %v6137_v41 = vpop.f32.mrf.mxu0  ;;  %v863_v56 = vmul.u32 14564, %v860_v39  ;;  %v17353_v19 = vadd.s32 80, %v16656_v38 }
 0x2f8   : > { %v5578_v47 = vsel %vm20644_vm3, %v17182_v35, %v17341_v20  ;;  %v6358_v51 = vmul.f32 %v17324_v28, %v17197_v34  ;;  %v1754_v14 = vadd.s32 18, %v17311_v46  ;;  %v4758_v24 = vadd.f32 %v4654_v6, %v20978_v59 }
 0x2f9   : > { %v17360_v9 = vadd.f32 %v6137_v41, %v16970_v16  ;;  %5742 = vmatmul.bf16.gmra.mxu3 %v5578_v47  ;;  %v17366_v60 = vadd.f32 %v17218_v52, %v5213_v55  ;;  %v20627_v35 = vrot.slane %v17336_v32, 2  ;;  %v20626_v17 = vrot.slane %v17339_v0, 3 }
 0x2fa   : > { %v867_v39 = vshll.u32 %v17345_v21, 16  ;;  %v6469_v1 = vadd.f32 %v6468_v62, %v6434_v54  ;;  %v823_v2 = vshrl.u32 %v822_v11, 4  ;;  %v851_v26 = vadd.s32 %v850_v49, %v841_v53 }
 0x2fb   : > { %20979 = vst [vmem:[#allocation59_spill] sm:$0xff] %v17360_v9  ;;  %v869_v52 = vshll.u32 %v17347_v63, 16  ;;  %v889_v33 = vand.u32 65535, %v17353_v19  ;;  %v890_v55 = vshrl.u32 %v17353_v19, 16  ;;  %v17384_v62 = vadd.f32 %v16994_v5, %v17185_v57 }
 0x2fc   : > { %vm871_vm15 = vc.u32 %v863_v56, %v867_v39  ;;  %v873_v3 = vadd.s32 %v867_v39, %v863_v56  ;;  %v6435_v54 = vmul.f32 %v6358_v51, %v6358_v51  ;;  %v17389_v6 = vsel %vm17327_vm9, 1.0, %v20961_v37 }
 0x2fd   : > { %20982 = vst [vmem:[#allocation40_spill] sm:$0xff] %v17389_v6  ;;  %v20628_v53 = vrot.slane %v17363_v61, 2  ;;  %v1790_v11 = vsel %vm17375_vm8, %v1754_v14, %v17311_v46  ;;  %v20983_v49 = vrot.slane %v17233_v22, 2  ;;  %v20984_v5 = vrot.slane %v17249_v10, 3 }
 0x2fe   : > { %v866_v8 = vmul.u32 58254, %v861_v42  ;;  %v824_v47 = vmul.u32 18, %v823_v2  ;;  %v5110_v56 = vpop.f32.mrf.mxu2  ;;  %v852_v59 = vshrl.u32 %v851_v26, 4  ;;  %v872_v39 = vsel %vm871_vm15, 1, %v20902_v43 }
 0x2ff   : > { %v4539_v41 = vsel %vm4504_vm4, %v20983_v49, %v20627_v35  ;;  %v6034_v57 = vsel %vm6007_vm5, %v20984_v5, %v20626_v17  ;;  %v17406_v46 = vmul.u32 58254, %v889_v33  ;;  %v17408_v14 = vadd.f32 %v5110_v56, %v4758_v24  ;;  %v4657_v22 = vpop.f32.mrf.mxu1  ;;  %v6140_v16 = vpop.f32.mrf.mxu0 }
 0x300   : > { %vm17410_vm6 = vc.u32 %v873_v3, %v869_v52  ;;  %v892_v10 = vmul.u32 14564, %v889_v33  ;;  %v17414_v5 = vmul.u32 14564, %v890_v55  ;;  %v6393_v42 = vadd.f32 %v6392_v4, %v6358_v51  ;;  %v17424_v17 = vpop.f32.mrf.mxu3  ;;  %v4394_v52 = vld [vmem:[%s15803_s16 + $0x98] sm:$0x3]  ;;  %v4851_v51 = vld [vmem:[%s15803_s16 + $0xa0] sm:$0x3] }
 0x301   : > { %v6470_v2 = vadd.f32 %v6469_v1, %v6435_v54  ;;  %v17417_v26 = vadd.f32 %v6140_v16, %v17017_v13  ;;  %v20987_v24 = vrot.slane %v17246_v30, 2  ;;  %vm17427_vm7 = vcmp.lt.s32.totalorder %v1790_v11, 16 }
 0x302   : > { %v874_v33 = vadd.s32 %v872_v39, %v866_v8  ;;  %v895_v35 = vmul.u32 58254, %v890_v55  ;;  %v896_v4 = vshll.u32 %v17406_v46, 16  ;;  %v6359_v13 = vmul.f32 %v17389_v6, %v17257_v31  ;;  %4696 = vmatmul.bf16.gmra.mxu1 %v4539_v41  ;;  %6179 = vmatmul.bf16.gmra.mxu0 %v6034_v57 }
 0x303   : > { %v4995_v56 = vsel %vm4504_vm4, %v20987_v24, %v20628_v53  ;;  %v17436_v1 = vsub.s32 %v17153_v12, %v824_v47  ;;  %v876_v30 = vsel %vm17410_vm6, 1, %v20902_v43  ;;  %v898_v54 = vshll.u32 %v17414_v5, 16  ;;  %v20991_v47 = vld [vmem:[#allocation80_spill] sm:$0xff] }
 0x304   : > { %v853_v11 = vmul.u32 18, %v852_v59  ;;  %5152 = vmatmul.bf16.gmra.mxu2 %v4995_v56  ;;  %vm900_vm9 = vc.u32 %v892_v10, %v896_v4  ;;  %v902_v55 = vadd.s32 %v896_v4, %v892_v10  ;;  %v4484_v8 = vunpack.c.l.b16 %v4394_v52 }
 0x305   : > { %v17445_v39 = vsel %vm17427_vm7, 1.0, %v20961_v37  ;;  %v868_v12 = vshrl.u32 %v17345_v21, 16  ;;  %v901_v41 = vsel %vm900_vm9, 1, %v20902_v43  ;;  %v4941_v57 = vunpack.c.l.b16 %v4851_v51 }
 0x306   : > { %20990 = vst [vmem:[#allocation42_spill] sm:$0xff] %v17445_v39  ;;  %v4759_v16 = vadd.f32 %v4657_v22, %v20991_v47  ;;  %v878_v49 = vadd.s32 %v876_v30, %v874_v33  ;;  %v903_v59 = vadd.s32 %v901_v41, %v895_v35  ;;  %vm904_vm12 = vc.u32 %v902_v55, %v898_v54  ;;  %v5113_v10 = vpop.f32.mrf.mxu2  ;;  %v17458_v33 = vld [vmem:[%s15803_s16 + $0x80] sm:$0xff] }
 0x307   : > { %v6436_v24 = vmul.f32 %v6359_v13, %v6359_v13  ;;  %vm1647_vm13 = vcmp.ne.s32.totalorder %v17436_v1, 0  ;;  %vm1683_vm8 = vcmp.lt.s32.totalorder %v17436_v1, 0  ;;  %v905_v56 = vsel %vm904_vm12, 1, %v20902_v43  ;;  %v4659_v4 = vpop.f32.mrf.mxu1  ;;  %v6142_v22 = vpop.f32.mrf.mxu0  ;;  %v5307_v35 = vld [vmem:[%s15803_s16 + $0xa0] sm:$0x7] }
 0x308   : > { %v1755_v21 = vadd.s32 18, %v17436_v1  ;;  %v17455_v52 = vsub.s32 %v17190_v36, %v853_v11  ;;  %v5215_v3 = vadd.f32 %v5113_v10, %v4759_v16  ;;  %v4503_v51 = vpack.c.b16 %v4484_v8, %v4484_v8  ;;  %v20992_v30 = vld [vmem:[#allocation81_spill] sm:$0xff]  ;;  %vm17470_vm15 = vmand %vm1683_vm8, %vm1647_vm13 }
 0x309   : > { %v4760_v54 = vadd.f32 %v4659_v4, %v20992_v30  ;;  %v870_v55 = vshrl.u32 %v17347_v63, 16  ;;  %v17464_v41 = vadd.f32 %v6142_v22, %v17085_v48  ;;  %v4960_v47 = vpack.c.b16 %v4941_v57, %v4941_v57  ;;  %v17480_v57 = vpop.f32.mrf.mxu3 }
 0x30a   : > { %v17475_v11 = vadd.f32 %v17343_v27, %v5215_v3  ;;  %v879_v8 = vadd.s32 %v878_v49, %v868_v12  ;;  %v897_v16 = vshrl.u32 %v17406_v46, 16  ;;  %v907_v10 = vadd.s32 %v905_v56, %v903_v59 }
 0x30b   : > { %v6394_v63 = vadd.f32 %v6393_v42, %v6359_v13  ;;  %v17478_v4 = vadd.f32 %v6470_v2, %v6436_v24  ;;  %v5397_v48 = vunpack.c.l.b16 %v5307_v35  ;;  %v17483_v22 = vadd.s32 88, %v16656_v38 }
 0x30c   : > { %vm1648_vm6 = vcmp.ne.s32.totalorder %v17455_v52, 0  ;;  %vm1684_vm7 = vcmp.lt.s32.totalorder %v17455_v52, 0  ;;  %v4540_v30 = vrot.slane %v4503_v51, 2  ;;  %v20631_v27 = vrot.slane %v17458_v33, 3 }
 0x30d   : > { %v1791_v46 = vsel %vm17470_vm15, %v1755_v21, %v17436_v1  ;;  %v1756_v42 = vadd.s32 18, %v17455_v52  ;;  %v4996_v2 = vrot.slane %v4960_v47, 2  ;;  %v5416_v13 = vpack.c.b16 %v5397_v48, %v5397_v48  ;;  %vm17496_vm9 = vmand %vm1684_vm7, %vm1648_vm6 }
 0x30e   : > { %v880_v12 = vadd.s32 %v879_v8, %v870_v55  ;;  %v899_v49 = vshrl.u32 %v17414_v5, 16  ;;  %v908_v59 = vadd.s32 %v907_v10, %v897_v16  ;;  %v17494_v24 = vadd.s32 96, %v16656_v38  ;;  %v5115_v3 = vpop.f32.mrf.mxu2 }
 0x30f   : > { %v5580_v51 = vshrl.u32 %v5416_v13, 16  ;;  %v5583_v35 = vshll.u32 %v5416_v13, 16  ;;  %v918_v1 = vand.u32 65535, %v17483_v22  ;;  %v919_v21 = vshrl.u32 %v17483_v22, 16  ;;  %v4662_v5 = vpop.f32.mrf.mxu1  ;;  %v6145_v36 = vpop.f32.mrf.mxu0  ;;  %v6528_v13 = vld [vmem:[#allocation10 + $0x58] sm:$0xff] }
 0x310   : > { %v6360_v55 = vmul.f32 %v17445_v39, %v17314_v25  ;;  %v17504_v47 = vadd.f32 %v5115_v3, %v4760_v54  ;;  %v20997_v8 = vrot.slane %v17336_v32, 2  ;;  %v20998_v10 = vrot.slane %v17339_v0, 3  ;;  %6557 = vmatpush.msrb.mxu2 %v6528_v13  ;;  %6537 = vmatpush.msrb.mxu1 %v6528_v13 }
 0x311   : > { %vm17514_vm12 = vcmp.lt.s32.totalorder %v1791_v46, 16  ;;  %v17519_v54 = vadd.f32 %v6145_v36, %v17144_v58  ;;  %v21001_v3 = vrot.slane %v17363_v61, 2  ;;  %v5582_v39 = vrot.slane %v5580_v51, 2  ;;  %v17542_v56 = vpop.f32.mrf.mxu3 }
 0x312   : > { %v4541_v16 = vsel %vm4504_vm4, %v20997_v8, %v4540_v30  ;;  %v6036_v48 = vsel %vm6007_vm5, %v20998_v10, %v20631_v27  ;;  %v1792_v0 = vsel %vm17496_vm9, %v1756_v42, %v17455_v52  ;;  %v881_v30 = vshrl.u32 %v880_v12, 4 }
 0x313   : > { %v4997_v32 = vsel %vm4504_vm4, %v21001_v3, %v4996_v2  ;;  %v909_v8 = vadd.s32 %v908_v59, %v899_v49  ;;  %v5585_v46 = vrot.slane %v5583_v35, 3  ;;  %4701 = vmatmul.bf16.gmra.mxu1 %v4541_v16  ;;  %6184 = vmatmul.bf16.gmra.mxu0 %v6036_v48  ;;  %v921_v10 = vmul.u32 14564, %v918_v1  ;;  %v21005_v35 = vld [vmem:[#allocation65_spill] sm:$0xff] }
 0x314   : > { %v922_v27 = vmul.u32 58254, %v918_v1  ;;  %v923_v58 = vmul.u32 14564, %v919_v21  ;;  %v947_v36 = vand.u32 65535, %v17494_v24  ;;  %v17528_v61 = vadd.f32 %v6394_v63, %v6360_v55  ;;  %5157 = vmatmul.bf16.gmra.mxu2 %v4997_v32 }
 0x315   : > { %v17530_v2 = vmul.f32 %v6360_v55, %v6360_v55  ;;  %v17535_v51 = vsel %vm17514_vm12, 1.0, %v20961_v37  ;;  %v948_v52 = vshrl.u32 %v17494_v24, 16  ;;  %vm17538_vm13 = vcmp.lt.s32.totalorder %v1792_v0, 16 }
 0x316   : > { %21002 = vst [vmem:[#allocation41_spill] sm:$0xff] %v17535_v51  ;;  %v5586_v12 = vor.u32 %v5585_v46, %v5582_v39  ;;  %v924_v49 = vmul.u32 58254, %v919_v21  ;;  %v925_v59 = vshll.u32 %v922_v27, 16  ;;  %v882_v63 = vmul.u32 18, %v881_v30  ;;  %v5118_v48 = vpop.f32.mrf.mxu2 }
 0x317   : > { %v4761_v1 = vadd.f32 %v4662_v5, %v21005_v35  ;;  %v910_v55 = vshrl.u32 %v909_v8, 4  ;;  %v927_v16 = vshll.u32 %v923_v58, 16  ;;  %v17547_v3 = vmul.u32 58254, %v947_v36  ;;  %v4664_v21 = vpop.f32.mrf.mxu1  ;;  %v6147_v0 = vpop.f32.mrf.mxu0  ;;  %v21006_v5 = vld [vmem:[#allocation22_spill] sm:$0xff] }
 0x318   : > { %v5587_v53 = vsel %vm20644_vm3, %v17341_v20, %v5586_v12  ;;  %vm929_vm8 = vc.u32 %v921_v10, %v925_v59  ;;  %v931_v13 = vadd.s32 %v925_v59, %v921_v10  ;;  %v950_v30 = vmul.u32 14564, %v947_v36  ;;  %v17554_v20 = vld [vmem:[%s15803_s16 + $0x88] sm:$0xff] }
 0x319   : > { %5747 = vmatmul.bf16.gmra.mxu3 %v5587_v53  ;;  %v5217_v39 = vadd.f32 %v5118_v48, %v4761_v1  ;;  %v930_v32 = vsel %vm929_vm8, 1, %v20902_v43  ;;  %v17550_v46 = vmul.u32 14564, %v948_v52  ;;  %v4762_v8 = vadd.f32 %v4664_v21, %v21006_v5 }
 0x31a   : > { %v926_v35 = vshrl.u32 %v922_v27, 16  ;;  %v932_v6 = vadd.s32 %v930_v32, %v924_v49  ;;  %vm933_vm15 = vc.u32 %v931_v13, %v927_v16  ;;  %v17561_v59 = vadd.f32 %v6147_v0, %v17384_v62 }
 0x31b   : > { %v17557_v10 = vadd.f32 %v17480_v57, %v5217_v39  ;;  %v934_v12 = vsel %vm933_vm15, 1, %v20902_v43  ;;  %v17564_v1 = vadd.s32 104, %v16656_v38  ;;  %v911_v36 = vmul.u32 18, %v910_v55 }
 0x31c   : > { %v928_v53 = vshrl.u32 %v923_v58, 16  ;;  %v936_v48 = vadd.s32 %v934_v12, %v932_v6  ;;  %v954_v27 = vshll.u32 %v17547_v3, 16  ;;  %v17569_v49 = vmul.f32 %v17535_v51, %v17360_v9 }
 0x31d   : > { %v17572_v57 = vsub.s32 %v17289_v18, %v882_v63  ;;  %v953_v16 = vmul.u32 58254, %v948_v52  ;;  %v956_v13 = vshll.u32 %v17550_v46, 16  ;;  %v20634_v21 = vrot.slane %v17554_v20, 3  ;;  %v6527_v63 = vld [vmem:[#allocation10 + $0x50] sm:$0xff] }
 0x31e   : > { %v937_v62 = vadd.s32 %v936_v48, %v926_v35  ;;  %vm958_vm6 = vc.u32 %v950_v30, %v954_v27  ;;  %v960_v39 = vadd.s32 %v954_v27, %v950_v30  ;;  %v17579_v6 = vsel %vm17538_vm13, 1.0, %v20961_v37  ;;  %v5120_v0 = vpop.f32.mrf.mxu2  ;;  %v5713_v30 = vpop.f32.mrf.mxu3  ;;  %6558 = vmatpush.msrb.mxu2 %v6527_v63  ;;  %6538 = vmatpush.msrb.mxu1 %v6527_v63 }
 0x31f   : > { %21007 = vst [vmem:[#allocation61_spill] sm:$0xff] %v17579_v6  ;;  %v959_v58 = vsel %vm958_vm6, 1, %v20902_v43  ;;  %v976_v55 = vand.u32 65535, %v17564_v1  ;;  %v977_v18 = vshrl.u32 %v17564_v1, 16  ;;  %v17585_v52 = vsub.s32 %v17353_v19, %v911_v36  ;;  %v4667_v35 = vpop.f32.mrf.mxu1  ;;  %v6150_v12 = vpop.f32.mrf.mxu0 }
 0x320   : > { %v938_v32 = vadd.s32 %v937_v62, %v928_v53  ;;  %vm962_vm7 = vc.u32 %v960_v39, %v956_v13  ;;  %v17588_v5 = vadd.s32 112, %v16656_v38  ;;  %v17590_v42 = vadd.f32 %v5120_v0, %v4762_v8 }
 0x321   : > { %v21008_v48 = vrot.slane %v17458_v33, 3  ;;  %v979_v19 = vmul.u32 14564, %v976_v55  ;;  %v980_v36 = vmul.u32 58254, %v976_v55  ;;  %vm1649_vm9 = vcmp.ne.s32.totalorder %v17572_v57, 0 }
 0x322   : > { %vm1685_vm12 = vcmp.lt.s32.totalorder %v17572_v57, 0  ;;  %v961_v53 = vadd.s32 %v959_v58, %v953_v16  ;;  %v17600_v13 = vadd.f32 %v6150_v12, %v17260_v15  ;;  %v963_v8 = vsel %vm962_vm7, 1, %v20902_v43 }
 0x323   : > { %v6038_v27 = vsel %vm6007_vm5, %v21008_v48, %v20634_v21  ;;  %v17603_v62 = vmul.u32 14564, %v977_v18  ;;  %v982_v39 = vmul.u32 58254, %v977_v18  ;;  %v983_v0 = vshll.u32 %v980_v36, 16  ;;  %vm17608_vm8 = vmand %vm1685_vm12, %vm1649_vm9 }
 0x324   : > { %21009 = vst [vmem:[#allocation43_spill] sm:$0xff] %v17600_v13  ;;  %v1757_v33 = vadd.s32 18, %v17572_v57  ;;  %vm1650_vm13 = vcmp.ne.s32.totalorder %v17585_v52, 0  ;;  %v939_v55 = vshrl.u32 %v938_v32, 4  ;;  %6189 = vmatmul.bf16.gmra.mxu0 %v6038_v27  ;;  %v1005_v63 = vand.u32 65535, %v17588_v5  ;;  %v21012_v27 = vld [vmem:[#allocation24_spill] sm:$0xff] }
 0x325   : > { %vm1686_vm15 = vcmp.lt.s32.totalorder %v17585_v52, 0  ;;  %v985_v15 = vshll.u32 %v17603_v62, 16  ;;  %vm987_vm6 = vc.u32 %v979_v19, %v983_v0  ;;  %v989_v16 = vadd.s32 %v983_v0, %v979_v19 }
 0x326   : > { %v955_v58 = vshrl.u32 %v17547_v3, 16  ;;  %v965_v18 = vadd.s32 %v963_v8, %v961_v53  ;;  %v988_v12 = vsel %vm987_vm6, 1, %v20902_v43  ;;  %v1006_v32 = vshrl.u32 %v17588_v5, 16  ;;  %v5123_v53 = vpop.f32.mrf.mxu2  ;;  %vm17634_vm9 = vmand %vm1686_vm15, %vm1650_vm13 }
 0x327   : > { %v4763_v21 = vadd.f32 %v4667_v35, %v21012_v27  ;;  %v990_v51 = vadd.s32 %v988_v12, %v982_v39  ;;  %vm991_vm7 = vc.u32 %v989_v16, %v985_v15  ;;  %v17618_v28 = vmul.u32 58254, %v1005_v63  ;;  %v4669_v0 = vpop.f32.mrf.mxu1  ;;  %v17626_v31 = vpop.f32.mrf.mxu0 }
 0x328   : > { %v1793_v44 = vsel %vm17608_vm8, %v1757_v33, %v17572_v57  ;;  %v1758_v9 = vadd.s32 18, %v17585_v52  ;;  %v940_v19 = vmul.u32 18, %v939_v55  ;;  %v957_v3 = vshrl.u32 %v17550_v46, 16  ;;  %v21015_v33 = vld [vmem:[#allocation23_spill] sm:$0xff]  ;;  %v17639_v15 = vpop.f32.mrf.mxu3 }
 0x329   : > { %v5219_v8 = vadd.f32 %v5123_v53, %v4763_v21  ;;  %v992_v25 = vsel %vm991_vm7, 1, %v20902_v43  ;;  %v1008_v35 = vmul.u32 14564, %v1005_v63  ;;  %v17628_v39 = vmul.u32 14564, %v1006_v32 }
 0x32a   : > { %v966_v46 = vadd.s32 %v965_v18, %v955_v58  ;;  %v4764_v21 = vadd.f32 %v4669_v0, %v21015_v33  ;;  %v984_v55 = vshrl.u32 %v980_v36, 16  ;;  %v994_v48 = vadd.s32 %v992_v25, %v990_v51  ;;  %v17657_v18 = vld [vmem:[%s15803_s16 + $0x90] sm:$0xff] }
 0x32b   : > { %v17643_v63 = vadd.f32 %v17140_v50, %v17292_v45  ;;  %v6438_v16 = vmul.f32 %v17569_v49, %v17569_v49  ;;  %v17647_v12 = vadd.f32 %v5713_v30, %v5219_v8  ;;  %v1012_v27 = vshll.u32 %v17618_v28, 16 }
 0x32c   : > { %v6472_v58 = vadd.f32 %v17478_v4, %v17530_v2  ;;  %v6396_v36 = vadd.f32 %v17528_v61, %v17569_v49  ;;  %v6362_v25 = vmul.f32 %v17579_v6, %v17417_v26  ;;  %v1011_v51 = vmul.u32 58254, %v1006_v32 }
 0x32d   : > { %vm1829_vm12 = vcmp.lt.s32.totalorder %v1793_v44, 16  ;;  %v1794_v50 = vsel %vm17634_vm9, %v1758_v9, %v17585_v52  ;;  %v1014_v45 = vshll.u32 %v17628_v39, 16  ;;  %vm1016_vm13 = vc.u32 %v1008_v35, %v1012_v27 }
 0x32e   : > { %v17664_v30 = vsub.s32 %v17483_v22, %v940_v19  ;;  %v967_v4 = vadd.s32 %v966_v46, %v957_v3  ;;  %v986_v61 = vshrl.u32 %v17603_v62, 16  ;;  %v995_v2 = vadd.s32 %v994_v48, %v984_v55  ;;  %v5125_v52 = vpop.f32.mrf.mxu2 }
 0x32f   : > { %v6473_v49 = vadd.f32 %v6472_v58, %v6438_v16  ;;  %v17669_v32 = vadd.f32 %v17273_v29, %v17408_v14  ;;  %v1017_v44 = vsel %vm1016_vm13, 1, %v20902_v43  ;;  %v1018_v53 = vadd.s32 %v1012_v27, %v1008_v35  ;;  %v4672_v3 = vpop.f32.mrf.mxu1  ;;  %v6155_v14 = vpop.f32.mrf.mxu0 }
 0x330   : > { %v6439_v8 = vmul.f32 %v6362_v25, %v6362_v25  ;;  %v17673_v9 = vsel %vm1829_vm12, 1.0, %v20961_v37  ;;  %v1019_v0 = vadd.s32 %v1017_v44, %v1011_v51  ;;  %v20645_v22 = vrot.slane %v17657_v18, 3  ;;  %v5718_v58 = vpop.f32.mrf.mxu3 }
 0x331   : > { %21016 = vst [vmem:[#allocation45_spill] sm:$0xff] %v17673_v9  ;;  %vm17676_vm8 = vcmp.lt.s32.totalorder %v1794_v50, 16  ;;  %v17680_v62 = vadd.f32 %v5125_v52, %v4764_v21  ;;  %v1013_v29 = vshrl.u32 %v17618_v28, 16  ;;  %vm1020_vm15 = vc.u32 %v1018_v53, %v1014_v45 }
 0x332   : > { %vm1651_vm6 = vcmp.ne.s32.totalorder %v17664_v30, 0  ;;  %v968_v35 = vshrl.u32 %v967_v4, 4  ;;  %v996_v57 = vadd.s32 %v995_v2, %v986_v61  ;;  %v1021_v46 = vsel %vm1020_vm15, 1, %v20902_v43  ;;  %v6526_v4 = vld [vmem:[#allocation10 + $0x48] sm:$0xff]  ;;  %v21024_v61 = vld [vmem:[#allocation53_spill] sm:$0xff] }
 0x333   : > { %vm1687_vm7 = vcmp.lt.s32.totalorder %v17664_v30, 0  ;;  %v1015_v33 = vshrl.u32 %v17628_v39, 16  ;;  %v1023_v55 = vadd.s32 %v1021_v46, %v1019_v0  ;;  %v17688_v48 = vadd.f32 %v6155_v14, %v17366_v60  ;;  %6559 = vmatpush.msrb.mxu2 %v6526_v4  ;;  %6539 = vmatpush.msrb.mxu1 %v6526_v4 }
 0x334   : > { %v6397_v21 = vadd.f32 %v6396_v36, %v6362_v25  ;;  %v6363_v28 = vmul.f32 %v17673_v9, %v17464_v41  ;;  %v21020_v16 = vrot.slane %v17554_v20, 3  ;;  %v17698_v51 = vadd.s32 120, %v16656_v38  ;;  %vm17714_vm9 = vmand %vm1687_vm7, %vm1651_vm6 }
 0x335   : > { %21019 = vst [vmem:[#allocation44_spill] sm:$0xff] %v17688_v48  ;;  %v6474_v50 = vadd.f32 %v6473_v49, %v6439_v8  ;;  %v17702_v39 = vadd.f32 %v17424_v17, %v17504_v47  ;;  %v1759_v60 = vadd.s32 18, %v17664_v30  ;;  %v1024_v36 = vadd.s32 %v1023_v55, %v1013_v29 }
 0x336   : > { %v6040_v27 = vsel %vm6007_vm5, %v21020_v16, %v20645_v22  ;;  %v17708_v25 = vsel %vm17676_vm8, 1.0, %v20961_v37  ;;  %v969_v45 = vmul.u32 18, %v968_v35  ;;  %v997_v17 = vshrl.u32 %v996_v57, 4  ;;  %v5128_v0 = vpop.f32.mrf.mxu2  ;;  %v21025_v16 = vld [vmem:[#allocation68_spill] sm:$0xff] }
 0x337   : > { %6194 = vmatmul.bf16.gmra.mxu0 %v6040_v27  ;;  %21021 = vst [vmem:[#allocation63_spill] sm:$0xff] %v17708_v25  ;;  %v1034_v47 = vand.u32 65535, %v17698_v51  ;;  %v4765_v2 = vadd.f32 %v4672_v3, %v21024_v61  ;;  %v1025_v49 = vadd.s32 %v1024_v36, %v1015_v33  ;;  %v1035_v44 = vshrl.u32 %v17698_v51, 16  ;;  %v4674_v57 = vpop.f32.mrf.mxu1  ;;  %v17729_v33 = vpop.f32.mrf.mxu0 }
 0x338   : > { %v17722_v53 = vadd.s32 128, %v16656_v38  ;;  %v6398_v8 = vadd.f32 %v6397_v21, %v6363_v28  ;;  %v6440_v52 = vmul.f32 %v6363_v28, %v6363_v28  ;;  %v6364_v14 = vmul.f32 %v17708_v25, %v17519_v54 }
 0x339   : > { %v1037_v19 = vmul.u32 14564, %v1034_v47  ;;  %v1038_v29 = vmul.u32 58254, %v1034_v47  ;;  %v1795_v3 = vsel %vm17714_vm9, %v1759_v60, %v17664_v30  ;;  %v5221_v35 = vadd.f32 %v5128_v0, %v4765_v2 }
 0x33a   : > { %v1039_v46 = vmul.u32 14564, %v1035_v44  ;;  %v998_v55 = vmul.u32 18, %v997_v17  ;;  %v4766_v21 = vadd.f32 %v4674_v57, %v21025_v16  ;;  %v1040_v28 = vmul.u32 58254, %v1035_v44  ;;  %v17743_v57 = vld [vmem:[%s15803_s16 + $0x98] sm:$0xff] }
 0x33b   : > { %v1041_v27 = vshll.u32 %v1038_v29, 16  ;;  %v17733_v36 = vsub.s32 %v17494_v24, %v969_v45  ;;  %v1026_v47 = vshrl.u32 %v1025_v49, 4  ;;  %v17735_v4 = vadd.f32 %v5718_v58, %v5221_v35  ;;  %v17752_v49 = vpop.f32.mrf.mxu3 }
 0x33c   : > { %v1063_v20 = vand.u32 65535, %v17722_v53  ;;  %v1043_v30 = vshll.u32 %v1039_v46, 16  ;;  %v1064_v61 = vshrl.u32 %v17722_v53, 16  ;;  %v6475_v2 = vadd.f32 %v6474_v50, %v6440_v52 }
 0x33d   : > { %vm1045_vm12 = vc.u32 %v1037_v19, %v1041_v27  ;;  %v1047_v60 = vadd.s32 %v1041_v27, %v1037_v19  ;;  %v17739_v17 = vadd.f32 %v6398_v8, %v6364_v14  ;;  %v6441_v0 = vmul.f32 %v6364_v14, %v6364_v14 }
 0x33e   : > { %v1046_v44 = vsel %vm1045_vm12, 1, %v20902_v43  ;;  %vm17745_vm13 = vcmp.lt.s32.totalorder %v1795_v3, 16  ;;  %v17750_v58 = vsub.s32 %v17564_v1, %v998_v55  ;;  %vm1652_vm15 = vcmp.ne.s32.totalorder %v17733_v36, 0  ;;  %v5130_v19 = vpop.f32.mrf.mxu2 }
 0x33f   : > { %v1048_v45 = vadd.s32 %v1046_v44, %v1040_v28  ;;  %vm1049_vm8 = vc.u32 %v1047_v60, %v1043_v30  ;;  %vm1688_vm6 = vcmp.lt.s32.totalorder %v17733_v36, 0  ;;  %v1027_v50 = vmul.u32 18, %v1026_v47  ;;  %v6160_v28 = vpop.f32.mrf.mxu0 }
 0x340   : > { %v1042_v8 = vshrl.u32 %v1038_v29, 16  ;;  %v1050_v52 = vsel %vm1049_vm8, 1, %v20902_v43  ;;  %v1066_v14 = vmul.u32 14564, %v1063_v20  ;;  %v17757_v3 = vmul.u32 58254, %v1063_v20  ;;  %vm17772_vm12 = vmand %vm1688_vm6, %vm1652_vm15 }
 0x341   : > { %v17759_v35 = vmul.u32 14564, %v1064_v61  ;;  %v1044_v1 = vshrl.u32 %v1039_v46, 16  ;;  %v1052_v55 = vadd.s32 %v1050_v52, %v1048_v45  ;;  %v17761_v16 = vadd.f32 %v5130_v19, %v4766_v21  ;;  %v4677_v52 = vpop.f32.mrf.mxu1 }
 0x342   : > { %v1760_v30 = vadd.s32 18, %v17733_v36  ;;  %vm1653_vm7 = vcmp.ne.s32.totalorder %v17750_v58, 0  ;;  %vm1689_vm9 = vcmp.lt.s32.totalorder %v17750_v58, 0  ;;  %v1070_v29 = vshll.u32 %v17757_v3, 16 }
 0x343   : > { %v1053_v21 = vadd.s32 %v1052_v55, %v1042_v8  ;;  %v1069_v47 = vmul.u32 58254, %v1064_v61  ;;  %v1072_v20 = vshll.u32 %v17759_v35, 16  ;;  %v17778_v60 = vadd.s32 136, %v16656_v38  ;;  %vm17784_vm3 = vmand %vm1689_vm9, %vm1653_vm7  ;;  %v5723_v24 = vpop.f32.mrf.mxu3 }
 0x344   : > { %v1761_v44 = vadd.s32 18, %v17750_v58  ;;  %v17782_v45 = vsub.s32 %v17588_v5, %v1027_v50  ;;  %vm1074_vm8 = vc.u32 %v1066_v14, %v1070_v29  ;;  %v1076_v19 = vadd.s32 %v1070_v29, %v1066_v14 }
 0x345   : > { %v1054_v27 = vadd.s32 %v1053_v21, %v1044_v1  ;;  %v1075_v61 = vsel %vm1074_vm8, 1, %v20902_v43  ;;  %v17790_v8 = vadd.f32 %v6160_v28, %v17475_v11  ;;  %v21033_v55 = vrot.slane %v17743_v57, 3  ;;  %v21036_v11 = vld [vmem:[#allocation25_spill] sm:$0xff] }
 0x346   : > { %v21034_v25 = vrot.slane %v17657_v18, 3  ;;  %v17797_v50 = vadd.f32 %v6475_v2, %v6441_v0  ;;  %v17802_v14 = vsel %vm17745_vm13, 1.0, %v20961_v37  ;;  %v1796_v1 = vsel %vm17772_vm12, %v1760_v30, %v17733_v36  ;;  %v5133_v36 = vpop.f32.mrf.mxu2  ;;  %v6525_v30 = vld [vmem:[#allocation10 + $0x40] sm:$0xff] }
 0x347   : > { %21032 = vst [vmem:[#allocation46_spill] sm:$0xff] %v17790_v8  ;;  %vm1078_vm15 = vc.u32 %v1076_v19, %v1072_v20  ;;  %v4767_v28 = vadd.f32 %v4677_v52, %v21036_v11  ;;  %v1077_v29 = vadd.s32 %v1075_v61, %v1069_v47  ;;  %v1092_v18 = vand.u32 65535, %v17778_v60  ;;  %v17816_v52 = vpop.f32.mrf.mxu0  ;;  %6560 = vmatpush.msrb.mxu2 %v6525_v30 }
 0x348   : > { %v6042_v5 = vsel %vm6007_vm5, %v21034_v25, %v21033_v55  ;;  %21035 = vst [vmem:[#allocation48_spill] sm:$0xff] %v17802_v14  ;;  %v1093_v25 = vshrl.u32 %v17778_v60, 16  ;;  %v1797_v2 = vsel %vm17784_vm3, %v1761_v44, %v17750_v58  ;;  %vm1654_vm13 = vcmp.ne.s32.totalorder %v17782_v45, 0  ;;  %6540 = vmatpush.msrb.mxu1 %v6525_v30 }
 0x349   : > { %6199 = vmatmul.bf16.gmra.mxu0 %v6042_v5  ;;  %vm1690_vm6 = vcmp.lt.s32.totalorder %v17782_v45, 0  ;;  %v1079_v0 = vsel %vm1078_vm15, 1, %v20902_v43  ;;  %v1055_v46 = vshrl.u32 %v1054_v27, 4  ;;  %v5223_v21 = vadd.f32 %v5133_v36, %v4767_v28 }
 0x34a   : > { %v1095_v47 = vmul.u32 14564, %v1092_v18  ;;  %v1096_v20 = vmul.u32 58254, %v1092_v18  ;;  %v1762_v22 = vadd.s32 18, %v17782_v45  ;;  %v1071_v58 = vshrl.u32 %v17757_v3, 16  ;;  %vm17827_vm3 = vmand %vm1690_vm6, %vm1654_vm13 }
 0x34b   : > { %v1097_v44 = vmul.u32 14564, %v1093_v25  ;;  %v17821_v19 = vadd.s32 144, %v16656_v38  ;;  %v1081_v61 = vadd.s32 %v1079_v0, %v1077_v29  ;;  %v17831_v55 = vadd.f32 %v5723_v24, %v5223_v21  ;;  %v5897_v29 = vld [vmem:[%s15803_s16 + $0xa0] sm:$0x7]  ;;  %s20500_s16 = scalar_lea.vmem [#allocation16], %s15039_s2 }
 0x34c   : > { %v1098_v5 = vmul.u32 58254, %v1093_v25  ;;  %v1099_v11 = vshll.u32 %v1096_v20, 16  ;;  %v6365_v3 = vmul.f32 %v17802_v14, %v17561_v59  ;;  %v17837_v28 = vadd.f32 %v17542_v56, %v17590_v42  ;;  %s12348_s13 = sshll.u32 %s20500_s16, 4  ;;  %s12349_s13 = int_to_ptr.vmem [resolvable:$true] %s12348_s13 }
 0x34d   : > { %v17841_v18 = vadd.f32 %v17626_v31, %v17643_v63  ;;  %v1101_v36 = vshll.u32 %v1097_v44, 16  ;;  %vm1832_vm7 = vcmp.lt.s32.totalorder %v1796_v1, 16  ;;  %vm1833_vm9 = vcmp.lt.s32.totalorder %v1797_v2, 16 }
 0x34e   : > { %v1056_v30 = vmul.u32 18, %v1055_v46  ;;  %vm1103_vm12 = vc.u32 %v1095_v47, %v1099_v11  ;;  %v1798_v25 = vsel %vm17827_vm3, %v1762_v22, %v17782_v45  ;;  %v1105_v24 = vadd.s32 %v1099_v11, %v1095_v47 }
 0x34f   : > { %21039 = vst [vmem:[#allocation47_spill] sm:$0xff] %v17841_v18  ;;  %v1104_v0 = vsel %vm1103_vm12, 1, %v20902_v43  ;;  %v1121_v56 = vand.u32 65535, %v17821_v19  ;;  %v1073_v42 = vshrl.u32 %v17759_v35, 16  ;;  %v1082_v21 = vadd.s32 %v1081_v61, %v1071_v58  ;;  %v6165_v35 = vpop.f32.mrf.mxu0 }
 0x350   : > { %v1106_v31 = vadd.s32 %v1104_v0, %v1098_v5  ;;  %v1122_v63 = vshrl.u32 %v17821_v19, 16  ;;  %v17852_v1 = vsel %vm1832_vm7, 1.0, %v20961_v37  ;;  %v17855_v2 = vsel %vm1833_vm9, 1.0, %v20961_v37  ;;  %v17861_v0 = vpop.f32.mrf.mxu1 }
 0x351   : > { %21040 = vst [vmem:[#allocation66_spill] sm:$0xff] %v17852_v1  ;;  %vm1107_vm8 = vc.u32 %v1105_v24, %v1101_v36  ;;  %v5987_v46 = vunpack.c.l.b16 %v5897_v29  ;;  %v17858_v45 = vsub.s32 %v17698_v51, %v1056_v30  ;;  %v1100_v47 = vshrl.u32 %v1096_v20, 16 }
 0x352   : > { %21041 = vst [vmem:[#allocation49_spill] sm:$0xff] %v17855_v2  ;;  %v1108_v22 = vsel %vm1107_vm8, 1, %v20902_v43  ;;  %v1125_v27 = vmul.u32 58254, %v1121_v56  ;;  %v6442_v58 = vmul.f32 %v6365_v3, %v6365_v3  ;;  %vm1834_vm15 = vcmp.lt.s32.totalorder %v1798_v25, 16 }
 0x353   : > { %v1110_v61 = vadd.s32 %v1108_v22, %v1106_v31  ;;  %v1124_v5 = vmul.u32 14564, %v1121_v56  ;;  %v1083_v11 = vadd.s32 %v1082_v21, %v1073_v42  ;;  %v1102_v14 = vshrl.u32 %v1097_v44, 16 }
 0x354   : > { %v1126_v9 = vmul.u32 14564, %v1122_v63  ;;  %v1128_v6 = vshll.u32 %v1125_v27, 16  ;;  %v6366_v36 = vmul.f32 %v17852_v1, %v17600_v13  ;;  %v6367_v51 = vmul.f32 %v17855_v2, %v17841_v18  ;;  %v21060_v18 = vld [vmem:[#allocation54_spill] sm:$0xff] }
 0x355   : > { %v1127_v20 = vmul.u32 58254, %v1122_v63  ;;  %v6006_v30 = vpack.c.b16 %v5987_v46, %v5987_v46  ;;  %v17868_v29 = vsel %vm1834_vm15, 1.0, %v20961_v37  ;;  %vm1655_vm13 = vcmp.ne.s32.totalorder %v17858_v45, 0 }
 0x356   : > { %21042 = vst [vmem:[#allocation51_spill] sm:$0xff] %v17868_v29  ;;  %v1111_v25 = vadd.s32 %v1110_v61, %v1100_v47  ;;  %v1130_v24 = vshll.u32 %v1126_v9, 16  ;;  %vm1691_vm6 = vcmp.lt.s32.totalorder %v17858_v45, 0  ;;  %v1763_v44 = vadd.s32 18, %v17858_v45 }
 0x357   : > { %vm1132_vm3 = vc.u32 %v1124_v5, %v1128_v6  ;;  %v1134_v56 = vadd.s32 %v1128_v6, %v1124_v5  ;;  %v1084_v42 = vshrl.u32 %v1083_v11, 4  ;;  %v17875_v63 = vadd.f32 %v6165_v35, %v17557_v10  ;;  %vm17884_vm9 = vmand %vm1691_vm6, %vm1655_vm13  ;;  %v17888_v10 = vpop.f32.mrf.mxu2  ;;  %v17895_v11 = vpop.f32.mrf.mxu0 }
 0x358   : > { %v1112_v21 = vadd.s32 %v1111_v25, %v1102_v14  ;;  %v1133_v31 = vsel %vm1132_vm3, 1, %v20902_v43  ;;  %v1129_v46 = vshrl.u32 %v1125_v27, 16  ;;  %v6043_v2 = vrot.slane %v6006_v30, 3 }
 0x359   : > { %v1135_v22 = vadd.s32 %v1133_v31, %v1127_v20  ;;  %vm1136_vm7 = vc.u32 %v1134_v56, %v1130_v24  ;;  %v6400_v47 = vadd.f32 %v17739_v17, %v6365_v3  ;;  %v6443_v61 = vmul.f32 %v6366_v36, %v6366_v36  ;;  %v17906_v31 = vpop.f32.mrf.mxu1 }
 0x35a   : > { %v6368_v1 = vmul.f32 %v17868_v29, %v17688_v48  ;;  %v1137_v14 = vsel %vm1136_vm7, 1, %v20902_v43  ;;  %v6477_v27 = vadd.f32 %v17797_v50, %v6442_v58  ;;  %v1113_v35 = vshrl.u32 %v1112_v21, 4 }
 0x35b   : > { %v1139_v17 = vadd.s32 %v1137_v14, %v1135_v22  ;;  %v21045_v3 = vrot.slane %v17743_v57, 3  ;;  %v6401_v20 = vadd.f32 %v6400_v47, %v6366_v36  ;;  %v6444_v30 = vmul.f32 %v6367_v51, %v6367_v51  ;;  %v17908_v36 = vpop.f32.mrf.mxu3 }
 0x35c   : > { %v1085_v25 = vmul.u32 18, %v1084_v42  ;;  %v17898_v24 = vadd.s32 152, %v16656_v38  ;;  %v1799_v56 = vsel %vm17884_vm9, %v1763_v44, %v17858_v45  ;;  %v1131_v50 = vshrl.u32 %v1126_v9, 16 }
 0x35d   : > { %v6044_v5 = vsel %vm6007_vm5, %v21045_v3, %v6043_v2  ;;  %v1140_v58 = vadd.s32 %v1139_v17, %v1129_v46  ;;  %v17904_v21 = vadd.s32 160, %v16656_v38  ;;  %v6478_v57 = vadd.f32 %v6477_v27, %v6443_v61 }
 0x35e   : > { %6204 = vmatmul.bf16.gmra.mxu0 %v6044_v5  ;;  %v6445_v2 = vmul.f32 %v6368_v1, %v6368_v1  ;;  %v1150_v42 = vand.u32 65535, %v17898_v24  ;;  %v1151_v22 = vshrl.u32 %v17898_v24, 16  ;;  %v6402_v47 = vadd.f32 %v6401_v20, %v6367_v51 }
 0x35f   : > { %v17914_v6 = vadd.f32 %v17639_v15, %v17680_v62  ;;  %v17918_v9 = vadd.f32 %v17729_v33, %v17669_v32  ;;  %v1114_v45 = vmul.u32 18, %v1113_v35  ;;  %v6479_v44 = vadd.f32 %v6478_v57, %v6444_v30  ;;  %v21047_v33 = vld [vmem:[#allocation27_spill] sm:$0xff]  ;;  %v17945_v30 = vpop.f32.mrf.mxu2 }
 0x360   : > { %vm1835_vm12 = vcmp.lt.s32.totalorder %v1799_v56, 16  ;;  %v17921_v46 = vsub.s32 %v17722_v53, %v1085_v25  ;;  %v1179_v61 = vand.u32 65535, %v17904_v21  ;;  %v1141_v14 = vadd.s32 %v1140_v58, %v1131_v50  ;;  %v6524_v56 = vld [vmem:[#allocation10 + $0x38] sm:$0xff]  ;;  %v6170_v50 = vpop.f32.mrf.mxu0 }
 0x361   : > { %21046 = vst [vmem:[#allocation50_spill] sm:$0xff] %v17918_v9  ;;  %v1153_v27 = vmul.u32 14564, %v1150_v42  ;;  %v1154_v17 = vmul.u32 58254, %v1150_v42  ;;  %v1155_v51 = vmul.u32 14564, %v1151_v22  ;;  %v17924_v3 = vadd.f32 %v6402_v47, %v6368_v1  ;;  %6561 = vmatpush.msrb.mxu2 %v6524_v56  ;;  %6541 = vmatpush.msrb.mxu1 %v6524_v56 }
 0x362   : > { %v17926_v15 = vadd.f32 %v6479_v44, %v6445_v2  ;;  %v17930_v32 = vadd.f32 %v17752_v49, %v17761_v16  ;;  %v1180_v62 = vshrl.u32 %v17904_v21, 16  ;;  %v4768_v53 = vadd.f32 %v17861_v0, %v21047_v33 }
 0x363   : > { %v17936_v35 = vsub.s32 %v17778_v60, %v1114_v45  ;;  %v17940_v5 = vadd.f32 %v17816_v52, %v17702_v39  ;;  %v1157_v1 = vshll.u32 %v1154_v17, 16  ;;  %v17943_v20 = vsel %vm1835_vm12, 1.0, %v20961_v37  ;;  %v17961_v47 = vpop.f32.mrf.mxu3 }
 0x364   : > { %21048 = vst [vmem:[#allocation69_spill] sm:$0xff] %v17943_v20  ;;  %v1156_v49 = vmul.u32 58254, %v1151_v22  ;;  %v1159_v16 = vshll.u32 %v1155_v51, 16  ;;  %v17947_v25 = vmul.u32 58254, %v1179_v61  ;;  %vm1656_vm8 = vcmp.ne.s32.totalorder %v17921_v46, 0  ;;  %v17959_v22 = vpop.f32.mrf.mxu1 }
 0x365   : > { %v1142_v0 = vshrl.u32 %v1141_v14, 4  ;;  %vm1161_vm15 = vc.u32 %v1153_v27, %v1157_v1  ;;  %v1163_v60 = vadd.s32 %v1157_v1, %v1153_v27  ;;  %vm1692_vm13 = vcmp.lt.s32.totalorder %v17921_v46, 0 }
 0x366   : > { %v1162_v39 = vsel %vm1161_vm15, 1, %v20902_v43  ;;  %v1182_v52 = vmul.u32 14564, %v1179_v61  ;;  %v17952_v58 = vmul.u32 14564, %v1180_v62  ;;  %v1764_v57 = vadd.s32 18, %v17921_v46  ;;  %vm17968_vm7 = vmand %vm1692_vm13, %vm1656_vm8 }
 0x367   : > { %vm1657_vm6 = vcmp.ne.s32.totalorder %v17936_v35, 0  ;;  %v1158_v2 = vshrl.u32 %v1154_v17, 16  ;;  %v17957_v42 = vadd.s32 168, %v16656_v38  ;;  %v1164_v45 = vadd.s32 %v1162_v39, %v1156_v49 }
 0x368   : > { %vm1165_vm3 = vc.u32 %v1163_v60, %v1159_v16  ;;  %v1185_v44 = vmul.u32 58254, %v1180_v62  ;;  %v1186_v61 = vshll.u32 %v17947_v25, 16  ;;  %vm1693_vm9 = vcmp.lt.s32.totalorder %v17936_v35, 0 }
 0x369   : > { %v1143_v27 = vmul.u32 18, %v1142_v0  ;;  %v1166_v17 = vsel %vm1165_vm3, 1, %v20902_v43  ;;  %v1188_v33 = vshll.u32 %v17952_v58, 16  ;;  %v5224_v1 = vadd.f32 %v17888_v10, %v4768_v53  ;;  %vm17988_vm8 = vmand %vm1693_vm9, %vm1657_vm6 }
 0x36a   : > { %v1160_v62 = vshrl.u32 %v1155_v51, 16  ;;  %v1168_v49 = vadd.s32 %v1166_v17, %v1164_v45  ;;  %vm1190_vm12 = vc.u32 %v1182_v52, %v1186_v61  ;;  %v1765_v16 = vadd.s32 18, %v17936_v35  ;;  %v21053_v45 = vld [vmem:[#allocation26_spill] sm:$0xff] }
 0x36b   : > { %v1191_v56 = vsel %vm1190_vm12, 1, %v20902_v43  ;;  %v1192_v60 = vadd.s32 %v1186_v61, %v1182_v52  ;;  %v17979_v39 = vadd.f32 %v6170_v50, %v17647_v12  ;;  %v6369_v0 = vmul.f32 %v17943_v20, %v17918_v9 }
 0x36c   : > { %v1800_v29 = vsel %vm17968_vm7, %v1764_v57, %v17921_v46  ;;  %v1169_v51 = vadd.s32 %v1168_v49, %v1158_v2  ;;  %v1193_v53 = vadd.s32 %v1191_v56, %v1185_v44  ;;  %v4769_v52 = vadd.f32 %v17906_v31, %v21053_v45  ;;  %v18001_v57 = vpop.f32.mrf.mxu2  ;;  %v4687_v49 = vpop.f32.mrf.mxu1 }
 0x36d   : > { %v17995_v12 = vsub.s32 %v17821_v19, %v1143_v27  ;;  %vm1194_vm15 = vc.u32 %v1192_v60, %v1188_v33  ;;  %v1208_v50 = vand.u32 65535, %v17957_v42  ;;  %v17999_v61 = vadd.f32 %v17908_v36, %v5224_v1  ;;  %v18009_v27 = vpop.f32.mrf.mxu0 }
 0x36e   : > { %v1170_v46 = vadd.s32 %v1169_v51, %v1160_v62  ;;  %v1195_v14 = vsel %vm1194_vm15, 1, %v20902_v43  ;;  %v1209_v2 = vshrl.u32 %v17957_v42, 16  ;;  %vm1836_vm13 = vcmp.lt.s32.totalorder %v1800_v29, 16 }
 0x36f   : > { %v1801_v31 = vsel %vm17988_vm8, %v1765_v16, %v17936_v35  ;;  %v1187_v19 = vshrl.u32 %v17947_v25, 16  ;;  %v1197_v44 = vadd.s32 %v1195_v14, %v1193_v53  ;;  %v6446_v17 = vmul.f32 %v6369_v0, %v6369_v0  ;;  %v18025_v16 = vpop.f32.mrf.mxu3 }
 0x370   : > { %v1211_v36 = vmul.u32 14564, %v1208_v50  ;;  %v1212_v33 = vmul.u32 58254, %v1208_v50  ;;  %v18011_v1 = vmul.u32 14564, %v1209_v2  ;;  %vm1658_vm6 = vcmp.ne.s32.totalorder %v17995_v12, 0 }
 0x371   : > { %vm1694_vm3 = vcmp.lt.s32.totalorder %v17995_v12, 0  ;;  %v1171_v62 = vshrl.u32 %v1170_v46, 4  ;;  %v18016_v29 = vadd.s32 176, %v16656_v38  ;;  %v18019_v35 = vsel %vm1836_vm13, 1.0, %v20961_v37 }
 0x372   : > { %21054 = vst [vmem:[#allocation52_spill] sm:$0xff] %v18019_v35  ;;  %vm18021_vm7 = vcmp.lt.s32.totalorder %v1801_v31, 16  ;;  %v1214_v56 = vmul.u32 58254, %v1209_v2  ;;  %v1215_v60 = vshll.u32 %v1212_v33, 16  ;;  %v1766_v10 = vadd.s32 18, %v17995_v12  ;;  %vm18033_vm9 = vmand %vm1694_vm3, %vm1658_vm6 }
 0x373   : > { %v1189_v51 = vshrl.u32 %v17952_v58, 16  ;;  %v1198_v53 = vadd.s32 %v1197_v44, %v1187_v19  ;;  %v1217_v45 = vshll.u32 %v18011_v1, 16  ;;  %v6404_v50 = vadd.f32 %v17924_v3, %v6369_v0  ;;  %v6523_v44 = vld [vmem:[#allocation10 + $0x30] sm:$0xff] }
 0x374   : > { %vm1219_vm12 = vc.u32 %v1211_v36, %v1215_v60  ;;  %v1221_v14 = vadd.s32 %v1215_v60, %v1211_v36  ;;  %v1237_v2 = vand.u32 65535, %v18016_v29  ;;  %v6481_v31 = vadd.f32 %v17926_v15, %v6446_v17  ;;  %6562 = vmatpush.msrb.mxu2 %v6523_v44  ;;  %6542 = vmatpush.msrb.mxu1 %v6523_v44  ;;  %v5143_v9 = vpop.f32.mrf.mxu2 }
 0x375   : > { %v1172_v20 = vmul.u32 18, %v1171_v62  ;;  %v1220_v58 = vsel %vm1219_vm12, 1, %v20902_v43  ;;  %v1238_v19 = vshrl.u32 %v18016_v29, 16  ;;  %v6370_v3 = vmul.f32 %v18019_v35, %v17790_v8 }
 0x376   : > { %v18046_v0 = vsel %vm18021_vm7, 1.0, %v20961_v37  ;;  %v5225_v36 = vadd.f32 %v17945_v30, %v4769_v52  ;;  %v1222_v60 = vadd.s32 %v1220_v58, %v1214_v56  ;;  %v1802_v15 = vsel %vm18033_vm9, %v1766_v10, %v17995_v12  ;;  %v6175_v58 = vpop.f32.mrf.mxu0 }
 0x377   : > { %21059 = vst [vmem:[#allocation58_spill] sm:$0xff] %v18046_v0  ;;  %v1199_v17 = vadd.s32 %v1198_v53, %v1189_v51  ;;  %vm1223_vm8 = vc.u32 %v1221_v14, %v1217_v45  ;;  %v1241_v62 = vmul.u32 58254, %v1237_v2  ;;  %v1216_v48 = vshrl.u32 %v1212_v33, 16 }
 0x378   : > { %v1224_v35 = vsel %vm1223_vm8, 1, %v20902_v43  ;;  %v1240_v8 = vmul.u32 14564, %v1237_v2  ;;  %v1242_v25 = vmul.u32 14564, %v1238_v19  ;;  %v4770_v13 = vadd.f32 %v17959_v22, %v21060_v18  ;;  %v4689_v22 = vpop.f32.mrf.mxu1 }
 0x379   : > { %v18056_v30 = vsub.s32 %v17898_v24, %v1172_v20  ;;  %v1226_v52 = vadd.s32 %v1224_v35, %v1222_v60  ;;  %v1244_v56 = vshll.u32 %v1241_v62, 16  ;;  %v18059_v12 = vadd.f32 %v17961_v47, %v5225_v36  ;;  %v5733_v35 = vpop.f32.mrf.mxu3 }
 0x37a   : > { %v18063_v10 = vadd.f32 %v17895_v11, %v17837_v28  ;;  %v1243_v33 = vmul.u32 58254, %v1238_v19  ;;  %v1246_v51 = vshll.u32 %v1242_v25, 16  ;;  %v6371_v53 = vmul.f32 %v18046_v0, %v17940_v5 }
 0x37b   : > { %vm18067_vm15 = vcmp.lt.s32.totalorder %v1802_v15, 16  ;;  %v1200_v24 = vshrl.u32 %v1199_v17, 4  ;;  %v1218_v20 = vshrl.u32 %v18011_v1, 16  ;;  %v1227_v47 = vadd.s32 %v1226_v52, %v1216_v48 }
 0x37c   : > { %vm1248_vm13 = vc.u32 %v1240_v8, %v1244_v56  ;;  %v1250_v45 = vadd.s32 %v1244_v56, %v1240_v8  ;;  %v18073_v28 = vadd.f32 %v6175_v58, %v17735_v4  ;;  %v6447_v11 = vmul.f32 %v6370_v3, %v6370_v3  ;;  %v21064_v4 = vld [vmem:[#allocation71_spill] sm:$0xff] }
 0x37d   : > { %vm1659_vm6 = vcmp.ne.s32.totalorder %v18056_v30, 0  ;;  %v5226_v46 = vadd.f32 %v18001_v57, %v4770_v13  ;;  %v1249_v14 = vsel %vm1248_vm13, 1, %v20902_v43  ;;  %vm1695_vm3 = vcmp.lt.s32.totalorder %v18056_v30, 0 }
 0x37e   : > { %v1245_v2 = vshrl.u32 %v1241_v62, 16  ;;  %v1251_v19 = vadd.s32 %v1249_v14, %v1243_v33  ;;  %vm1252_vm7 = vc.u32 %v1250_v45, %v1246_v51  ;;  %v6448_v1 = vmul.f32 %v6371_v53, %v6371_v53  ;;  %vm18089_vm9 = vmand %vm1695_vm3, %vm1659_vm6  ;;  %v5145_v33 = vpop.f32.mrf.mxu2 }
 0x37f   : > { %v18082_v48 = vsel %vm18067_vm15, 1.0, %v20961_v37  ;;  %v4771_v8 = vadd.f32 %v4687_v49, %v21064_v4  ;;  %v1253_v44 = vsel %vm1252_vm7, 1, %v20902_v43  ;;  %v1767_v36 = vadd.s32 18, %v18056_v30 }
 0x380   : > { %21063 = vst [vmem:[#allocation60_spill] sm:$0xff] %v18082_v48  ;;  %v1201_v13 = vmul.u32 18, %v1200_v24  ;;  %v1228_v57 = vadd.s32 %v1227_v47, %v1218_v20  ;;  %v1255_v60 = vadd.s32 %v1253_v44, %v1251_v19  ;;  %v6405_v15 = vadd.f32 %v6404_v50, %v6370_v3  ;;  %v18106_v24 = vpop.f32.mrf.mxu0 }
 0x381   : > { %v6482_v17 = vadd.f32 %v6481_v31, %v6447_v11  ;;  %v1247_v52 = vshrl.u32 %v1242_v25, 16  ;;  %v18094_v56 = vadd.s32 184, %v16656_v38  ;;  %v6372_v49 = vmul.f32 %v18082_v48, %v17875_v63  ;;  %v5735_v44 = vpop.f32.mrf.mxu3 }
 0x382   : > { %v5227_v58 = vadd.f32 %v5143_v9, %v4771_v8  ;;  %v1256_v51 = vadd.s32 %v1255_v60, %v1245_v2  ;;  %v18099_v18 = vadd.s32 192, %v16656_v38  ;;  %v6406_v50 = vadd.f32 %v6405_v15, %v6371_v53  ;;  %v21067_v2 = vld [vmem:[#allocation28_spill] sm:$0xff]  ;;  %v4692_v8 = vpop.f32.mrf.mxu1 }
 0x383   : > { %v18102_v31 = vadd.f32 %v18025_v16, %v5226_v46  ;;  %v1266_v3 = vand.u32 65535, %v18094_v56  ;;  %v1267_v25 = vshrl.u32 %v18094_v56, 16  ;;  %v6483_v20 = vadd.f32 %v6482_v17, %v6448_v1 }
 0x384   : > { %v1803_v9 = vsel %vm18089_vm9, %v1767_v36, %v18056_v30  ;;  %v18112_v47 = vsub.s32 %v17904_v21, %v1201_v13  ;;  %v1229_v45 = vshrl.u32 %v1228_v57, 4  ;;  %v1257_v11 = vadd.s32 %v1256_v51, %v1247_v52 }
 0x385   : > { %v1269_v53 = vmul.u32 14564, %v1266_v3  ;;  %v1270_v14 = vmul.u32 58254, %v1266_v3  ;;  %v1271_v16 = vmul.u32 14564, %v1267_v25  ;;  %v6449_v46 = vmul.f32 %v6372_v49, %v6372_v49 }
 0x386   : > { %v4772_v19 = vadd.f32 %v4689_v22, %v21067_v2  ;;  %v18115_v4 = vadd.f32 %v5733_v35, %v5227_v58  ;;  %v1295_v1 = vand.u32 65535, %v18099_v18  ;;  %v18118_v60 = vadd.f32 %v6406_v50, %v6372_v49  ;;  %v6522_v58 = vld [vmem:[#allocation10 + $0x28] sm:$0xff] }
 0x387   : > { %v1272_v30 = vmul.u32 58254, %v1267_v25  ;;  %v1273_v36 = vshll.u32 %v1270_v14, 16  ;;  %v1275_v21 = vshll.u32 %v1271_v16, 16  ;;  %vm18120_vm12 = vcmp.lt.s32.totalorder %v1803_v9, 16  ;;  %6563 = vmatpush.msrb.mxu2 %v6522_v58  ;;  %6543 = vmatpush.msrb.mxu1 %v6522_v58 }
 0x388   : > { %vm1660_vm8 = vcmp.ne.s32.totalorder %v18112_v47, 0  ;;  %v1230_v57 = vmul.u32 18, %v1229_v45  ;;  %v1296_v22 = vshrl.u32 %v18099_v18, 16  ;;  %vm1696_vm15 = vcmp.lt.s32.totalorder %v18112_v47, 0  ;;  %v5148_v45 = vpop.f32.mrf.mxu2 }
 0x389   : > { %v1258_v35 = vshrl.u32 %v1257_v11, 4  ;;  %vm1277_vm13 = vc.u32 %v1269_v53, %v1273_v36  ;;  %v1279_v15 = vadd.s32 %v1273_v36, %v1269_v53  ;;  %v18127_v17 = vadd.f32 %v6483_v20, %v6449_v46  ;;  %vm18144_vm3 = vmand %vm1696_vm15, %vm1660_vm8  ;;  %v6180_v36 = vpop.f32.mrf.mxu0 }
 0x38a   : > { %v1768_v62 = vadd.s32 18, %v18112_v47  ;;  %v1278_v52 = vsel %vm1277_vm13, 1, %v20902_v43  ;;  %v18131_v49 = vmul.u32 58254, %v1295_v1  ;;  %v1274_v51 = vshrl.u32 %v1270_v14, 16 }
 0x38b   : > { %v1280_v50 = vadd.s32 %v1278_v52, %v1272_v30  ;;  %vm1281_vm6 = vc.u32 %v1279_v15, %v1275_v21  ;;  %v18133_v3 = vmul.u32 14564, %v1296_v22  ;;  %v18138_v25 = vsel %vm18120_vm12, 1.0, %v20961_v37 }
 0x38c   : > { %21070 = vst [vmem:[#allocation62_spill] sm:$0xff] %v18138_v25  ;;  %v18149_v9 = vsub.s32 %v17957_v42, %v1230_v57  ;;  %v1282_v11 = vsel %vm1281_vm6, 1, %v20902_v43  ;;  %v1298_v53 = vmul.u32 14564, %v1295_v1  ;;  %v18154_v14 = vadd.f32 %v18009_v27, %v17914_v6  ;;  %v21073_v57 = vld [vmem:[#allocation30_spill] sm:$0xff] }
 0x38d   : > { %v1259_v46 = vmul.u32 18, %v1258_v35  ;;  %v1276_v2 = vshrl.u32 %v1271_v16, 16  ;;  %v1284_v30 = vadd.s32 %v1282_v11, %v1280_v50  ;;  %v5228_v21 = vadd.f32 %v5145_v33, %v4772_v19  ;;  %v4694_v16 = vpop.f32.mrf.mxu1  ;;  %v5738_v35 = vpop.f32.mrf.mxu3 }
 0x38e   : > { %v1301_v13 = vmul.u32 58254, %v1296_v22  ;;  %v1302_v15 = vshll.u32 %v18131_v49, 16  ;;  %v1304_v52 = vshll.u32 %v18133_v3, 16  ;;  %v6373_v42 = vmul.f32 %v18138_v25, %v18063_v10 }
 0x38f   : > { %v1804_v1 = vsel %vm18144_vm3, %v1768_v62, %v18112_v47  ;;  %v4773_v6 = vadd.f32 %v4692_v8, %v21073_v57  ;;  %v1285_v27 = vadd.s32 %v1284_v30, %v1274_v51  ;;  %vm1661_vm7 = vcmp.ne.s32.totalorder %v18149_v9, 0  ;;  %v14704_v30 = vld [vmem:[#allocation12 + $0x38] sm:$0xff] }
 0x390   : > { %vm1306_vm9 = vc.u32 %v1298_v53, %v1302_v15  ;;  %v1308_v33 = vadd.s32 %v1302_v15, %v1298_v53  ;;  %v18166_v19 = vadd.f32 %v6180_v36, %v17831_v55  ;;  %vm1697_vm12 = vcmp.lt.s32.totalorder %v18149_v9, 0  ;;  %7570 = vmatpush.bf16.msra.mxu3 %v14704_v30 }
 0x391   : > { %v18170_v22 = vsub.s32 %v18016_v29, %v1259_v46  ;;  %v1286_v58 = vadd.s32 %v1285_v27, %v1276_v2  ;;  %v1307_v47 = vsel %vm1306_vm9, 1, %v20902_v43  ;;  %vm1840_vm8 = vcmp.lt.s32.totalorder %v1804_v1, 16  ;;  %vm18182_vm13 = vmand %vm1697_vm12, %vm1661_vm7 }
 0x392   : > { %21074 = vst [vmem:[#allocation64_spill] sm:$0xff] %v18166_v19  ;;  %v1309_v8 = vadd.s32 %v1307_v47, %v1301_v13  ;;  %vm1310_vm15 = vc.u32 %v1308_v33, %v1304_v52  ;;  %v18174_v62 = vadd.s32 200, %v16656_v38  ;;  %v1769_v51 = vadd.s32 18, %v18149_v9  ;;  %v5150_v13 = vpop.f32.mrf.mxu2 }
 0x393   : > { %v18177_v50 = vadd.f32 %v5735_v44, %v5228_v21  ;;  %v1287_v55 = vshrl.u32 %v1286_v58, 4  ;;  %v1311_v20 = vsel %vm1310_vm15, 1, %v20902_v43  ;;  %v1303_v11 = vshrl.u32 %v18131_v49, 16 }
 0x394   : > { %v1313_v53 = vadd.s32 %v1311_v20, %v1309_v8  ;;  %v1324_v46 = vand.u32 65535, %v18174_v62  ;;  %v1325_v2 = vshrl.u32 %v18174_v62, 16  ;;  %v6450_v36 = vmul.f32 %v6373_v42, %v6373_v42 }
 0x395   : > { %v18190_v44 = vsel %vm1840_vm8, 1.0, %v20961_v37  ;;  %vm1662_vm6 = vcmp.ne.s32.totalorder %v18170_v22, 0  ;;  %vm1698_vm3 = vcmp.lt.s32.totalorder %v18170_v22, 0  ;;  %v5229_v21 = vadd.f32 %v5148_v45, %v4773_v6  ;;  %v4697_v30 = vpop.f32.mrf.mxu1  ;;  %v18212_v25 = vpop.f32.mrf.mxu3 }
 0x396   : > { %21077 = vst [vmem:[#allocation67_spill] sm:$0xff] %v18190_v44  ;;  %v1327_v15 = vmul.u32 14564, %v1324_v46  ;;  %v1328_v52 = vmul.u32 58254, %v1324_v46  ;;  %v1329_v1 = vmul.u32 14564, %v1325_v2  ;;  %v1805_v49 = vsel %vm18182_vm13, %v1769_v51, %v18149_v9  ;;  %vm18199_vm7 = vmand %vm1698_vm3, %vm1662_vm6  ;;  %v21080_v51 = vld [vmem:[#allocation29_spill] sm:$0xff] }
 0x397   : > { %v1770_v57 = vadd.s32 18, %v18170_v22  ;;  %v1288_v27 = vmul.u32 18, %v1287_v55  ;;  %v1305_v33 = vshrl.u32 %v18133_v3, 16  ;;  %v1314_v47 = vadd.s32 %v1313_v53, %v1303_v11  ;;  %v18208_v55 = vpop.f32.mrf.mxu0 }
 0x398   : > { %v1330_v45 = vmul.u32 58254, %v1325_v2  ;;  %v1331_v6 = vshll.u32 %v1328_v52, 16  ;;  %v1333_v8 = vshll.u32 %v1329_v1, 16  ;;  %v6408_v20 = vadd.f32 %v18118_v60, %v6373_v42 }
 0x399   : > { %v6485_v46 = vadd.f32 %v18127_v17, %v6450_v36  ;;  %v6374_v9 = vmul.f32 %v18190_v44, %v17979_v39  ;;  %v4774_v29 = vadd.f32 %v4694_v16, %v21080_v51  ;;  %v18210_v3 = vadd.f32 %v5738_v35, %v5229_v21  ;;  %v6521_v21 = vld [vmem:[#allocation10 + $0x20] sm:$0xff] }
 0x39a   : > { %vm1335_vm9 = vc.u32 %v1327_v15, %v1331_v6  ;;  %v1337_v11 = vadd.s32 %v1331_v6, %v1327_v15  ;;  %v18215_v53 = vadd.s32 208, %v16656_v38  ;;  %vm18217_vm12 = vcmp.lt.s32.totalorder %v1805_v49, 16  ;;  %6564 = vmatpush.msrb.mxu2 %v6521_v21  ;;  %6544 = vmatpush.msrb.mxu1 %v6521_v21 }
 0x39b   : > { %v1806_v17 = vsel %vm18199_vm7, %v1770_v57, %v18170_v22  ;;  %v18226_v42 = vadd.f32 %v18106_v24, %v17930_v32  ;;  %v1336_v16 = vsel %vm1335_vm9, 1, %v20902_v43  ;;  %v1289_v35 = vsub.s32 %v18094_v56, %v1288_v27 }
 0x39c   : > { %v1315_v2 = vadd.s32 %v1314_v47, %v1305_v33  ;;  %v1338_v36 = vadd.s32 %v1336_v16, %v1330_v45  ;;  %vm1339_vm8 = vc.u32 %v1337_v11, %v1333_v8  ;;  %v1332_v15 = vshrl.u32 %v1328_v52, 16  ;;  %v5153_v45 = vpop.f32.mrf.mxu2 }
 0x39d   : > { %v1340_v49 = vsel %vm1339_vm8, 1, %v20902_v43  ;;  %v1353_v6 = vand.u32 65535, %v18215_v53  ;;  %v1354_v58 = vshrl.u32 %v18215_v53, 16  ;;  %v6409_v22 = vadd.f32 %v6408_v20, %v6374_v9 }
 0x39e   : > { %v6451_v32 = vmul.f32 %v6374_v9, %v6374_v9  ;;  %v18236_v24 = vsel %vm18217_vm12, 1.0, %v20961_v37  ;;  %v1342_v56 = vadd.s32 %v1340_v49, %v1338_v36  ;;  %v1334_v57 = vshrl.u32 %v1329_v1, 16 }
 0x39f   : > { %21083 = vst [vmem:[#allocation70_spill] sm:$0xff] %v18236_v24  ;;  %v1356_v27 = vmul.u32 14564, %v1353_v6  ;;  %v1357_v33 = vmul.u32 58254, %v1353_v6  ;;  %v18238_v52 = vmul.u32 14564, %v1354_v58  ;;  %vm18240_vm15 = vcmp.lt.s32.totalorder %v1806_v17, 16 }
 0x3a0   : > { %vm1663_vm13 = vcmp.ne.s32.totalorder %v1289_v35, 0  ;;  %vm1699_vm6 = vcmp.lt.s32.totalorder %v1289_v35, 0  ;;  %v18245_v8 = vadd.s32 216, %v16656_v38  ;;  %v1316_v20 = vshrl.u32 %v1315_v2, 4  ;;  %v18255_v2 = vpop.f32.mrf.mxu0 }
 0x3a1   : > { %v1343_v9 = vadd.s32 %v1342_v56, %v1332_v15  ;;  %v1359_v51 = vmul.u32 58254, %v1354_v58  ;;  %v1360_v11 = vshll.u32 %v1357_v33, 16  ;;  %v1771_v60 = vadd.s32 18, %v1289_v35  ;;  %vm18251_vm3 = vmand %vm1699_vm6, %vm1663_vm13 }
 0x3a2   : > { %v5230_v1 = vadd.f32 %v5150_v13, %v4774_v29  ;;  %v4775_v16 = vadd.f32 %v4697_v30, %v16766_v23  ;;  %v1362_v36 = vshll.u32 %v18238_v52, 16  ;;  %v6375_v17 = vmul.f32 %v18236_v24, %v18154_v14  ;;  %v4699_v23 = vpop.f32.mrf.mxu1  ;;  %v5743_v29 = vpop.f32.mrf.mxu3 }
 0x3a3   : > { %v1344_v49 = vadd.s32 %v1343_v9, %v1334_v57  ;;  %vm1364_vm7 = vc.u32 %v1356_v27, %v1360_v11  ;;  %v1366_v6 = vadd.s32 %v1360_v11, %v1356_v27  ;;  %v6486_v15 = vadd.f32 %v6485_v46, %v6451_v32 }
 0x3a4   : > { %v18260_v13 = vsel %vm18240_vm15, 1.0, %v20961_v37  ;;  %v1365_v30 = vsel %vm1364_vm7, 1, %v20902_v43  ;;  %v1382_v58 = vand.u32 65535, %v18245_v8  ;;  %v1317_v56 = vmul.u32 18, %v1316_v20  ;;  %v5155_v21 = vpop.f32.mrf.mxu2 }
 0x3a5   : > { %21088 = vst [vmem:[#allocation72_spill] sm:$0xff] %v18260_v13  ;;  %v1345_v24 = vshrl.u32 %v1344_v49, 4  ;;  %v1367_v44 = vadd.s32 %v1365_v30, %v1359_v51  ;;  %vm1368_vm9 = vc.u32 %v1366_v6, %v1362_v36  ;;  %v1807_v57 = vsel %vm18251_vm3, %v1771_v60, %v1289_v35 }
 0x3a6   : > { %v1361_v27 = vshrl.u32 %v1357_v33, 16  ;;  %v1369_v46 = vsel %vm1368_vm9, 1, %v20902_v43  ;;  %v1383_v32 = vshrl.u32 %v18245_v8, 16  ;;  %v6452_v47 = vmul.f32 %v6375_v17, %v6375_v17 }
 0x3a7   : > { %v6376_v9 = vmul.f32 %v18260_v13, %v18073_v28  ;;  %v1371_v11 = vadd.s32 %v1369_v46, %v1367_v44  ;;  %v1386_v48 = vmul.u32 58254, %v1382_v58  ;;  %v6410_v0 = vadd.f32 %v6409_v22, %v6375_v17 }
 0x3a8   : > { %v18271_v20 = vadd.f32 %v18212_v25, %v5230_v1  ;;  %v1385_v51 = vmul.u32 14564, %v1382_v58  ;;  %v18273_v36 = vmul.u32 14564, %v1383_v32  ;;  %vm1843_vm12 = vcmp.lt.s32.totalorder %v1807_v57, 16 }
 0x3a9   : > { %v1318_v35 = vsub.s32 %v18099_v18, %v1317_v56  ;;  %v1346_v33 = vmul.u32 18, %v1345_v24  ;;  %v1389_v60 = vshll.u32 %v1386_v48, 16  ;;  %v1363_v49 = vshrl.u32 %v18238_v52, 16 }
 0x3aa   : > { %v1372_v6 = vadd.s32 %v1371_v11, %v1361_v27  ;;  %v1388_v30 = vmul.u32 58254, %v1383_v32  ;;  %v1391_v44 = vshll.u32 %v18273_v36, 16  ;;  %v6487_v46 = vadd.f32 %v6486_v15, %v6452_v47 }
 0x3ab   : > { %v18278_v22 = vadd.f32 %v6410_v0, %v6376_v9  ;;  %v5231_v25 = vadd.f32 %v5153_v45, %v4775_v16  ;;  %v4776_v1 = vadd.f32 %v4699_v23, %v16811_v40  ;;  %v18282_v17 = vsel %vm1843_vm12, 1.0, %v20961_v37  ;;  %v18291_v0 = vpop.f32.mrf.mxu0  ;;  %v4702_v45 = vpop.f32.mrf.mxu1 }
 0x3ac   : > { %21089 = vst [vmem:[#allocation74_spill] sm:$0xff] %v18282_v17  ;;  %vm1393_vm8 = vc.u32 %v1385_v51, %v1389_v60  ;;  %v1395_v18 = vadd.s32 %v1389_v60, %v1385_v51  ;;  %v18285_v24 = vadd.s32 224, %v16656_v38  ;;  %vm1664_vm15 = vcmp.ne.s32.totalorder %v1318_v35, 0  ;;  %v5745_v16 = vpop.f32.mrf.mxu3 }
 0x3ad   : > { %vm1700_vm13 = vcmp.lt.s32.totalorder %v1318_v35, 0  ;;  %v18288_v52 = vsub.s32 %v18174_v62, %v1346_v33  ;;  %v1394_v15 = vsel %vm1393_vm8, 1, %v20902_v43  ;;  %v1373_v40 = vadd.s32 %v1372_v6, %v1363_v49 }
 0x3ae   : > { %v1396_v23 = vadd.s32 %v1394_v15, %v1388_v30  ;;  %vm1397_vm6 = vc.u32 %v1395_v18, %v1391_v44  ;;  %v1411_v58 = vand.u32 65535, %v18285_v24  ;;  %v6453_v56 = vmul.f32 %v6376_v9, %v6376_v9  ;;  %vm18297_vm3 = vmand %vm1700_vm13, %vm1664_vm15 }
 0x3af   : > { %v1772_v57 = vadd.s32 18, %v1318_v35  ;;  %v1398_v27 = vsel %vm1397_vm6, 1, %v20902_v43  ;;  %v1412_v32 = vshrl.u32 %v18285_v24, 16  ;;  %v18301_v47 = vadd.f32 %v5743_v29, %v5231_v25 }
 0x3b0   : > { %v1390_v11 = vshrl.u32 %v1386_v48, 16  ;;  %v1400_v51 = vadd.s32 %v1398_v27, %v1396_v23  ;;  %v18303_v33 = vmul.u32 58254, %v1411_v58  ;;  %v6377_v60 = vmul.f32 %v18282_v17, %v18226_v42  ;;  %v21093_v23 = vld [vmem:[#allocation31_spill] sm:$0xff]  ;;  %v5158_v27 = vpop.f32.mrf.mxu2 }
 0x3b1   : > { %v1414_v9 = vmul.u32 14564, %v1411_v58  ;;  %v18307_v49 = vmul.u32 14564, %v1412_v32  ;;  %v18310_v6 = vadd.s32 232, %v16656_v38  ;;  %vm1665_vm7 = vcmp.ne.s32.totalorder %v18288_v52, 0 }
 0x3b2   : > { %vm1701_vm9 = vcmp.lt.s32.totalorder %v18288_v52, 0  ;;  %v1374_v30 = vshrl.u32 %v1373_v40, 4  ;;  %v1418_v29 = vshll.u32 %v18303_v33, 16  ;;  %v6488_v48 = vadd.f32 %v6487_v46, %v6453_v56 }
 0x3b3   : > { %v1808_v44 = vsel %vm18297_vm3, %v1772_v57, %v1318_v35  ;;  %v18319_v25 = vadd.f32 %v18208_v55, %v17999_v61  ;;  %v5232_v18 = vadd.f32 %v5155_v21, %v4776_v1  ;;  %v1773_v15 = vadd.s32 18, %v18288_v52  ;;  %vm18324_vm12 = vmand %vm1701_vm9, %vm1665_vm7 }
 0x3b4   : > { %v4777_v58 = vadd.f32 %v4702_v45, %v21093_v23  ;;  %v1392_v17 = vshrl.u32 %v18273_v36, 16  ;;  %v1401_v13 = vadd.s32 %v1400_v51, %v1390_v11  ;;  %v1420_v46 = vshll.u32 %v18307_v49, 16  ;;  %v18345_v51 = vpop.f32.mrf.mxu0  ;;  %v5748_v23 = vpop.f32.mrf.mxu3 }
 0x3b5   : > { %21092 = vst [vmem:[#allocation76_spill] sm:$0xff] %v18319_v25  ;;  %vm18329_vm8 = vc.u32 %v1414_v9, %v1418_v29  ;;  %v1424_v61 = vadd.s32 %v1418_v29, %v1414_v9  ;;  %v1440_v55 = vand.u32 65535, %v18310_v6  ;;  %v6454_v21 = vmul.f32 %v6377_v60, %v6377_v60  ;;  %v6520_v9 = vld [vmem:[#allocation10 + $0x18] sm:$0xff] }
 0x3b6   : > { %vm18334_vm15 = vcmp.lt.s32.totalorder %v1808_v44, 16  ;;  %v1375_v36 = vmul.u32 18, %v1374_v30  ;;  %v1441_v45 = vshrl.u32 %v18310_v6, 16  ;;  %v18339_v56 = vadd.f32 %v5745_v16, %v5232_v18  ;;  %v4704_v44 = vpop.f32.mrf.mxu1  ;;  %6565 = vmatpush.msrb.mxu2 %v6520_v9  ;;  %6545 = vmatpush.msrb.mxu1 %v6520_v9 }
 0x3b7   : > { %v18343_v57 = vadd.f32 %v18255_v2, %v18059_v12  ;;  %v5233_v62 = vadd.f32 %v5158_v27, %v4777_v58  ;;  %v1417_v11 = vmul.u32 58254, %v1412_v32  ;;  %v1809_v29 = vsel %vm18324_vm12, %v1773_v15, %v18288_v52  ;;  %v21101_v58 = vld [vmem:[#allocation33_spill] sm:$0xff] }
 0x3b8   : > { %v1402_v30 = vadd.s32 %v1401_v13, %v1392_v17  ;;  %v1423_v16 = vsel %vm18329_vm8, 1, %v20902_v43  ;;  %v18353_v18 = vmul.u32 58254, %v1440_v55  ;;  %v18358_v12 = vsel %vm18334_vm15, 1.0, %v20961_v37 }
 0x3b9   : > { %21100 = vst [vmem:[#allocation77_spill] sm:$0xff] %v18358_v12  ;;  %vm1426_vm13 = vc.u32 %v1424_v61, %v1420_v46  ;;  %v1443_v2 = vmul.u32 14564, %v1440_v55  ;;  %v18360_v32 = vmul.u32 14564, %v1441_v45  ;;  %v6412_v52 = vadd.f32 %v18278_v22, %v6377_v60 }
 0x3ba   : > { %v6489_v13 = vadd.f32 %v6488_v48, %v6454_v21  ;;  %v18364_v17 = vsub.s32 %v18215_v53, %v1375_v36  ;;  %v1447_v15 = vshll.u32 %v18353_v18, 16  ;;  %vm1845_vm6 = vcmp.lt.s32.totalorder %v1809_v29, 16 }
 0x3bb   : > { %v18368_v27 = vadd.f32 %v4704_v44, %v21101_v58  ;;  %v18370_v40 = vadd.f32 %v5748_v23, %v5233_v62  ;;  %v1425_v35 = vadd.s32 %v1423_v16, %v1417_v11  ;;  %v6378_v46 = vmul.f32 %v18358_v12, %v18166_v19  ;;  %v14703_v23 = vld [vmem:[#allocation12 + $0x30] sm:$0xff] }
 0x3bc   : > { %v1403_v61 = vshrl.u32 %v1402_v30, 4  ;;  %v1427_v55 = vsel %vm1426_vm13, 1, %v20902_v43  ;;  %v1449_v22 = vshll.u32 %v18360_v32, 16  ;;  %v18378_v53 = vadd.f32 %v18291_v0, %v18102_v31  ;;  %7571 = vmatpush.bf16.msra.mxu3 %v14703_v23 }
 0x3bd   : > { %vm1451_vm3 = vc.u32 %v1443_v2, %v1447_v15  ;;  %v1453_v60 = vadd.s32 %v1447_v15, %v1443_v2  ;;  %v18381_v48 = vadd.s32 240, %v16656_v38  ;;  %v18384_v21 = vsel %vm1845_vm6, 1.0, %v20961_v37  ;;  %v18402_v2 = vpop.f32.mrf.mxu0 }
 0x3be   : > { %21102 = vst [vmem:[#allocation78_spill] sm:$0xff] %v18384_v21  ;;  %vm1666_vm7 = vcmp.ne.s32.totalorder %v18364_v17, 0  ;;  %vm1702_vm9 = vcmp.lt.s32.totalorder %v18364_v17, 0  ;;  %v1446_v1 = vmul.u32 58254, %v1441_v45  ;;  %v1419_v36 = vshrl.u32 %v18303_v33, 16 }
 0x3bf   : > { %v1429_v62 = vadd.s32 %v1427_v55, %v1425_v35  ;;  %v1452_v11 = vsel %vm1451_vm3, 1, %v20902_v43  ;;  %v18391_v31 = vadd.s32 248, %v16656_v38  ;;  %v1404_v0 = vmul.u32 18, %v1403_v61  ;;  %vm18408_vm8 = vmand %vm1702_vm9, %vm1666_vm7 }
 0x3c0   : > { %vm18393_vm12 = vc.u32 %v1453_v60, %v1449_v22  ;;  %v1469_v29 = vand.u32 65535, %v18381_v48  ;;  %v1470_v44 = vshrl.u32 %v18381_v48, 16  ;;  %v6413_v30 = vadd.f32 %v6412_v52, %v6378_v46 }
 0x3c1   : > { %v6455_v45 = vmul.f32 %v6378_v46, %v6378_v46  ;;  %v6379_v33 = vmul.f32 %v18384_v21, %v18319_v25  ;;  %v1774_v16 = vadd.s32 18, %v18364_v17  ;;  %v1454_v58 = vadd.s32 %v1452_v11, %v1446_v1 }
 0x3c2   : > { %v1472_v35 = vmul.u32 14564, %v1469_v29  ;;  %v1473_v61 = vmul.u32 58254, %v1469_v29  ;;  %v18412_v52 = vmul.u32 14564, %v1470_v44  ;;  %v1421_v46 = vshrl.u32 %v18307_v49, 16 }
 0x3c3   : > { %v1430_v55 = vadd.s32 %v1429_v62, %v1419_v36  ;;  %v1456_v22 = vsel %vm18393_vm12, 1, %v20902_v43  ;;  %v1498_v60 = vand.u32 65535, %v18391_v31  ;;  %v18420_v21 = vsub.s32 %v18245_v8, %v1404_v0 }
 0x3c4   : > { %v1475_v12 = vmul.u32 58254, %v1470_v44  ;;  %v1476_v25 = vshll.u32 %v1473_v61, 16  ;;  %v1478_v1 = vshll.u32 %v18412_v52, 16  ;;  %v6490_v11 = vadd.f32 %v6489_v13, %v6455_v45  ;;  %v5160_v13 = vpop.f32.mrf.mxu2 }
 0x3c5   : > { %v6456_v29 = vmul.f32 %v6379_v33, %v6379_v33  ;;  %v1810_v49 = vsel %vm18408_vm8, %v1774_v16, %v18364_v17  ;;  %v1448_v36 = vshrl.u32 %v18353_v18, 16  ;;  %v1458_v62 = vadd.s32 %v1456_v22, %v1454_v58  ;;  %v6519_v17 = vld [vmem:[#allocation10 + $0x10] sm:$0xff]  ;;  %v18445_v22 = vpop.f32.mrf.mxu0 }
 0x3c6   : > { %vm1480_vm15 = vc.u32 %v1472_v35, %v1476_v25  ;;  %v1482_v9 = vadd.s32 %v1476_v25, %v1472_v35  ;;  %v1499_v23 = vshrl.u32 %v18391_v31, 16  ;;  %v1431_v19 = vadd.s32 %v1430_v55, %v1421_v46  ;;  %6566 = vmatpush.msrb.mxu2 %v6519_v17  ;;  %6546 = vmatpush.msrb.mxu1 %v6519_v17 }
 0x3c7   : > { %v1450_v8 = vshrl.u32 %v18360_v32, 16  ;;  %v1481_v0 = vsel %vm1480_vm15, 1, %v20902_v43  ;;  %v1502_v44 = vmul.u32 58254, %v1498_v60  ;;  %vm1667_vm13 = vcmp.ne.s32.totalorder %v18420_v21, 0 }
 0x3c8   : > { %vm1703_vm6 = vcmp.lt.s32.totalorder %v18420_v21, 0  ;;  %v1483_v45 = vadd.s32 %v1481_v0, %v1475_v12  ;;  %vm1484_vm3 = vc.u32 %v1482_v9, %v1478_v1  ;;  %v1477_v18 = vshrl.u32 %v1473_v61, 16 }
 0x3c9   : > { %v1485_v16 = vsel %vm1484_vm3, 1, %v20902_v43  ;;  %v1501_v25 = vmul.u32 14564, %v1498_v60  ;;  %v1503_v15 = vmul.u32 14564, %v1499_v23  ;;  %v1775_v32 = vadd.s32 18, %v18420_v21  ;;  %vm18438_vm9 = vmand %vm1703_vm6, %vm1667_vm13 }
 0x3ca   : > { %v1459_v58 = vadd.s32 %v1458_v62, %v1448_v36  ;;  %v1487_v35 = vadd.s32 %v1485_v16, %v1483_v45  ;;  %v1505_v46 = vshll.u32 %v1502_v44, 16  ;;  %vm1846_vm7 = vcmp.lt.s32.totalorder %v1810_v49, 16 }
 0x3cb   : > { %v18443_v61 = vadd.f32 %v5160_v13, %v18368_v27  ;;  %v1432_v55 = vshrl.u32 %v1431_v19, 4  ;;  %v1507_v60 = vshll.u32 %v1503_v15, 16  ;;  %v6414_v1 = vadd.f32 %v6413_v30, %v6379_v33 }
 0x3cc   : > { %v18449_v36 = vadd.f32 %v18345_v51, %v18115_v4  ;;  %v1479_v49 = vshrl.u32 %v18412_v52, 16  ;;  %v1504_v62 = vmul.u32 58254, %v1499_v23  ;;  %v1488_v9 = vadd.s32 %v1487_v35, %v1477_v18 }
 0x3cd   : > { %vm1509_vm12 = vc.u32 %v1501_v25, %v1505_v46  ;;  %v1511_v0 = vadd.s32 %v1505_v46, %v1501_v25  ;;  %v18453_v45 = vadd.s32 256, %v16656_v38  ;;  %v6491_v27 = vadd.f32 %v6490_v11, %v6456_v29 }
 0x3ce   : > { %v18456_v19 = vsel %vm1846_vm7, 1.0, %v20961_v37  ;;  %v1811_v30 = vsel %vm18438_vm9, %v1775_v32, %v18420_v21  ;;  %v1460_v33 = vadd.s32 %v1459_v58, %v1450_v8  ;;  %v1433_v4 = vmul.u32 18, %v1432_v55 }
 0x3cf   : > { %21109 = vst [vmem:[#allocation79_spill] sm:$0xff] %v18456_v19  ;;  %v1510_v51 = vsel %vm1509_vm12, 1, %v20902_v43  ;;  %vm1513_vm8 = vc.u32 %v1511_v0, %v1507_v60  ;;  %v1527_v52 = vand.u32 65535, %v18453_v45  ;;  %v1506_v23 = vshrl.u32 %v1502_v44, 16  ;;  %v18483_v0 = vpop.f32.mrf.mxu0 }
 0x3d0   : > { %v1512_v13 = vadd.s32 %v1510_v51, %v1504_v62  ;;  %v1514_v17 = vsel %vm1513_vm8, 1, %v20902_v43  ;;  %v1528_v11 = vshrl.u32 %v18453_v45, 16  ;;  %v6380_v29 = vmul.f32 %v18456_v19, %v18343_v57 }
 0x3d1   : > { %v1489_v18 = vadd.s32 %v1488_v9, %v1479_v49  ;;  %v1530_v16 = vmul.u32 14564, %v1527_v52  ;;  %v1531_v25 = vmul.u32 58254, %v1527_v52  ;;  %v1461_v21 = vshrl.u32 %v1460_v33, 4 }
 0x3d2   : > { %v18469_v8 = vadd.f32 %v18402_v2, %v18177_v50  ;;  %v1516_v32 = vadd.s32 %v1514_v17, %v1512_v13  ;;  %v1532_v58 = vmul.u32 14564, %v1528_v11  ;;  %vm18471_vm15 = vcmp.lt.s32.totalorder %v1811_v30, 16  ;;  %v6518_v13 = vld [vmem:[#allocation10 + $0x8] sm:$0xff] }
 0x3d3   : > { %v18476_v35 = vsub.s32 %v18285_v24, %v1433_v4  ;;  %v1508_v46 = vshrl.u32 %v1503_v15, 16  ;;  %v1534_v12 = vshll.u32 %v1531_v25, 16  ;;  %v1533_v60 = vmul.u32 58254, %v1528_v11  ;;  %6567 = vmatpush.msrb.mxu2 %v6518_v13  ;;  %6547 = vmatpush.msrb.mxu1 %v6518_v13 }
 0x3d4   : > { %v1517_v55 = vadd.s32 %v1516_v32, %v1506_v23  ;;  %v1536_v49 = vshll.u32 %v1532_v58, 16  ;;  %v18479_v62 = vadd.s32 264, %v16656_v38  ;;  %v18481_v9 = vadd.f32 %v6414_v1, %v6380_v29 }
 0x3d5   : > { %v6457_v50 = vmul.f32 %v6380_v29, %v6380_v29  ;;  %v1490_v2 = vshrl.u32 %v1489_v18, 4  ;;  %vm1538_vm13 = vc.u32 %v1530_v16, %v1534_v12  ;;  %v1462_v30 = vmul.u32 18, %v1461_v21 }
 0x3d6   : > { %v1539_v33 = vsel %vm1538_vm13, 1, %v20902_v43  ;;  %v1540_v24 = vadd.s32 %v1534_v12, %v1530_v16  ;;  %v1556_v15 = vand.u32 65535, %v18479_v62  ;;  %v18490_v4 = vsel %vm18471_vm15, 1.0, %v20961_v37 }
 0x3d7   : > { %21112 = vst [vmem:[#allocation80_spill] sm:$0xff] %v18490_v4  ;;  %vm1668_vm6 = vcmp.ne.s32.totalorder %v18476_v35, 0  ;;  %vm1704_vm3 = vcmp.lt.s32.totalorder %v18476_v35, 0  ;;  %v1518_v1 = vadd.s32 %v1517_v55, %v1508_v46  ;;  %v1535_v51 = vshrl.u32 %v1531_v25, 16 }
 0x3d8   : > { %v1541_v52 = vadd.s32 %v1539_v33, %v1533_v60  ;;  %vm1542_vm7 = vc.u32 %v1540_v24, %v1536_v49  ;;  %v1557_v23 = vshrl.u32 %v18479_v62, 16  ;;  %v1491_v17 = vmul.u32 18, %v1490_v2  ;;  %vm18504_vm9 = vmand %vm1704_vm3, %vm1668_vm6 }
 0x3d9   : > { %v1543_v11 = vsel %vm1542_vm7, 1, %v20902_v43  ;;  %v1559_v29 = vmul.u32 14564, %v1556_v15  ;;  %v1560_v18 = vmul.u32 58254, %v1556_v15  ;;  %v1776_v16 = vadd.s32 18, %v18476_v35  ;;  %v18522_v15 = vpop.f32.mrf.mxu0 }
 0x3da   : > { %v1463_v21 = vsub.s32 %v18310_v6, %v1462_v30  ;;  %v1545_v32 = vadd.s32 %v1543_v11, %v1541_v52  ;;  %v1561_v44 = vmul.u32 14564, %v1557_v23  ;;  %v18498_v46 = vadd.f32 %v6491_v27, %v6457_v50 }
 0x3db   : > { %v1519_v12 = vshrl.u32 %v1518_v1, 4  ;;  %v1537_v55 = vshrl.u32 %v1532_v58, 16  ;;  %v1563_v60 = vshll.u32 %v1560_v18, 16  ;;  %v18510_v49 = vadd.f32 %v18445_v22, %v18210_v3 }
 0x3dc   : > { %v1546_v6 = vadd.s32 %v1545_v32, %v1535_v51  ;;  %v1562_v2 = vmul.u32 58254, %v1557_v23  ;;  %v1565_v30 = vshll.u32 %v1561_v44, 16  ;;  %v18514_v27 = vmul.f32 %v18490_v4, %v18378_v53  ;;  %v14702_v32 = vld [vmem:[#allocation12 + $0x28] sm:$0xff] }
 0x3dd   : > { %v18517_v50 = vsub.s32 %v18381_v48, %v1491_v17  ;;  %vm1567_vm12 = vc.u32 %v1559_v29, %v1563_v60  ;;  %v1569_v33 = vadd.s32 %v1563_v60, %v1559_v29  ;;  %v1812_v58 = vsel %vm18504_vm9, %v1776_v16, %v18476_v35  ;;  %7572 = vmatpush.bf16.msra.mxu3 %v14702_v32 }
 0x3de   : > { %vm1669_vm8 = vcmp.ne.s32.totalorder %v1463_v21, 0  ;;  %vm1705_vm15 = vcmp.lt.s32.totalorder %v1463_v21, 0  ;;  %v1777_v3 = vadd.s32 18, %v1463_v21  ;;  %v1520_v22 = vmul.u32 18, %v1519_v12 }
 0x3df   : > { %v1547_v24 = vadd.s32 %v1546_v6, %v1537_v55  ;;  %v1568_v1 = vsel %vm1567_vm12, 1, %v20902_v43  ;;  %vm1571_vm13 = vc.u32 %v1569_v33, %v1565_v30  ;;  %v1564_v51 = vshrl.u32 %v1560_v18, 16  ;;  %vm18529_vm6 = vmand %vm1705_vm15, %vm1669_vm8 }
 0x3e0   : > { %v1570_v52 = vadd.s32 %v1568_v1, %v1562_v2  ;;  %v1572_v48 = vsel %vm1571_vm13, 1, %v20902_v43  ;;  %v18527_v23 = vadd.s32 272, %v16656_v38  ;;  %vm1670_vm3 = vcmp.ne.s32.totalorder %v18517_v50, 0 }
 0x3e1   : > { %vm1706_vm7 = vcmp.lt.s32.totalorder %v18517_v50, 0  ;;  %v1548_v35 = vshrl.u32 %v1547_v24, 4  ;;  %v18536_v17 = vadd.s32 280, %v16656_v38  ;;  %v1566_v11 = vshrl.u32 %v1561_v44, 16 }
 0x3e2   : > { %v1574_v29 = vadd.s32 %v1572_v48, %v1570_v52  ;;  %v1585_v18 = vand.u32 65535, %v18527_v23  ;;  %v1586_v16 = vshrl.u32 %v18527_v23, 16  ;;  %vm1848_vm9 = vcmp.lt.s32.totalorder %v1812_v58, 16  ;;  %vm18552_vm12 = vmand %vm1706_vm7, %vm1670_vm3 }
 0x3e3   : > { %v1778_v25 = vadd.s32 18, %v18517_v50  ;;  %v18542_v12 = vsub.s32 %v18391_v31, %v1520_v22  ;;  %v1549_v55 = vmul.u32 18, %v1548_v35  ;;  %v18546_v60 = vmul.f32 %v18514_v27, %v18514_v27  ;;  %v18575_v35 = vpop.f32.mrf.mxu0 }
 0x3e4   : > { %v1813_v38 = vsel %vm18529_vm6, %v1777_v3, %v1463_v21  ;;  %v1575_v6 = vadd.s32 %v1574_v29, %v1564_v51  ;;  %v1589_v2 = vmul.u32 58254, %v1585_v18  ;;  %v1588_v30 = vmul.u32 14564, %v1585_v18 }
 0x3e5   : > { %v18557_v31 = vsub.s32 %v18453_v45, %v1549_v55  ;;  %v1590_v33 = vmul.u32 14564, %v1586_v16  ;;  %v1614_v58 = vand.u32 65535, %v18536_v17  ;;  %v18561_v22 = vsel %vm1848_vm9, 1.0, %v20961_v37 }
 0x3e6   : > { %21119 = vst [vmem:[#allocation81_spill] sm:$0xff] %v18561_v22  ;;  %v1576_v21 = vadd.s32 %v1575_v6, %v1566_v11  ;;  %v1592_v3 = vshll.u32 %v1589_v2, 16  ;;  %v1615_v24 = vshrl.u32 %v18536_v17, 16  ;;  %vm18564_vm8 = vcmp.lt.s32.totalorder %v1813_v38, 16 }
 0x3e7   : > { %v1814_v45 = vsel %vm18552_vm12, %v1778_v25, %v18517_v50  ;;  %vm1671_vm15 = vcmp.ne.s32.totalorder %v18542_v12, 0  ;;  %v1591_v51 = vmul.u32 58254, %v1586_v16  ;;  %vm1707_vm13 = vcmp.lt.s32.totalorder %v18542_v12, 0 }
 0x3e8   : > { %v1779_v52 = vadd.s32 18, %v18542_v12  ;;  %v1577_v48 = vshrl.u32 %v1576_v21, 4  ;;  %v1594_v13 = vshll.u32 %v1590_v33, 16  ;;  %vm1672_vm6 = vcmp.ne.s32.totalorder %v18557_v31, 0  ;;  %vm18581_vm9 = vmand %vm1707_vm13, %vm1671_vm15 }
 0x3e9   : > { %vm1596_vm3 = vc.u32 %v1588_v30, %v1592_v3  ;;  %v1598_v11 = vadd.s32 %v1592_v3, %v1588_v30  ;;  %v1618_v29 = vmul.u32 58254, %v1614_v58  ;;  %vm1708_vm7 = vcmp.lt.s32.totalorder %v18557_v31, 0 }
 0x3ea   : > { %v1578_v18 = vmul.u32 18, %v1577_v48  ;;  %v1597_v50 = vsel %vm1596_vm3, 1, %v20902_v43  ;;  %v1619_v32 = vmul.u32 14564, %v1615_v24  ;;  %v1593_v25 = vshrl.u32 %v1589_v2, 16  ;;  %vm18590_vm3 = vmand %vm1708_vm7, %vm1672_vm6 }
 0x3eb   : > { %v1599_v55 = vadd.s32 %v1597_v50, %v1591_v51  ;;  %vm1600_vm12 = vc.u32 %v1598_v11, %v1594_v13  ;;  %v1617_v38 = vmul.u32 14564, %v1614_v58  ;;  %v1780_v44 = vadd.s32 18, %v18557_v31 }
 0x3ec   : > { %v1579_v6 = vsub.s32 %v18479_v62, %v1578_v18  ;;  %v1601_v30 = vsel %vm1600_vm12, 1, %v20902_v43  ;;  %v1621_v21 = vshll.u32 %v1618_v29, 16  ;;  %v1595_v48 = vshrl.u32 %v1590_v33, 16 }
 0x3ed   : > { %v1603_v4 = vadd.s32 %v1601_v30, %v1599_v55  ;;  %v1620_v19 = vmul.u32 58254, %v1615_v24  ;;  %v1623_v2 = vshll.u32 %v1619_v32, 16  ;;  %v18597_v58 = vsel %vm18564_vm8, 1.0, %v20961_v37 }
 0x3ee   : > { %21126 = vst [vmem:[#allocation65_spill] sm:$0xff] %v18597_v58  ;;  %v1815_v62 = vsel %vm18581_vm9, %v1779_v52, %v18542_v12  ;;  %vm1673_vm15 = vcmp.ne.s32.totalorder %v1579_v6, 0  ;;  %vm1709_vm13 = vcmp.lt.s32.totalorder %v1579_v6, 0  ;;  %v1781_v13 = vadd.s32 18, %v1579_v6 }
 0x3ef   : > { %vm18602_vm12 = vmand %vm1709_vm13, %vm1673_vm15  ;;  %v1604_v33 = vadd.s32 %v1603_v4, %v1593_v25  ;;  %vm1625_vm6 = vc.u32 %v1617_v38, %v1621_v21  ;;  %v1627_v24 = vadd.s32 %v1621_v21, %v1617_v38  ;;  %v6382_v11 = vmul.f32 %v18561_v22, %v18449_v36  ;;  %v6517_v21 = vld [vmem:[#allocation10] sm:$0xff] }
 0x3f0   : > { %vm1850_vm7 = vcmp.lt.s32.totalorder %v1814_v45, 16  ;;  %v1816_v1 = vsel %vm18590_vm3, %v1780_v44, %v18557_v31  ;;  %v1626_v12 = vsel %vm1625_vm6, 1, %v20902_v43  ;;  %v1622_v18 = vshrl.u32 %v1618_v29, 16  ;;  %v6205_v31 = vpop.f32.mrf.mxu0  ;;  %6568 = vmatpush.msrb.mxu2 %v6517_v21  ;;  %6548 = vmatpush.msrb.mxu1 %v6517_v21 }
 0x3f1   : > { %v1605_v52 = vadd.s32 %v1604_v33, %v1595_v48  ;;  %v1628_v50 = vadd.s32 %v1626_v12, %v1620_v19  ;;  %vm1629_vm8 = vc.u32 %v1627_v24, %v1623_v2  ;;  %v6383_v16 = vmul.f32 %v18597_v58, %v18469_v8  ;;  %v5750_v33 = vpop.f32.mrf.mxu3  ;;  %v14701_v12 = vld [vmem:[#allocation12 + $0x20] sm:$0xff] }
 0x3f2   : > { %vm1851_vm9 = vcmp.lt.s32.totalorder %v1815_v62, 16  ;;  %v1817_v4 = vsel %vm18602_vm12, %v1781_v13, %v1579_v6  ;;  %v1630_v25 = vsel %vm1629_vm8, 1, %v20902_v43  ;;  %v18618_v45 = vsel %vm1850_vm7, 1.0, %v20961_v37  ;;  %7573 = vmatpush.bf16.msra.mxu3 %v14701_v12 }
 0x3f3   : > { %21129 = vst [vmem:[#allocation22_spill] sm:$0xff] %v18618_v45  ;;  %v1606_v55 = vshrl.u32 %v1605_v52, 4  ;;  %v1624_v38 = vshrl.u32 %v1619_v32, 16  ;;  %v1632_v44 = vadd.s32 %v1630_v25, %v1628_v50  ;;  %v6416_v19 = vadd.f32 %v18481_v9, %v18514_v27 }
 0x3f4   : > { %v6459_v29 = vmul.f32 %v6382_v11, %v6382_v11  ;;  %v18624_v30 = vadd.f32 %v18483_v0, %v18271_v20  ;;  %vm1852_vm3 = vcmp.lt.s32.totalorder %v1816_v1, 16  ;;  %v18627_v6 = vsel %vm1851_vm9, 1.0, %v20961_v37 }
 0x3f5   : > { %21130 = vst [vmem:[#allocation24_spill] sm:$0xff] %v18627_v6  ;;  %vm1853_vm15 = vcmp.lt.s32.totalorder %v1817_v4, 16  ;;  %v1607_v43 = vmul.u32 18, %v1606_v55  ;;  %v1633_v3 = vadd.s32 %v1632_v44, %v1622_v18  ;;  %v6493_v32 = vadd.f32 %v18498_v46, %v18546_v60 }
 0x3f6   : > { %v6417_v48 = vadd.f32 %v6416_v19, %v6382_v11  ;;  %v6384_v9 = vmul.f32 %v18618_v45, %v18510_v49  ;;  %v18635_v20 = vadd.f32 %v18522_v15, %v18301_v47  ;;  %v6460_v0 = vmul.f32 %v6383_v16, %v6383_v16 }
 0x3f7   : > { %v18638_v27 = vsel %vm1852_vm3, 1.0, %v20961_v37  ;;  %v1608_v2 = vsub.s32 %v18527_v23, %v1607_v43  ;;  %v1634_v62 = vadd.s32 %v1633_v3, %v1624_v38  ;;  %v6494_v51 = vadd.f32 %v6493_v32, %v6459_v29 }
 0x3f8   : > { %21131 = vst [vmem:[#allocation23_spill] sm:$0xff] %v18638_v27  ;;  %v6385_v13 = vmul.f32 %v18627_v6, %v18624_v30  ;;  %v18644_v46 = vsel %vm1853_vm15, 1.0, %v20961_v37  ;;  %v18648_v60 = vadd.f32 %v18575_v35, %v18339_v56  ;;  %v6418_v24 = vadd.f32 %v6417_v48, %v6383_v16  ;;  %v14700_v16 = vld [vmem:[#allocation12 + $0x18] sm:$0xff]  ;;  %v14699_v48 = vld [vmem:[#allocation12 + $0x10] sm:$0xff] }
 0x3f9   : > { %21132 = vst [vmem:[#allocation53_spill] sm:$0xff] %v18644_v46  ;;  %vm1674_vm13 = vcmp.ne.s32.totalorder %v1608_v2, 0  ;;  %vm1710_vm12 = vcmp.lt.s32.totalorder %v1608_v2, 0  ;;  %v1782_v47 = vadd.s32 18, %v1608_v2  ;;  %v1635_v15 = vshrl.u32 %v1634_v62, 4  ;;  %7574 = vmatpush.bf16.msra.mxu3 %v14700_v16 }
 0x3fa   : > { %v6461_v11 = vmul.f32 %v6384_v9, %v6384_v9  ;;  %v6386_v23 = vmul.f32 %v18638_v27, %v18635_v20  ;;  %vm1746_vm6 = vmand %vm1710_vm12, %vm1674_vm13  ;;  %v18653_v1 = vadd.f32 %v6205_v31, %v18370_v40  ;;  %v6495_v52 = vadd.f32 %v6494_v51, %v6460_v0  ;;  %v6207_v31 = vpop.f32.mrf.mxu0 }
 0x3fb   : > { %v1818_v18 = vsel %vm1746_vm6, %v1782_v47, %v1608_v2  ;;  %v1636_v50 = vmul.u32 18, %v1635_v15  ;;  %v6419_v56 = vadd.f32 %v6418_v24, %v6384_v9  ;;  %v6462_v35 = vmul.f32 %v6385_v13, %v6385_v13  ;;  %v14698_v15 = vld [vmem:[#allocation12 + $0x8] sm:$0xff] }
 0x3fc   : > { %v6387_v4 = vmul.f32 %v18644_v46, %v18648_v60  ;;  %vm1854_vm7 = vcmp.lt.s32.totalorder %v1818_v18, 16  ;;  %v5824_v25 = vadd.f32 %v5750_v33, %v18443_v61  ;;  %v6496_v38 = vadd.f32 %v6495_v52, %v6461_v11 }
 0x3fd   : > { %v18659_v55 = vsel %vm1854_vm7, 1.0, %v20961_v37  ;;  %v1637_v40 = vsub.s32 %v18536_v17, %v1636_v50  ;;  %v6420_v44 = vadd.f32 %v6419_v56, %v6385_v13  ;;  %v6463_v19 = vmul.f32 %v6386_v23, %v6386_v23  ;;  %7575 = vmatpush.bf16.msra.mxu3 %v14699_v48 }
 0x3fe   : > { %21133 = vst [vmem:[#allocation68_spill] sm:$0xff] %v18659_v55  ;;  %v6388_v29 = vmul.f32 %v18659_v55, %v18653_v1  ;;  %v6497_v43 = vadd.f32 %v6496_v38, %v6462_v35  ;;  %v6464_v32 = vmul.f32 %v6387_v4, %v6387_v4  ;;  %v18664_v61 = vadd.f32 %v6207_v31, %v5824_v25  ;;  %v6508_v35 = vld [vmem:[#allocation9] sm:$0x1] }
 0x3ff   : > { %vm1675_vm8 = vcmp.ne.s32.totalorder %v1637_v40, 0  ;;  %vm1711_vm9 = vcmp.lt.s32.totalorder %v1637_v40, 0  ;;  %v1783_v21 = vadd.s32 18, %v1637_v40  ;;  %v6421_v3 = vadd.f32 %v6420_v44, %v6386_v23 }
 0x400   : > { %vm1747_vm3 = vmand %vm1711_vm9, %vm1675_vm8  ;;  %v6498_v17 = vadd.f32 %v6497_v43, %v6463_v19  ;;  %v6465_v2 = vmul.f32 %v6388_v29, %v6388_v29  ;;  %v6511_v16 = vmul.f32 2.0, %v6508_v35  ;;  %v6509_v31 = vmul.f32 256.0, %v6508_v35 }
 0x401   : > { %v1819_v9 = vsel %vm1747_vm3, %v1783_v21, %v1637_v40  ;;  %v6422_v0 = vadd.f32 %v6421_v3, %v6387_v4  ;;  %7576 = vmatpush.bf16.msra.mxu3 %v14698_v15  ;;  %v6514_v38 = vmul.f32 %v6508_v35, %v6508_v35  ;;  %vm6923_vm7 = vsmask.f32 5392 }
 0x402   : > { %vm1855_vm15 = vcmp.lt.s32.totalorder %v1819_v9, 16  ;;  %v6499_v51 = vadd.f32 %v6498_v17, %v6464_v32  ;;  %vm19129_vm8 = vmor %vm1931_vm10, %vm6923_vm7 }
 0x403   : > { %v18667_v62 = vsel %vm1855_vm15, 1.0, %v20961_v37  ;;  %v6423_v13 = vadd.f32 %v6422_v0, %v6388_v29  ;;  %v6515_v3 = vmul.f32 256.0, %v6514_v38 }
 0x404   : > { %21134 = vst [vmem:[#allocation25_spill] sm:$0xff] %v18667_v62  ;;  %v6389_v47 = vmul.f32 %v18667_v62, %v18664_v61  ;;  %v6500_v33 = vadd.f32 %v6499_v51, %v6465_v2 }
 0x406   : > { %v6424_v24 = vadd.f32 %v6423_v13, %v6389_v47  ;;  %v6466_v11 = vmul.f32 %v6389_v47, %v6389_v47 }
 0x408   : > { %v6425_v23 = vrot.slane %v6424_v24, 4  ;;  %v6501_v12 = vadd.f32 %v6500_v33, %v6466_v11 }
 0x40a   : > { %v6426_v52 = vadd.f32 %v6425_v23, %v6424_v24  ;;  %v6502_v18 = vrot.slane %v6501_v12, 4 }
 0x40c   : > { %v6427_v50 = vrot.slane %v6426_v52, 2  ;;  %v6503_v56 = vadd.f32 %v6502_v18, %v6501_v12  ;;  %v6589_v18 = vld [vmem:[%s548_s28] sm:$0x1]  ;;  %s12347_s28 = scalar_lea.hbm %s21407_s1, %s15040_s25 }
 0x40d   : > { %s12350_s23 = sshll.u32 %s12347_s28, 4  ;;  %s12351_s23 = int_to_ptr.hbm [resolvable:$true] %s12350_s23 }
 0x40e   : > { %v6428_v37 = vadd.f32 %v6427_v50, %v6426_v52  ;;  %v6504_v4 = vrot.slane %v6503_v56, 2  ;;  %s15528_s14 = sshra.s32 %s12351_s23, 4  ;;  %s15529_s14 = int_to_ptr.hbm [resolvable:$true] %s15528_s14 }
 0x40f   : > { %s15530_s29 = scalar_lea.hbm %s15529_s14, 144  ;;  %p15535_p7 = scmp.lt.s32.totalorder %s15529_s14, %s21407_s1 }
 0x410   : > { %v6429_v25 = vrot.slane %v6428_v37, 1  ;;  %v6505_v40 = vadd.f32 %v6504_v4, %v6503_v56  ;;  %p15531_p3 = scmp.ne.s32.totalorder %s15529_s14, %s15530_s29  ;;  %p15536_p8 = scmp.lt.s32.totalorder %s15534_s12, %s15530_s29 }
 0x412   : > { %v6430_v44 = vadd.f32 %v6429_v25, %v6428_v37  ;;  %v6506_v19 = vrot.slane %v6505_v40, 1  ;;  %p15532_p5 = pnand %p15531_p3, %p15767_p4  ;;  %p15537_p9 = por %p15536_p8, %p15535_p7 }
 0x414   : > { %v6507_v29 = vadd.f32 %v6506_v19, %v6505_v40  ;;  %v6512_v21 = vmul.f32 %v6511_v16, %v6430_v44  ;;  %v6510_v43 = vadd.f32 %v6509_v31, %v6430_v44  ;;  %v6593_v16 = vld [vmem:[%s551_s30] sm:$0x1]  ;;  %s12336_s30 = scalar_lea.sflag [#allocation6], %s15799_s6  ;;  %p15533_p12 = pneg %p15532_p5 }
 0x415   : > { %v21135_v31 = vld [vmem:[#allocation32_spill] sm:$0xff] }
 0x416   : > { %6549 = vmatmul.f32.vlgmr.msrb.gmra.mxu1 %v6510_v43  ;;  %v6513_v32 = vadd.f32 %v6512_v21, %v6507_v29  ;;  %v21136_v44 = vld [vmem:[#allocation56_spill] sm:$0xff]  ;;  %v21137_v29 = vld [vmem:[#allocation75_spill] sm:$0xff]  ;;  %p15538_p10 = pnand %p15537_p9, %p15533_p12 }
 0x418   : > { %v6516_v48 = vadd.f32 %v6515_v3, %v6513_v32 }
 0x41a   : > { %6569 = vmatmul.f32.vlgmr.msrb.gmra.mxu2 %v6516_v48 }
 0x493   : > { %v6550_v9 = vpop.f32.mrf.mxu1 }
 0x494   : > { %v6573_v17 = vmul.f32 0.001953125, %v6550_v9  ;;  %v21139_v9 = vld [vmem:[#allocation39_spill] sm:$0xff] }
 0x496   : > { %v6575_v2 = vmul.f32 %v6573_v17, %v6573_v17  ;;  %v6591_v37 = vsub.f32 %v6508_v35, %v6573_v17  ;;  %v21138_v35 = vld [vmem:[#allocation37_spill] sm:$0xff] }
 0x49d   : > { %v6570_v0 = vpop.f32.mrf.mxu2 }
 0x49e   : > { %v6574_v51 = vmul.f32 0.001953125, %v6570_v0  ;;  %v21140_v0 = vld [vmem:[#allocation59_spill] sm:$0xff] }
 0x4a0   : > { %v6576_v13 = vsub.f32 %v6574_v51, %v6575_v2 }
 0x4a2   : > { %v6577_v47 = vmax.f32 %v6576_v13, 0.0 }
 0x4a4   : > { %v6578_v15 = vadd.f32 1e-05, %v6577_v47 }
 0x4a6   : > { %15156 = vrsqrt.f32 %v6578_v15  ;;  %vm6585_vm12 = vweird.f32 %v6578_v15 }
 0x4ac   : > { %v15157_v33 = vpop.eup %15156 }
 0x4ad   : > { %v6580_v24 = vmul.f32 %v15157_v33, %v6578_v15  ;;  %vm6586_vm13 = vweird.f32 %v15157_v33 }
 0x4ae   : > { %vm6587_vm6 = vmor %vm6585_vm12, %vm6586_vm13 }
 0x4af   : > { %v6581_v11 = vmul.f32 %v15157_v33, %v6580_v24  ;;  %v21142_v24 = vld [vmem:[#allocation47_spill] sm:$0xff] }
 0x4b1   : > { %v6582_v23 = vmul.f32 0.5, %v6581_v11  ;;  %v21143_v11 = vld [vmem:[#allocation44_spill] sm:$0xff] }
 0x4b3   : > { %v6583_v12 = vsub.f32 1.5, %v6582_v23 }
 0x4b5   : > { %v6584_v52 = vmul.f32 %v15157_v33, %v6583_v12  ;;  %v21144_v12 = vld [vmem:[#allocation50_spill] sm:$0xff] }
 0x4b7   : > { %v6588_v50 = vsel %vm6587_vm6, %v15157_v33, %v6584_v52  ;;  %v21141_v33 = vld [vmem:[#allocation43_spill] sm:$0xff] }
 0x4b8   : > { %v6590_v56 = vmul.f32 %v6589_v18, %v6588_v50  ;;  %v21145_v18 = vld [vmem:[#allocation46_spill] sm:$0xff] }
 0x4ba   : > { %v6592_v4 = vmul.f32 %v6591_v37, %v6590_v56  ;;  %v6595_v25 = vperm.slane %v6590_v56, 0 }
 0x4bc   : > { %v6594_v40 = vadd.f32 %v6593_v16, %v6592_v4  ;;  %v6596_v38 = vmul.f32 %v6595_v25, %v21135_v31  ;;  %v6597_v19 = vmul.f32 %v6595_v25, %v21136_v44  ;;  %v6598_v21 = vmul.f32 %v6595_v25, %v21137_v29  ;;  %v21146_v16 = vld [vmem:[#allocation64_spill] sm:$0xff] }
 0x4bd   : > { %v6599_v43 = vmul.f32 %v6595_v25, %v17138_v7  ;;  %v6600_v3 = vmul.f32 %v6595_v25, %v17197_v34  ;;  %v6601_v48 = vmul.f32 %v6595_v25, %v21138_v35  ;;  %v6602_v17 = vmul.f32 %v6595_v25, %v21139_v9  ;;  %v21147_v31 = vld [vmem:[#allocation76_spill] sm:$0xff] }
 0x4be   : > { %v18688_v32 = vperm.slane %v6594_v40, 0  ;;  %v6603_v2 = vmul.f32 %v6595_v25, %v21140_v0  ;;  %v6604_v51 = vmul.f32 %v6595_v25, %v17417_v26  ;;  %v6605_v13 = vmul.f32 %v6595_v25, %v17464_v41 }
 0x4bf   : > { %v6606_v47 = vmul.f32 %v6595_v25, %v17519_v54  ;;  %v6607_v15 = vmul.f32 %v6595_v25, %v17561_v59  ;;  %v6608_v7 = vmul.f32 %v6595_v25, %v21141_v33  ;;  %v6609_v34 = vmul.f32 %v6595_v25, %v21142_v24 }
 0x4c0   : > { %v6610_v23 = vmul.f32 %v6595_v25, %v21143_v11  ;;  %v6611_v52 = vmul.f32 %v6595_v25, %v21144_v12  ;;  %v6612_v50 = vmul.f32 %v6595_v25, %v21145_v18  ;;  %v6613_v56 = vmul.f32 %v6595_v25, %v17940_v5 }
 0x4c1   : > { %v6614_v26 = vmul.f32 %v6595_v25, %v17875_v63  ;;  %v6615_v41 = vmul.f32 %v6595_v25, %v18063_v10  ;;  %v6616_v54 = vmul.f32 %v6595_v25, %v17979_v39  ;;  %v6617_v59 = vmul.f32 %v6595_v25, %v18154_v14 }
 0x4c2   : > { %v6618_v37 = vmul.f32 %v6595_v25, %v18073_v28  ;;  %v6619_v4 = vmul.f32 %v6595_v25, %v18226_v42  ;;  %v6620_v40 = vmul.f32 %v6595_v25, %v21146_v16  ;;  %v6621_v44 = vmul.f32 %v6595_v25, %v21147_v31 }
 0x4c3   : > { %v6622_v29 = vmul.f32 %v6595_v25, %v18343_v57  ;;  %v6623_v5 = vmul.f32 %v6595_v25, %v18378_v53  ;;  %v6624_v63 = vmul.f32 %v6595_v25, %v18449_v36  ;;  %v6625_v10 = vmul.f32 %v6595_v25, %v18469_v8 }
 0x4c4   : > { %v6626_v39 = vmul.f32 %v6595_v25, %v18510_v49  ;;  %v6627_v14 = vmul.f32 %v6595_v25, %v18624_v30  ;;  %v6628_v28 = vmul.f32 %v6595_v25, %v18635_v20  ;;  %v6629_v42 = vmul.f32 %v6595_v25, %v18648_v60 }
 0x4c5   : > { %v6630_v35 = vmul.f32 %v6595_v25, %v18653_v1  ;;  %v6631_v9 = vmul.f32 %v6595_v25, %v18664_v61  ;;  %v18722_v57 = vadd.f32 %v18688_v32, %v6596_v38  ;;  %v18725_v53 = vadd.f32 %v18688_v32, %v6597_v19 }
 0x4c6   : > { %v18728_v36 = vadd.f32 %v18688_v32, %v6598_v21  ;;  %v18731_v8 = vadd.f32 %v18688_v32, %v6599_v43  ;;  %v18734_v49 = vadd.f32 %v18688_v32, %v6600_v3  ;;  %v18737_v30 = vadd.f32 %v18688_v32, %v6601_v48 }
 0x4c7   : > { %v18740_v20 = vadd.f32 %v18688_v32, %v6602_v17  ;;  %v18743_v60 = vadd.f32 %v18688_v32, %v6603_v2  ;;  %v18746_v1 = vadd.f32 %v18688_v32, %v6604_v51  ;;  %v18749_v61 = vadd.f32 %v18688_v32, %v6605_v13 }
 0x4c8   : > { %v18752_v25 = vadd.f32 %v18688_v32, %v6606_v47  ;;  %v18755_v38 = vadd.f32 %v18688_v32, %v6607_v15  ;;  %v18758_v19 = vadd.f32 %v18688_v32, %v6608_v7  ;;  %v18761_v21 = vadd.f32 %v18688_v32, %v6609_v34 }
 0x4c9   : > { %v18764_v43 = vadd.f32 %v18688_v32, %v6610_v23  ;;  %v18767_v3 = vadd.f32 %v18688_v32, %v6611_v52  ;;  %v18770_v48 = vadd.f32 %v18688_v32, %v6612_v50  ;;  %v18773_v17 = vadd.f32 %v18688_v32, %v6613_v56 }
 0x4ca   : > { %v18776_v0 = vadd.f32 %v18688_v32, %v6614_v26  ;;  %v18779_v2 = vadd.f32 %v18688_v32, %v6615_v41  ;;  %v18782_v51 = vadd.f32 %v18688_v32, %v6616_v54  ;;  %v18785_v13 = vadd.f32 %v18688_v32, %v6617_v59 }
 0x4cb   : > { %v18788_v47 = vadd.f32 %v18688_v32, %v6618_v37  ;;  %v18791_v15 = vadd.f32 %v18688_v32, %v6619_v4  ;;  %v18794_v33 = vadd.f32 %v18688_v32, %v6620_v40  ;;  %v18797_v7 = vadd.f32 %v18688_v32, %v6621_v44 }
 0x4cc   : > { %21148 = vst [vmem:[#allocation27_spill] sm:$0xff] %v18785_v13  ;;  %v18800_v24 = vadd.f32 %v18688_v32, %v6622_v29  ;;  %v18803_v34 = vadd.f32 %v18688_v32, %v6623_v5  ;;  %v18806_v11 = vadd.f32 %v18688_v32, %v6624_v63  ;;  %v18809_v23 = vadd.f32 %v18688_v32, %v6625_v10 }
 0x4cd   : > { %21149 = vst [vmem:[#allocation26_spill] sm:$0xff] %v18788_v47  ;;  %v18812_v12 = vadd.f32 %v18688_v32, %v6626_v39  ;;  %v6671_v52 = vmul.f32 0.5, %v18722_v57  ;;  %v18816_v18 = vadd.f32 %v18688_v32, %v6627_v14  ;;  %v18819_v50 = vadd.f32 %v18688_v32, %v6628_v28 }
 0x4ce   : > { %21150 = vst [vmem:[#allocation54_spill] sm:$0xff] %v18791_v15  ;;  %v18822_v56 = vadd.f32 %v18688_v32, %v6629_v42  ;;  %v6672_v26 = vmul.f32 0.5, %v18725_v53  ;;  %v18826_v41 = vadd.f32 %v18688_v32, %v6630_v35  ;;  %v18829_v54 = vadd.f32 %v18688_v32, %v6631_v9 }
 0x4cf   : > { %21151 = vst [vmem:[#allocation71_spill] sm:$0xff] %v18794_v33  ;;  %v6673_v59 = vmul.f32 0.5, %v18728_v36  ;;  %v6674_v37 = vmul.f32 0.5, %v18731_v8  ;;  %v6675_v4 = vmul.f32 0.5, %v18734_v49  ;;  %v6676_v16 = vmul.f32 0.5, %v18737_v30 }
 0x4d0   : > { %21152 = vst [vmem:[#allocation28_spill] sm:$0xff] %v18797_v7  ;;  %v6677_v40 = vmul.f32 0.5, %v18740_v20  ;;  %v6678_v31 = vmul.f32 0.5, %v18743_v60  ;;  %v6679_v44 = vmul.f32 0.5, %v18746_v1  ;;  %v6680_v29 = vmul.f32 0.5, %v18749_v61 }
 0x4d1   : > { %21153 = vst [vmem:[#allocation30_spill] sm:$0xff] %v18800_v24  ;;  %v6681_v5 = vmul.f32 0.5, %v18752_v25  ;;  %15158 = vtanh.f32 %v6671_v52  ;;  %v6682_v32 = vmul.f32 0.5, %v18755_v38  ;;  %v6683_v63 = vmul.f32 0.5, %v18758_v19 }
 0x4d2   : > { %21154 = vst [vmem:[#allocation29_spill] sm:$0xff] %v18803_v34  ;;  %v6684_v10 = vmul.f32 0.5, %v18761_v21  ;;  %15160 = vtanh.f32 %v6672_v26  ;;  %v6685_v39 = vmul.f32 0.5, %v18764_v43  ;;  %v6686_v14 = vmul.f32 0.5, %v18767_v3 }
 0x4d3   : > { %21155 = vst [vmem:[#allocation31_spill] sm:$0xff] %v18806_v11  ;;  %v18846_v28 = vmul.f32 0.5, %v18770_v48  ;;  %15162 = vtanh.f32 %v6673_v59  ;;  %v18849_v42 = vmul.f32 0.5, %v18773_v17  ;;  %v18852_v35 = vmul.f32 0.5, %v18776_v0 }
 0x4d4   : > { %21156 = vst [vmem:[#allocation33_spill] sm:$0xff] %v18809_v23  ;;  %v18855_v9 = vmul.f32 0.5, %v18779_v2  ;;  %15164 = vtanh.f32 %v6674_v37  ;;  %v18858_v52 = vmul.f32 0.5, %v18782_v51  ;;  %v18861_v26 = vmul.f32 0.5, %v18785_v13 }
 0x4d5   : > { %21157 = vst [vmem:[#allocation32_spill] sm:$0xff] %v18812_v12  ;;  %v18864_v62 = vmul.f32 0.5, %v18788_v47  ;;  %15166 = vtanh.f32 %v6675_v4  ;;  %v18867_v59 = vmul.f32 0.5, %v18791_v15  ;;  %v18870_v55 = vmul.f32 0.5, %v18794_v33 }
 0x4d6   : > { %21158 = vst [vmem:[#allocation56_spill] sm:$0xff] %v18816_v18  ;;  %v18873_v46 = vmul.f32 0.5, %v18797_v7  ;;  %15168 = vtanh.f32 %v6676_v16  ;;  %v18876_v27 = vmul.f32 0.5, %v18800_v24  ;;  %v18879_v6 = vmul.f32 0.5, %v18803_v34 }
 0x4d7   : > { %21159 = vst [vmem:[#allocation75_spill] sm:$0xff] %v18819_v50  ;;  %v15159_v37 = vpop.eup %15158  ;;  %v18882_v45 = vmul.f32 0.5, %v18806_v11  ;;  %15170 = vtanh.f32 %v6677_v40  ;;  %v18885_v58 = vmul.f32 0.5, %v18809_v23  ;;  %v18888_v22 = vmul.f32 0.5, %v18812_v12 }
 0x4d8   : > { %21160 = vst [vmem:[#allocation37_spill] sm:$0xff] %v18822_v56  ;;  %v15161_v4 = vpop.eup %15160  ;;  %15172 = vtanh.f32 %v6678_v31  ;;  %v6743_v16 = vmul.f32 0.5, %v15159_v37  ;;  %v18891_v24 = vmul.f32 0.5, %v18816_v18  ;;  %v18894_v34 = vmul.f32 0.5, %v18819_v50 }
 0x4d9   : > { %21161 = vst [vmem:[#allocation39_spill] sm:$0xff] %v18826_v41  ;;  %v15163_v7 = vpop.eup %15162  ;;  %15174 = vtanh.f32 %v6679_v44  ;;  %v6744_v11 = vmul.f32 0.5, %v15161_v4  ;;  %v18897_v40 = vmul.f32 0.5, %v18822_v56  ;;  %v18900_v23 = vmul.f32 0.5, %v18826_v41 }
 0x4da   : > { %v15165_v33 = vpop.eup %15164  ;;  %15176 = vtanh.f32 %v6680_v29  ;;  %v6745_v12 = vmul.f32 0.5, %v15163_v7  ;;  %v6779_v15 = vadd.f32 0.5, %v6743_v16  ;;  %v18903_v50 = vmul.f32 0.5, %v18829_v54 }
 0x4db   : > { %21162 = vst [vmem:[#allocation59_spill] sm:$0xff] %v18897_v40  ;;  %v15167_v31 = vpop.eup %15166  ;;  %15178 = vtanh.f32 %v6681_v5  ;;  %v6746_v37 = vmul.f32 0.5, %v15165_v33  ;;  %v6780_v18 = vadd.f32 0.5, %v6744_v11 }
 0x4dc   : > { %v15169_v47 = vpop.eup %15168  ;;  %15180 = vtanh.f32 %v6682_v32  ;;  %v6747_v44 = vmul.f32 0.5, %v15167_v31  ;;  %v6781_v4 = vadd.f32 0.5, %v6745_v12  ;;  %v18906_v41 = vmul.f32 %v6779_v15, %v18722_v57 }
 0x4dd   : > { %v15171_v13 = vpop.eup %15170  ;;  %15182 = vtanh.f32 %v6683_v63  ;;  %v6748_v56 = vmul.f32 0.5, %v15169_v47  ;;  %v6782_v40 = vadd.f32 0.5, %v6746_v37  ;;  %v18909_v11 = vmul.f32 %v6780_v18, %v18725_v53 }
 0x4de   : > { %v15173_v7 = vpop.eup %15172  ;;  %15184 = vtanh.f32 %v6684_v10  ;;  %v6749_v29 = vmul.f32 0.5, %v15171_v13  ;;  %v6783_v33 = vadd.f32 0.5, %v6747_v44  ;;  %v18912_v12 = vmul.f32 %v6781_v4, %v18728_v36 }
 0x4df   : > { %v15175_v5 = vpop.eup %15174  ;;  %15186 = vtanh.f32 %v6685_v39  ;;  %v6750_v16 = vmul.f32 0.5, %v15173_v7  ;;  %v6784_v32 = vadd.f32 0.5, %v6748_v56  ;;  %v18915_v57 = vmul.f32 %v6782_v40, %v18731_v8 }
 0x4e0   : > { %v15177_v63 = vpop.eup %15176  ;;  %15188 = vtanh.f32 %v6686_v14  ;;  %v6751_v47 = vmul.f32 0.5, %v15175_v5  ;;  %v6785_v31 = vadd.f32 0.5, %v6749_v29  ;;  %v18919_v18 = vmul.f32 %v6783_v33, %v18734_v49 }
 0x4e1   : > { %v15179_v15 = vpop.eup %15178  ;;  %15190 = vtanh.f32 %v18846_v28  ;;  %v6752_v13 = vmul.f32 0.5, %v15177_v63  ;;  %v6786_v53 = vadd.f32 0.5, %v6750_v16  ;;  %v18923_v39 = vmul.f32 %v6784_v32, %v18737_v30 }
 0x4e2   : > { %v15181_v10 = vpop.eup %15180  ;;  %15192 = vtanh.f32 %v18849_v42  ;;  %v6753_v36 = vmul.f32 0.5, %v15179_v15  ;;  %v6787_v56 = vadd.f32 0.5, %v6751_v47  ;;  %v18927_v28 = vmul.f32 %v6785_v31, %v18740_v20 }
 0x4e3   : > { %v15183_v14 = vpop.eup %15182  ;;  %15194 = vtanh.f32 %v18852_v35  ;;  %v6754_v8 = vmul.f32 0.5, %v15181_v10  ;;  %v6788_v40 = vadd.f32 0.5, %v6752_v13  ;;  %v18931_v42 = vmul.f32 %v6786_v53, %v18743_v60 }
 0x4e4   : > { %v15185_v37 = vpop.eup %15184  ;;  %15196 = vtanh.f32 %v18855_v9  ;;  %v6755_v49 = vmul.f32 0.5, %v15183_v14  ;;  %v6789_v44 = vadd.f32 0.5, %v6753_v36  ;;  %v18935_v35 = vmul.f32 %v6787_v56, %v18746_v1 }
 0x4e5   : > { %v15187_v4 = vpop.eup %15186  ;;  %15198 = vtanh.f32 %v18858_v52  ;;  %v6756_v30 = vmul.f32 0.5, %v15185_v37  ;;  %v6790_v7 = vadd.f32 0.5, %v6754_v8  ;;  %v18939_v9 = vmul.f32 %v6788_v40, %v18749_v61 }
 0x4e6   : > { %v15189_v29 = vpop.eup %15188  ;;  %15200 = vtanh.f32 %v18861_v26  ;;  %v6757_v20 = vmul.f32 0.5, %v15187_v4  ;;  %v6791_v33 = vadd.f32 0.5, %v6755_v49  ;;  %v18943_v52 = vmul.f32 %v6789_v44, %v18752_v25 }
 0x4e7   : > { %v15191_v5 = vpop.eup %15190  ;;  %15202 = vtanh.f32 %v18864_v62  ;;  %v6758_v60 = vmul.f32 0.5, %v15189_v29  ;;  %v6792_v16 = vadd.f32 0.5, %v6756_v30  ;;  %v18947_v26 = vmul.f32 %v6790_v7, %v18755_v38 }
 0x4e8   : > { %v15193_v32 = vpop.eup %15192  ;;  %15204 = vtanh.f32 %v18867_v59  ;;  %v6759_v1 = vmul.f32 0.5, %v15191_v5  ;;  %v6793_v63 = vadd.f32 0.5, %v6757_v20  ;;  %v18951_v62 = vmul.f32 %v6791_v33, %v18758_v19  ;;  %v21163_v33 = vld [vmem:[#allocation59_spill] sm:$0xff] }
 0x4e9   : > { %v15195_v47 = vpop.eup %15194  ;;  %15206 = vtanh.f32 %v18870_v55  ;;  %v6760_v61 = vmul.f32 0.5, %v15193_v32  ;;  %v6794_v31 = vadd.f32 0.5, %v6758_v60  ;;  %v18955_v59 = vmul.f32 %v6792_v16, %v18761_v21  ;;  %v21164_v60 = vld [vmem:[#allocation27_spill] sm:$0xff] }
 0x4ea   : > { %v15197_v15 = vpop.eup %15196  ;;  %15208 = vtanh.f32 %v18873_v46  ;;  %v6761_v25 = vmul.f32 0.5, %v15195_v47  ;;  %v6795_v13 = vadd.f32 0.5, %v6759_v1  ;;  %v18959_v55 = vmul.f32 %v6793_v63, %v18764_v43  ;;  %v21165_v1 = vld [vmem:[#allocation26_spill] sm:$0xff] }
 0x4eb   : > { %v15199_v53 = vpop.eup %15198  ;;  %15210 = vtanh.f32 %v18876_v27  ;;  %v6762_v38 = vmul.f32 0.5, %v15197_v15  ;;  %v6796_v10 = vadd.f32 0.5, %v6760_v61  ;;  %v18963_v46 = vmul.f32 %v6794_v31, %v18767_v3  ;;  %v21166_v61 = vld [vmem:[#allocation54_spill] sm:$0xff] }
 0x4ec   : > { %v15201_v36 = vpop.eup %15200  ;;  %15212 = vtanh.f32 %v18879_v6  ;;  %v6763_v19 = vmul.f32 0.5, %v15199_v53  ;;  %v6797_v56 = vadd.f32 0.5, %v6761_v25  ;;  %v18967_v27 = vmul.f32 %v6795_v13, %v18770_v48  ;;  %v21167_v53 = vld [vmem:[#allocation71_spill] sm:$0xff] }
 0x4ed   : > { %v15203_v14 = vpop.eup %15202  ;;  %15214 = vtanh.f32 %v18882_v45  ;;  %v6764_v21 = vmul.f32 0.5, %v15201_v36  ;;  %v6798_v8 = vadd.f32 0.5, %v6762_v38  ;;  %v18971_v6 = vmul.f32 %v6796_v10, %v18773_v17  ;;  %v21168_v10 = vld [vmem:[#allocation28_spill] sm:$0xff] }
 0x4ee   : > { %v15205_v40 = vpop.eup %15204  ;;  %15216 = vtanh.f32 %v18885_v58  ;;  %v6765_v43 = vmul.f32 0.5, %v15203_v14  ;;  %v6799_v37 = vadd.f32 0.5, %v6763_v19  ;;  %v18975_v45 = vmul.f32 %v6797_v56, %v18776_v0  ;;  %v21169_v14 = vld [vmem:[#allocation30_spill] sm:$0xff] }
 0x4ef   : > { %v15207_v49 = vpop.eup %15206  ;;  %15218 = vtanh.f32 %v18888_v22  ;;  %v6766_v3 = vmul.f32 0.5, %v15205_v40  ;;  %v6800_v44 = vadd.f32 0.5, %v6764_v21  ;;  %v18979_v58 = vmul.f32 %v6798_v8, %v18779_v2  ;;  %v21170_v8 = vld [vmem:[#allocation34_spill] sm:$0xff] }
 0x4f0   : > { %v15209_v4 = vpop.eup %15208  ;;  %15220 = vtanh.f32 %v18891_v24  ;;  %v6767_v48 = vmul.f32 0.5, %v15207_v49  ;;  %v6801_v30 = vadd.f32 0.5, %v6765_v43  ;;  %v18983_v22 = vmul.f32 %v6799_v37, %v18782_v51  ;;  %v21171_v49 = vld [vmem:[#allocation29_spill] sm:$0xff] }
 0x4f1   : > { %v15211_v7 = vpop.eup %15210  ;;  %15222 = vtanh.f32 %v18894_v34  ;;  %v6768_v17 = vmul.f32 0.5, %v15209_v4  ;;  %v6802_v29 = vadd.f32 0.5, %v6766_v3  ;;  %v18987_v24 = vmul.f32 %v6800_v44, %v21164_v60  ;;  %v21172_v44 = vld [vmem:[#allocation36_spill] sm:$0xff] }
 0x4f2   : > { %v15213_v20 = vpop.eup %15212  ;;  %15224 = vtanh.f32 %v21163_v33  ;;  %v6769_v0 = vmul.f32 0.5, %v15211_v7  ;;  %v6803_v5 = vadd.f32 0.5, %v6767_v48  ;;  %v6837_v34 = vmul.f32 %v6801_v30, %v21165_v1 }
 0x4f3   : > { %v15215_v16 = vpop.eup %15214  ;;  %15226 = vtanh.f32 %v18900_v23  ;;  %v6770_v2 = vmul.f32 0.5, %v15213_v20  ;;  %v6804_v32 = vadd.f32 0.5, %v6768_v17  ;;  %v6838_v31 = vmul.f32 %v6802_v29, %v21166_v61  ;;  %v21173_v17 = vld [vmem:[#allocation31_spill] sm:$0xff]  ;;  %v21178_v61 = vld [vmem:[#allocation38_spill] sm:$0xff] }
 0x4f4   : > { %v15217_v63 = vpop.eup %15216  ;;  %15228 = vtanh.f32 %v18903_v50  ;;  %v6771_v51 = vmul.f32 0.5, %v15215_v16  ;;  %v6805_v47 = vadd.f32 0.5, %v6769_v0  ;;  %v6839_v38 = vmul.f32 %v6803_v5, %v21167_v53  ;;  %v21174_v20 = vld [vmem:[#allocation35_spill] sm:$0xff]  ;;  %v21179_v53 = vld [vmem:[#allocation56_spill] sm:$0xff] }
 0x4f5   : > { %v15219_v15 = vpop.eup %15218  ;;  %v6772_v25 = vmul.f32 0.5, %v15217_v63  ;;  %v6806_v13 = vadd.f32 0.5, %v6770_v2  ;;  %v6840_v36 = vmul.f32 %v6804_v32, %v21168_v10  ;;  %v6851_v40 = vmul.f32 %v21170_v8, %v18906_v41  ;;  %v21175_v41 = vld [vmem:[#allocation33_spill] sm:$0xff]  ;;  %v21180_v10 = vld [vmem:[#allocation40_spill] sm:$0xff] }
 0x4f6   : > { %v15221_v19 = vpop.eup %15220  ;;  %v6773_v23 = vmul.f32 0.5, %v15219_v15  ;;  %v6807_v56 = vadd.f32 0.5, %v6771_v51  ;;  %v6841_v21 = vmul.f32 %v6805_v47, %v21169_v14  ;;  %v6852_v4 = vmul.f32 %v21172_v44, %v18909_v11  ;;  %v21176_v2 = vld [vmem:[#allocation57_spill] sm:$0xff]  ;;  %v21177_v11 = vld [vmem:[#allocation32_spill] sm:$0xff] }
 0x4f7   : > { %v15223_v50 = vpop.eup %15222  ;;  %v6774_v43 = vmul.f32 0.5, %v15221_v19  ;;  %v6808_v37 = vadd.f32 0.5, %v6772_v25  ;;  %v6842_v3 = vmul.f32 %v6806_v13, %v21171_v49  ;;  %v6853_v33 = vmul.f32 %v21174_v20, %v18912_v12 }
 0x4f8   : > { %v15225_v48 = vpop.eup %15224  ;;  %v6775_v30 = vmul.f32 0.5, %v15223_v50  ;;  %v6809_v7 = vadd.f32 0.5, %v6773_v23  ;;  %v6843_v29 = vmul.f32 %v6807_v56, %v21173_v17  ;;  %v6854_v32 = vmul.f32 %v21176_v2, %v18915_v57  ;;  %v21181_v56 = vld [vmem:[#allocation75_spill] sm:$0xff]  ;;  %v21182_v57 = vld [vmem:[#allocation42_spill] sm:$0xff]  ;;  %v21186_v17 = vld [vmem:[#allocation45_spill] sm:$0xff] }
 0x4f9   : > { %v15227_v0 = vpop.eup %15226  ;;  %v6776_v5 = vmul.f32 0.5, %v15225_v48  ;;  %v6810_v60 = vadd.f32 0.5, %v6774_v43  ;;  %v6844_v16 = vmul.f32 %v6808_v37, %v21175_v41  ;;  %v6855_v15 = vmul.f32 %v21178_v61, %v18919_v18  ;;  %v21183_v43 = vld [vmem:[#allocation41_spill] sm:$0xff] }
 0x4fa   : > { %v15229_v1 = vpop.eup %15228  ;;  %v6777_v63 = vmul.f32 0.5, %v15227_v0  ;;  %v6811_v51 = vadd.f32 0.5, %v6775_v30  ;;  %v6845_v47 = vmul.f32 %v6809_v7, %v21177_v11  ;;  %v6856_v19 = vmul.f32 %v21180_v10, %v18923_v39  ;;  %v21184_v48 = vld [vmem:[#allocation37_spill] sm:$0xff] }
 0x4fb   : > { %v6778_v25 = vmul.f32 0.5, %v15229_v1  ;;  %v6812_v13 = vadd.f32 0.5, %v6776_v5  ;;  %v6846_v12 = vmul.f32 %v6810_v60, %v21179_v53  ;;  %v6857_v50 = vmul.f32 %v21182_v57, %v18927_v28  ;;  %v21185_v18 = vld [vmem:[#allocation61_spill] sm:$0xff]  ;;  %v21187_v5 = vld [vmem:[#allocation39_spill] sm:$0xff]  ;;  %v21189_v1 = vld [vmem:[#allocation48_spill] sm:$0xff] }
 0x4fc   : > { %v6813_v23 = vadd.f32 0.5, %v6777_v63  ;;  %v6847_v14 = vmul.f32 %v6811_v51, %v21181_v56  ;;  %v6858_v37 = vmul.f32 %v21183_v43, %v18931_v42  ;;  %v6859_v7 = vmul.f32 %v21185_v18, %v18935_v35  ;;  %v21188_v60 = vld [vmem:[#allocation63_spill] sm:$0xff]  ;;  %v21190_v63 = vld [vmem:[#allocation66_spill] sm:$0xff]  ;;  %v21191_v11 = vld [vmem:[#allocation49_spill] sm:$0xff] }
 0x4fd   : > { %v6814_v49 = vadd.f32 0.5, %v6778_v25  ;;  %v6848_v30 = vmul.f32 %v6812_v13, %v21184_v48  ;;  %v6860_v0 = vmul.f32 %v21186_v17, %v18939_v9  ;;  %v6861_v41 = vmul.f32 %v21188_v60, %v18943_v52  ;;  %v21192_v35 = vld [vmem:[#allocation51_spill] sm:$0xff]  ;;  %v21193_v9 = vld [vmem:[#allocation69_spill] sm:$0xff]  ;;  %v21195_v56 = vld [vmem:[#allocation58_spill] sm:$0xff] }
 0x4fe   : > { %v6849_v39 = vmul.f32 %v6813_v23, %v21187_v5  ;;  %v6862_v28 = vmul.f32 %v21189_v1, %v18947_v26  ;;  %v6863_v42 = vmul.f32 %v21190_v63, %v18951_v62  ;;  %v6864_v25 = vmul.f32 %v21191_v11, %v18955_v59  ;;  %v21194_v23 = vld [vmem:[#allocation52_spill] sm:$0xff]  ;;  %v21198_v59 = vld [vmem:[#allocation67_spill] sm:$0xff]  ;;  %v21203_v1 = vld [vmem:[#allocation78_spill] sm:$0xff] }
 0x4ff   : > { %v6850_v51 = vmul.f32 %v6814_v49, %v18829_v54  ;;  %v6865_v13 = vmul.f32 %v21192_v35, %v18959_v55  ;;  %v6866_v53 = vmul.f32 %v21193_v9, %v18963_v46  ;;  %v6867_v52 = vmul.f32 %v21194_v23, %v18967_v27  ;;  %v21196_v48 = vld [vmem:[#allocation60_spill] sm:$0xff]  ;;  %v21197_v54 = vld [vmem:[#allocation62_spill] sm:$0xff]  ;;  %v21202_v27 = vld [vmem:[#allocation77_spill] sm:$0xff] }
 0x500   : > { %v6868_v26 = vmul.f32 %v21195_v56, %v18971_v6  ;;  %v6869_v62 = vmul.f32 %v21196_v48, %v18975_v45  ;;  %v6870_v49 = vmul.f32 %v21197_v54, %v18979_v58  ;;  %v6871_v5 = vmul.f32 %v21198_v59, %v18983_v22  ;;  %v21199_v55 = vld [vmem:[#allocation70_spill] sm:$0xff]  ;;  %v21200_v11 = vld [vmem:[#allocation72_spill] sm:$0xff]  ;;  %v21204_v56 = vld [vmem:[#allocation79_spill] sm:$0xff] }
 0x501   : > { %v6872_v35 = vmul.f32 %v21199_v55, %v18987_v24  ;;  %v6873_v46 = vmul.f32 %v21200_v11, %v6837_v34  ;;  %v21201_v9 = vld [vmem:[#allocation74_spill] sm:$0xff]  ;;  %v6875_v23 = vmul.f32 %v21202_v27, %v6839_v38  ;;  %v6876_v6 = vmul.f32 %v21203_v1, %v6840_v36  ;;  %v21205_v45 = vld [vmem:[#allocation80_spill] sm:$0xff]  ;;  %v21206_v17 = vld [vmem:[#allocation81_spill] sm:$0xff] }
 0x502   : > { %v6874_v63 = vmul.f32 %v21201_v9, %v6838_v31  ;;  %v6877_v60 = vmul.f32 %v21204_v56, %v6841_v21  ;;  %v6878_v48 = vmul.f32 %v21205_v45, %v6842_v3  ;;  %v6879_v58 = vmul.f32 %v21206_v17, %v6843_v29  ;;  %v21207_v54 = vld [vmem:[#allocation65_spill] sm:$0xff]  ;;  %v21208_v22 = vld [vmem:[#allocation22_spill] sm:$0xff]  ;;  %v21209_v43 = vld [vmem:[#allocation24_spill] sm:$0xff] }
 0x503   : > { %v6880_v18 = vmul.f32 %v21207_v54, %v6844_v16  ;;  %v6881_v59 = vmul.f32 %v21208_v22, %v6845_v47  ;;  %v6882_v24 = vmul.f32 %v21209_v43, %v6846_v12  ;;  %v21210_v55 = vld [vmem:[#allocation23_spill] sm:$0xff]  ;;  %v21211_v11 = vld [vmem:[#allocation53_spill] sm:$0xff]  ;;  %v21212_v9 = vld [vmem:[#allocation68_spill] sm:$0xff]  ;;  %v6887_v1 = vpack.c.bf16 %v6851_v40, %v6851_v40 }
 0x504   : > { %v6883_v34 = vmul.f32 %v21210_v55, %v6847_v14  ;;  %v6884_v31 = vmul.f32 %v21211_v11, %v6848_v30  ;;  %v6885_v38 = vmul.f32 %v21212_v9, %v6849_v39  ;;  %v21213_v27 = vld [vmem:[#allocation25_spill] sm:$0xff]  ;;  %v6888_v21 = vpack.c.bf16 %v6852_v4, %v6852_v4 }
 0x505   : > { %v6886_v36 = vmul.f32 %v21213_v27, %v6850_v51  ;;  %v6889_v56 = vpack.c.bf16 %v6853_v33, %v6853_v33  ;;  %v6890_v3 = vpack.c.bf16 %v6854_v32, %v6854_v32  ;;  %v6891_v45 = vpack.c.bf16 %v6855_v15, %v6855_v15 }
 0x506   : > { %v19063_v29 = vpack.c.bf16 %v6856_v19, %v6856_v19  ;;  %v19065_v16 = vpack.c.bf16 %v6857_v50, %v6857_v50  ;;  %v19067_v47 = vpack.c.bf16 %v6858_v37, %v6858_v37  ;;  %v19069_v12 = vpack.c.bf16 %v6859_v7, %v6859_v7 }
 0x507   : > { %v19071_v14 = vpack.c.bf16 %v6860_v0, %v6860_v0  ;;  %v19073_v30 = vpack.c.bf16 %v6861_v41, %v6861_v41  ;;  %v19075_v39 = vpack.c.bf16 %v6862_v28, %v6862_v28  ;;  %v19077_v40 = vpack.c.bf16 %v6863_v42, %v6863_v42 }
 0x508   : > { %v19079_v4 = vpack.c.bf16 %v6864_v25, %v6864_v25  ;;  %v19081_v33 = vpack.c.bf16 %v6865_v13, %v6865_v13  ;;  %v19083_v32 = vpack.c.bf16 %v6866_v53, %v6866_v53  ;;  %v19085_v15 = vpack.c.bf16 %v6867_v52, %v6867_v52 }
 0x509   : > { %v19087_v19 = vpack.c.bf16 %v6868_v26, %v6868_v26  ;;  %v19089_v50 = vpack.c.bf16 %v6869_v62, %v6869_v62  ;;  %v19091_v37 = vpack.c.bf16 %v6870_v49, %v6870_v49  ;;  %v19093_v7 = vpack.c.bf16 %v6871_v5, %v6871_v5 }
 0x50a   : > { %v19095_v0 = vpack.c.bf16 %v6872_v35, %v6872_v35  ;;  %v19097_v41 = vpack.c.bf16 %v6873_v46, %v6873_v46  ;;  %v19099_v28 = vpack.c.bf16 %v6874_v63, %v6874_v63  ;;  %v19101_v42 = vpack.c.bf16 %v6875_v23, %v6875_v23 }
 0x50b   : > { %v19103_v51 = vpack.c.bf16 %v6876_v6, %v6876_v6  ;;  %v19105_v25 = vpack.c.bf16 %v6877_v60, %v6877_v60  ;;  %v19107_v13 = vpack.c.bf16 %v6878_v48, %v6878_v48  ;;  %v19109_v53 = vpack.c.bf16 %v6879_v58, %v6879_v58 }
 0x50c   : > { %v19111_v52 = vpack.c.bf16 %v6880_v18, %v6880_v18  ;;  %v19113_v26 = vpack.c.bf16 %v6881_v59, %v6881_v59  ;;  %v19115_v35 = vpack.c.bf16 %v6882_v24, %v6882_v24  ;;  %v19117_v62 = vpack.c.bf16 %v6883_v34, %v6883_v34 }
 0x50d   : > { %v19119_v63 = vpack.c.bf16 %v6884_v31, %v6884_v31  ;;  %v19121_v23 = vpack.c.bf16 %v6885_v38, %v6885_v38  ;;  %v19123_v49 = vpack.c.bf16 %v6886_v36, %v6886_v36  ;;  %v6926_v60 = vshrl.u32 %v6887_v1, 16 }
 0x50e   : > { %v6929_v5 = vshll.u32 %v6887_v1, 16  ;;  %v6935_v48 = vshrl.u32 %v6888_v21, 16  ;;  %v6938_v46 = vshll.u32 %v6888_v21, 16  ;;  %v6945_v6 = vshrl.u32 %v6889_v56, 16 }
 0x50f   : > { %v6948_v58 = vshll.u32 %v6889_v56, 16  ;;  %v6955_v18 = vshrl.u32 %v6890_v3, 16  ;;  %v6958_v27 = vshll.u32 %v6890_v3, 16  ;;  %v6928_v59 = vrot.slane %v6926_v60, 6 }
 0x510   : > { %v6931_v9 = vrot.slane %v6929_v5, 7  ;;  %v6937_v24 = vrot.slane %v6935_v48, 6  ;;  %v6940_v11 = vrot.slane %v6938_v46, 7  ;;  %v6947_v34 = vrot.slane %v6945_v6, 6 }
 0x511   : > { %v6950_v55 = vrot.slane %v6948_v58, 7  ;;  %v6957_v31 = vrot.slane %v6955_v18, 6  ;;  %v6960_v43 = vrot.slane %v6958_v27, 7  ;;  %v6965_v22 = vshrl.u32 %v6891_v45, 16 }
 0x512   : > { %v19125_v38 = vor.u32 %v6931_v9, %v6928_v59  ;;  %v6941_v36 = vor.u32 %v6940_v11, %v6937_v24  ;;  %v6968_v54 = vshll.u32 %v6891_v45, 16  ;;  %v6975_v3 = vshrl.u32 %v19063_v29, 16 }
 0x513   : > { %v6951_v56 = vor.u32 %v6950_v55, %v6947_v34  ;;  %v6961_v21 = vor.u32 %v6960_v43, %v6957_v31  ;;  %v6978_v60 = vshll.u32 %v19063_v29, 16  ;;  %v6967_v9 = vrot.slane %v6965_v22, 6 }
 0x514   : > { %v6933_v5 = vrot.slane %v19125_v38, 4  ;;  %v6943_v27 = vrot.slane %v6941_v36, 4  ;;  %v6970_v48 = vrot.slane %v6968_v54, 7  ;;  %v6977_v45 = vrot.slane %v6975_v3, 6 }
 0x515   : > { %v6953_v11 = vrot.slane %v6951_v56, 4  ;;  %v6963_v46 = vrot.slane %v6961_v21, 4  ;;  %v6980_v6 = vrot.slane %v6978_v60, 7  ;;  %v6985_v18 = vshrl.u32 %v19065_v16, 16 }
 0x516   : > { %v6942_v58 = vsel %vm19129_vm8, %v6933_v5, %v6941_v36  ;;  %v6952_v55 = vsel %vm19129_vm8, %v6943_v27, %v6951_v56  ;;  %v6971_v43 = vor.u32 %v6970_v48, %v6967_v9  ;;  %v6988_v22 = vshll.u32 %v19065_v16, 16 }
 0x517   : > { %v6962_v29 = vsel %vm19129_vm8, %v6953_v11, %v6961_v21  ;;  %v6981_v59 = vor.u32 %v6980_v6, %v6977_v45  ;;  %v6995_v54 = vshrl.u32 %v19067_v47, 16  ;;  %7324 = vst [vmem:[#allocation2 + $0xc] sm:$0xf] %v6942_v58  ;;  %v6987_v31 = vrot.slane %v6985_v18, 6 }
 0x518   : > { %v6972_v24 = vsel %vm19129_vm8, %v6963_v46, %v6971_v43  ;;  %v6973_v34 = vrot.slane %v6971_v43, 4  ;;  %v6998_v36 = vshll.u32 %v19067_v47, 16  ;;  %7325 = vst [vmem:[#allocation2 + $0x10] sm:$0xf] %v6952_v55  ;;  %v6990_v3 = vrot.slane %v6988_v22, 7 }
 0x519   : > { %v6983_v56 = vrot.slane %v6981_v59, 4  ;;  %v6997_v60 = vrot.slane %v6995_v54, 6  ;;  %v7005_v5 = vshrl.u32 %v19069_v12, 16  ;;  %7326 = vst [vmem:[#allocation2 + $0x14] sm:$0xf] %v6962_v29  ;;  %v7008_v27 = vshll.u32 %v19069_v12, 16 }
 0x51a   : > { %v6982_v16 = vsel %vm19129_vm8, %v6973_v34, %v6981_v59  ;;  %v7000_v21 = vrot.slane %v6998_v36, 7  ;;  %v7015_v9 = vshrl.u32 %v19071_v14, 16  ;;  %7327 = vst [vmem:[#allocation2 + $0x18] sm:$0xf] %v6972_v24  ;;  %v6991_v48 = vor.u32 %v6990_v3, %v6987_v31  ;;  %v14756_v59 = vld [vmem:[#allocation12 + $0xb8] sm:$0xff]  ;;  %v14697_v34 = vld [vmem:[#allocation12] sm:$0xff] }
 0x51b   : > { %v7007_v11 = vrot.slane %v7005_v5, 6  ;;  %v7018_v47 = vshll.u32 %v19071_v14, 16  ;;  %v7025_v46 = vshrl.u32 %v19073_v30, 16  ;;  %7328 = vst [vmem:[#allocation2 + $0x1c] sm:$0xf] %v6982_v16  ;;  %v7010_v6 = vrot.slane %v7008_v27, 7  ;;  %8521 = vmatpush.bf16.msra.mxu2 %v14756_v59  ;;  %7577 = vmatpush.bf16.msra.mxu3 %v14697_v34 }
 0x51c   : > { %v7001_v45 = vor.u32 %v7000_v21, %v6997_v60  ;;  %v7017_v58 = vrot.slane %v7015_v9, 6  ;;  %v7028_v55 = vshll.u32 %v19073_v30, 16  ;;  %v6992_v43 = vsel %vm19129_vm8, %v6983_v56, %v6991_v48  ;;  %v14782_v56 = vld [vmem:[#allocation12 + $0xf8] sm:$0xff]  ;;  %v14729_v59 = vld [vmem:[#allocation12 + $0x70] sm:$0xff] }
 0x51d   : > { %v6993_v18 = vrot.slane %v6991_v48, 4  ;;  %v7020_v12 = vrot.slane %v7018_v47, 7  ;;  %v7027_v29 = vrot.slane %v7025_v46, 6  ;;  %v7011_v54 = vor.u32 %v7010_v6, %v7007_v11  ;;  %7329 = vst [vmem:[#allocation2 + $0x20] sm:$0xf] %v6992_v43  ;;  %v14730_v60 = vld [vmem:[#allocation12 + $0x78] sm:$0xff]  ;;  %8977 = vmatpush.bf16.msrb.mxu0 %v14782_v56 }
 0x51e   : > { %v7003_v22 = vrot.slane %v7001_v45, 4  ;;  %v7030_v24 = vrot.slane %v7028_v55, 7  ;;  %v7035_v14 = vshrl.u32 %v19075_v39, 16  ;;  %v7038_v30 = vshll.u32 %v19075_v39, 16  ;;  %8065 = vmatpush.bf16.msra.mxu1 %v14730_v60  ;;  %v14755_v55 = vld [vmem:[#allocation12 + $0xb0] sm:$0xff] }
 0x51f   : > { %v7002_v31 = vsel %vm19129_vm8, %v6993_v18, %v7001_v45  ;;  %v7021_v36 = vor.u32 %v7020_v12, %v7017_v58  ;;  %v7045_v3 = vshrl.u32 %v19077_v40, 16  ;;  %v7013_v16 = vrot.slane %v7011_v54, 4  ;;  %v14679_v58 = vld [vmem:[#allocation2] sm:$0xff]  ;;  %8522 = vmatpush.bf16.msra.mxu2 %v14755_v55  ;;  %v14753_v55 = vld [vmem:[#allocation12 + $0xa0] sm:$0xff] }
 0x520   : > { %v7012_v5 = vsel %vm19129_vm8, %v7003_v22, %v7011_v54  ;;  %v7031_v21 = vor.u32 %v7030_v24, %v7027_v29  ;;  %v7037_v27 = vrot.slane %v7035_v14, 6  ;;  %7330 = vst [vmem:[#allocation2 + $0x24] sm:$0xf] %v7002_v31  ;;  %v7040_v48 = vrot.slane %v7038_v30, 7  ;;  %v14781_v43 = vld [vmem:[#allocation12 + $0xf0] sm:$0xff]  ;;  %7578 = vmatmul.bf16.vlgmr.msra.gmra.mxu3 %v14679_v58  ;;  %v14754_v30 = vld [vmem:[#allocation12 + $0xa8] sm:$0xff] }
 0x521   : > { %v7023_v9 = vrot.slane %v7021_v36, 4  ;;  %v7047_v11 = vrot.slane %v7045_v3, 6  ;;  %v7048_v47 = vshll.u32 %v19077_v40, 16  ;;  %7331 = vst [vmem:[#allocation2 + $0x28] sm:$0xf] %v7012_v5  ;;  %v7022_v39 = vsel %vm19129_vm8, %v7013_v16, %v7021_v36  ;;  %8978 = vmatpush.bf16.msrb.mxu0 %v14781_v43 }
 0x522   : > { %v7033_v46 = vrot.slane %v7031_v21, 4  ;;  %v7055_v45 = vshrl.u32 %v19079_v4, 16  ;;  %v7058_v6 = vshll.u32 %v19079_v4, 16  ;;  %v7041_v12 = vor.u32 %v7040_v48, %v7037_v27  ;;  %7332 = vst [vmem:[#allocation2 + $0x2c] sm:$0xf] %v7022_v39  ;;  %8066 = vmatpush.bf16.msra.mxu1 %v14729_v59  ;;  %v14728_v48 = vld [vmem:[#allocation12 + $0x68] sm:$0xff] }
 0x523   : > { %v7032_v18 = vsel %vm19129_vm8, %v7023_v9, %v7031_v21  ;;  %v7050_v29 = vrot.slane %v7048_v47, 7  ;;  %v7065_v40 = vshrl.u32 %v19081_v33, 16  ;;  %v7068_v24 = vshll.u32 %v19081_v33, 16  ;;  %v14780_v33 = vld [vmem:[#allocation12 + $0xe8] sm:$0xff]  ;;  %8523 = vmatpush.bf16.msra.mxu2 %v14754_v30 }
 0x524   : > { %v7057_v22 = vrot.slane %v7055_v45, 6  ;;  %v7060_v54 = vrot.slane %v7058_v6, 7  ;;  %v7075_v14 = vshrl.u32 %v19083_v32, 16  ;;  %7333 = vst [vmem:[#allocation2 + $0x30] sm:$0xf] %v7032_v18  ;;  %v7042_v4 = vsel %vm19129_vm8, %v7033_v46, %v7041_v12 }
 0x525   : > { %v7043_v34 = vrot.slane %v7041_v12, 4  ;;  %v7051_v31 = vor.u32 %v7050_v29, %v7047_v11  ;;  %v7067_v36 = vrot.slane %v7065_v40, 6  ;;  %v7070_v56 = vrot.slane %v7068_v24, 7  ;;  %7334 = vst [vmem:[#allocation2 + $0x34] sm:$0xf] %v7042_v4  ;;  %8979 = vmatpush.bf16.msrb.mxu0 %v14780_v33  ;;  %v14779_v29 = vld [vmem:[#allocation12 + $0xe0] sm:$0xff] }
 0x526   : > { %v7061_v3 = vor.u32 %v7060_v54, %v7057_v22  ;;  %v7077_v60 = vrot.slane %v7075_v14, 6  ;;  %v7078_v5 = vshll.u32 %v19083_v32, 16  ;;  %v7085_v27 = vshrl.u32 %v19085_v15, 16  ;;  %8067 = vmatpush.bf16.msra.mxu1 %v14728_v48  ;;  %v14727_v24 = vld [vmem:[#allocation12 + $0x60] sm:$0xff]  ;;  %v14726_v48 = vld [vmem:[#allocation12 + $0x58] sm:$0xff] }
 0x527   : > { %v7052_v16 = vsel %vm19129_vm8, %v7043_v34, %v7051_v31  ;;  %v7053_v21 = vrot.slane %v7051_v31, 4  ;;  %v7088_v9 = vshll.u32 %v19085_v15, 16  ;;  %v7071_v47 = vor.u32 %v7070_v56, %v7067_v36  ;;  %8524 = vmatpush.bf16.msra.mxu2 %v14753_v55  ;;  %v14752_v56 = vld [vmem:[#allocation12 + $0x98] sm:$0xff] }
 0x528   : > { %v7063_v11 = vrot.slane %v7061_v3, 4  ;;  %v7080_v39 = vrot.slane %v7078_v5, 7  ;;  %v7095_v46 = vshrl.u32 %v19087_v19, 16  ;;  %7335 = vst [vmem:[#allocation2 + $0x38] sm:$0xf] %v7052_v16  ;;  %v7087_v45 = vrot.slane %v7085_v27, 6 }
 0x529   : > { %v7062_v32 = vsel %vm19129_vm8, %v7053_v21, %v7061_v3  ;;  %v7090_v6 = vrot.slane %v7088_v9, 7  ;;  %v7098_v58 = vshll.u32 %v19087_v19, 16  ;;  %v7073_v43 = vrot.slane %v7071_v47, 4  ;;  %8980 = vmatpush.bf16.msrb.mxu0 %v14779_v29  ;;  %v14778_v16 = vld [vmem:[#allocation12 + $0xd8] sm:$0xff] }
 0x52a   : > { %v7072_v15 = vsel %vm19129_vm8, %v7063_v11, %v7071_v47  ;;  %v7081_v18 = vor.u32 %v7080_v39, %v7077_v60  ;;  %v7097_v12 = vrot.slane %v7095_v46, 6  ;;  %7336 = vst [vmem:[#allocation2 + $0x3c] sm:$0xf] %v7062_v32  ;;  %v7105_v22 = vshrl.u32 %v19089_v50, 16  ;;  %8068 = vmatpush.bf16.msra.mxu1 %v14727_v24  ;;  %v14813_v44 = vld [vmem:[#allocation2 + $0x28] sm:$0xff] }
 0x52b   : > { %v7091_v40 = vor.u32 %v7090_v6, %v7087_v45  ;;  %v7100_v59 = vrot.slane %v7098_v58, 7  ;;  %v7108_v54 = vshll.u32 %v19089_v50, 16  ;;  %7337 = vst [vmem:[#allocation2 + $0x40] sm:$0xf] %v7072_v15  ;;  %v7115_v4 = vshrl.u32 %v19091_v37, 16  ;;  %8525 = vmatpush.bf16.msra.mxu2 %v14752_v56 }
 0x52c   : > { %v7082_v19 = vsel %vm19129_vm8, %v7073_v43, %v7081_v18  ;;  %v7083_v14 = vrot.slane %v7081_v18, 4  ;;  %v7118_v34 = vshll.u32 %v19091_v37, 16  ;;  %v7107_v30 = vrot.slane %v7105_v22, 6  ;;  %v14777_v22 = vld [vmem:[#allocation12 + $0xd0] sm:$0xff]  ;;  %v14865_v2 = vld [vmem:[#allocation2 + $0x30] sm:$0xff] }
 0x52d   : > { %v7093_v31 = vrot.slane %v7091_v40, 4  ;;  %v7101_v36 = vor.u32 %v7100_v59, %v7097_v12  ;;  %v7110_v3 = vrot.slane %v7108_v54, 7  ;;  %7338 = vst [vmem:[#allocation2 + $0x44] sm:$0xf] %v7082_v19  ;;  %v7117_v60 = vrot.slane %v7115_v4, 6  ;;  %8981 = vmatpush.bf16.msrb.mxu0 %v14778_v16  ;;  %v14808_v59 = vld [vmem:[#allocation12 + $0x138] sm:$0xff] }
 0x52e   : > { %v7092_v50 = vsel %vm19129_vm8, %v7083_v14, %v7091_v40  ;;  %v7120_v5 = vrot.slane %v7118_v34, 7  ;;  %v7125_v33 = vshrl.u32 %v19093_v7, 16  ;;  %v7128_v9 = vshll.u32 %v19093_v7, 16  ;;  %8069 = vmatpush.bf16.msra.mxu1 %v14726_v48  ;;  %v14751_v7 = vld [vmem:[#allocation12 + $0x90] sm:$0xff]  ;;  %9566 = vmatpush.bf16.msrb.mxu3 %v14808_v59 }
 0x52f   : > { %v7102_v37 = vsel %vm19129_vm8, %v7093_v31, %v7101_v36  ;;  %v7103_v21 = vrot.slane %v7101_v36, 4  ;;  %v7111_v27 = vor.u32 %v7110_v3, %v7107_v30  ;;  %7339 = vst [vmem:[#allocation2 + $0x48] sm:$0xf] %v7092_v50  ;;  %v7135_v39 = vshrl.u32 %v19095_v0, 16  ;;  %v14725_v54 = vld [vmem:[#allocation12 + $0x50] sm:$0xff]  ;;  %8526 = vmatpush.bf16.msra.mxu2 %v14751_v7  ;;  %v14776_v3 = vld [vmem:[#allocation12 + $0xc8] sm:$0xff] }
 0x530   : > { %v7121_v11 = vor.u32 %v7120_v5, %v7117_v60  ;;  %v7127_v47 = vrot.slane %v7125_v33, 6  ;;  %v7138_v46 = vshll.u32 %v19095_v0, 16  ;;  %7340 = vst [vmem:[#allocation2 + $0x4c] sm:$0xf] %v7102_v37  ;;  %v7130_v6 = vrot.slane %v7128_v9, 7 }
 0x531   : > { %v7112_v32 = vsel %vm19129_vm8, %v7103_v21, %v7111_v27  ;;  %v7113_v45 = vrot.slane %v7111_v27, 4  ;;  %v7145_v58 = vshrl.u32 %v19097_v41, 16  ;;  %v7137_v15 = vrot.slane %v7135_v39, 6  ;;  %8982 = vmatpush.bf16.msrb.mxu0 %v14777_v22 }
 0x532   : > { %v7123_v55 = vrot.slane %v7121_v11, 4  ;;  %v7140_v43 = vrot.slane %v7138_v46, 7  ;;  %v7148_v18 = vshll.u32 %v19097_v41, 16  ;;  %7341 = vst [vmem:[#allocation2 + $0x50] sm:$0xf] %v7112_v32  ;;  %v7131_v12 = vor.u32 %v7130_v6, %v7127_v47  ;;  %v14750_v41 = vld [vmem:[#allocation12 + $0x88] sm:$0xff]  ;;  %8070 = vmatpush.bf16.msra.mxu1 %v14725_v54 }
 0x533   : > { %v7122_v0 = vsel %vm19129_vm8, %v7113_v45, %v7121_v11  ;;  %v7147_v29 = vrot.slane %v7145_v58, 6  ;;  %v7155_v40 = vshrl.u32 %v19099_v28, 16  ;;  %v7158_v14 = vshll.u32 %v19099_v28, 16  ;;  %v14724_v28 = vld [vmem:[#allocation12 + $0x48] sm:$0xff]  ;;  %8527 = vmatpush.bf16.msra.mxu2 %v14750_v41  ;;  %v14749_v11 = vld [vmem:[#allocation12 + $0x80] sm:$0xff] }
 0x534   : > { %v7141_v24 = vor.u32 %v7140_v43, %v7137_v15  ;;  %v7150_v19 = vrot.slane %v7148_v18, 7  ;;  %v7165_v4 = vshrl.u32 %v19101_v42, 16  ;;  %7342 = vst [vmem:[#allocation2 + $0x54] sm:$0xf] %v7122_v0  ;;  %v7132_v34 = vsel %vm19129_vm8, %v7123_v55, %v7131_v12  ;;  %v14775_v45 = vld [vmem:[#allocation12 + $0xc0] sm:$0xff] }
 0x535   : > { %v7133_v31 = vrot.slane %v7131_v12, 4  ;;  %v7157_v36 = vrot.slane %v7155_v40, 6  ;;  %v7168_v30 = vshll.u32 %v19101_v42, 16  ;;  %v7160_v60 = vrot.slane %v7158_v14, 7  ;;  %7343 = vst [vmem:[#allocation2 + $0x58] sm:$0xf] %v7132_v34  ;;  %8983 = vmatpush.bf16.msrb.mxu0 %v14776_v3 }
 0x536   : > { %v7143_v56 = vrot.slane %v7141_v24, 4  ;;  %v7151_v50 = vor.u32 %v7150_v19, %v7147_v29  ;;  %v7167_v5 = vrot.slane %v7165_v4, 6  ;;  %v7175_v37 = vshrl.u32 %v19103_v51, 16  ;;  %8071 = vmatpush.bf16.msra.mxu1 %v14724_v28  ;;  %v14723_v55 = vld [vmem:[#allocation12 + $0x40] sm:$0xff] }
 0x537   : > { %v7142_v33 = vsel %vm19129_vm8, %v7133_v31, %v7141_v24  ;;  %v7170_v16 = vrot.slane %v7168_v30, 7  ;;  %v7178_v21 = vshll.u32 %v19103_v51, 16  ;;  %v7161_v9 = vor.u32 %v7160_v60, %v7157_v36  ;;  %8528 = vmatpush.bf16.msra.mxu2 %v14749_v11 }
 0x538   : > { %v7152_v42 = vsel %vm19129_vm8, %v7143_v56, %v7151_v50  ;;  %v7153_v27 = vrot.slane %v7151_v50, 4  ;;  %v7185_v48 = vshrl.u32 %v19105_v25, 16  ;;  %7344 = vst [vmem:[#allocation2 + $0x5c] sm:$0xf] %v7142_v33  ;;  %v7177_v39 = vrot.slane %v7175_v37, 6 }
 0x539   : > { %v7171_v47 = vor.u32 %v7170_v16, %v7167_v5  ;;  %v7180_v46 = vrot.slane %v7178_v21, 7  ;;  %v7188_v32 = vshll.u32 %v19105_v25, 16  ;;  %7345 = vst [vmem:[#allocation2 + $0x60] sm:$0xf] %v7152_v42  ;;  %v7163_v6 = vrot.slane %v7161_v9, 4  ;;  %8984 = vmatpush.bf16.msrb.mxu0 %v14775_v45 }
 0x53a   : > { %v7162_v51 = vsel %vm19129_vm8, %v7153_v27, %v7161_v9  ;;  %v7187_v58 = vrot.slane %v7185_v48, 6  ;;  %v7195_v7 = vshrl.u32 %v19107_v13, 16  ;;  %v7198_v0 = vshll.u32 %v19107_v13, 16  ;;  %8072 = vmatpush.bf16.msra.mxu1 %v14723_v55  ;;  %v7321_v45 = vld [vmem:[#allocation2 + $0x8] sm:$0xe] }
 0x53b   : > { %v7173_v15 = vrot.slane %v7171_v47, 4  ;;  %v7181_v43 = vor.u32 %v7180_v46, %v7177_v39  ;;  %v7190_v18 = vrot.slane %v7188_v32, 7  ;;  %7346 = vst [vmem:[#allocation2 + $0x64] sm:$0xf] %v7162_v51  ;;  %v7172_v25 = vsel %vm19129_vm8, %v7163_v6, %v7171_v47 }
 0x53c   : > { %v7197_v12 = vrot.slane %v7195_v7, 6  ;;  %v7205_v29 = vshrl.u32 %v19109_v53, 16  ;;  %v7208_v40 = vshll.u32 %v19109_v53, 16  ;;  %v7200_v24 = vrot.slane %v7198_v0, 7  ;;  %7347 = vst [vmem:[#allocation2 + $0x68] sm:$0xf] %v7172_v25 }
 0x53d   : > { %v7182_v59 = vsel %vm19129_vm8, %v7173_v15, %v7181_v43  ;;  %v7183_v22 = vrot.slane %v7181_v43, 4  ;;  %v7191_v54 = vor.u32 %v7190_v18, %v7187_v58  ;;  %v7215_v14 = vshrl.u32 %v19111_v52, 16  ;;  %v13716_v18 = vld [vmem:[#allocation2] sm:$0xe] }
 0x53e   : > { %v7207_v19 = vrot.slane %v7205_v29, 6  ;;  %v7210_v13 = vrot.slane %v7208_v40, 7  ;;  %v7218_v4 = vshll.u32 %v19111_v52, 16  ;;  %7348 = vst [vmem:[#allocation2 + $0x6c] sm:$0xf] %v7182_v59  ;;  %v7201_v34 = vor.u32 %v7200_v24, %v7197_v12  ;;  %v14807_v40 = vld [vmem:[#allocation12 + $0x130] sm:$0xff] }
 0x53f   : > { %v7192_v53 = vsel %vm19129_vm8, %v7183_v22, %v7191_v54  ;;  %v7193_v41 = vrot.slane %v7191_v54, 4  ;;  %v7225_v31 = vshrl.u32 %v19113_v26, 16  ;;  %v7217_v30 = vrot.slane %v7215_v14, 6  ;;  %v14731_v29 = vld [vmem:[#allocation2] sm:$0xf0]  ;;  %9567 = vmatpush.bf16.msrb.mxu3 %v14807_v40  ;;  %v14806_v40 = vld [vmem:[#allocation12 + $0x128] sm:$0xff] }
 0x540   : > { %v7211_v36 = vor.u32 %v7210_v13, %v7207_v19  ;;  %v7220_v3 = vrot.slane %v7218_v4, 7  ;;  %v7228_v56 = vshll.u32 %v19113_v26, 16  ;;  %7349 = vst [vmem:[#allocation2 + $0x70] sm:$0xf] %v7192_v53  ;;  %v7203_v60 = vrot.slane %v7201_v34, 4  ;;  %v14705_v19 = vld [vmem:[#allocation2] sm:$0xff] }
 0x541   : > { %v7202_v50 = vsel %vm19129_vm8, %v7193_v41, %v7201_v34  ;;  %v7227_v52 = vrot.slane %v7225_v31, 6  ;;  %v7235_v5 = vshrl.u32 %v19115_v35, 16  ;;  %v7238_v37 = vshll.u32 %v19115_v35, 16 }
 0x542   : > { %v7213_v28 = vrot.slane %v7211_v36, 4  ;;  %v7221_v33 = vor.u32 %v7220_v3, %v7217_v30  ;;  %v7230_v16 = vrot.slane %v7228_v56, 7  ;;  %7350 = vst [vmem:[#allocation2 + $0x74] sm:$0xf] %v7202_v50  ;;  %v7212_v21 = vsel %vm19129_vm8, %v7203_v60, %v7211_v36  ;;  %v7359_v50 = vld [vmem:[#allocation2 + $0x98] sm:$0x3] }
 0x543   : > { %v7237_v42 = vrot.slane %v7235_v5, 6  ;;  %v7245_v26 = vshrl.u32 %v19117_v62, 16  ;;  %v7248_v27 = vshll.u32 %v19117_v62, 16  ;;  %v7240_v47 = vrot.slane %v7238_v37, 7  ;;  %7351 = vst [vmem:[#allocation2 + $0x78] sm:$0xf] %v7212_v21  ;;  %9568 = vmatpush.bf16.msrb.mxu3 %v14806_v40 }
 0x544   : > { %v7222_v9 = vsel %vm19129_vm8, %v7213_v28, %v7221_v33  ;;  %v7223_v48 = vrot.slane %v7221_v33, 4  ;;  %v7231_v11 = vor.u32 %v7230_v16, %v7227_v52  ;;  %v7255_v35 = vshrl.u32 %v19119_v63, 16  ;;  %v14758_v52 = vld [vmem:[#allocation2 + $0x10] sm:$0xff]  ;;  %v14757_v5 = vld [vmem:[#allocation2 + $0x8] sm:$0xf0]  ;;  %v14712_v40 = vld [vmem:[#allocation2 + $0x38] sm:$0xff] }
 0x545   : > { %v7247_v39 = vrot.slane %v7245_v26, 6  ;;  %v7250_v46 = vrot.slane %v7248_v27, 7  ;;  %v7258_v32 = vshll.u32 %v19119_v63, 16  ;;  %7352 = vst [vmem:[#allocation2 + $0x7c] sm:$0xf] %v7222_v9  ;;  %v7241_v62 = vor.u32 %v7240_v47, %v7237_v42 }
 0x546   : > { %v7232_v51 = vsel %vm19129_vm8, %v7223_v48, %v7231_v11  ;;  %v7233_v6 = vrot.slane %v7231_v11, 4  ;;  %v7265_v58 = vshrl.u32 %v19121_v23, 16  ;;  %v7257_v55 = vrot.slane %v7255_v35, 6 }
 0x547   : > { %v7251_v7 = vor.u32 %v7250_v46, %v7247_v39  ;;  %v7260_v15 = vrot.slane %v7258_v32, 7  ;;  %v7268_v43 = vshll.u32 %v19121_v23, 16  ;;  %7353 = vst [vmem:[#allocation2 + $0x80] sm:$0xf] %v7232_v51  ;;  %v7243_v63 = vrot.slane %v7241_v62, 4 }
 0x548   : > { %v7242_v0 = vsel %vm19129_vm8, %v7233_v6, %v7241_v62  ;;  %v7267_v25 = vrot.slane %v7265_v58, 6  ;;  %v7275_v12 = vshrl.u32 %v19123_v49, 16  ;;  %v7278_v24 = vshll.u32 %v19123_v49, 16  ;;  %v14733_v6 = vld [vmem:[#allocation2 + $0x10] sm:$0xff]  ;;  %v14759_v62 = vld [vmem:[#allocation2 + $0x18] sm:$0xff] }
 0x549   : > { %v7253_v59 = vrot.slane %v7251_v7, 4  ;;  %v7261_v22 = vor.u32 %v7260_v15, %v7257_v55  ;;  %v7270_v54 = vrot.slane %v7268_v43, 7  ;;  %7354 = vst [vmem:[#allocation2 + $0x84] sm:$0xf] %v7242_v0  ;;  %v7252_v23 = vsel %vm19129_vm8, %v7243_v63, %v7251_v7  ;;  %v14707_v58 = vld [vmem:[#allocation2 + $0x10] sm:$0xff] }
 0x54a   : > { %v7277_v13 = vrot.slane %v7275_v12, 6  ;;  %v7322_v4 = vsel %vm16793_vm14, %v19125_v38, %v7321_v45  ;;  %v7280_v31 = vrot.slane %v7278_v24, 7  ;;  %7355 = vst [vmem:[#allocation2 + $0x88] sm:$0xf] %v7252_v23  ;;  %v13717_v49 = vor.u32 %v14731_v29, %v13716_v18  ;;  %v14681_v7 = vld [vmem:[#allocation2 + $0x10] sm:$0xff]  ;;  %v14682_v24 = vld [vmem:[#allocation2 + $0x18] sm:$0xff] }
 0x54b   : > { %v7262_v53 = vsel %vm19129_vm8, %v7253_v59, %v7261_v22  ;;  %v7263_v41 = vrot.slane %v7261_v22, 4  ;;  %v7271_v34 = vor.u32 %v7270_v54, %v7267_v25  ;;  %7323 = vst [vmem:[#allocation2 + $0x8] sm:$0xe] %v7322_v4  ;;  %v7854_v56 = vshll.u32 %v14705_v19, 16  ;;  %v14734_v59 = vld [vmem:[#allocation2 + $0x18] sm:$0xff]  ;;  %v14760_v22 = vld [vmem:[#allocation2 + $0x20] sm:$0xff] }
 0x54c   : > { %v7281_v3 = vor.u32 %v7280_v31, %v7277_v13  ;;  %7356 = vst [vmem:[#allocation2 + $0x8c] sm:$0xf] %v7262_v53  ;;  %v8418_v16 = vrot.slane %v13717_v49, 1  ;;  %v7852_v37 = vshrl.u32 %v14705_v19, 16  ;;  %v8875_v48 = vrot.slane %v14758_v52, 1  ;;  %v14708_v54 = vld [vmem:[#allocation2 + $0x18] sm:$0xff] }
 0x54d   : > { %v7272_v36 = vsel %vm19129_vm8, %v7263_v41, %v7271_v34  ;;  %v7273_v30 = vrot.slane %v7271_v34, 4  ;;  %v7856_v21 = vrot.slane %v7854_v56, 1  ;;  %v8421_v55 = vrot.slane %v14733_v6, 1  ;;  %v14735_v49 = vld [vmem:[#allocation2 + $0x20] sm:$0xff]  ;;  %v14711_v6 = vld [vmem:[#allocation2 + $0x30] sm:$0xff] }
 0x54e   : > { %7357 = vst [vmem:[#allocation2 + $0x90] sm:$0xf] %v7272_v36  ;;  %v7283_v60 = vrot.slane %v7281_v3, 4  ;;  %v8877_v15 = vrot.slane %v14759_v62, 1  ;;  %v7867_v18 = vshll.u32 %v14707_v58, 16  ;;  %v8423_v19 = vrot.slane %v14734_v59, 1 }
 0x54f   : > { %v7282_v38 = vsel %vm19129_vm8, %v7273_v30, %v7281_v3  ;;  %v7857_v39 = vor.u32 %v7856_v21, %v7852_v37  ;;  %v8879_v23 = vrot.slane %v14760_v22, 1  ;;  %v7871_v13 = vshrl.u32 %v14707_v58, 16  ;;  %v14761_v36 = vld [vmem:[#allocation2 + $0x28] sm:$0xff]  ;;  %v14709_v30 = vld [vmem:[#allocation2 + $0x20] sm:$0xff]  ;;  %v14685_v62 = vld [vmem:[#allocation2 + $0x30] sm:$0xff] }
 0x550   : > { %7358 = vst [vmem:[#allocation2 + $0x94] sm:$0xf] %v7282_v38  ;;  %v7360_v33 = vsel %vm16781_vm11, %v7283_v60, %v7359_v50  ;;  %v8878_v25 = vsel %vm3001_vm0, %v8875_v48, %v8877_v15  ;;  %v7869_v12 = vrot.slane %v7867_v18, 1  ;;  %v7875_v14 = vshll.u32 %v14708_v54, 16  ;;  %v14683_v3 = vld [vmem:[#allocation2 + $0x20] sm:$0xff]  ;;  %v14805_v37 = vld [vmem:[#allocation12 + $0x120] sm:$0xff] }
 0x551   : > { %7361 = vst [vmem:[#allocation2 + $0x98] sm:$0x3] %v7360_v33  ;;  %v8424_v53 = vsel %vm3001_vm0, %v8421_v55, %v8423_v19  ;;  %v8880_v41 = vsel %vm3001_vm0, %v8877_v15, %v8879_v23  ;;  %v8425_v56 = vrot.slane %v14735_v49, 1  ;;  %v8881_v50 = vrot.slane %v14761_v36, 1  ;;  %9569 = vmatpush.bf16.msrb.mxu3 %v14805_v37  ;;  %v14736_v21 = vld [vmem:[#allocation2 + $0x28] sm:$0xff]  ;;  %v14686_v59 = vld [vmem:[#allocation2 + $0x38] sm:$0xff] }
 0x552   : > { %v14680_v42 = vld [vmem:[#allocation2 + $0x8] sm:$0xff]  ;;  %v7873_v4 = vor.u32 %v7871_v13, %v7869_v12  ;;  %v7877_v34 = vrot.slane %v7875_v14, 1  ;;  %v7879_v38 = vshrl.u32 %v14708_v54, 16  ;;  %v7883_v60 = vshll.u32 %v14709_v30, 16  ;;  %v14713_v49 = vld [vmem:[#allocation2 + $0x40] sm:$0xff] }
 0x553   : > { %v14732_v26 = vld [vmem:[#allocation2 + $0x8] sm:$0xff]  ;;  %7583 = vmatmul.bf16.gmra.mxu3 %v14680_v42  ;;  %v8882_v28 = vsel %vm3001_vm0, %v8879_v23, %v8881_v50  ;;  %v14762_v42 = vld [vmem:[#allocation2 + $0x30] sm:$0xff]  ;;  %v7899_v15 = vshll.u32 %v14711_v6, 16  ;;  %v14687_v36 = vld [vmem:[#allocation2 + $0x40] sm:$0xff] }
 0x554   : > { %v13820_v27 = vld [vmem:[#allocation2 + $0x8] sm:$0xe]  ;;  %v8419_v1 = vrot.slane %v14732_v26, 1  ;;  %v7878_v31 = vsel %vm2433_vm1, %v7873_v4, %v7877_v34  ;;  %v7881_v52 = vor.u32 %v7879_v38, %v7877_v34  ;;  %v7885_v33 = vrot.slane %v7883_v60, 1  ;;  %v14739_v34 = vld [vmem:[#allocation2 + $0x40] sm:$0xff] }
 0x555   : > { %v13821_v9 = vor.u32 %v14757_v5, %v13820_v27  ;;  %v14706_v11 = vld [vmem:[#allocation2 + $0x8] sm:$0xff]  ;;  %v8426_v5 = vsel %vm3001_vm0, %v8423_v19, %v8425_v56  ;;  %v7907_v19 = vshll.u32 %v14712_v40, 16 }
 0x556   : > { %v7859_v46 = vshll.u32 %v14706_v11, 16  ;;  %v8420_v35 = vsel %vm3001_vm0, %v8418_v16, %v8419_v1  ;;  %v7863_v43 = vshrl.u32 %v14706_v11, 16  ;;  %v8422_v63 = vsel %vm3001_vm0, %v8419_v1, %v8421_v55  ;;  %v14710_v26 = vld [vmem:[#allocation2 + $0x28] sm:$0xff] }
 0x557   : > { %v8874_v47 = vrot.slane %v13821_v9, 1  ;;  %8529 = vmatmul.bf16.vlgmr.msra.gmra.mxu2 %v8420_v35  ;;  %v7886_v16 = vsel %vm2433_vm1, %v7881_v52, %v7885_v33  ;;  %v14684_v27 = vld [vmem:[#allocation2 + $0x28] sm:$0xff]  ;;  %v8427_v9 = vrot.slane %v14736_v21, 1  ;;  %v7887_v11 = vshrl.u32 %v14709_v30, 16  ;;  %v14766_v21 = vld [vmem:[#allocation2 + $0x50] sm:$0xff] }
 0x558   : > { %v7861_v45 = vrot.slane %v7859_v46, 1  ;;  %v7891_v1 = vshll.u32 %v14710_v26, 16  ;;  %v7895_v55 = vshrl.u32 %v14710_v26, 16  ;;  %v14804_v13 = vld [vmem:[#allocation12 + $0x118] sm:$0xff]  ;;  %v8433_v30 = vrot.slane %v14739_v34, 1 }
 0x559   : > { %v8876_v32 = vsel %vm3001_vm0, %v8874_v47, %v8875_v48  ;;  %v8883_v48 = vrot.slane %v14762_v42, 1  ;;  %v7889_v47 = vor.u32 %v7887_v11, %v7885_v33  ;;  %9570 = vmatpush.bf16.msrb.mxu3 %v14804_v13  ;;  %v14714_v42 = vld [vmem:[#allocation2 + $0x48] sm:$0xff] }
 0x55a   : > { %8985 = vmatmul.bf16.vlgmr.msrb.gmra.mxu0 %v8876_v32  ;;  %v7862_v51 = vsel %vm2433_vm1, %v7857_v39, %v7861_v45  ;;  %v7865_v0 = vor.u32 %v7863_v43, %v7861_v45  ;;  %v8428_v39 = vsel %vm3001_vm0, %v8425_v56, %v8427_v9  ;;  %v7893_v35 = vrot.slane %v7891_v1, 1  ;;  %v14737_v45 = vld [vmem:[#allocation2 + $0x30] sm:$0xff]  ;;  %v14688_v26 = vld [vmem:[#allocation2 + $0x48] sm:$0xff] }
 0x55b   : > { %8073 = vmatmul.bf16.vlgmr.msra.gmra.mxu1 %v7862_v51  ;;  %v8884_v46 = vsel %vm3001_vm0, %v8881_v50, %v8883_v48  ;;  %v14763_v51 = vld [vmem:[#allocation2 + $0x38] sm:$0xff]  ;;  %v8429_v58 = vrot.slane %v14737_v45, 1  ;;  %v7911_v56 = vshrl.u32 %v14712_v40, 16  ;;  %v7915_v50 = vshll.u32 %v14713_v49, 16 }
 0x55c   : > { %v7870_v29 = vsel %vm2433_vm1, %v7865_v0, %v7869_v12  ;;  %v7894_v32 = vsel %vm2433_vm1, %v7889_v47, %v7893_v35  ;;  %v7897_v43 = vor.u32 %v7895_v55, %v7893_v35  ;;  %v14738_v12 = vld [vmem:[#allocation2 + $0x38] sm:$0xff]  ;;  %v7923_v11 = vshll.u32 %v14714_v42, 16 }
 0x55d   : > { %v8430_v18 = vsel %vm3001_vm0, %v8427_v9, %v8429_v58  ;;  %v8431_v22 = vrot.slane %v14738_v12, 1  ;;  %v8891_v9 = vrot.slane %v14766_v21, 1 }
 0x55e   : > { %v7925_v45 = vrot.slane %v7923_v11, 1 }
 0x55f   : > { %v8432_v14 = vsel %vm3001_vm0, %v8429_v58, %v8431_v22  ;;  %v8434_v52 = vsel %vm3001_vm0, %v8431_v22, %v8433_v30 }
 0x563   : > { %7588 = vmatmul.bf16.gmra.mxu3 %v14681_v7  ;;  %v8885_v7 = vrot.slane %v14763_v51, 1 }
 0x565   : > { %v8886_v0 = vsel %vm3001_vm0, %v8883_v48, %v8885_v7  ;;  %v7919_v48 = vshrl.u32 %v14713_v49, 16 }
 0x567   : > { %8534 = vmatmul.bf16.gmra.mxu2 %v8422_v63  ;;  %v7901_v63 = vrot.slane %v7899_v15, 1  ;;  %v14741_v15 = vld [vmem:[#allocation2 + $0x50] sm:$0xff] }
 0x568   : > { %v8437_v40 = vrot.slane %v14741_v15, 1 }
 0x56a   : > { %8990 = vmatmul.bf16.gmra.mxu0 %v8878_v25  ;;  %v7902_v25 = vsel %vm2433_vm1, %v7897_v43, %v7901_v63 }
 0x56b   : > { %8078 = vmatmul.bf16.gmra.mxu1 %v7870_v29  ;;  %v14764_v29 = vld [vmem:[#allocation2 + $0x40] sm:$0xff] }
 0x56c   : > { %v8887_v54 = vrot.slane %v14764_v29, 1  ;;  %v14689_v29 = vld [vmem:[#allocation2 + $0x50] sm:$0xff] }
 0x56e   : > { %v8888_v4 = vsel %vm3001_vm0, %v8885_v7, %v8887_v54 }
 0x573   : > { %7593 = vmatmul.bf16.gmra.mxu3 %v14682_v24  ;;  %v7903_v24 = vshrl.u32 %v14711_v6, 16  ;;  %v14803_v6 = vld [vmem:[#allocation12 + $0x110] sm:$0xff] }
 0x574   : > { %9571 = vmatpush.bf16.msrb.mxu3 %v14803_v6  ;;  %v14802_v6 = vld [vmem:[#allocation12 + $0x108] sm:$0xff] }
 0x575   : > { %v7905_v23 = vor.u32 %v7903_v24, %v7901_v63  ;;  %v14715_v63 = vld [vmem:[#allocation2 + $0x50] sm:$0xff] }
 0x576   : > { %v7931_v24 = vshll.u32 %v14715_v63, 16  ;;  %v7935_v21 = vshrl.u32 %v14715_v63, 16 }
 0x577   : > { %8539 = vmatmul.bf16.gmra.mxu2 %v8424_v53  ;;  %v7909_v53 = vrot.slane %v7907_v19, 1 }
 0x578   : > { %9572 = vmatpush.bf16.msrb.mxu3 %v14802_v6 }
 0x579   : > { %v7913_v60 = vor.u32 %v7911_v56, %v7909_v53 }
 0x57a   : > { %8995 = vmatmul.bf16.gmra.mxu0 %v8880_v41  ;;  %v7910_v41 = vsel %vm2433_vm1, %v7905_v23, %v7909_v53 }
 0x57b   : > { %8083 = vmatmul.bf16.gmra.mxu1 %v7878_v31  ;;  %v14765_v31 = vld [vmem:[#allocation2 + $0x48] sm:$0xff] }
 0x583   : > { %7598 = vmatmul.bf16.gmra.mxu3 %v14683_v3  ;;  %v8889_v3 = vrot.slane %v14765_v31, 1 }
 0x587   : > { %8544 = vmatmul.bf16.gmra.mxu2 %v8426_v5  ;;  %v8890_v5 = vsel %vm3001_vm0, %v8887_v54, %v8889_v3  ;;  %v7927_v54 = vshrl.u32 %v14714_v42, 16 }
 0x589   : > { %v7929_v23 = vor.u32 %v7927_v54, %v7925_v45 }
 0x58a   : > { %9000 = vmatmul.bf16.gmra.mxu0 %v8882_v28  ;;  %v7917_v28 = vrot.slane %v7915_v50, 1 }
 0x58b   : > { %8088 = vmatmul.bf16.gmra.mxu1 %v7886_v16  ;;  %v14740_v16 = vld [vmem:[#allocation2 + $0x48] sm:$0xff] }
 0x58c   : > { %v7918_v33 = vsel %vm2433_vm1, %v7913_v60, %v7917_v28  ;;  %v7921_v47 = vor.u32 %v7919_v48, %v7917_v28  ;;  %v14716_v60 = vld [vmem:[#allocation2 + $0x58] sm:$0xff] }
 0x58d   : > { %v14690_v28 = vld [vmem:[#allocation2 + $0x58] sm:$0xff]  ;;  %v7939_v42 = vshll.u32 %v14716_v60, 16  ;;  %v7943_v54 = vshrl.u32 %v14716_v60, 16 }
 0x593   : > { %7603 = vmatmul.bf16.gmra.mxu3 %v14684_v27  ;;  %v8435_v27 = vrot.slane %v14740_v16, 1 }
 0x595   : > { %v8438_v13 = vsel %vm3001_vm0, %v8435_v27, %v8437_v40 }
 0x597   : > { %8549 = vmatmul.bf16.gmra.mxu2 %v8428_v39  ;;  %v8436_v39 = vsel %vm3001_vm0, %v8433_v30, %v8435_v27 }
 0x59a   : > { %9005 = vmatmul.bf16.gmra.mxu0 %v8884_v46 }
 0x59b   : > { %8093 = vmatmul.bf16.gmra.mxu1 %v7894_v32  ;;  %v8892_v32 = vsel %vm3001_vm0, %v8889_v3, %v8891_v9  ;;  %v14742_v3 = vld [vmem:[#allocation2 + $0x58] sm:$0xff] }
 0x5a3   : > { %7608 = vmatmul.bf16.gmra.mxu3 %v14685_v62  ;;  %v7579_v38 = vpop.f32.mrf.mxu3  ;;  %v7926_v62 = vsel %vm2433_vm1, %v7921_v47, %v7925_v45 }
 0x5a7   : > { %8554 = vmatmul.bf16.gmra.mxu2 %v8430_v18 }
 0x5aa   : > { %9010 = vmatmul.bf16.gmra.mxu0 %v8886_v0  ;;  %v14767_v0 = vld [vmem:[#allocation2 + $0x58] sm:$0xff] }
 0x5ab   : > { %8098 = vmatmul.bf16.gmra.mxu1 %v7902_v25  ;;  %v7581_v37 = vpop.f32.mrf.mxu3  ;;  %v8893_v22 = vrot.slane %v14767_v0, 1 }
 0x5ad   : > { %v8894_v53 = vsel %vm3001_vm0, %v8891_v9, %v8893_v22 }
 0x5b3   : > { %7613 = vmatmul.bf16.gmra.mxu3 %v14686_v59 }
 0x5b7   : > { %8559 = vmatmul.bf16.gmra.mxu2 %v8432_v14 }
 0x5ba   : > { %9015 = vmatmul.bf16.gmra.mxu0 %v8888_v4 }
 0x5bb   : > { %8103 = vmatmul.bf16.gmra.mxu1 %v7910_v41  ;;  %v7933_v41 = vrot.slane %v7931_v24, 1 }
 0x5bd   : > { %v7934_v31 = vsel %vm2433_vm1, %v7929_v23, %v7933_v41  ;;  %v7937_v27 = vor.u32 %v7935_v21, %v7933_v41 }
 0x5c3   : > { %7618 = vmatmul.bf16.gmra.mxu3 %v14687_v36 }
 0x5c7   : > { %8564 = vmatmul.bf16.gmra.mxu2 %v8434_v52 }
 0x5ca   : > { %9020 = vmatmul.bf16.gmra.mxu0 %v8890_v5 }
 0x5cb   : > { %8108 = vmatmul.bf16.gmra.mxu1 %v7918_v33  ;;  %v8439_v33 = vrot.slane %v14742_v3, 1 }
 0x5cd   : > { %v8440_v9 = vsel %vm3001_vm0, %v8437_v40, %v8439_v33 }
 0x5d3   : > { %7623 = vmatmul.bf16.gmra.mxu3 %v14688_v26 }
 0x5d6   : > { %v7584_v35 = vpop.f32.mrf.mxu3 }
 0x5d7   : > { %v19295_v1 = vpop.f32.mrf.mxu0  ;;  %8569 = vmatmul.bf16.gmra.mxu2 %v8436_v39  ;;  %v7941_v39 = vrot.slane %v7939_v42, 1 }
 0x5d8   : > { %v8074_v46 = vpop.f32.mrf.mxu1 }
 0x5d9   : > { %v8200_v51 = vadd.f32 %v8074_v46, %v7579_v38  ;;  %v14768_v38 = vld [vmem:[#allocation2 + $0x60] sm:$0xff] }
 0x5da   : > { %9025 = vmatmul.bf16.gmra.mxu0 %v8892_v32  ;;  %v8530_v58 = vpop.f32.mrf.mxu2 }
 0x5db   : > { %8113 = vmatmul.bf16.gmra.mxu1 %v7926_v62  ;;  %v19300_v7 = vadd.f32 %v8530_v58, %v8200_v51  ;;  %v14743_v62 = vld [vmem:[#allocation2 + $0x60] sm:$0xff] }
 0x5de   : > { %v7586_v18 = vpop.f32.mrf.mxu3 }
 0x5df   : > { %v19302_v55 = vpop.f32.mrf.mxu0 }
 0x5e0   : > { %v8076_v43 = vpop.f32.mrf.mxu1 }
 0x5e1   : > { %v8201_v25 = vadd.f32 %v8076_v43, %v7581_v37  ;;  %v8895_v37 = vrot.slane %v14768_v38, 1  ;;  %v14769_v43 = vld [vmem:[#allocation2 + $0x68] sm:$0xff] }
 0x5e2   : > { %v8532_v12 = vpop.f32.mrf.mxu2 }
 0x5e3   : > { %v19304_v59 = vadd.f32 %v8532_v12, %v8201_v25  ;;  %7628 = vmatmul.bf16.gmra.mxu3 %v14689_v29  ;;  %v8896_v47 = vsel %vm3001_vm0, %v8893_v22, %v8895_v37  ;;  %v14691_v25 = vld [vmem:[#allocation2 + $0x60] sm:$0xff]  ;;  %v8441_v12 = vrot.slane %v14743_v62, 1  ;;  %v19328_v29 = vadd.f32 %v19295_v1, %v19300_v7 }
 0x5e4   : > { %v8897_v22 = vrot.slane %v14769_v43, 1 }
 0x5e6   : > { %v7589_v4 = vpop.f32.mrf.mxu3  ;;  %v8898_v41 = vsel %vm3001_vm0, %v8895_v37, %v8897_v22  ;;  %v14692_v37 = vld [vmem:[#allocation2 + $0x68] sm:$0xff] }
 0x5e7   : > { %v19306_v19 = vpop.f32.mrf.mxu0  ;;  %8574 = vmatmul.bf16.gmra.mxu2 %v8438_v13  ;;  %v7945_v13 = vor.u32 %v7943_v54, %v7941_v39 }
 0x5e8   : > { %v8079_v14 = vpop.f32.mrf.mxu1 }
 0x5e9   : > { %v8202_v34 = vadd.f32 %v8079_v14, %v7584_v35  ;;  %v7942_v35 = vsel %vm2433_vm1, %v7937_v27, %v7941_v39  ;;  %v8442_v14 = vsel %vm3001_vm0, %v8439_v33, %v8441_v12 }
 0x5ea   : > { %9030 = vmatmul.bf16.gmra.mxu0 %v8894_v53  ;;  %v8535_v49 = vpop.f32.mrf.mxu2 }
 0x5eb   : > { %8118 = vmatmul.bf16.gmra.mxu1 %v7934_v31  ;;  %v19311_v36 = vadd.f32 %v8535_v49, %v8202_v34 }
 0x5ee   : > { %v7591_v50 = vpop.f32.mrf.mxu3 }
 0x5ef   : > { %v19313_v30 = vpop.f32.mrf.mxu0 }
 0x5f0   : > { %v8081_v56 = vpop.f32.mrf.mxu1 }
 0x5f1   : > { %v8203_v52 = vadd.f32 %v8081_v56, %v7586_v18  ;;  %v14717_v18 = vld [vmem:[#allocation2 + $0x60] sm:$0xff]  ;;  %v14744_v56 = vld [vmem:[#allocation2 + $0x68] sm:$0xff] }
 0x5f2   : > { %v8537_v5 = vpop.f32.mrf.mxu2  ;;  %v7947_v24 = vshll.u32 %v14717_v18, 16  ;;  %v8443_v21 = vrot.slane %v14744_v56, 1 }
 0x5f3   : > { %v19315_v16 = vadd.f32 %v8537_v5, %v8203_v52  ;;  %7633 = vmatmul.bf16.gmra.mxu3 %v14690_v28  ;;  %v14770_v52 = vld [vmem:[#allocation2 + $0x70] sm:$0xff]  ;;  %v14718_v5 = vld [vmem:[#allocation2 + $0x68] sm:$0xff] }
 0x5f4   : > { %v7949_v34 = vrot.slane %v7947_v24, 1  ;;  %v8899_v27 = vrot.slane %v14770_v52, 1 }
 0x5f6   : > { %v7594_v11 = vpop.f32.mrf.mxu3  ;;  %v7950_v1 = vsel %vm2433_vm1, %v7945_v13, %v7949_v34  ;;  %v19362_v13 = vadd.f32 %v19313_v30, %v19315_v16 }
 0x5f7   : > { %v19317_v26 = vpop.f32.mrf.mxu0  ;;  %8579 = vmatmul.bf16.gmra.mxu2 %v8440_v9  ;;  %v7951_v9 = vshrl.u32 %v14717_v18, 16  ;;  %v14745_v18 = vld [vmem:[#allocation2 + $0x70] sm:$0xff] }
 0x5f8   : > { %v8084_v48 = vpop.f32.mrf.mxu1  ;;  %v8445_v24 = vrot.slane %v14745_v18, 1 }
 0x5f9   : > { %v8204_v46 = vadd.f32 %v8084_v48, %v7589_v4  ;;  %v7955_v48 = vshll.u32 %v14718_v5, 16 }
 0x5fa   : > { %9035 = vmatmul.bf16.gmra.mxu0 %v8896_v47  ;;  %v8540_v32 = vpop.f32.mrf.mxu2  ;;  %v7953_v47 = vor.u32 %v7951_v9, %v7949_v34 }
 0x5fb   : > { %8123 = vmatmul.bf16.gmra.mxu1 %v7942_v35  ;;  %v19322_v45 = vadd.f32 %v8540_v32, %v8204_v46  ;;  %v8900_v35 = vsel %vm3001_vm0, %v8897_v22, %v8899_v27  ;;  %v7957_v32 = vrot.slane %v7955_v48, 1  ;;  %v14693_v22 = vld [vmem:[#allocation2 + $0x70] sm:$0xff]  ;;  %v14720_v48 = vld [vmem:[#allocation2 + $0x78] sm:$0xff] }
 0x5fd   : > { %v7958_v62 = vsel %vm2433_vm1, %v7953_v47, %v7957_v32 }
 0x5fe   : > { %v7596_v15 = vpop.f32.mrf.mxu3 }
 0x5ff   : > { %v19324_v51 = vpop.f32.mrf.mxu0 }
 0x600   : > { %v8086_v58 = vpop.f32.mrf.mxu1 }
 0x601   : > { %v8205_v0 = vadd.f32 %v8086_v58, %v7591_v50  ;;  %v19343_v50 = vadd.f32 %v19302_v55, %v19304_v59  ;;  %v8444_v55 = vsel %vm3001_vm0, %v8441_v12, %v8443_v21  ;;  %v19352_v59 = vadd.f32 %v19306_v19, %v19311_v36  ;;  %v14771_v36 = vld [vmem:[#allocation2 + $0x78] sm:$0xff]  ;;  %v14801_v12 = vld [vmem:[#allocation12 + $0x100] sm:$0xff] }
 0x602   : > { %v8542_v63 = vpop.f32.mrf.mxu2  ;;  %9573 = vmatpush.bf16.msrb.mxu3 %v14801_v12  ;;  %v14860_v12 = vld [vmem:[#allocation12 + $0x1b8] sm:$0xff] }
 0x603   : > { %v19330_v40 = vadd.f32 %v8542_v63, %v8205_v0  ;;  %7638 = vmatmul.bf16.gmra.mxu3 %v14691_v25  ;;  %v14719_v63 = vld [vmem:[#allocation2 + $0x70] sm:$0xff]  ;;  %10478 = vmatpush.bf16.msrb.mxu2 %v14860_v12 }
 0x605   : > { %v19392_v18 = vadd.f32 %v19324_v51, %v19330_v40  ;;  %v14834_v51 = vld [vmem:[#allocation12 + $0x178] sm:$0xff] }
 0x606   : > { %v7599_v53 = vpop.f32.mrf.mxu3  ;;  %10022 = vmatpush.bf16.msrb.mxu1 %v14834_v51  ;;  %v14856_v51 = vld [vmem:[#allocation12 + $0x198] sm:$0xff] }
 0x607   : > { %v19332_v23 = vpop.f32.mrf.mxu0  ;;  %8584 = vmatmul.bf16.gmra.mxu2 %v8442_v14 }
 0x608   : > { %v8089_v4 = vpop.f32.mrf.mxu1 }
 0x609   : > { %v8206_v31 = vadd.f32 %v8089_v4, %v7594_v11  ;;  %v8901_v4 = vrot.slane %v14771_v36, 1 }
 0x60a   : > { %9040 = vmatmul.bf16.gmra.mxu0 %v8898_v41  ;;  %v8545_v7 = vpop.f32.mrf.mxu2  ;;  %v7963_v41 = vshll.u32 %v14719_v63, 16 }
 0x60b   : > { %8128 = vmatmul.bf16.gmra.mxu1 %v7950_v1  ;;  %v19337_v49 = vadd.f32 %v8545_v7, %v8206_v31  ;;  %v8446_v1 = vsel %vm3001_vm0, %v8443_v21, %v8445_v24 }
 0x60e   : > { %v7601_v60 = vpop.f32.mrf.mxu3 }
 0x60f   : > { %v19339_v3 = vpop.f32.mrf.mxu0 }
 0x610   : > { %v8091_v38 = vpop.f32.mrf.mxu1 }
 0x611   : > { %v8207_v28 = vadd.f32 %v8091_v38, %v7596_v15  ;;  %v8902_v38 = vsel %vm3001_vm0, %v8899_v27, %v8901_v4  ;;  %v19381_v27 = vld [vmem:[#allocation2 + $0x80] sm:$0xff] }
 0x612   : > { %v8547_v33 = vpop.f32.mrf.mxu2 }
 0x613   : > { %v19345_v42 = vadd.f32 %v8547_v33, %v8207_v28  ;;  %7643 = vmatmul.bf16.gmra.mxu3 %v14692_v37  ;;  %v19379_v37 = vld [vmem:[#allocation2 + $0x78] sm:$0xff] }
 0x616   : > { %v7604_v46 = vpop.f32.mrf.mxu3 }
 0x617   : > { %v19347_v11 = vpop.f32.mrf.mxu0  ;;  %8589 = vmatmul.bf16.gmra.mxu2 %v8444_v55 }
 0x618   : > { %v8094_v39 = vpop.f32.mrf.mxu1 }
 0x619   : > { %v8208_v6 = vadd.f32 %v8094_v39, %v7599_v53  ;;  %v7959_v53 = vshrl.u32 %v14718_v5, 16  ;;  %v19373_v5 = vadd.f32 %v19317_v26, %v19322_v45  ;;  %v14694_v39 = vld [vmem:[#allocation2 + $0x78] sm:$0xff]  ;;  %v8903_v26 = vrot.slane %v19381_v27, 1 }
 0x61a   : > { %9045 = vmatmul.bf16.gmra.mxu0 %v8900_v35  ;;  %v8550_v58 = vpop.f32.mrf.mxu2  ;;  %v7967_v45 = vshrl.u32 %v14719_v63, 16 }
 0x61b   : > { %8133 = vmatmul.bf16.gmra.mxu1 %v7958_v62  ;;  %v19356_v15 = vadd.f32 %v8550_v58, %v8208_v6  ;;  %v7961_v31 = vor.u32 %v7959_v53, %v7957_v32  ;;  %v7971_v32 = vshll.u32 %v14720_v48, 16  ;;  %v8904_v36 = vsel %vm3001_vm0, %v8901_v4, %v8903_v26  ;;  %v19402_v4 = vld [vmem:[#allocation2 + $0x80] sm:$0xff] }
 0x61e   : > { %v7606_v19 = vpop.f32.mrf.mxu3 }
 0x61f   : > { %v19358_v43 = vpop.f32.mrf.mxu0 }
 0x620   : > { %v8096_v0 = vpop.f32.mrf.mxu1 }
 0x621   : > { %v8209_v25 = vadd.f32 %v8096_v0, %v7601_v60  ;;  %v7965_v60 = vrot.slane %v7963_v41, 1  ;;  %v14859_v41 = vld [vmem:[#allocation12 + $0x1b0] sm:$0xff] }
 0x622   : > { %v8552_v54 = vpop.f32.mrf.mxu2  ;;  %10479 = vmatpush.bf16.msrb.mxu2 %v14859_v41  ;;  %v14882_v41 = vld [vmem:[#allocation12 + $0x1d8] sm:$0xff] }
 0x623   : > { %v19364_v14 = vadd.f32 %v8552_v54, %v8209_v25  ;;  %7648 = vmatmul.bf16.gmra.mxu3 %v14693_v22  ;;  %v7966_v30 = vsel %vm2433_vm1, %v7961_v31, %v7965_v60  ;;  %v7969_v62 = vor.u32 %v7967_v45, %v7965_v60  ;;  %v7973_v25 = vrot.slane %v7971_v32, 1  ;;  %v14886_v54 = vld [vmem:[#allocation12 + $0x1f8] sm:$0xff]  ;;  %v14885_v31 = vld [vmem:[#allocation12 + $0x1f0] sm:$0xff]  ;;  %v14832_v32 = vld [vmem:[#allocation12 + $0x168] sm:$0xff] }
 0x624   : > { %11067 = vmatpush.bf16.msra.mxu0 %v14886_v54  ;;  %v19410_v60 = vld [vmem:[#allocation2 + $0x80] sm:$0xff] }
 0x625   : > { %v7974_v22 = vsel %vm2433_vm1, %v7969_v62, %v7973_v25  ;;  %v7979_v45 = vshll.u32 %v19410_v60, 16 }
 0x626   : > { %v7609_v56 = vpop.f32.mrf.mxu3 }
 0x627   : > { %v19366_v34 = vpop.f32.mrf.mxu0  ;;  %8594 = vmatmul.bf16.gmra.mxu2 %v8446_v1  ;;  %v19406_v1 = vadd.f32 %v19332_v23, %v19337_v49  ;;  %v7975_v49 = vshrl.u32 %v14720_v48, 16 }
 0x628   : > { %v8099_v7 = vpop.f32.mrf.mxu1  ;;  %11068 = vmatpush.bf16.msra.mxu0 %v14885_v31 }
 0x629   : > { %v8210_v52 = vadd.f32 %v8099_v7, %v7604_v46  ;;  %v8447_v46 = vrot.slane %v19379_v37, 1  ;;  %v14884_v37 = vld [vmem:[#allocation12 + $0x1e8] sm:$0xff]  ;;  %v7977_v62 = vor.u32 %v7975_v49, %v7973_v25  ;;  %v19444_v49 = vld [vmem:[#allocation2 + $0x88] sm:$0xff] }
 0x62a   : > { %9050 = vmatmul.bf16.gmra.mxu0 %v8902_v38  ;;  %v8555_v16 = vpop.f32.mrf.mxu2  ;;  %v19408_v38 = vld [vmem:[#allocation2 + $0x88] sm:$0xff] }
 0x62b   : > { %8138 = vmatmul.bf16.gmra.mxu1 %v7966_v30  ;;  %v19375_v28 = vadd.f32 %v8555_v16, %v8210_v52  ;;  %v8448_v58 = vsel %vm3001_vm0, %v8445_v24, %v8447_v46  ;;  %v14833_v30 = vld [vmem:[#allocation12 + $0x170] sm:$0xff]  ;;  %v14858_v16 = vld [vmem:[#allocation12 + $0x1a8] sm:$0xff]  ;;  %v8905_v23 = vrot.slane %v19408_v38, 1 }
 0x62c   : > { %10023 = vmatpush.bf16.msrb.mxu1 %v14833_v30  ;;  %10480 = vmatpush.bf16.msrb.mxu2 %v14858_v16  ;;  %v14881_v30 = vld [vmem:[#allocation12 + $0x1d0] sm:$0xff]  ;;  %v19438_v16 = vld [vmem:[#allocation2 + $0x88] sm:$0xff] }
 0x62d   : > { %11069 = vmatpush.bf16.msra.mxu0 %v14884_v37  ;;  %v8906_v48 = vsel %vm3001_vm0, %v8903_v26, %v8905_v23  ;;  %v14830_v26 = vld [vmem:[#allocation12 + $0x158] sm:$0xff]  ;;  %v19440_v37 = vld [vmem:[#allocation2 + $0x90] sm:$0xff] }
 0x62e   : > { %v7611_v9 = vpop.f32.mrf.mxu3 }
 0x62f   : > { %v19377_v33 = vpop.f32.mrf.mxu0 }
 0x630   : > { %v8101_v21 = vpop.f32.mrf.mxu1  ;;  %10024 = vmatpush.bf16.msrb.mxu1 %v14832_v32  ;;  %v14854_v32 = vld [vmem:[#allocation12 + $0x188] sm:$0xff] }
 0x631   : > { %v8211_v47 = vadd.f32 %v8101_v21, %v7606_v19 }
 0x632   : > { %v8557_v55 = vpop.f32.mrf.mxu2 }
 0x633   : > { %v19384_v35 = vadd.f32 %v8557_v55, %v8211_v47  ;;  %7653 = vmatmul.bf16.gmra.mxu3 %v14694_v39  ;;  %v14695_v47 = vld [vmem:[#allocation2 + $0x80] sm:$0xff]  ;;  %v8449_v55 = vrot.slane %v19402_v4, 1 }
 0x636   : > { %v7614_v19 = vpop.f32.mrf.mxu3 }
 0x637   : > { %v19387_v6 = vpop.f32.mrf.mxu0  ;;  %8599 = vmatmul.bf16.gmra.mxu2 %v8448_v58  ;;  %v14857_v58 = vld [vmem:[#allocation12 + $0x1a0] sm:$0xff] }
 0x638   : > { %v8104_v0 = vpop.f32.mrf.mxu1  ;;  %10481 = vmatpush.bf16.msrb.mxu2 %v14857_v58 }
 0x639   : > { %v8212_v63 = vadd.f32 %v8104_v0, %v7609_v56  ;;  %v14883_v0 = vld [vmem:[#allocation12 + $0x1e0] sm:$0xff] }
 0x63a   : > { %9055 = vmatmul.bf16.gmra.mxu0 %v8904_v36  ;;  %v8560_v24 = vpop.f32.mrf.mxu2  ;;  %v14912_v36 = vld [vmem:[#allocation12 + $0x238] sm:$0xff] }
 0x63b   : > { %8143 = vmatmul.bf16.gmra.mxu1 %v7974_v22  ;;  %v19398_v53 = vadd.f32 %v8560_v24, %v8212_v63  ;;  %v8450_v63 = vsel %vm3001_vm0, %v8447_v46, %v8449_v55  ;;  %v7981_v22 = vrot.slane %v7979_v45, 1  ;;  %11070 = vmatpush.bf16.msra.mxu0 %v14883_v0  ;;  %v14831_v24 = vld [vmem:[#allocation12 + $0x160] sm:$0xff]  ;;  %v14829_v45 = vld [vmem:[#allocation12 + $0x150] sm:$0xff] }
 0x63c   : > { %11523 = vmatpush.bf16.msra.mxu3 %v14912_v36  ;;  %10025 = vmatpush.bf16.msrb.mxu1 %v14831_v24  ;;  %v14696_v0 = vld [vmem:[#allocation2 + $0x88] sm:$0xff]  ;;  %v8451_v36 = vrot.slane %v19438_v16, 1  ;;  %v14911_v16 = vld [vmem:[#allocation12 + $0x230] sm:$0xff] }
 0x63d   : > { %v7982_v46 = vsel %vm2433_vm1, %v7977_v62, %v7981_v22  ;;  %10482 = vmatpush.bf16.msrb.mxu2 %v14856_v51  ;;  %v14880_v62 = vld [vmem:[#allocation12 + $0x1c8] sm:$0xff]  ;;  %v7987_v51 = vshll.u32 %v19444_v49, 16 }
 0x63e   : > { %v7616_v56 = vpop.f32.mrf.mxu3 }
 0x63f   : > { %v19400_v40 = vpop.f32.mrf.mxu0  ;;  %11071 = vmatpush.bf16.msra.mxu0 %v14882_v41 }
 0x640   : > { %v8106_v7 = vpop.f32.mrf.mxu1  ;;  %10026 = vmatpush.bf16.msrb.mxu1 %v14830_v26  ;;  %11524 = vmatpush.bf16.msra.mxu3 %v14911_v16  ;;  %v19505_v16 = vld [vmem:[#allocation2 + $0x10] sm:$0xff] }
 0x641   : > { %v8213_v52 = vadd.f32 %v8106_v7, %v7611_v9  ;;  %v19432_v7 = vadd.f32 %v19339_v3, %v19345_v42  ;;  %v14783_v3 = vld [vmem:[#allocation2 + $0x8] sm:$0xf0] }
 0x642   : > { %v8562_v21 = vpop.f32.mrf.mxu2 }
 0x643   : > { %v19413_v39 = vadd.f32 %v8562_v21, %v8213_v52  ;;  %7658 = vmatmul.bf16.gmra.mxu3 %v14695_v47  ;;  %v14855_v52 = vld [vmem:[#allocation12 + $0x190] sm:$0xff]  ;;  %11072 = vmatpush.bf16.msra.mxu0 %v14881_v30  ;;  %v14879_v30 = vld [vmem:[#allocation12 + $0x1c0] sm:$0xff] }
 0x644   : > { %10483 = vmatpush.bf16.msrb.mxu2 %v14855_v52  ;;  %10027 = vmatpush.bf16.msrb.mxu1 %v14829_v45  ;;  %v14853_v52 = vld [vmem:[#allocation12 + $0x180] sm:$0xff]  ;;  %v7989_v45 = vrot.slane %v7987_v51, 1 }
 0x646   : > { %v19422_v54 = vpop.f32.mrf.mxu3 }
 0x647   : > { %v19417_v9 = vpop.f32.mrf.mxu0  ;;  %8604 = vmatmul.bf16.gmra.mxu2 %v8450_v63  ;;  %v20723_v63 = vrot.slane %v19440_v37, 1  ;;  %11073 = vmatpush.bf16.msra.mxu0 %v14880_v62 }
 0x648   : > { %v8109_v12 = vpop.f32.mrf.mxu1  ;;  %10484 = vmatpush.bf16.msrb.mxu2 %v14854_v32 }
 0x649   : > { %v8214_v25 = vadd.f32 %v8109_v12, %v7614_v19  ;;  %v13924_v12 = vld [vmem:[#allocation2 + $0x8] sm:$0xe] }
 0x64a   : > { %9060 = vmatmul.bf16.gmra.mxu0 %v8906_v48  ;;  %v8565_v31 = vpop.f32.mrf.mxu2  ;;  %v14784_v48 = vld [vmem:[#allocation2 + $0x10] sm:$0xff]  ;;  %v13925_v41 = vor.u32 %v14783_v3, %v13924_v12 }
 0x64b   : > { %8148 = vmatmul.bf16.gmra.mxu1 %v7982_v46  ;;  %v19434_v27 = vadd.f32 %v8565_v31, %v8214_v25  ;;  %v19450_v25 = vadd.f32 %v19347_v11, %v19356_v15  ;;  %v14828_v46 = vld [vmem:[#allocation12 + $0x148] sm:$0xff]  ;;  %v8452_v11 = vsel %vm3001_vm0, %v8449_v55, %v8451_v36  ;;  %v9339_v15 = vshrl.u32 %v14784_v48, 16  ;;  %11074 = vmatpush.bf16.msra.mxu0 %v14879_v30 }
 0x64c   : > { %v9331_v32 = vshrl.u32 %v13925_v41, 16  ;;  %v9334_v62 = vshll.u32 %v13925_v41, 16  ;;  %10028 = vmatpush.bf16.msrb.mxu1 %v14828_v46  ;;  %v8764_v55 = vld [vmem:[#allocation2 + $0x98] sm:$0x1]  ;;  %10485 = vmatpush.bf16.msrb.mxu2 %v14853_v52 }
 0x64d   : > { %v9341_v38 = vrot.slane %v9339_v15, 1  ;;  %v8854_v46 = vunpack.c.l.b16 %v8764_v55  ;;  %v14785_v55 = vld [vmem:[#allocation2 + $0x18] sm:$0xff] }
 0x64e   : > { %v19442_v47 = vpop.f32.mrf.mxu3  ;;  %v9333_v41 = vrot.slane %v9331_v32, 1 }
 0x64f   : > { %v19436_v19 = vpop.f32.mrf.mxu0 }
 0x650   : > { %v8111_v21 = vpop.f32.mrf.mxu1 }
 0x651   : > { %v8215_v42 = vadd.f32 %v8111_v21, %v7616_v56  ;;  %v7983_v56 = vshrl.u32 %v19410_v60, 16  ;;  %v9342_v60 = vshll.u32 %v14784_v48, 16  ;;  %v7741_v21 = vld [vmem:[#allocation2 + $0x90] sm:$0x1] }
 0x652   : > { %v8567_v58 = vpop.f32.mrf.mxu2  ;;  %v7831_v48 = vunpack.c.l.b16 %v7741_v21 }
 0x653   : > { %v19452_v24 = vadd.f32 %v8567_v58, %v8215_v42  ;;  %7663 = vmatmul.bf16.gmra.mxu3 %v14696_v0  ;;  %v7985_v26 = vor.u32 %v7983_v56, %v7981_v22  ;;  %v8908_v22 = vsel %vm3001_vm0, %v8905_v23, %v20723_v63  ;;  %v8308_v58 = vld [vmem:[#allocation2 + $0x90] sm:$0x1]  ;;  %v9336_v63 = vrot.slane %v9334_v62, 2 }
 0x654   : > { %v14827_v0 = vld [vmem:[#allocation12 + $0x140] sm:$0xff]  ;;  %v8398_v23 = vunpack.c.l.b16 %v8308_v58 }
 0x655   : > { %v7990_v12 = vsel %vm2433_vm1, %v7985_v26, %v7989_v45  ;;  %10029 = vmatpush.bf16.msrb.mxu1 %v14827_v0  ;;  %v19476_v26 = vadd.f32 %v19358_v43, %v19364_v14  ;;  %v7991_v43 = vshrl.u32 %v19444_v49, 16  ;;  %v14236_v14 = vld [vmem:[#allocation2 + $0x10] sm:$0xc] }
 0x656   : > { %v7624_v42 = vpop.f32.mrf.mxu3  ;;  %v8417_v52 = vpack.c.b16 %v8398_v23, %v8398_v23  ;;  %v9348_v23 = vshrl.u32 %v14785_v55, 16 }
 0x657   : > { %v19456_v31 = vpop.f32.mrf.mxu0  ;;  %8609 = vmatmul.bf16.gmra.mxu2 %v8452_v11  ;;  %v9344_v11 = vrot.slane %v9342_v60, 2  ;;  %v8873_v60 = vpack.c.b16 %v8854_v46, %v8854_v46  ;;  %v14862_v46 = vld [vmem:[#allocation2 + $0x18] sm:$0xff] }
 0x658   : > { %v8114_v3 = vpop.f32.mrf.mxu1 }
 0x659   : > { %v8216_v4 = vadd.f32 %v8114_v3, %v19422_v54  ;;  %v7850_v3 = vpack.c.b16 %v7831_v48, %v7831_v48  ;;  %v19478_v15 = vor.u32 %v9344_v11, %v9341_v38  ;;  %v8909_v48 = vrot.slane %v8873_v60, 1 }
 0x65a   : > { %9065 = vmatmul.bf16.gmra.mxu0 %v8908_v22  ;;  %v8570_v56 = vpop.f32.mrf.mxu2  ;;  %v9337_v22 = vor.u32 %v9336_v63, %v9333_v41  ;;  %v14861_v63 = vld [vmem:[#allocation2 + $0x10] sm:$0xf0]  ;;  %v9351_v41 = vshll.u32 %v14785_v55, 16 }
 0x65b   : > { %8153 = vmatmul.bf16.gmra.mxu1 %v7990_v12  ;;  %v19470_v51 = vadd.f32 %v8570_v56, %v8216_v4  ;;  %v7995_v32 = vshll.u32 %v7850_v3, 16  ;;  %v8453_v4 = vrot.slane %v8417_v52, 1  ;;  %v7993_v56 = vor.u32 %v7991_v43, %v7989_v45  ;;  %v14835_v55 = vld [vmem:[#allocation2 + $0x10] sm:$0xf0] }
 0x65c   : > { %v9346_v12 = vsel %vm3914_vm2, %v9337_v22, %v19478_v15  ;;  %v19493_v3 = vadd.f32 %v19366_v34, %v19375_v28  ;;  %v14237_v22 = vor.u32 %v14861_v63, %v14236_v14  ;;  %v10840_v34 = vshrl.u32 %v14862_v46, 16  ;;  %v19501_v14 = vld [vmem:[#allocation2 + $0x18] sm:$0xff]  ;;  %v14809_v63 = vld [vmem:[#allocation2 + $0x8] sm:$0xf0] }
 0x65d   : > { %v7997_v38 = vrot.slane %v7995_v32, 1  ;;  %v9350_v32 = vrot.slane %v9348_v23, 1  ;;  %v10843_v43 = vshll.u32 %v14862_v46, 16 }
 0x65e   : > { %v7626_v21 = vpop.f32.mrf.mxu3  ;;  %v10842_v23 = vrot.slane %v10840_v34, 2 }
 0x65f   : > { %v19472_v54 = vpop.f32.mrf.mxu0 }
 0x660   : > { %v8116_v30 = vpop.f32.mrf.mxu1 }
 0x661   : > { %v8217_v58 = vadd.f32 %v8116_v30, %v19442_v47  ;;  %v8454_v47 = vsel %vm3001_vm0, %v8451_v36, %v8453_v4  ;;  %v21218_v30 = vrot.slane %v19440_v37, 1  ;;  %v7998_v36 = vsel %vm2433_vm1, %v7993_v56, %v7997_v38  ;;  %v14132_v4 = vld [vmem:[#allocation2 + $0x10] sm:$0xc] }
 0x662   : > { %v8572_v62 = vpop.f32.mrf.mxu2  ;;  %v10835_v37 = vshll.u32 %v14237_v22, 16 }
 0x663   : > { %v19481_v0 = vadd.f32 %v8572_v62, %v8217_v58  ;;  %9574 = vmatmul.bf16.vlgmr.msrb.gmra.mxu3 %v9346_v12  ;;  %v8910_v45 = vsel %vm3001_vm0, %v21218_v30, %v8909_v48  ;;  %v9353_v62 = vrot.slane %v9351_v41, 2  ;;  %v10832_v12 = vshrl.u32 %v14237_v22, 16 }
 0x664   : > { %v10845_v41 = vrot.slane %v10843_v43, 3  ;;  %vm21219_vm0 = vsmask.f32 5376 }
 0x665   : > { %v9354_v48 = vor.u32 %v9353_v62, %v9350_v32  ;;  %v10834_v38 = vrot.slane %v10832_v12, 2  ;;  %v19510_v32 = vadd.f32 %v19377_v33, %v19384_v35  ;;  %vm21220_vm1 = vmmov %vm21219_vm0 }
 0x666   : > { %v7629_v49 = vpop.f32.mrf.mxu3  ;;  %vm21221_vm10 = vmmov %vm21219_vm0 }
 0x667   : > { %v19486_v11 = vpop.f32.mrf.mxu0  ;;  %8614 = vmatmul.bf16.gmra.mxu2 %v8454_v47  ;;  %vm21225_vm11 = vmmov %vm21219_vm0 }
 0x668   : > { %v8119_v52 = vpop.f32.mrf.mxu1  ;;  %vm21230_vm14 = vmmov %vm21219_vm0 }
 0x669   : > { %v8218_v60 = vadd.f32 %v8119_v52, %v7624_v42  ;;  %v14133_v42 = vor.u32 %v14835_v55, %v14132_v4  ;;  %v10837_v52 = vrot.slane %v10835_v37, 3  ;;  %v9355_v4 = vsel %vm3914_vm2, %v19478_v15, %v9354_v48  ;;  %vm21234_vm9 = vmmov %vm21219_vm0 }
 0x66a   : > { %9070 = vmatmul.bf16.gmra.mxu0 %v8910_v45  ;;  %v8575_v58 = vpop.f32.mrf.mxu2  ;;  %v10846_v55 = vor.u32 %v10845_v41, %v10842_v23  ;;  %v9920_v37 = vrot.slane %v19505_v16, 2  ;;  %v19524_v41 = vadd.f32 %v19387_v6, %v19398_v53  ;;  %vm21239_vm3 = vmmov %vm21219_vm0 }
 0x66b   : > { %8158 = vmatmul.bf16.gmra.mxu1 %v7998_v36  ;;  %v19499_v28 = vadd.f32 %v8575_v58, %v8218_v60  ;;  %v14028_v60 = vld [vmem:[#allocation2 + $0x8] sm:$0xc]  ;;  %v10375_v46 = vrot.slane %v14133_v42, 2  ;;  %v10376_v58 = vrot.slane %v19501_v14, 2  ;;  %v10838_v34 = vor.u32 %v10837_v52, %v10834_v38  ;;  %v14863_v42 = vld [vmem:[#allocation2 + $0x20] sm:$0xff]  ;;  %vm21243_vm15 = vmmov %vm21219_vm0 }
 0x66c   : > { %v14029_v36 = vor.u32 %v14809_v63, %v14028_v60  ;;  %v10849_v23 = vshrl.u32 %v14863_v42, 16  ;;  %vm21245_vm13 = vmmov %vm21219_vm0 }
 0x66d   : > { %v10377_v43 = vsel %vm4504_vm4, %v10375_v46, %v10376_v58  ;;  %v10847_v33 = vsel %vm21219_vm0, %v10838_v34, %v10846_v55  ;;  %v14837_v46 = vld [vmem:[#allocation2 + $0x20] sm:$0xff]  ;;  %vm21248_vm12 = vmmov %vm21219_vm0 }
 0x66e   : > { %v7631_v56 = vpop.f32.mrf.mxu3  ;;  %v9919_v12 = vrot.slane %v14029_v36, 2  ;;  %vm21251_vm6 = vmmov %vm21219_vm0 }
 0x66f   : > { %v19503_v30 = vpop.f32.mrf.mxu0  ;;  %vm21253_vm7 = vmmov %vm21219_vm0 }
 0x670   : > { %v8121_v47 = vpop.f32.mrf.mxu1  ;;  %v9921_v15 = vsel %vm4504_vm4, %v9919_v12, %v9920_v37  ;;  %vm21256_vm8 = vmmov %vm21219_vm0 }
 0x671   : > { %v8219_v45 = vadd.f32 %v8121_v47, %v7626_v21  ;;  %v14786_v21 = vld [vmem:[#allocation2 + $0x20] sm:$0xff] }
 0x672   : > { %v8577_v22 = vpop.f32.mrf.mxu2  ;;  %v9357_v35 = vshrl.u32 %v14786_v21, 16  ;;  %v9360_v47 = vshll.u32 %v14786_v21, 16  ;;  %v10851_v21 = vrot.slane %v10849_v23, 2 }
 0x673   : > { %v19512_v62 = vadd.f32 %v8577_v22, %v8219_v45  ;;  %9579 = vmatmul.bf16.gmra.mxu3 %v9355_v4  ;;  %v10852_v22 = vshll.u32 %v14863_v42, 16 }
 0x674   : > { %v9359_v16 = vrot.slane %v9357_v35, 1  ;;  %v9362_v36 = vrot.slane %v9360_v47, 2  ;;  %v14864_v47 = vld [vmem:[#allocation2 + $0x28] sm:$0xff] }
 0x675   : > { %v10854_v12 = vrot.slane %v10852_v22, 3 }
 0x676   : > { %v7634_v63 = vpop.f32.mrf.mxu3  ;;  %v9363_v34 = vor.u32 %v9362_v36, %v9359_v16 }
 0x677   : > { %10486 = vmatmul.bf16.vlgmr.msrb.gmra.mxu2 %v10377_v43  ;;  %v19520_v38 = vpop.f32.mrf.mxu0  ;;  %v10855_v53 = vor.u32 %v10854_v12, %v10851_v21  ;;  %v10858_v21 = vshrl.u32 %v14864_v47, 16 }
 0x678   : > { %v8124_v14 = vpop.f32.mrf.mxu1  ;;  %v9364_v6 = vsel %vm3914_vm2, %v9354_v48, %v9363_v34 }
 0x679   : > { %v8220_v45 = vadd.f32 %v8124_v14, %v7629_v49  ;;  %v14811_v14 = vld [vmem:[#allocation2 + $0x18] sm:$0xff] }
 0x67a   : > { %11075 = vmatmul.bf16.vlgmr.msra.gmra.mxu0 %v10847_v33  ;;  %v8580_v52 = vpop.f32.mrf.mxu2  ;;  %v9922_v42 = vrot.slane %v14811_v14, 2 }
 0x67b   : > { %10030 = vmatmul.bf16.vlgmr.msrb.gmra.mxu1 %v9921_v15  ;;  %v19526_v60 = vadd.f32 %v8580_v52, %v8220_v45  ;;  %v10378_v15 = vrot.slane %v14837_v46, 2  ;;  %v14787_v45 = vld [vmem:[#allocation2 + $0x28] sm:$0xff] }
 0x67c   : > { %v9366_v36 = vshrl.u32 %v14787_v45, 16  ;;  %v9369_v22 = vshll.u32 %v14787_v45, 16  ;;  %v9923_v48 = vsel %vm4504_vm4, %v9920_v37, %v9922_v42  ;;  %v10860_v45 = vrot.slane %v10858_v21, 2  ;;  %v14812_v37 = vld [vmem:[#allocation2 + $0x20] sm:$0xff] }
 0x67d   : > { %v10379_v35 = vsel %vm4504_vm4, %v10376_v58, %v10378_v15  ;;  %v10861_v58 = vshll.u32 %v14864_v47, 16  ;;  %v14788_v47 = vld [vmem:[#allocation2 + $0x30] sm:$0xff] }
 0x67e   : > { %v7636_v49 = vpop.f32.mrf.mxu3  ;;  %v9371_v14 = vrot.slane %v9369_v22, 2 }
 0x67f   : > { %v19531_v52 = vpop.f32.mrf.mxu0 }
 0x680   : > { %v8126_v4 = vpop.f32.mrf.mxu1 }
 0x681   : > { %v8221_v43 = vadd.f32 %v8126_v4, %v7631_v56  ;;  %v10856_v56 = vsel %vm21220_vm1, %v10846_v55, %v10855_v53  ;;  %vm21258_vm1 = vmmov %vm21219_vm0 }
 0x682   : > { %v8582_v33 = vpop.f32.mrf.mxu2 }
 0x683   : > { %v19528_v17 = vadd.f32 %v8582_v33, %v8221_v43  ;;  %9584 = vmatmul.bf16.gmra.mxu3 %v9364_v6  ;;  %v9368_v43 = vrot.slane %v9366_v36, 1  ;;  %v14910_v33 = vld [vmem:[#allocation12 + $0x228] sm:$0xff] }
 0x684   : > { %11525 = vmatpush.bf16.msra.mxu3 %v14910_v33 }
 0x685   : > { %v9372_v10 = vor.u32 %v9371_v14, %v9368_v43 }
 0x686   : > { %v7639_v23 = vpop.f32.mrf.mxu3 }
 0x687   : > { %10491 = vmatmul.bf16.gmra.mxu2 %v10379_v35  ;;  %v19538_v6 = vpop.f32.mrf.mxu0  ;;  %v14838_v35 = vld [vmem:[#allocation2 + $0x28] sm:$0xff]  ;;  %v9373_v36 = vsel %vm3914_vm2, %v9363_v34, %v9372_v10 }
 0x688   : > { %v8129_v16 = vpop.f32.mrf.mxu1 }
 0x689   : > { %v8222_v46 = vadd.f32 %v8129_v16, %v7634_v63  ;;  %v10863_v63 = vrot.slane %v10861_v58, 3 }
 0x68a   : > { %11080 = vmatmul.bf16.gmra.mxu0 %v10856_v56  ;;  %v8585_v4 = vpop.f32.mrf.mxu2 }
 0x68b   : > { %10035 = vmatmul.bf16.gmra.mxu1 %v9923_v48  ;;  %v19536_v12 = vadd.f32 %v8585_v4, %v8222_v46  ;;  %v10380_v48 = vrot.slane %v14838_v35, 2  ;;  %v10864_v22 = vor.u32 %v10863_v63, %v10860_v45  ;;  %v9924_v46 = vrot.slane %v14812_v37, 2  ;;  %v14839_v37 = vld [vmem:[#allocation2 + $0x30] sm:$0xff] }
 0x68c   : > { %v10867_v35 = vshrl.u32 %v14865_v2, 16 }
 0x68d   : > { %v10381_v4 = vsel %vm4504_vm4, %v10378_v15, %v10380_v48  ;;  %v10865_v21 = vsel %vm21221_vm10, %v10855_v53, %v10864_v22  ;;  %v9925_v34 = vsel %vm4504_vm4, %v9922_v42, %v9924_v46  ;;  %v10382_v42 = vrot.slane %v14839_v37, 2  ;;  %vm21260_vm10 = vmmov %vm21219_vm0 }
 0x68e   : > { %v7641_v55 = vpop.f32.mrf.mxu3 }
 0x68f   : > { %v19545_v14 = vpop.f32.mrf.mxu0 }
 0x690   : > { %v8131_v57 = vpop.f32.mrf.mxu1 }
 0x691   : > { %v8223_v16 = vadd.f32 %v8131_v57, %v7636_v49  ;;  %v9375_v57 = vshrl.u32 %v14788_v47, 16  ;;  %v9378_v49 = vshll.u32 %v14788_v47, 16 }
 0x692   : > { %v8587_v56 = vpop.f32.mrf.mxu2 }
 0x693   : > { %v19540_v61 = vadd.f32 %v8587_v56, %v8223_v16  ;;  %9589 = vmatmul.bf16.gmra.mxu3 %v9373_v36  ;;  %v9377_v15 = vrot.slane %v9375_v57, 1  ;;  %v9380_v63 = vrot.slane %v9378_v49, 2  ;;  %v10870_v16 = vshll.u32 %v14865_v2, 16  ;;  %v14789_v57 = vld [vmem:[#allocation2 + $0x38] sm:$0xff] }
 0x694   : > { %v9926_v2 = vrot.slane %v14813_v44, 2  ;;  %v10383_v49 = vsel %vm4504_vm4, %v10380_v48, %v10382_v42 }
 0x695   : > { %v9381_v53 = vor.u32 %v9380_v63, %v9377_v15  ;;  %v10872_v47 = vrot.slane %v10870_v16, 3  ;;  %v9384_v63 = vshrl.u32 %v14789_v57, 16  ;;  %v9387_v16 = vshll.u32 %v14789_v57, 16 }
 0x696   : > { %v7644_v43 = vpop.f32.mrf.mxu3 }
 0x697   : > { %10496 = vmatmul.bf16.gmra.mxu2 %v10381_v4  ;;  %v10869_v4 = vrot.slane %v10867_v35, 2  ;;  %v9386_v44 = vrot.slane %v9384_v63, 1 }
 0x698   : > { %v8134_v20 = vpop.f32.mrf.mxu1 }
 0x699   : > { %v8224_v58 = vadd.f32 %v8134_v20, %v7639_v23  ;;  %v19550_v20 = vpop.f32.mrf.mxu0 }
 0x69a   : > { %11085 = vmatmul.bf16.gmra.mxu0 %v10865_v21  ;;  %v8590_v33 = vpop.f32.mrf.mxu2  ;;  %21223 = vst [vmem:[#allocation47_spill] sm:$0xff] %v19550_v20 }
 0x69b   : > { %10040 = vmatmul.bf16.gmra.mxu1 %v9925_v34  ;;  %v19548_v45 = vadd.f32 %v8590_v33, %v8224_v58  ;;  %v9382_v58 = vsel %vm3914_vm2, %v9372_v10, %v9381_v53  ;;  %v10873_v34 = vor.u32 %v10872_v47, %v10869_v4  ;;  %v14866_v33 = vld [vmem:[#allocation2 + $0x38] sm:$0xff]  ;;  %v9389_v47 = vrot.slane %v9387_v16, 2 }
 0x69c   : > { %v10876_v37 = vshrl.u32 %v14866_v33, 16  ;;  %v10879_v48 = vshll.u32 %v14866_v33, 16  ;;  %v14790_v33 = vld [vmem:[#allocation2 + $0x40] sm:$0xff] }
 0x69d   : > { %21222 = vst [vmem:[#allocation43_spill] sm:$0xff] %v19548_v45 }
 0x69e   : > { %v7646_v36 = vpop.f32.mrf.mxu3  ;;  %v10878_v20 = vrot.slane %v10876_v37, 2  ;;  %v10881_v57 = vrot.slane %v10879_v48, 3  ;;  %v14867_v37 = vld [vmem:[#allocation2 + $0x40] sm:$0xff] }
 0x6a0   : > { %v8136_v56 = vpop.f32.mrf.mxu1  ;;  %v10882_v16 = vor.u32 %v10881_v57, %v10878_v20  ;;  %v10885_v57 = vshrl.u32 %v14867_v37, 16 }
 0x6a1   : > { %v8225_v8 = vadd.f32 %v8136_v56, %v7641_v55  ;;  %v10874_v55 = vsel %vm21225_vm11, %v10864_v22, %v10873_v34  ;;  %v9390_v22 = vor.u32 %v9389_v47, %v9386_v44  ;;  %vm21261_vm11 = vmmov %vm21219_vm0 }
 0x6a2   : > { %v8592_v23 = vpop.f32.mrf.mxu2  ;;  %v10883_v48 = vsel %vm21230_vm14, %v10873_v34, %v10882_v16 }
 0x6a3   : > { %v19552_v21 = vadd.f32 %v8592_v23, %v8225_v8  ;;  %9594 = vmatmul.bf16.gmra.mxu3 %v9382_v58  ;;  %v9927_v8 = vsel %vm4504_vm4, %v9924_v46, %v9926_v2  ;;  %v19560_v23 = vpop.f32.mrf.mxu0  ;;  %v14840_v58 = vld [vmem:[#allocation2 + $0x38] sm:$0xff]  ;;  %v9391_v63 = vsel %vm3914_vm2, %v9381_v53, %v9390_v22 }
 0x6a4   : > { %21227 = vst [vmem:[#allocation46_spill] sm:$0xff] %v19560_v23 }
 0x6a5   : > { %21224 = vst [vmem:[#allocation44_spill] sm:$0xff] %v19552_v21 }
 0x6a6   : > { %v7649_v35 = vpop.f32.mrf.mxu3 }
 0x6a7   : > { %10501 = vmatmul.bf16.gmra.mxu2 %v10383_v49 }
 0x6a8   : > { %v8139_v15 = vpop.f32.mrf.mxu1 }
 0x6a9   : > { %v8226_v56 = vadd.f32 %v8139_v15, %v7644_v43  ;;  %v14909_v15 = vld [vmem:[#allocation12 + $0x220] sm:$0xff] }
 0x6aa   : > { %11090 = vmatmul.bf16.gmra.mxu0 %v10874_v55  ;;  %v8595_v10 = vpop.f32.mrf.mxu2  ;;  %v14814_v55 = vld [vmem:[#allocation2 + $0x30] sm:$0xff]  ;;  %11526 = vmatpush.bf16.msra.mxu3 %v14909_v15 }
 0x6ab   : > { %10045 = vmatmul.bf16.gmra.mxu1 %v9927_v8  ;;  %v19558_v4 = vadd.f32 %v8595_v10, %v8226_v56  ;;  %v10384_v8 = vrot.slane %v14840_v58, 2  ;;  %v9928_v56 = vrot.slane %v14814_v55, 2  ;;  %v19565_v10 = vpop.f32.mrf.mxu0  ;;  %v9393_v58 = vshrl.u32 %v14790_v33, 16 }
 0x6ac   : > { %21229 = vst [vmem:[#allocation76_spill] sm:$0xff] %v19565_v10 }
 0x6ad   : > { %21226 = vst [vmem:[#allocation50_spill] sm:$0xff] %v19558_v4  ;;  %v10385_v44 = vsel %vm4504_vm4, %v10382_v42, %v10384_v8  ;;  %v9929_v53 = vsel %vm4504_vm4, %v9926_v2, %v9928_v56  ;;  %v9395_v55 = vrot.slane %v9393_v58, 1  ;;  %v10888_v42 = vshll.u32 %v14867_v37, 16  ;;  %v14791_v58 = vld [vmem:[#allocation2 + $0x48] sm:$0xff] }
 0x6ae   : > { %v7651_v21 = vpop.f32.mrf.mxu3  ;;  %v10887_v4 = vrot.slane %v10885_v57, 2 }
 0x6af   : > { %v10890_v34 = vrot.slane %v10888_v42, 3 }
 0x6b0   : > { %v8141_v49 = vpop.f32.mrf.mxu1 }
 0x6b1   : > { %v8227_v43 = vadd.f32 %v8141_v49, %v7646_v36  ;;  %v9396_v49 = vshll.u32 %v14790_v33, 16  ;;  %v14815_v33 = vld [vmem:[#allocation2 + $0x38] sm:$0xff] }
 0x6b2   : > { %v8597_v46 = vpop.f32.mrf.mxu2  ;;  %v9930_v37 = vrot.slane %v14815_v33, 2 }
 0x6b3   : > { %v19562_v45 = vadd.f32 %v8597_v46, %v8227_v43  ;;  %9599 = vmatmul.bf16.gmra.mxu3 %v9391_v63  ;;  %v9398_v46 = vrot.slane %v9396_v49, 2  ;;  %v14841_v63 = vld [vmem:[#allocation2 + $0x40] sm:$0xff]  ;;  %v19572_v23 = vpop.f32.mrf.mxu0 }
 0x6b4   : > { %21232 = vst [vmem:[#allocation27_spill] sm:$0xff] %v19572_v23  ;;  %v10386_v2 = vrot.slane %v14841_v63, 2  ;;  %v9931_v63 = vsel %vm4504_vm4, %v9928_v56, %v9930_v37 }
 0x6b5   : > { %21228 = vst [vmem:[#allocation64_spill] sm:$0xff] %v19562_v45 }
 0x6b6   : > { %v7654_v36 = vpop.f32.mrf.mxu3  ;;  %v10387_v49 = vsel %vm4504_vm4, %v10384_v8, %v10386_v2 }
 0x6b7   : > { %10506 = vmatmul.bf16.gmra.mxu2 %v10385_v44  ;;  %v9399_v44 = vor.u32 %v9398_v46, %v9395_v55 }
 0x6b8   : > { %v8144_v47 = vpop.f32.mrf.mxu1 }
 0x6b9   : > { %v8228_v43 = vadd.f32 %v8144_v47, %v7649_v35 }
 0x6ba   : > { %11095 = vmatmul.bf16.gmra.mxu0 %v10883_v48  ;;  %v8600_v20 = vpop.f32.mrf.mxu2 }
 0x6bb   : > { %10050 = vmatmul.bf16.gmra.mxu1 %v9929_v53  ;;  %v19570_v15 = vadd.f32 %v8600_v20, %v8228_v43  ;;  %v9400_v43 = vsel %vm3914_vm2, %v9390_v22, %v9399_v44  ;;  %v10891_v53 = vor.u32 %v10890_v34, %v10887_v4  ;;  %v14868_v20 = vld [vmem:[#allocation2 + $0x48] sm:$0xff] }
 0x6bc   : > { %v10894_v22 = vshrl.u32 %v14868_v20, 16 }
 0x6bd   : > { %21231 = vst [vmem:[#allocation59_spill] sm:$0xff] %v19570_v15  ;;  %v10892_v46 = vsel %vm21234_vm9, %v10882_v16, %v10891_v53 }
 0x6be   : > { %v7656_v10 = vpop.f32.mrf.mxu3  ;;  %v10896_v15 = vrot.slane %v10894_v22, 2 }
 0x6c0   : > { %v8146_v45 = vpop.f32.mrf.mxu1 }
 0x6c1   : > { %v8229_v35 = vadd.f32 %v8146_v45, %v7651_v21  ;;  %v9402_v45 = vshrl.u32 %v14791_v58, 16  ;;  %v9405_v21 = vshll.u32 %v14791_v58, 16 }
 0x6c2   : > { %v8602_v47 = vpop.f32.mrf.mxu2 }
 0x6c3   : > { %v19574_v48 = vadd.f32 %v8602_v47, %v8229_v35  ;;  %9604 = vmatmul.bf16.gmra.mxu3 %v9400_v43  ;;  %v19580_v35 = vpop.f32.mrf.mxu0  ;;  %v9404_v8 = vrot.slane %v9402_v45, 1  ;;  %v9407_v33 = vrot.slane %v9405_v21, 2  ;;  %v10897_v47 = vshll.u32 %v14868_v20, 16  ;;  %v14842_v43 = vld [vmem:[#allocation2 + $0x48] sm:$0xff] }
 0x6c4   : > { %21235 = vst [vmem:[#allocation54_spill] sm:$0xff] %v19580_v35  ;;  %v10388_v56 = vrot.slane %v14842_v43, 2  ;;  %v14908_v45 = vld [vmem:[#allocation12 + $0x218] sm:$0xff] }
 0x6c5   : > { %21233 = vst [vmem:[#allocation26_spill] sm:$0xff] %v19574_v48  ;;  %v9408_v16 = vor.u32 %v9407_v33, %v9404_v8  ;;  %v10899_v58 = vrot.slane %v10897_v47, 3  ;;  %v14869_v8 = vld [vmem:[#allocation2 + $0x50] sm:$0xff]  ;;  %11527 = vmatpush.bf16.msra.mxu3 %v14908_v45 }
 0x6c6   : > { %v7659_v57 = vpop.f32.mrf.mxu3  ;;  %v10389_v21 = vsel %vm4504_vm4, %v10386_v2, %v10388_v56 }
 0x6c7   : > { %10511 = vmatmul.bf16.gmra.mxu2 %v10387_v49  ;;  %v10900_v35 = vor.u32 %v10899_v58, %v10896_v15  ;;  %v10903_v58 = vshrl.u32 %v14869_v8, 16 }
 0x6c8   : > { %v8149_v55 = vpop.f32.mrf.mxu1 }
 0x6c9   : > { %v8230_v42 = vadd.f32 %v8149_v55, %v7654_v36  ;;  %v14816_v55 = vld [vmem:[#allocation2 + $0x40] sm:$0xff] }
 0x6ca   : > { %11100 = vmatmul.bf16.gmra.mxu0 %v10892_v46  ;;  %v8605_v4 = vpop.f32.mrf.mxu2  ;;  %v9932_v20 = vrot.slane %v14816_v55, 2 }
 0x6cb   : > { %10055 = vmatmul.bf16.gmra.mxu1 %v9931_v63  ;;  %v19582_v34 = vadd.f32 %v8605_v4, %v8230_v42  ;;  %v9409_v63 = vsel %vm3914_vm2, %v9399_v44, %v9408_v16  ;;  %v14792_v42 = vld [vmem:[#allocation2 + $0x50] sm:$0xff]  ;;  %v19587_v4 = vpop.f32.mrf.mxu0 }
 0x6cc   : > { %21238 = vst [vmem:[#allocation30_spill] sm:$0xff] %v19587_v4  ;;  %v9411_v47 = vshrl.u32 %v14792_v42, 16  ;;  %v9414_v43 = vshll.u32 %v14792_v42, 16  ;;  %v9933_v15 = vsel %vm4504_vm4, %v9930_v37, %v9932_v20  ;;  %v10905_v42 = vrot.slane %v10903_v58, 2 }
 0x6cd   : > { %21236 = vst [vmem:[#allocation71_spill] sm:$0xff] %v19582_v34 }
 0x6ce   : > { %v7661_v48 = vpop.f32.mrf.mxu3  ;;  %v9413_v55 = vrot.slane %v9411_v47, 1  ;;  %v9416_v2 = vrot.slane %v9414_v43, 2  ;;  %v14793_v47 = vld [vmem:[#allocation2 + $0x58] sm:$0xff] }
 0x6d0   : > { %v8151_v49 = vpop.f32.mrf.mxu1  ;;  %v9417_v34 = vor.u32 %v9416_v2, %v9413_v55 }
 0x6d1   : > { %v8231_v36 = vadd.f32 %v8151_v49, %v7656_v10  ;;  %v10901_v10 = vsel %vm21239_vm3, %v10891_v53, %v10900_v35 }
 0x6d2   : > { %v8607_v46 = vpop.f32.mrf.mxu2 }
 0x6d3   : > { %v19584_v23 = vadd.f32 %v8607_v46, %v8231_v36  ;;  %9609 = vmatmul.bf16.gmra.mxu3 %v9409_v63  ;;  %v10906_v46 = vshll.u32 %v14869_v8, 16  ;;  %v19594_v63 = vpop.f32.mrf.mxu0 }
 0x6d4   : > { %21241 = vst [vmem:[#allocation31_spill] sm:$0xff] %v19594_v63 }
 0x6d5   : > { %21237 = vst [vmem:[#allocation28_spill] sm:$0xff] %v19584_v23  ;;  %v10908_v45 = vrot.slane %v10906_v46, 3 }
 0x6d6   : > { %v7664_v33 = vpop.f32.mrf.mxu3 }
 0x6d7   : > { %10516 = vmatmul.bf16.gmra.mxu2 %v10389_v21  ;;  %v14843_v21 = vld [vmem:[#allocation2 + $0x50] sm:$0xff] }
 0x6d8   : > { %v8154_v22 = vpop.f32.mrf.mxu1  ;;  %v10390_v37 = vrot.slane %v14843_v21, 2 }
 0x6d9   : > { %v8232_v49 = vadd.f32 %v8154_v22, %v7659_v57  ;;  %v14817_v22 = vld [vmem:[#allocation2 + $0x48] sm:$0xff] }
 0x6da   : > { %11105 = vmatmul.bf16.gmra.mxu0 %v10901_v10  ;;  %v8610_v44 = vpop.f32.mrf.mxu2  ;;  %v9934_v8 = vrot.slane %v14817_v22, 2  ;;  %v10391_v43 = vsel %vm4504_vm4, %v10388_v56, %v10390_v37 }
 0x6db   : > { %10060 = vmatmul.bf16.gmra.mxu1 %v9933_v15  ;;  %v19592_v36 = vadd.f32 %v8610_v44, %v8232_v49  ;;  %v9418_v49 = vsel %vm3914_vm2, %v9408_v16, %v9417_v34  ;;  %v10909_v44 = vor.u32 %v10908_v45, %v10905_v42  ;;  %v19601_v55 = vpop.f32.mrf.mxu0 }
 0x6dc   : > { %v9935_v16 = vsel %vm4504_vm4, %v9932_v20, %v9934_v8 }
 0x6dd   : > { %21240 = vst [vmem:[#allocation29_spill] sm:$0xff] %v19592_v36  ;;  %v14870_v36 = vld [vmem:[#allocation2 + $0x58] sm:$0xff]  ;;  %v10910_v58 = vsel %vm21243_vm15, %v10900_v35, %v10909_v44 }
 0x6de   : > { %v7666_v53 = vpop.f32.mrf.mxu3  ;;  %v10912_v42 = vshrl.u32 %v14870_v36, 16  ;;  %v10915_v22 = vshll.u32 %v14870_v36, 16 }
 0x6e0   : > { %v8156_v23 = vpop.f32.mrf.mxu1 }
 0x6e1   : > { %v8233_v57 = vadd.f32 %v8156_v23, %v7661_v48  ;;  %v9420_v23 = vshrl.u32 %v14793_v47, 16  ;;  %v9423_v48 = vshll.u32 %v14793_v47, 16 }
 0x6e2   : > { %v8612_v10 = vpop.f32.mrf.mxu2 }
 0x6e3   : > { %v19596_v15 = vadd.f32 %v8612_v10, %v8233_v57  ;;  %9614 = vmatmul.bf16.gmra.mxu3 %v9418_v49  ;;  %v9422_v45 = vrot.slane %v9420_v23, 1  ;;  %v9425_v57 = vrot.slane %v9423_v48, 2  ;;  %v14844_v10 = vld [vmem:[#allocation2 + $0x58] sm:$0xff]  ;;  %v19610_v20 = vpop.f32.mrf.mxu0  ;;  %v14794_v48 = vld [vmem:[#allocation2 + $0x60] sm:$0xff] }
 0x6e5   : > { %21242 = vst [vmem:[#allocation33_spill] sm:$0xff] %v19596_v15  ;;  %v9426_v47 = vor.u32 %v9425_v57, %v9422_v45  ;;  %v10917_v15 = vrot.slane %v10915_v22, 3  ;;  %v9429_v57 = vshrl.u32 %v14794_v48, 16  ;;  %v9432_v22 = vshll.u32 %v14794_v48, 16 }
 0x6e6   : > { %v9575_v4 = vpop.f32.mrf.mxu3 }
 0x6e7   : > { %10521 = vmatmul.bf16.gmra.mxu2 %v10391_v43  ;;  %v9701_v46 = vadd.f32 %v9575_v4, %v19328_v29  ;;  %v10914_v43 = vrot.slane %v10912_v42, 2  ;;  %v19608_v4 = vld [vmem:[#allocation2 + $0x50] sm:$0xff]  ;;  %v9427_v23 = vsel %vm3914_vm2, %v9417_v34, %v9426_v47  ;;  %v14907_v34 = vld [vmem:[#allocation12 + $0x210] sm:$0xff] }
 0x6e8   : > { %v8159_v63 = vpop.f32.mrf.mxu1  ;;  %11528 = vmatpush.bf16.msra.mxu3 %v14907_v34 }
 0x6e9   : > { %v8234_v2 = vadd.f32 %v8159_v63, %v7664_v33  ;;  %v10918_v36 = vor.u32 %v10917_v15, %v10914_v43 }
 0x6ea   : > { %11110 = vmatmul.bf16.gmra.mxu0 %v10910_v58  ;;  %v8615_v21 = vpop.f32.mrf.mxu2  ;;  %v10392_v58 = vrot.slane %v14844_v10, 2 }
 0x6eb   : > { %10065 = vmatmul.bf16.gmra.mxu1 %v9935_v16  ;;  %v19605_v56 = vadd.f32 %v8615_v21, %v8234_v2  ;;  %v9936_v16 = vrot.slane %v19608_v4, 2  ;;  %v10919_v45 = vsel %vm21245_vm13, %v10909_v44, %v10918_v36  ;;  %v9434_v4 = vrot.slane %v9432_v22, 2  ;;  %v14845_v44 = vld [vmem:[#allocation2 + $0x60] sm:$0xff] }
 0x6ec   : > { %v10393_v21 = vsel %vm4504_vm4, %v10390_v37, %v10392_v58 }
 0x6ed   : > { %v9937_v15 = vsel %vm4504_vm4, %v9934_v8, %v9936_v16 }
 0x6ee   : > { %v9577_v49 = vpop.f32.mrf.mxu3 }
 0x6ef   : > { %v9702_v29 = vadd.f32 %v9577_v49, %v19343_v50 }
 0x6f0   : > { %v8161_v35 = vpop.f32.mrf.mxu1 }
 0x6f1   : > { %v8235_v33 = vadd.f32 %v8161_v35, %v7666_v53  ;;  %v14871_v53 = vld [vmem:[#allocation2 + $0x60] sm:$0xff] }
 0x6f2   : > { %v8617_v63 = vpop.f32.mrf.mxu2  ;;  %v10921_v43 = vshrl.u32 %v14871_v53, 16 }
 0x6f3   : > { %v19612_v2 = vadd.f32 %v8617_v63, %v8235_v33  ;;  %9619 = vmatmul.bf16.gmra.mxu3 %v9427_v23  ;;  %v9431_v33 = vrot.slane %v9429_v57, 1  ;;  %v10924_v63 = vshll.u32 %v14871_v53, 16  ;;  %v19622_v23 = vpop.f32.mrf.mxu0  ;;  %v14795_v53 = vld [vmem:[#allocation2 + $0x68] sm:$0xff] }
 0x6f5   : > { %21244 = vst [vmem:[#allocation32_spill] sm:$0xff] %v19612_v2  ;;  %v10394_v2 = vrot.slane %v14845_v44, 2  ;;  %v9441_v44 = vshll.u32 %v14795_v53, 16 }
 0x6f6   : > { %v9580_v50 = vpop.f32.mrf.mxu3 }
 0x6f7   : > { %10526 = vmatmul.bf16.gmra.mxu2 %v10393_v21  ;;  %v9703_v35 = vadd.f32 %v9580_v50, %v19352_v59  ;;  %v9435_v21 = vor.u32 %v9434_v4, %v9431_v33  ;;  %v10923_v59 = vrot.slane %v10921_v43, 2  ;;  %v10395_v33 = vsel %vm4504_vm4, %v10392_v58, %v10394_v2  ;;  %v14872_v43 = vld [vmem:[#allocation2 + $0x68] sm:$0xff] }
 0x6f8   : > { %v10031_v42 = vpop.f32.mrf.mxu1 }
 0x6f9   : > { %v10157_v10 = vadd.f32 %v10031_v42, %v9701_v46  ;;  %v10926_v42 = vrot.slane %v10924_v63, 3  ;;  %v9436_v57 = vsel %vm3914_vm2, %v9426_v47, %v9435_v21  ;;  %v9438_v63 = vshrl.u32 %v14795_v53, 16 }
 0x6fa   : > { %11115 = vmatmul.bf16.gmra.mxu0 %v10919_v45  ;;  %v10487_v49 = vpop.f32.mrf.mxu2  ;;  %v14819_v45 = vld [vmem:[#allocation2 + $0x58] sm:$0xff] }
 0x6fb   : > { %10070 = vmatmul.bf16.gmra.mxu1 %v9937_v15  ;;  %v19620_v37 = vadd.f32 %v10487_v49, %v10157_v10  ;;  %v10927_v22 = vor.u32 %v10926_v42, %v10923_v59  ;;  %v9938_v10 = vrot.slane %v14819_v45, 2  ;;  %v19628_v49 = vpop.f32.mrf.mxu0  ;;  %v10930_v42 = vshrl.u32 %v14872_v43, 16 }
 0x6fc   : > { %v9440_v58 = vrot.slane %v9438_v63, 1  ;;  %v9443_v45 = vrot.slane %v9441_v44, 2 }
 0x6fd   : > { %21246 = vst [vmem:[#allocation56_spill] sm:$0xff] %v19620_v37  ;;  %v9939_v47 = vsel %vm4504_vm4, %v9936_v16, %v9938_v10  ;;  %v10932_v37 = vrot.slane %v10930_v42, 2  ;;  %v14820_v16 = vld [vmem:[#allocation2 + $0x60] sm:$0xff]  ;;  %v14873_v42 = vld [vmem:[#allocation2 + $0x70] sm:$0xff] }
 0x6fe   : > { %v9582_v46 = vpop.f32.mrf.mxu3 }
 0x6ff   : > { %v9704_v8 = vadd.f32 %v9582_v46, %v19362_v13  ;;  %v10928_v13 = vsel %vm21248_vm12, %v10918_v36, %v10927_v22  ;;  %v9444_v36 = vor.u32 %v9443_v45, %v9440_v58 }
 0x700   : > { %v10033_v48 = vpop.f32.mrf.mxu1 }
 0x701   : > { %v10158_v50 = vadd.f32 %v10033_v48, %v9702_v29  ;;  %v9445_v63 = vsel %vm3914_vm2, %v9435_v21, %v9444_v36 }
 0x702   : > { %v10489_v15 = vpop.f32.mrf.mxu2 }
 0x703   : > { %v19625_v34 = vadd.f32 %v10489_v15, %v10158_v50  ;;  %9624 = vmatmul.bf16.gmra.mxu3 %v9436_v57  ;;  %v10933_v15 = vshll.u32 %v14872_v43, 16  ;;  %v14846_v57 = vld [vmem:[#allocation2 + $0x68] sm:$0xff]  ;;  %v14796_v43 = vld [vmem:[#allocation2 + $0x70] sm:$0xff] }
 0x705   : > { %21247 = vst [vmem:[#allocation75_spill] sm:$0xff] %v19625_v34  ;;  %v10935_v53 = vrot.slane %v10933_v15, 3 }
 0x706   : > { %v9585_v29 = vpop.f32.mrf.mxu3 }
 0x707   : > { %10531 = vmatmul.bf16.gmra.mxu2 %v10395_v33  ;;  %v9705_v46 = vadd.f32 %v9585_v29, %v19373_v5  ;;  %v10936_v44 = vor.u32 %v10935_v53, %v10932_v37  ;;  %v10939_v53 = vshrl.u32 %v14873_v42, 16 }
 0x708   : > { %v10036_v4 = vpop.f32.mrf.mxu1 }
 0x709   : > { %v10159_v48 = vadd.f32 %v10036_v4, %v9703_v35  ;;  %v19636_v35 = vpop.f32.mrf.mxu0 }
 0x70a   : > { %11120 = vmatmul.bf16.gmra.mxu0 %v10928_v13  ;;  %v10492_v59 = vpop.f32.mrf.mxu2  ;;  %v10396_v13 = vrot.slane %v14846_v57, 2 }
 0x70b   : > { %10075 = vmatmul.bf16.gmra.mxu1 %v9939_v47  ;;  %v19634_v50 = vadd.f32 %v10492_v59, %v10159_v48  ;;  %v9940_v48 = vrot.slane %v14820_v16, 2 }
 0x70c   : > { %v10397_v59 = vsel %vm4504_vm4, %v10394_v2, %v10396_v13 }
 0x70d   : > { %21249 = vst [vmem:[#allocation37_spill] sm:$0xff] %v19634_v50  ;;  %v9941_v21 = vsel %vm4504_vm4, %v9938_v10, %v9940_v48 }
 0x70e   : > { %v9587_v34 = vpop.f32.mrf.mxu3 }
 0x70f   : > { %v9706_v4 = vadd.f32 %v9587_v34, %v19392_v18  ;;  %v9447_v18 = vshrl.u32 %v14796_v43, 16  ;;  %v9450_v34 = vshll.u32 %v14796_v43, 16 }
 0x710   : > { %v10038_v33 = vpop.f32.mrf.mxu1 }
 0x711   : > { %v10160_v5 = vadd.f32 %v10038_v33, %v9704_v8  ;;  %v10937_v8 = vsel %vm21251_vm6, %v10927_v22, %v10936_v44  ;;  %v19646_v37 = vpop.f32.mrf.mxu0  ;;  %v9452_v16 = vrot.slane %v9450_v34, 2  ;;  %v14847_v22 = vld [vmem:[#allocation2 + $0x70] sm:$0xff] }
 0x712   : > { %v10494_v29 = vpop.f32.mrf.mxu2 }
 0x713   : > { %v19639_v47 = vadd.f32 %v10494_v29, %v10160_v5  ;;  %9629 = vmatmul.bf16.gmra.mxu3 %v9445_v63  ;;  %v9449_v5 = vrot.slane %v9447_v18, 1  ;;  %v10942_v29 = vshll.u32 %v14873_v42, 16  ;;  %v14906_v63 = vld [vmem:[#allocation12 + $0x208] sm:$0xff] }
 0x714   : > { %11529 = vmatpush.bf16.msra.mxu3 %v14906_v63  ;;  %v14797_v42 = vld [vmem:[#allocation2 + $0x78] sm:$0xff] }
 0x715   : > { %21250 = vst [vmem:[#allocation39_spill] sm:$0xff] %v19639_v47  ;;  %v10398_v47 = vrot.slane %v14847_v22, 2  ;;  %v9459_v63 = vshll.u32 %v14797_v42, 16 }
 0x716   : > { %v9590_v45 = vpop.f32.mrf.mxu3 }
 0x717   : > { %10536 = vmatmul.bf16.gmra.mxu2 %v10397_v59  ;;  %v9707_v57 = vadd.f32 %v9590_v45, %v19406_v1  ;;  %v10944_v1 = vrot.slane %v10942_v29, 3  ;;  %v9456_v29 = vshrl.u32 %v14797_v42, 16 }
 0x718   : > { %v10041_v58 = vpop.f32.mrf.mxu1 }
 0x719   : > { %v10161_v15 = vadd.f32 %v10041_v58, %v9705_v46  ;;  %v9453_v46 = vor.u32 %v9452_v16, %v9449_v5  ;;  %v10941_v58 = vrot.slane %v10939_v53, 2  ;;  %v10399_v53 = vsel %vm4504_vm4, %v10396_v13, %v10398_v47  ;;  %v14874_v5 = vld [vmem:[#allocation2 + $0x78] sm:$0xff] }
 0x71a   : > { %11125 = vmatmul.bf16.gmra.mxu0 %v10937_v8  ;;  %v10497_v33 = vpop.f32.mrf.mxu2  ;;  %v14821_v8 = vld [vmem:[#allocation2 + $0x68] sm:$0xff]  ;;  %v9458_v13 = vrot.slane %v9456_v29, 1 }
 0x71b   : > { %10080 = vmatmul.bf16.gmra.mxu1 %v9941_v21  ;;  %v19648_v2 = vadd.f32 %v10497_v33, %v10161_v15  ;;  %v9454_v18 = vsel %vm3914_vm2, %v9444_v36, %v9453_v46  ;;  %v10945_v34 = vor.u32 %v10944_v1, %v10941_v58  ;;  %v19654_v15 = vpop.f32.mrf.mxu0  ;;  %v9942_v33 = vrot.slane %v14821_v8, 2 }
 0x71c   : > { %v10948_v58 = vshrl.u32 %v14874_v5, 16  ;;  %v10951_v8 = vshll.u32 %v14874_v5, 16  ;;  %v14798_v5 = vld [vmem:[#allocation2 + $0x80] sm:$0xff] }
 0x71d   : > { %v9943_v36 = vsel %vm4504_vm4, %v9940_v48, %v9942_v33  ;;  %v14822_v48 = vld [vmem:[#allocation2 + $0x70] sm:$0xff] }
 0x71e   : > { %v9592_v43 = vpop.f32.mrf.mxu3 }
 0x71f   : > { %v9708_v10 = vadd.f32 %v9592_v43, %v19432_v7  ;;  %v10946_v7 = vsel %vm21253_vm7, %v10936_v44, %v10945_v34 }
 0x720   : > { %v10043_v59 = vpop.f32.mrf.mxu1 }
 0x721   : > { %v10162_v45 = vadd.f32 %v10043_v59, %v9706_v4 }
 0x722   : > { %v10499_v21 = vpop.f32.mrf.mxu2 }
 0x723   : > { %v19651_v50 = vadd.f32 %v10499_v21, %v10162_v45  ;;  %9634 = vmatmul.bf16.gmra.mxu3 %v9454_v18  ;;  %v9461_v45 = vrot.slane %v9459_v63, 2  ;;  %v19662_v21 = vpop.f32.mrf.mxu0  ;;  %v14848_v18 = vld [vmem:[#allocation2 + $0x78] sm:$0xff] }
 0x725   : > { %21252 = vst [vmem:[#allocation73_spill] sm:$0xff] %v19651_v50  ;;  %v9462_v42 = vor.u32 %v9461_v45, %v9458_v13  ;;  %v9468_v45 = vshll.u32 %v14798_v5, 16 }
 0x726   : > { %v9595_v4 = vpop.f32.mrf.mxu3 }
 0x727   : > { %10541 = vmatmul.bf16.gmra.mxu2 %v10399_v53  ;;  %v9709_v59 = vadd.f32 %v9595_v4, %v19450_v25  ;;  %v9463_v29 = vsel %vm3914_vm2, %v9453_v46, %v9462_v42 }
 0x728   : > { %v10046_v16 = vpop.f32.mrf.mxu1 }
 0x729   : > { %v10163_v22 = vadd.f32 %v10046_v16, %v9707_v57  ;;  %v10950_v57 = vrot.slane %v10948_v58, 2  ;;  %v10953_v16 = vrot.slane %v10951_v8, 3 }
 0x72a   : > { %11130 = vmatmul.bf16.gmra.mxu0 %v10946_v7  ;;  %v10502_v43 = vpop.f32.mrf.mxu2 }
 0x72b   : > { %10085 = vmatmul.bf16.gmra.mxu1 %v9943_v36  ;;  %v19660_v1 = vadd.f32 %v10502_v43, %v10163_v22  ;;  %v10400_v36 = vrot.slane %v14848_v18, 2  ;;  %v10954_v63 = vor.u32 %v10953_v16, %v10950_v57  ;;  %v9944_v22 = vrot.slane %v14822_v48, 2  ;;  %v19670_v8 = vpop.f32.mrf.mxu0 }
 0x72d   : > { %21254 = vst [vmem:[#allocation55_spill] sm:$0xff] %v19660_v1  ;;  %v10401_v43 = vsel %vm4504_vm4, %v10398_v47, %v10400_v36  ;;  %v14875_v1 = vld [vmem:[#allocation2 + $0x80] sm:$0xff]  ;;  %v9945_v46 = vsel %vm4504_vm4, %v9942_v33, %v9944_v22 }
 0x72e   : > { %v9597_v53 = vpop.f32.mrf.mxu3  ;;  %v10957_v57 = vshrl.u32 %v14875_v1, 16  ;;  %v10960_v48 = vshll.u32 %v14875_v1, 16 }
 0x72f   : > { %v9710_v4 = vadd.f32 %v9597_v53, %v19476_v26  ;;  %v9465_v26 = vshrl.u32 %v14798_v5, 16 }
 0x730   : > { %v10048_v44 = vpop.f32.mrf.mxu1 }
 0x731   : > { %v10164_v25 = vadd.f32 %v10048_v44, %v9708_v10  ;;  %v10955_v10 = vsel %vm21256_vm8, %v10945_v34, %v10954_v63  ;;  %v9467_v16 = vrot.slane %v9465_v26, 1 }
 0x732   : > { %v10504_v7 = vpop.f32.mrf.mxu2 }
 0x733   : > { %v19665_v50 = vadd.f32 %v10504_v7, %v10164_v25  ;;  %9639 = vmatmul.bf16.gmra.mxu3 %v9463_v29  ;;  %v9470_v25 = vrot.slane %v9468_v45, 2  ;;  %v14849_v7 = vld [vmem:[#allocation2 + $0x80] sm:$0xff]  ;;  %v19679_v33 = vpop.f32.mrf.mxu0 }
 0x735   : > { %21255 = vst [vmem:[#allocation82_spill] sm:$0xff] %v19665_v50  ;;  %v9471_v5 = vor.u32 %v9470_v25, %v9467_v16  ;;  %v10962_v50 = vrot.slane %v10960_v48, 3 }
 0x736   : > { %v9600_v58 = vpop.f32.mrf.mxu3 }
 0x737   : > { %10546 = vmatmul.bf16.gmra.mxu2 %v10401_v43  ;;  %v9711_v44 = vadd.f32 %v9600_v58, %v19493_v3  ;;  %v10959_v43 = vrot.slane %v10957_v57, 2  ;;  %v19677_v58 = vld [vmem:[#allocation2 + $0x78] sm:$0xff]  ;;  %v9472_v1 = vsel %vm3914_vm2, %v9462_v42, %v9471_v5 }
 0x738   : > { %v10051_v13 = vpop.f32.mrf.mxu1 }
 0x739   : > { %v10165_v18 = vadd.f32 %v10051_v13, %v9709_v59  ;;  %v14905_v13 = vld [vmem:[#allocation12 + $0x200] sm:$0xff]  ;;  %v10963_v45 = vor.u32 %v10962_v50, %v10959_v43 }
 0x73a   : > { %11135 = vmatmul.bf16.gmra.mxu0 %v10955_v10  ;;  %v10507_v53 = vpop.f32.mrf.mxu2  ;;  %11530 = vmatpush.bf16.msra.mxu3 %v14905_v13 }
 0x73b   : > { %10090 = vmatmul.bf16.gmra.mxu1 %v9945_v46  ;;  %v19674_v47 = vadd.f32 %v10507_v53, %v10165_v18  ;;  %v10402_v18 = vrot.slane %v14849_v7, 2  ;;  %v14799_v46 = vld [vmem:[#allocation2 + $0x88] sm:$0xff]  ;;  %v9946_v53 = vrot.slane %v19677_v58, 2  ;;  %v10964_v25 = vsel %vm21219_vm0, %v10954_v63, %v10963_v45 }
 0x73c   : > { %v9474_v48 = vshrl.u32 %v14799_v46, 16  ;;  %v9477_v7 = vshll.u32 %v14799_v46, 16  ;;  %v9125_v63 = vadd.f32 %v19400_v40, %v19413_v39 }
 0x73d   : > { %v9947_v50 = vsel %vm4504_vm4, %v9944_v22, %v9946_v53 }
 0x73e   : > { %v9602_v29 = vpop.f32.mrf.mxu3  ;;  %v9479_v13 = vrot.slane %v9477_v7, 2 }
 0x73f   : > { %v9712_v3 = vadd.f32 %v9602_v29, %v19510_v32  ;;  %v14876_v32 = vld [vmem:[#allocation2 + $0x88] sm:$0xff] }
 0x740   : > { %v10053_v34 = vpop.f32.mrf.mxu1  ;;  %v10966_v43 = vshrl.u32 %v14876_v32, 16  ;;  %v10969_v58 = vshll.u32 %v14876_v32, 16 }
 0x741   : > { %v10166_v59 = vadd.f32 %v10053_v34, %v9710_v4  ;;  %v10403_v4 = vsel %vm4504_vm4, %v10400_v36, %v10402_v18  ;;  %v9476_v36 = vrot.slane %v9474_v48, 1 }
 0x742   : > { %v10509_v10 = vpop.f32.mrf.mxu2 }
 0x743   : > { %v19681_v26 = vadd.f32 %v10509_v10, %v10166_v59  ;;  %9644 = vmatmul.bf16.gmra.mxu3 %v9472_v1  ;;  %v19693_v10 = vpop.f32.mrf.mxu0  ;;  %v9480_v46 = vor.u32 %v9479_v13, %v9476_v36 }
 0x745   : > { %v9481_v32 = vsel %vm3914_vm2, %v9471_v5, %v9480_v46 }
 0x746   : > { %v9605_v16 = vpop.f32.mrf.mxu3 }
 0x747   : > { %10551 = vmatmul.bf16.gmra.mxu2 %v10403_v4  ;;  %v19688_v29 = vadd.f32 %v9605_v16, %v19524_v41  ;;  %v10968_v4 = vrot.slane %v10966_v43, 2  ;;  %v9126_v43 = vadd.f32 %v19417_v9, %v19434_v27 }
 0x748   : > { %v10056_v57 = vpop.f32.mrf.mxu1 }
 0x749   : > { %v10167_v34 = vadd.f32 %v10056_v57, %v9711_v44  ;;  %v14850_v44 = vld [vmem:[#allocation2 + $0x88] sm:$0xff]  ;;  %v10971_v57 = vrot.slane %v10969_v58, 3 }
 0x74a   : > { %11140 = vmatmul.bf16.gmra.mxu0 %v10964_v25  ;;  %v10512_v42 = vpop.f32.mrf.mxu2  ;;  %v19697_v25 = vld [vmem:[#allocation2 + $0x80] sm:$0xff] }
 0x74b   : > { %10095 = vmatmul.bf16.gmra.mxu1 %v9947_v50  ;;  %v19691_v59 = vadd.f32 %v10512_v42, %v10167_v34  ;;  %v10404_v50 = vrot.slane %v14850_v44, 2  ;;  %v10972_v7 = vor.u32 %v10971_v57, %v10968_v4  ;;  %v14800_v42 = vld [vmem:[#allocation2 + $0x90] sm:$0xff]  ;;  %v9948_v40 = vrot.slane %v19697_v25, 2  ;;  %v19703_v39 = vpop.f32.mrf.mxu0 }
 0x74c   : > { %v9486_v5 = vshll.u32 %v14800_v42, 16  ;;  %v14877_v44 = vld [vmem:[#allocation2 + $0x90] sm:$0xff]  ;;  %v9127_v25 = vadd.f32 %v19436_v19, %v19452_v24 }
 0x74d   : > { %v10973_v58 = vsel %vm21258_vm1, %v10963_v45, %v10972_v7  ;;  %v10975_v27 = vshrl.u32 %v14877_v44, 16 }
 0x74e   : > { %v9607_v41 = vpop.f32.mrf.mxu3  ;;  %v9488_v9 = vrot.slane %v9486_v5, 2 }
 0x74f   : > { %v9714_v16 = vadd.f32 %v9607_v41, %v9125_v63  ;;  %v9483_v63 = vshrl.u32 %v14800_v42, 16  ;;  %v9949_v41 = vsel %vm4504_vm4, %v9946_v53, %v9948_v40 }
 0x750   : > { %v10058_v1 = vpop.f32.mrf.mxu1 }
 0x751   : > { %v10168_v22 = vadd.f32 %v10058_v1, %v9712_v3  ;;  %v10405_v3 = vsel %vm4504_vm4, %v10402_v18, %v10404_v50  ;;  %v9485_v57 = vrot.slane %v9483_v63, 1  ;;  %v10978_v18 = vshll.u32 %v14877_v44, 16  ;;  %v19720_v63 = vld [vmem:[#allocation2 + $0x88] sm:$0xff] }
 0x752   : > { %v10514_v34 = vpop.f32.mrf.mxu2 }
 0x753   : > { %v19699_v48 = vadd.f32 %v10514_v34, %v10168_v22  ;;  %9649 = vmatmul.bf16.gmra.mxu3 %v9481_v32  ;;  %v9220_v22 = vld [vmem:[#allocation2 + $0x98] sm:$0x3]  ;;  %v19716_v34 = vld [vmem:[#allocation2 + $0x90] sm:$0xff]  ;;  %v9489_v42 = vor.u32 %v9488_v9, %v9485_v57  ;;  %v19718_v53 = vpop.f32.mrf.mxu0  ;;  %v9950_v57 = vrot.slane %v19720_v63, 2  ;;  %v9128_v9 = vadd.f32 %v19456_v31, %v19470_v51 }
 0x754   : > { %v10406_v44 = vrot.slane %v19716_v34, 2 }
 0x755   : > { %v9490_v19 = vsel %vm3914_vm2, %v9480_v46, %v9489_v42 }
 0x756   : > { %v9610_v13 = vpop.f32.mrf.mxu3 }
 0x757   : > { %10556 = vmatmul.bf16.gmra.mxu2 %v10405_v3  ;;  %v9715_v1 = vadd.f32 %v9610_v13, %v9126_v43  ;;  %v10977_v43 = vrot.slane %v10975_v27, 2  ;;  %v10980_v3 = vrot.slane %v10978_v18, 3  ;;  %v9310_v13 = vunpack.c.l.b16 %v9220_v22  ;;  %v14878_v27 = vld [vmem:[#allocation2 + $0x98] sm:$0xff] }
 0x758   : > { %v19708_v36 = vpop.f32.mrf.mxu1  ;;  %v10984_v31 = vshrl.u32 %v14878_v27, 16  ;;  %v10987_v63 = vshll.u32 %v14878_v27, 16 }
 0x759   : > { %21257 = vst [vmem:[#allocation83_spill] sm:$0xff] %v19708_v36  ;;  %v10981_v24 = vor.u32 %v10980_v3, %v10977_v43  ;;  %v9329_v36 = vpack.c.b16 %v9310_v13, %v9310_v13  ;;  %v9951_v43 = vsel %vm4504_vm4, %v9948_v40, %v9950_v57 }
 0x75a   : > { %11145 = vmatmul.bf16.gmra.mxu0 %v10973_v58  ;;  %v19712_v4 = vpop.f32.mrf.mxu2  ;;  %v10989_v40 = vrot.slane %v10987_v63, 3 }
 0x75b   : > { %10100 = vmatmul.bf16.gmra.mxu1 %v9949_v41  ;;  %21259 = vst [vmem:[#allocation84_spill] sm:$0xff] %v19712_v4  ;;  %v9492_v34 = vshrl.u32 %v9329_v36, 16  ;;  %v19732_v3 = vpop.f32.mrf.mxu0 }
 0x75e   : > { %v9612_v32 = vpop.f32.mrf.mxu3 }
 0x75f   : > { %v9716_v41 = vadd.f32 %v9612_v32, %v9127_v25  ;;  %v10982_v25 = vsel %vm21260_vm10, %v10972_v7, %v10981_v24  ;;  %v9129_v7 = vadd.f32 %v19472_v54, %v19481_v0 }
 0x760   : > { %v10063_v45 = vpop.f32.mrf.mxu1 }
 0x761   : > { %v10170_v58 = vadd.f32 %v10063_v45, %v9714_v16  ;;  %v10407_v16 = vsel %vm4504_vm4, %v10404_v50, %v10406_v44  ;;  %v9495_v45 = vshll.u32 %v9329_v36, 16  ;;  %v9494_v50 = vrot.slane %v9492_v34, 1 }
 0x762   : > { %v10519_v5 = vpop.f32.mrf.mxu2 }
 0x763   : > { %v19723_v4 = vadd.f32 %v10519_v5, %v10170_v58  ;;  %9654 = vmatmul.bf16.gmra.mxu3 %v9490_v19  ;;  %v9497_v58 = vrot.slane %v9495_v45, 2  ;;  %v19738_v5 = vld [vmem:[#allocation2 + $0x98] sm:$0xff] }
 0x764   : > { %v10408_v34 = vrot.slane %v19738_v5, 2 }
 0x765   : > { %v9498_v19 = vor.u32 %v9497_v58, %v9494_v50 }
 0x766   : > { %v9615_v22 = vpop.f32.mrf.mxu3 }
 0x767   : > { %10561 = vmatmul.bf16.gmra.mxu2 %v10407_v16  ;;  %v9717_v46 = vadd.f32 %v9615_v22, %v9128_v9  ;;  %v10986_v9 = vrot.slane %v10984_v31, 2  ;;  %v10721_v22 = vld [vmem:[#allocation2 + $0xa0] sm:$0x7]  ;;  %v9499_v27 = vsel %vm3914_vm2, %v9489_v42, %v9498_v19  ;;  %v10409_v31 = vsel %vm4504_vm4, %v10406_v44, %v10408_v34  ;;  %v14887_v19 = vld [vmem:[#allocation2 + $0x10] sm:$0xf0]  ;;  %v14888_v44 = vld [vmem:[#allocation2 + $0x18] sm:$0xff] }
 0x768   : > { %v10066_v18 = vpop.f32.mrf.mxu1  ;;  %v10811_v0 = vunpack.c.l.b16 %v10721_v22  ;;  %vm21263_vm2 = vmmov %vm21219_vm0 }
 0x769   : > { %v10171_v32 = vadd.f32 %v10066_v18, %v9715_v1  ;;  %v10990_v54 = vor.u32 %v10989_v40, %v10986_v9 }
 0x76a   : > { %11150 = vmatmul.bf16.gmra.mxu0 %v10982_v25  ;;  %v10522_v13 = vpop.f32.mrf.mxu2  ;;  %v19740_v25 = vld [vmem:[#allocation2 + $0x90] sm:$0xff]  ;;  %v10830_v5 = vpack.c.b16 %v10811_v0, %v10811_v0 }
 0x76b   : > { %10105 = vmatmul.bf16.gmra.mxu1 %v9951_v43  ;;  %v19734_v51 = vadd.f32 %v10522_v13, %v10171_v32  ;;  %v19746_v43 = vpop.f32.mrf.mxu0  ;;  %v9952_v13 = vrot.slane %v19740_v25, 2  ;;  %v10991_v63 = vsel %vm21261_vm11, %v10981_v24, %v10990_v54 }
 0x76c   : > { %v10993_v25 = vshrl.u32 %v10830_v5, 16 }
 0x76d   : > { %v9953_v9 = vsel %vm4504_vm4, %v9950_v57, %v9952_v13 }
 0x76e   : > { %v9617_v1 = vpop.f32.mrf.mxu3 }
 0x76f   : > { %v9718_v18 = vadd.f32 %v9617_v1, %v9129_v7  ;;  %v10265_v7 = vld [vmem:[#allocation2 + $0xa0] sm:$0x3]  ;;  %v14340_v1 = vld [vmem:[#allocation2 + $0x10] sm:$0x8] }
 0x770   : > { %v10068_v36 = vpop.f32.mrf.mxu1  ;;  %v14341_v22 = vor.u32 %v14887_v19, %v14340_v1 }
 0x771   : > { %v10172_v16 = vadd.f32 %v10068_v36, %v9716_v41  ;;  %v9130_v41 = vadd.f32 %v19486_v11, %v19499_v28  ;;  %v9809_v11 = vld [vmem:[#allocation2 + $0x98] sm:$0x3] }
 0x772   : > { %v10524_v32 = vpop.f32.mrf.mxu2  ;;  %v9899_v24 = vunpack.c.l.b16 %v9809_v11  ;;  %v11420_v57 = vrot.slane %v14341_v22, 3 }
 0x773   : > { %v19743_v45 = vadd.f32 %v10524_v32, %v10172_v16  ;;  %9659 = vmatmul.bf16.gmra.mxu3 %v9499_v27  ;;  %v10355_v16 = vunpack.c.l.b16 %v10265_v7  ;;  %v10996_v32 = vshll.u32 %v10830_v5, 16  ;;  %v19756_v27 = vpop.f32.mrf.mxu0 }
 0x775   : > { %v10374_v0 = vpack.c.b16 %v10355_v16, %v10355_v16 }
 0x776   : > { %v9620_v58 = vpop.f32.mrf.mxu3 }
 0x777   : > { %10566 = vmatmul.bf16.gmra.mxu2 %v10409_v31  ;;  %v9719_v36 = vadd.f32 %v9620_v58, %v9130_v41  ;;  %v10995_v58 = vrot.slane %v10993_v25, 2  ;;  %v10410_v1 = vrot.slane %v10374_v0, 2 }
 0x778   : > { %v10071_v50 = vpop.f32.mrf.mxu1 }
 0x779   : > { %v10173_v42 = vadd.f32 %v10071_v50, %v9717_v46  ;;  %v9131_v46 = vadd.f32 %v19503_v30, %v19512_v62  ;;  %v11421_v50 = vrot.slane %v14888_v44, 3  ;;  %v9132_v30 = vadd.f32 %v19520_v38, %v19526_v60 }
 0x77a   : > { %11155 = vmatmul.bf16.gmra.mxu0 %v10991_v63  ;;  %v10527_v40 = vpop.f32.mrf.mxu2  ;;  %v10998_v63 = vrot.slane %v10996_v32, 3  ;;  %v10411_v62 = vsel %vm4504_vm4, %v10408_v34, %v10410_v1  ;;  %v9133_v38 = vadd.f32 %v19531_v52, %v19528_v17  ;;  %v14890_v52 = vld [vmem:[#allocation2 + $0x28] sm:$0xff] }
 0x77b   : > { %10110 = vmatmul.bf16.gmra.mxu1 %v9953_v9  ;;  %v19754_v28 = vadd.f32 %v10527_v40, %v10173_v42  ;;  %v9918_v9 = vpack.c.b16 %v9899_v24, %v9899_v24  ;;  %v11422_v5 = vsel %vm6007_vm5, %v11420_v57, %v11421_v50  ;;  %v19767_v22 = vpop.f32.mrf.mxu0 }
 0x77c   : > { %v10999_v11 = vor.u32 %v10998_v63, %v10995_v58 }
 0x77d   : > { %21262 = vst [vmem:[#allocation85_spill] sm:$0xff] %v19754_v28  ;;  %v9954_v28 = vrot.slane %v9918_v9, 2 }
 0x77e   : > { %v9622_v31 = vpop.f32.mrf.mxu3 }
 0x77f   : > { %v9720_v42 = vadd.f32 %v9622_v31, %v9131_v46  ;;  %v9955_v24 = vsel %vm4504_vm4, %v9952_v13, %v9954_v28  ;;  %v9134_v13 = vadd.f32 %v19538_v6, %v19536_v12 }
 0x780   : > { %v10073_v41 = vpop.f32.mrf.mxu1 }
 0x781   : > { %v10174_v7 = vadd.f32 %v10073_v41, %v9718_v18  ;;  %v11000_v18 = vsel %vm21263_vm2, %v10990_v54, %v10999_v11  ;;  %v14889_v41 = vld [vmem:[#allocation2 + $0x20] sm:$0xff] }
 0x782   : > { %v10529_v40 = vpop.f32.mrf.mxu2  ;;  %v11423_v31 = vrot.slane %v14889_v41, 3 }
 0x783   : > { %v19760_v19 = vadd.f32 %v10529_v40, %v10174_v7  ;;  %11531 = vmatmul.bf16.vlgmr.msra.gmra.mxu3 %v11422_v5 }
 0x786   : > { %v9625_v44 = vpop.f32.mrf.mxu3 }
 0x787   : > { %10571 = vmatmul.bf16.gmra.mxu2 %v10411_v62  ;;  %v9721_v32 = vadd.f32 %v9625_v44, %v9132_v30  ;;  %v11425_v30 = vrot.slane %v14890_v52, 3 }
 0x788   : > { %v10076_v16 = vpop.f32.mrf.mxu1 }
 0x789   : > { %v10175_v25 = vadd.f32 %v10076_v16, %v9719_v36  ;;  %v11424_v36 = vsel %vm6007_vm5, %v11421_v50, %v11423_v31  ;;  %v19783_v16 = vpop.f32.mrf.mxu0  ;;  %v11426_v6 = vsel %vm6007_vm5, %v11423_v31, %v11425_v30 }
 0x78a   : > { %11160 = vmatmul.bf16.gmra.mxu0 %v11000_v18  ;;  %v10532_v46 = vpop.f32.mrf.mxu2  ;;  %v21264_v18 = vld [vmem:[#allocation43_spill] sm:$0xff] }
 0x78b   : > { %10115 = vmatmul.bf16.gmra.mxu1 %v9955_v24  ;;  %v19770_v0 = vadd.f32 %v10532_v46, %v10175_v25  ;;  %v21265_v25 = vld [vmem:[#allocation47_spill] sm:$0xff] }
 0x78e   : > { %v9627_v34 = vpop.f32.mrf.mxu3 }
 0x78f   : > { %v9722_v54 = vadd.f32 %v9627_v34, %v9133_v38 }
 0x790   : > { %v10078_v60 = vpop.f32.mrf.mxu1 }
 0x791   : > { %v10176_v57 = vadd.f32 %v10078_v60, %v9720_v42  ;;  %v9135_v42 = vadd.f32 %v19545_v14, %v19540_v61  ;;  %v14891_v60 = vld [vmem:[#allocation2 + $0x30] sm:$0xff]  ;;  %v19792_v34 = vpop.f32.mrf.mxu0 }
 0x792   : > { %v10534_v58 = vpop.f32.mrf.mxu2  ;;  %v11427_v31 = vrot.slane %v14891_v60, 3 }
 0x793   : > { %v19774_v63 = vadd.f32 %v10534_v58, %v10176_v57  ;;  %11536 = vmatmul.bf16.gmra.mxu3 %v11424_v36  ;;  %v21266_v57 = vld [vmem:[#allocation44_spill] sm:$0xff] }
 0x796   : > { %v9630_v7 = vpop.f32.mrf.mxu3 }
 0x797   : > { %v9723_v40 = vadd.f32 %v9630_v7, %v9134_v13 }
 0x798   : > { %v10081_v28 = vpop.f32.mrf.mxu1 }
 0x799   : > { %v10177_v9 = vadd.f32 %v10081_v28, %v9721_v32  ;;  %v9136_v32 = vadd.f32 %v21265_v25, %v21264_v18  ;;  %v19801_v52 = vpop.f32.mrf.mxu0 }
 0x79a   : > { %v10537_v1 = vpop.f32.mrf.mxu2 }
 0x79b   : > { %v19779_v17 = vadd.f32 %v10537_v1, %v10177_v9 }
 0x79e   : > { %v9632_v11 = vpop.f32.mrf.mxu3 }
 0x79f   : > { %v9724_v50 = vadd.f32 %v9632_v11, %v9135_v42  ;;  %v21268_v42 = vld [vmem:[#allocation50_spill] sm:$0xff] }
 0x7a0   : > { %v10083_v5 = vpop.f32.mrf.mxu1 }
 0x7a1   : > { %v10178_v62 = vadd.f32 %v10083_v5, %v9722_v54  ;;  %v21267_v54 = vld [vmem:[#allocation46_spill] sm:$0xff]  ;;  %v21269_v5 = vld [vmem:[#allocation76_spill] sm:$0xff] }
 0x7a2   : > { %v10539_v44 = vpop.f32.mrf.mxu2  ;;  %v9137_v58 = vadd.f32 %v21267_v54, %v21266_v57  ;;  %v9138_v11 = vadd.f32 %v21269_v5, %v21268_v42  ;;  %v19813_v57 = vpop.f32.mrf.mxu0  ;;  %v21274_v42 = vld [vmem:[#allocation26_spill] sm:$0xff] }
 0x7a3   : > { %v19785_v12 = vadd.f32 %v10539_v44, %v10178_v62  ;;  %11541 = vmatmul.bf16.gmra.mxu3 %v11426_v6  ;;  %v21275_v5 = vld [vmem:[#allocation30_spill] sm:$0xff] }
 0x7a6   : > { %v9635_v46 = vpop.f32.mrf.mxu3 }
 0x7a7   : > { %v9725_v61 = vadd.f32 %v9635_v46, %v9136_v32  ;;  %v14892_v32 = vld [vmem:[#allocation2 + $0x38] sm:$0xff] }
 0x7a8   : > { %v10086_v24 = vpop.f32.mrf.mxu1  ;;  %v21271_v46 = vld [vmem:[#allocation27_spill] sm:$0xff] }
 0x7a9   : > { %v10179_v41 = vadd.f32 %v10086_v24, %v9723_v40  ;;  %v11428_v40 = vsel %vm6007_vm5, %v11425_v30, %v11427_v31  ;;  %v21270_v24 = vld [vmem:[#allocation64_spill] sm:$0xff]  ;;  %v11429_v30 = vrot.slane %v14892_v32, 3  ;;  %v21276_v32 = vld [vmem:[#allocation71_spill] sm:$0xff] }
 0x7aa   : > { %v10542_v14 = vpop.f32.mrf.mxu2 }
 0x7ab   : > { %v19790_v38 = vadd.f32 %v10542_v14, %v10179_v41  ;;  %v9139_v41 = vadd.f32 %v21271_v46, %v21270_v24  ;;  %v11430_v54 = vsel %vm6007_vm5, %v11427_v31, %v11429_v30  ;;  %v21277_v24 = vld [vmem:[#allocation31_spill] sm:$0xff] }
 0x7ac   : > { %v9142_v46 = vadd.f32 %v21277_v24, %v21276_v32  ;;  %v14895_v24 = vld [vmem:[#allocation2 + $0x50] sm:$0xff] }
 0x7ae   : > { %v9637_v13 = vpop.f32.mrf.mxu3 }
 0x7af   : > { %v19796_v7 = vadd.f32 %v9637_v13, %v9137_v58  ;;  %v21272_v58 = vld [vmem:[#allocation59_spill] sm:$0xff] }
 0x7b0   : > { %v10088_v36 = vpop.f32.mrf.mxu1 }
 0x7b1   : > { %v10180_v28 = vadd.f32 %v10088_v36, %v9724_v50 }
 0x7b2   : > { %v10544_v9 = vpop.f32.mrf.mxu2 }
 0x7b3   : > { %v19798_v1 = vadd.f32 %v10544_v9, %v10180_v28  ;;  %11546 = vmatmul.bf16.gmra.mxu3 %v11428_v40  ;;  %v19820_v9 = vpop.f32.mrf.mxu0  ;;  %v14893_v40 = vld [vmem:[#allocation2 + $0x40] sm:$0xff] }
 0x7b6   : > { %v9640_v44 = vpop.f32.mrf.mxu3 }
 0x7b7   : > { %v19805_v18 = vadd.f32 %v9640_v44, %v9138_v11  ;;  %v9141_v11 = vadd.f32 %v21275_v5, %v21274_v42  ;;  %v11431_v44 = vrot.slane %v14893_v40, 3  ;;  %v21281_v5 = vld [vmem:[#allocation29_spill] sm:$0xff] }
 0x7b8   : > { %v10091_v62 = vpop.f32.mrf.mxu1 }
 0x7b9   : > { %v10181_v6 = vadd.f32 %v10091_v62, %v9725_v61  ;;  %v21273_v61 = vld [vmem:[#allocation54_spill] sm:$0xff] }
 0x7ba   : > { %v10547_v25 = vpop.f32.mrf.mxu2  ;;  %v9140_v36 = vadd.f32 %v21273_v61, %v21272_v58  ;;  %v21279_v58 = vld [vmem:[#allocation28_spill] sm:$0xff] }
 0x7bb   : > { %v19807_v50 = vadd.f32 %v10547_v25, %v10181_v6  ;;  %v11432_v25 = vsel %vm6007_vm5, %v11429_v30, %v11431_v44  ;;  %v19827_v31 = vpop.f32.mrf.mxu0  ;;  %v9143_v61 = vadd.f32 %v19601_v55, %v21279_v58  ;;  %v11435_v58 = vrot.slane %v14895_v24, 3  ;;  %v11944_v24 = vld [vmem:[#allocation15 + $0x78] sm:$0xff] }
 0x7bc   : > { %11965 = vmatpush.msra.mxu2 %v11944_v24  ;;  %11945 = vmatpush.msra.mxu1 %v11944_v24 }
 0x7be   : > { %v9642_v14 = vpop.f32.mrf.mxu3 }
 0x7bf   : > { %v19811_v60 = vadd.f32 %v9642_v14, %v9139_v41 }
 0x7c3   : > { %11551 = vmatmul.bf16.gmra.mxu3 %v11430_v54  ;;  %v14894_v54 = vld [vmem:[#allocation2 + $0x48] sm:$0xff] }
 0x7c4   : > { %v11433_v40 = vrot.slane %v14894_v54, 3 }
 0x7c6   : > { %v9645_v13 = vpop.f32.mrf.mxu3  ;;  %v11434_v30 = vsel %vm6007_vm5, %v11431_v44, %v11433_v40  ;;  %v11436_v44 = vsel %vm6007_vm5, %v11433_v40, %v11435_v58 }
 0x7c7   : > { %v19818_v28 = vadd.f32 %v9645_v13, %v9140_v36  ;;  %v19835_v36 = vpop.f32.mrf.mxu0 }
 0x7ce   : > { %v9647_v62 = vpop.f32.mrf.mxu3 }
 0x7cf   : > { %v19824_v6 = vadd.f32 %v9647_v62, %v9141_v11  ;;  %v9144_v11 = vadd.f32 %v19610_v20, %v21281_v5  ;;  %v19844_v32 = vpop.f32.mrf.mxu0  ;;  %v9146_v20 = vadd.f32 %v19628_v49, %v19605_v56  ;;  %v14896_v5 = vld [vmem:[#allocation2 + $0x58] sm:$0xff]  ;;  %v21288_v56 = vld [vmem:[#allocation56_spill] sm:$0xff] }
 0x7d0   : > { %v11202_v49 = vadd.f32 %v19646_v37, %v21288_v56 }
 0x7d3   : > { %11556 = vmatmul.bf16.gmra.mxu3 %v11432_v25 }
 0x7d6   : > { %v9650_v41 = vpop.f32.mrf.mxu3 }
 0x7d7   : > { %v19831_v14 = vadd.f32 %v9650_v41, %v9142_v46  ;;  %v21283_v46 = vld [vmem:[#allocation33_spill] sm:$0xff] }
 0x7d8   : > { %v9145_v55 = vadd.f32 %v19622_v23, %v21283_v46 }
 0x7d9   : > { %21278 = vst [vmem:[#allocation43_spill] sm:$0xff] %v19831_v14 }
 0x7de   : > { %v9652_v13 = vpop.f32.mrf.mxu3 }
 0x7df   : > { %v19837_v42 = vadd.f32 %v9652_v13, %v9143_v61  ;;  %v19850_v61 = vpop.f32.mrf.mxu0 }
 0x7e1   : > { %21280 = vst [vmem:[#allocation47_spill] sm:$0xff] %v19837_v42 }
 0x7e3   : > { %11561 = vmatmul.bf16.gmra.mxu3 %v11434_v30 }
 0x7e6   : > { %v9655_v62 = vpop.f32.mrf.mxu3 }
 0x7e7   : > { %v19842_v25 = vadd.f32 %v9655_v62, %v9144_v11  ;;  %v19857_v11 = vpop.f32.mrf.mxu0  ;;  %v21286_v62 = vld [vmem:[#allocation32_spill] sm:$0xff] }
 0x7e8   : > { %v9147_v23 = vadd.f32 %v19636_v35, %v21286_v62  ;;  %v21290_v35 = vld [vmem:[#allocation75_spill] sm:$0xff] }
 0x7e9   : > { %21282 = vst [vmem:[#allocation44_spill] sm:$0xff] %v19842_v25  ;;  %v11203_v62 = vadd.f32 %v19654_v15, %v21290_v35  ;;  %v14898_v15 = vld [vmem:[#allocation2 + $0x68] sm:$0xff] }
 0x7ee   : > { %v9657_v41 = vpop.f32.mrf.mxu3 }
 0x7ef   : > { %v19848_v54 = vadd.f32 %v9657_v41, %v9145_v55  ;;  %v11437_v55 = vrot.slane %v14896_v5, 3  ;;  %v11943_v5 = vld [vmem:[#allocation15 + $0x70] sm:$0xff] }
 0x7f0   : > { %11966 = vmatpush.msra.mxu2 %v11943_v5  ;;  %11946 = vmatpush.msra.mxu1 %v11943_v5 }
 0x7f1   : > { %21284 = vst [vmem:[#allocation46_spill] sm:$0xff] %v19848_v54  ;;  %v11438_v40 = vsel %vm6007_vm5, %v11435_v58, %v11437_v55 }
 0x7f3   : > { %11566 = vmatmul.bf16.gmra.mxu3 %v11436_v44  ;;  %v19866_v44 = vpop.f32.mrf.mxu0 }
 0x7f6   : > { %v9660_v13 = vpop.f32.mrf.mxu3 }
 0x7f7   : > { %v19855_v30 = vadd.f32 %v9660_v13, %v9146_v20 }
 0x7f9   : > { %21285 = vst [vmem:[#allocation50_spill] sm:$0xff] %v19855_v30  ;;  %v14897_v30 = vld [vmem:[#allocation2 + $0x60] sm:$0xff] }
 0x7fa   : > { %v11439_v24 = vrot.slane %v14897_v30, 3  ;;  %v21294_v30 = vld [vmem:[#allocation39_spill] sm:$0xff] }
 0x7fb   : > { %v19874_v58 = vpop.f32.mrf.mxu0 }
 0x7fc   : > { %v11440_v37 = vsel %vm6007_vm5, %v11437_v55, %v11439_v24 }
 0x7fe   : > { %v9662_v46 = vpop.f32.mrf.mxu3 }
 0x7ff   : > { %v19861_v41 = vadd.f32 %v9662_v46, %v9147_v23  ;;  %v21292_v46 = vld [vmem:[#allocation37_spill] sm:$0xff] }
 0x801   : > { %21287 = vst [vmem:[#allocation76_spill] sm:$0xff] %v19861_v41  ;;  %v11441_v41 = vrot.slane %v14898_v15, 3 }
 0x803   : > { %11571 = vmatmul.bf16.gmra.mxu3 %v11438_v40  ;;  %v11204_v40 = vadd.f32 %v19662_v21, %v21292_v46  ;;  %v11442_v21 = vsel %vm6007_vm5, %v11439_v24, %v11441_v41 }
 0x806   : > { %v11532_v20 = vpop.f32.mrf.mxu3 }
 0x807   : > { %v19868_v13 = vadd.f32 %v11532_v20, %v11202_v49  ;;  %v11136_v20 = vpop.f32.mrf.mxu0 }
 0x808   : > { %v19882_v35 = vadd.f32 %v11136_v20, %v19807_v50  ;;  %v14899_v50 = vld [vmem:[#allocation2 + $0x70] sm:$0xff] }
 0x809   : > { %21289 = vst [vmem:[#allocation64_spill] sm:$0xff] %v19868_v13  ;;  %v11941_v20 = vld [vmem:[#allocation15 + $0x60] sm:$0xff]  ;;  %v11443_v15 = vrot.slane %v14899_v50, 3 }
 0x80b   : > { %v11444_v24 = vsel %vm6007_vm5, %v11441_v41, %v11443_v15  ;;  %v11210_v41 = vadd.f32 %v19732_v3, %v19674_v47  ;;  %v11212_v47 = vadd.f32 %v19756_v27, %v19691_v59  ;;  %v11939_v3 = vld [vmem:[#allocation15 + $0x50] sm:$0xff] }
 0x80e   : > { %v11534_v54 = vpop.f32.mrf.mxu3 }
 0x80f   : > { %v19872_v23 = vadd.f32 %v11534_v54, %v11203_v62  ;;  %v11205_v54 = vadd.f32 %v19670_v8, %v21294_v30  ;;  %v11942_v62 = vld [vmem:[#allocation15 + $0x68] sm:$0xff] }
 0x810   : > { %11967 = vmatpush.msra.mxu2 %v11942_v62  ;;  %11947 = vmatpush.msra.mxu1 %v11942_v62  ;;  %v21299_v62 = vld [vmem:[#allocation55_spill] sm:$0xff] }
 0x811   : > { %21291 = vst [vmem:[#allocation27_spill] sm:$0xff] %v19872_v23 }
 0x812   : > { %11968 = vmatpush.msra.mxu2 %v11941_v20  ;;  %11948 = vmatpush.msra.mxu1 %v11941_v20  ;;  %v11940_v20 = vld [vmem:[#allocation15 + $0x58] sm:$0xff] }
 0x813   : > { %11576 = vmatmul.bf16.gmra.mxu3 %v11440_v37  ;;  %v11206_v37 = vadd.f32 %v19679_v33, %v19648_v2  ;;  %v11208_v2 = vadd.f32 %v19703_v39, %v21299_v62 }
 0x814   : > { %11969 = vmatpush.msra.mxu2 %v11940_v20  ;;  %11949 = vmatpush.msra.mxu1 %v11940_v20  ;;  %v21307_v20 = vld [vmem:[#allocation84_spill] sm:$0xff] }
 0x816   : > { %v11537_v56 = vpop.f32.mrf.mxu3  ;;  %11970 = vmatpush.msra.mxu2 %v11939_v3  ;;  %11950 = vmatpush.msra.mxu1 %v11939_v3 }
 0x817   : > { %v19879_v49 = vadd.f32 %v11537_v56, %v11204_v40  ;;  %v21297_v56 = vld [vmem:[#allocation73_spill] sm:$0xff] }
 0x818   : > { %v11207_v8 = vadd.f32 %v19693_v10, %v21297_v56 }
 0x819   : > { %21293 = vst [vmem:[#allocation59_spill] sm:$0xff] %v19879_v49 }
 0x81e   : > { %v11539_v5 = vpop.f32.mrf.mxu3 }
 0x81f   : > { %v19886_v55 = vadd.f32 %v11539_v5, %v11205_v54 }
 0x821   : > { %21295 = vst [vmem:[#allocation54_spill] sm:$0xff] %v19886_v55 }
 0x823   : > { %11581 = vmatmul.bf16.gmra.mxu3 %v11442_v21  ;;  %v14900_v21 = vld [vmem:[#allocation2 + $0x78] sm:$0xff] }
 0x824   : > { %v11445_v56 = vrot.slane %v14900_v21, 3 }
 0x826   : > { %v11542_v46 = vpop.f32.mrf.mxu3 }
 0x827   : > { %v19891_v40 = vadd.f32 %v11542_v46, %v11206_v37  ;;  %v21300_v37 = vld [vmem:[#allocation82_spill] sm:$0xff] }
 0x828   : > { %v11209_v10 = vadd.f32 %v19718_v53, %v21300_v37  ;;  %v11211_v53 = vadd.f32 %v19746_v43, %v19681_v26  ;;  %v11213_v26 = vadd.f32 %v19767_v22, %v19699_v48  ;;  %v14903_v48 = vld [vmem:[#allocation2 + $0x90] sm:$0xff]  ;;  %v11215_v22 = vadd.f32 %v19792_v34, %v19723_v4 }
 0x829   : > { %21296 = vst [vmem:[#allocation26_spill] sm:$0xff] %v19891_v40  ;;  %v11217_v4 = vadd.f32 %v19813_v57, %v19743_v45  ;;  %v11936_v45 = vld [vmem:[#allocation15 + $0x38] sm:$0xff] }
 0x82e   : > { %v11544_v30 = vpop.f32.mrf.mxu3 }
 0x82f   : > { %v19895_v54 = vadd.f32 %v11544_v30, %v11207_v8  ;;  %v11446_v8 = vsel %vm6007_vm5, %v11443_v15, %v11445_v56 }
 0x831   : > { %21298 = vst [vmem:[#allocation30_spill] sm:$0xff] %v19895_v54 }
 0x833   : > { %11586 = vmatmul.bf16.gmra.mxu3 %v11444_v24  ;;  %v14901_v24 = vld [vmem:[#allocation2 + $0x80] sm:$0xff] }
 0x836   : > { %v11547_v33 = vpop.f32.mrf.mxu3 }
 0x837   : > { %v19900_v5 = vadd.f32 %v11547_v33, %v11208_v2  ;;  %v11447_v2 = vrot.slane %v14901_v24, 3  ;;  %v11938_v24 = vld [vmem:[#allocation15 + $0x48] sm:$0xff] }
 0x838   : > { %11971 = vmatpush.msra.mxu2 %v11938_v24  ;;  %11951 = vmatpush.msra.mxu1 %v11938_v24  ;;  %v11219_v24 = vadd.f32 %v19827_v31, %v19760_v19  ;;  %v11935_v19 = vld [vmem:[#allocation15 + $0x30] sm:$0xff] }
 0x839   : > { %v11448_v15 = vsel %vm6007_vm5, %v11445_v56, %v11447_v2 }
 0x83e   : > { %v11549_v46 = vpop.f32.mrf.mxu3 }
 0x83f   : > { %v19904_v50 = vadd.f32 %v11549_v46, %v11209_v10  ;;  %v14902_v10 = vld [vmem:[#allocation2 + $0x88] sm:$0xff] }
 0x840   : > { %v11449_v46 = vrot.slane %v14902_v10, 3 }
 0x841   : > { %21301 = vst [vmem:[#allocation71_spill] sm:$0xff] %v19904_v50 }
 0x842   : > { %v11450_v59 = vsel %vm6007_vm5, %v11447_v2, %v11449_v46  ;;  %v11937_v2 = vld [vmem:[#allocation15 + $0x40] sm:$0xff] }
 0x843   : > { %11591 = vmatmul.bf16.gmra.mxu3 %v11446_v8  ;;  %v21305_v8 = vld [vmem:[#allocation83_spill] sm:$0xff]  ;;  %11972 = vmatpush.msra.mxu2 %v11937_v2 }
 0x844   : > { %11952 = vmatpush.msra.mxu1 %v11937_v2  ;;  %v11222_v2 = vadd.f32 %v19850_v61, %v19779_v17 }
 0x845   : > { %11973 = vmatpush.msra.mxu2 %v11936_v45 }
 0x846   : > { %v11552_v30 = vpop.f32.mrf.mxu3  ;;  %11953 = vmatpush.msra.mxu1 %v11936_v45 }
 0x847   : > { %v19909_v39 = vadd.f32 %v11552_v30, %v11210_v41  ;;  %v10169_v41 = vadd.f32 %v21305_v8, %v19688_v29  ;;  %11974 = vmatpush.msra.mxu2 %v11935_v19 }
 0x848   : > { %11954 = vmatpush.msra.mxu1 %v11935_v19 }
 0x849   : > { %21302 = vst [vmem:[#allocation31_spill] sm:$0xff] %v19909_v39  ;;  %v10625_v30 = vadd.f32 %v21307_v20, %v10169_v41  ;;  %v11310_v41 = vld [vmem:[#allocation2 + $0xa0] sm:$0x7]  ;;  %v21311_v20 = vld [vmem:[#allocation85_spill] sm:$0xff] }
 0x84b   : > { %v11214_v27 = vadd.f32 %v19783_v16, %v10625_v30  ;;  %v11216_v16 = vadd.f32 %v19801_v52, %v19734_v51  ;;  %v11218_v51 = vadd.f32 %v19820_v9, %v21311_v20  ;;  %v11400_v30 = vunpack.c.l.b16 %v11310_v41  ;;  %v11933_v20 = vld [vmem:[#allocation15 + $0x20] sm:$0xff] }
 0x84c   : > { %v11220_v9 = vadd.f32 %v19835_v36, %v19770_v0  ;;  %v11223_v0 = vadd.f32 %v19857_v11, %v19785_v12  ;;  %v11934_v36 = vld [vmem:[#allocation15 + $0x28] sm:$0xff]  ;;  %v11225_v11 = vadd.f32 %v19874_v58, %v19798_v1 }
 0x84d   : > { %11975 = vmatpush.msra.mxu2 %v11934_v36  ;;  %11955 = vmatpush.msra.mxu1 %v11934_v36 }
 0x84e   : > { %v11554_v62 = vpop.f32.mrf.mxu3 }
 0x84f   : > { %v19913_v33 = vadd.f32 %v11554_v62, %v11211_v53  ;;  %11976 = vmatpush.msra.mxu2 %v11933_v20  ;;  %11956 = vmatpush.msra.mxu1 %v11933_v20  ;;  %v21318_v20 = vld [vmem:[#allocation38_spill] sm:$0xff] }
 0x851   : > { %21303 = vst [vmem:[#allocation28_spill] sm:$0xff] %v19913_v33 }
 0x853   : > { %11596 = vmatmul.bf16.gmra.mxu3 %v11448_v15  ;;  %v11451_v15 = vrot.slane %v14903_v48, 3 }
 0x855   : > { %v11452_v3 = vsel %vm6007_vm5, %v11449_v46, %v11451_v15 }
 0x856   : > { %v11557_v21 = vpop.f32.mrf.mxu3 }
 0x857   : > { %v19918_v37 = vadd.f32 %v11557_v21, %v11212_v47 }
 0x859   : > { %21304 = vst [vmem:[#allocation29_spill] sm:$0xff] %v19918_v37 }
 0x85e   : > { %v11559_v43 = vpop.f32.mrf.mxu3 }
 0x85f   : > { %v19924_v56 = vadd.f32 %v11559_v43, %v11213_v26  ;;  %v14904_v26 = vld [vmem:[#allocation2 + $0x98] sm:$0xff] }
 0x860   : > { %v11453_v43 = vrot.slane %v14904_v26, 3 }
 0x861   : > { %21306 = vst [vmem:[#allocation33_spill] sm:$0xff] %v19924_v56 }
 0x862   : > { %v11454_v46 = vsel %vm6007_vm5, %v11451_v15, %v11453_v43 }
 0x863   : > { %11601 = vmatmul.bf16.gmra.mxu3 %v11450_v59 }
 0x866   : > { %v11562_v53 = vpop.f32.mrf.mxu3 }
 0x867   : > { %v19929_v62 = vadd.f32 %v11562_v53, %v11214_v27  ;;  %v11419_v27 = vpack.c.b16 %v11400_v30, %v11400_v30 }
 0x869   : > { %21308 = vst [vmem:[#allocation32_spill] sm:$0xff] %v19929_v62  ;;  %v11455_v53 = vrot.slane %v11419_v27, 3 }
 0x86e   : > { %v11564_v29 = vpop.f32.mrf.mxu3 }
 0x86f   : > { %v19933_v47 = vadd.f32 %v11564_v29, %v11215_v22  ;;  %v11456_v22 = vsel %vm6007_vm5, %v11453_v43, %v11455_v53  ;;  %v11224_v43 = vadd.f32 %v19866_v44, %v19790_v38  ;;  %v11932_v53 = vld [vmem:[#allocation15 + $0x18] sm:$0xff] }
 0x870   : > { %11977 = vmatpush.msra.mxu2 %v11932_v53  ;;  %11957 = vmatpush.msra.mxu1 %v11932_v53 }
 0x873   : > { %11606 = vmatmul.bf16.gmra.mxu3 %v11452_v3  ;;  %v11221_v3 = vadd.f32 %v19844_v32, %v19774_v63  ;;  %v19968_v63 = vpop.f32.mrf.mxu1 }
 0x876   : > { %v11567_v21 = vpop.f32.mrf.mxu3 }
 0x877   : > { %v19938_v10 = vadd.f32 %v11567_v21, %v11216_v16 }
 0x879   : > { %21309 = vst [vmem:[#allocation56_spill] sm:$0xff] %v19938_v10 }
 0x87b   : > { %v19980_v41 = vpop.f32.mrf.mxu1 }
 0x87e   : > { %v11569_v34 = vpop.f32.mrf.mxu3 }
 0x87f   : > { %v19942_v8 = vadd.f32 %v11569_v34, %v11217_v4  ;;  %v19972_v34 = vpop.f32.mrf.mxu2 }
 0x881   : > { %21310 = vst [vmem:[#allocation75_spill] sm:$0xff] %v19942_v8 }
 0x883   : > { %11611 = vmatmul.bf16.gmra.mxu3 %v11454_v46  ;;  %v19978_v46 = vpop.f32.mrf.mxu0  ;;  %v19990_v38 = vpop.f32.mrf.mxu1 }
 0x886   : > { %v11572_v52 = vpop.f32.mrf.mxu3 }
 0x887   : > { %v19947_v59 = vadd.f32 %v11572_v52, %v11218_v51  ;;  %v19982_v12 = vpop.f32.mrf.mxu2 }
 0x889   : > { %21312 = vst [vmem:[#allocation37_spill] sm:$0xff] %v19947_v59 }
 0x88b   : > { %v19988_v30 = vpop.f32.mrf.mxu0 }
 0x88e   : > { %v11574_v57 = vpop.f32.mrf.mxu3 }
 0x88f   : > { %v19951_v48 = vadd.f32 %v11574_v57, %v11219_v24  ;;  %v19992_v44 = vpop.f32.mrf.mxu2  ;;  %v19999_v57 = vpop.f32.mrf.mxu1 }
 0x893   : > { %11616 = vmatmul.bf16.gmra.mxu3 %v11456_v22  ;;  %v19997_v45 = vpop.f32.mrf.mxu0 }
 0x896   : > { %v11577_v29 = vpop.f32.mrf.mxu3 }
 0x897   : > { %v19956_v15 = vadd.f32 %v11577_v29, %v11220_v9  ;;  %v20003_v58 = vpop.f32.mrf.mxu2  ;;  %v20009_v29 = vpop.f32.mrf.mxu1 }
 0x89b   : > { %v20005_v22 = vpop.f32.mrf.mxu0 }
 0x89c   : > { %21313 = vst [vmem:[#allocation39_spill] sm:$0xff] %v20005_v22 }
 0x89e   : > { %v11579_v31 = vpop.f32.mrf.mxu3 }
 0x89f   : > { %v19960_v16 = vadd.f32 %v11579_v31, %v11221_v3  ;;  %v20013_v19 = vpop.f32.mrf.mxu2  ;;  %v21315_v31 = vld [vmem:[#allocation34_spill] sm:$0xff] }
 0x8a6   : > { %v11582_v21 = vpop.f32.mrf.mxu3 }
 0x8a7   : > { %v19964_v26 = vadd.f32 %v11582_v21, %v11222_v2  ;;  %v11766_v2 = vmul.f32 %v21315_v31, %v19868_v13  ;;  %v21316_v21 = vld [vmem:[#allocation35_spill] sm:$0xff]  ;;  %v21321_v31 = vld [vmem:[#allocation40_spill] sm:$0xff]  ;;  %v20033_v14 = vpop.f32.mrf.mxu2 }
 0x8a8   : > { %v11771_v13 = vmul.f32 %v21321_v31, %v19895_v54  ;;  %v21324_v54 = vld [vmem:[#allocation61_spill] sm:$0xff] }
 0x8ae   : > { %v11584_v4 = vpop.f32.mrf.mxu3 }
 0x8af   : > { %v19970_v32 = vadd.f32 %v11584_v4, %v11223_v0  ;;  %v11768_v0 = vmul.f32 %v21316_v21, %v19879_v49  ;;  %v21317_v4 = vld [vmem:[#allocation57_spill] sm:$0xff]  ;;  %v20029_v21 = vpop.f32.mrf.mxu1 }
 0x8b6   : > { %v11587_v17 = vpop.f32.mrf.mxu3 }
 0x8b7   : > { %v19976_v61 = vadd.f32 %v11587_v17, %v11224_v43  ;;  %v11769_v43 = vmul.f32 %v21317_v4, %v19886_v55  ;;  %v11843_v17 = vmul.f32 %v11766_v2, %v11766_v2  ;;  %v21322_v55 = vld [vmem:[#allocation42_spill] sm:$0xff] }
 0x8b8   : > { %v11772_v22 = vmul.f32 %v21322_v55, %v19900_v5 }
 0x8b9   : > { %v11846_v25 = vmul.f32 %v11769_v43, %v11769_v43 }
 0x8ba   : > { %v11849_v31 = vmul.f32 %v11772_v22, %v11772_v22 }
 0x8be   : > { %v11589_v51 = vpop.f32.mrf.mxu3 }
 0x8bf   : > { %v19986_v52 = vadd.f32 %v11589_v51, %v11225_v11  ;;  %v11845_v11 = vmul.f32 %v11768_v0, %v11768_v0  ;;  %v11770_v51 = vmul.f32 %v21318_v20, %v19891_v40 }
 0x8c1   : > { %v11847_v4 = vmul.f32 %v11770_v51, %v11770_v51 }
 0x8c6   : > { %v11592_v27 = vpop.f32.mrf.mxu3 }
 0x8c7   : > { %v19995_v24 = vadd.f32 %v11592_v27, %v19882_v35  ;;  %v21314_v35 = vld [vmem:[#allocation36_spill] sm:$0xff] }
 0x8c8   : > { %v11767_v3 = vmul.f32 %v21314_v35, %v19872_v23  ;;  %v20025_v35 = vpop.f32.mrf.mxu0 }
 0x8c9   : > { %21320 = vst [vmem:[#allocation55_spill] sm:$0xff] %v20025_v35  ;;  %v11931_v35 = vld [vmem:[#allocation15 + $0x10] sm:$0xff] }
 0x8ca   : > { %v11844_v36 = vmul.f32 %v11767_v3, %v11767_v3  ;;  %v11802_v53 = vadd.f32 %v11767_v3, %v11766_v2  ;;  %v11848_v3 = vmul.f32 %v11771_v13, %v11771_v13  ;;  %v21323_v2 = vld [vmem:[#allocation41_spill] sm:$0xff]  ;;  %11978 = vmatpush.msra.mxu2 %v11931_v35  ;;  %11958 = vmatpush.msra.mxu1 %v11931_v35  ;;  %v20051_v35 = vpop.f32.mrf.mxu2 }
 0x8cc   : > { %v11879_v23 = vadd.f32 %v11844_v36, %v11843_v17  ;;  %v11803_v49 = vadd.f32 %v11802_v53, %v11768_v0  ;;  %v11773_v36 = vmul.f32 %v21323_v2, %v19904_v50  ;;  %v11774_v0 = vmul.f32 %v21324_v54, %v19909_v39  ;;  %v20047_v2 = vpop.f32.mrf.mxu1 }
 0x8ce   : > { %v20001_v1 = vpop.f32.mrf.mxu3  ;;  %v11880_v42 = vadd.f32 %v11879_v23, %v11845_v11  ;;  %v11804_v20 = vadd.f32 %v11803_v49, %v11769_v43  ;;  %v11850_v53 = vmul.f32 %v11773_v36, %v11773_v36 }
 0x8d0   : > { %v11881_v40 = vadd.f32 %v11880_v42, %v11846_v25  ;;  %v11805_v17 = vadd.f32 %v11804_v20, %v11770_v51  ;;  %v21325_v42 = vld [vmem:[#allocation45_spill] sm:$0xff]  ;;  %v20043_v43 = vpop.f32.mrf.mxu0  ;;  %v11851_v20 = vmul.f32 %v11774_v0, %v11774_v0 }
 0x8d1   : > { %v11775_v25 = vmul.f32 %v21325_v42, %v19913_v33 }
 0x8d2   : > { %v11806_v55 = vadd.f32 %v11805_v17, %v11771_v13  ;;  %v21327_v13 = vld [vmem:[#allocation48_spill] sm:$0xff] }
 0x8d3   : > { %v11852_v50 = vmul.f32 %v11775_v25, %v11775_v25 }
 0x8d4   : > { %v11807_v49 = vadd.f32 %v11806_v55, %v11772_v22  ;;  %v21328_v55 = vld [vmem:[#allocation66_spill] sm:$0xff] }
 0x8d6   : > { %v20007_v9 = vpop.f32.mrf.mxu3  ;;  %v11808_v54 = vadd.f32 %v11807_v49, %v11773_v36  ;;  %v21329_v36 = vld [vmem:[#allocation49_spill] sm:$0xff] }
 0x8de   : > { %v20023_v27 = vpop.f32.mrf.mxu3 }
 0x8df   : > { %21319 = vst [vmem:[#allocation73_spill] sm:$0xff] %v20023_v27  ;;  %v11882_v27 = vadd.f32 %v11881_v40, %v11847_v4  ;;  %v21326_v40 = vld [vmem:[#allocation63_spill] sm:$0xff] }
 0x8e0   : > { %v11776_v4 = vmul.f32 %v21326_v40, %v19918_v37 }
 0x8e1   : > { %v11883_v11 = vadd.f32 %v11882_v27, %v11848_v3  ;;  %v11777_v27 = vmul.f32 %v21327_v13, %v19924_v56  ;;  %v11809_v3 = vadd.f32 %v11808_v54, %v11774_v0  ;;  %v21330_v13 = vld [vmem:[#allocation51_spill] sm:$0xff] }
 0x8e2   : > { %v11853_v22 = vmul.f32 %v11776_v4, %v11776_v4  ;;  %v11780_v56 = vmul.f32 %v21330_v13, %v19938_v10  ;;  %v21335_v10 = vld [vmem:[#allocation62_spill] sm:$0xff] }
 0x8e3   : > { %v11884_v51 = vadd.f32 %v11883_v11, %v11849_v31  ;;  %v11778_v31 = vmul.f32 %v21328_v55, %v19929_v62  ;;  %v11810_v42 = vadd.f32 %v11809_v3, %v11775_v25  ;;  %v11854_v37 = vmul.f32 %v11777_v27, %v11777_v27  ;;  %v21331_v55 = vld [vmem:[#allocation69_spill] sm:$0xff]  ;;  %v20065_v25 = vpop.f32.mrf.mxu1  ;;  %v11930_v3 = vld [vmem:[#allocation15 + $0x8] sm:$0xff] }
 0x8e4   : > { %v11781_v62 = vmul.f32 %v21331_v55, %v19942_v8  ;;  %11979 = vmatpush.msra.mxu2 %v11930_v3  ;;  %11959 = vmatpush.msra.mxu1 %v11930_v3 }
 0x8e5   : > { %v11885_v39 = vadd.f32 %v11884_v51, %v11850_v53  ;;  %v11779_v53 = vmul.f32 %v21329_v36, %v19933_v47  ;;  %v11811_v49 = vadd.f32 %v11810_v42, %v11776_v4  ;;  %v11855_v33 = vmul.f32 %v11778_v31, %v11778_v31  ;;  %v21332_v4 = vld [vmem:[#allocation52_spill] sm:$0xff] }
 0x8e6   : > { %v20039_v23 = vpop.f32.mrf.mxu3  ;;  %v11857_v36 = vmul.f32 %v11780_v56, %v11780_v56 }
 0x8e7   : > { %v11886_v17 = vadd.f32 %v11885_v39, %v11851_v20  ;;  %v11812_v0 = vadd.f32 %v11811_v49, %v11777_v27  ;;  %v20061_v39 = vpop.f32.mrf.mxu0  ;;  %v11856_v54 = vmul.f32 %v11779_v53, %v11779_v53  ;;  %v20071_v27 = vpop.f32.mrf.mxu2  ;;  %v11858_v49 = vmul.f32 %v11781_v62, %v11781_v62 }
 0x8e9   : > { %v11887_v40 = vadd.f32 %v11886_v17, %v11852_v50  ;;  %v11813_v50 = vadd.f32 %v11812_v0, %v11778_v31 }
 0x8eb   : > { %v11888_v51 = vadd.f32 %v11887_v40, %v11853_v22  ;;  %v11782_v22 = vmul.f32 %v21332_v4, %v19947_v59  ;;  %v10182_v4 = vadd.f32 %v19968_v63, %v19796_v7  ;;  %v10113_v63 = vpop.f32.mrf.mxu1 }
 0x8ed   : > { %v11889_v20 = vadd.f32 %v11888_v51, %v11854_v37  ;;  %v11814_v37 = vadd.f32 %v11813_v50, %v11779_v53  ;;  %v21333_v51 = vld [vmem:[#allocation58_spill] sm:$0xff]  ;;  %v11859_v0 = vmul.f32 %v11782_v22, %v11782_v22  ;;  %v11785_v53 = vmul.f32 %v21335_v10, %v19960_v16 }
 0x8ee   : > { %v20055_v11 = vpop.f32.mrf.mxu3  ;;  %v11783_v13 = vmul.f32 %v21333_v51, %v19951_v48  ;;  %v10184_v10 = vadd.f32 %v19990_v38, %v19811_v60 }
 0x8ef   : > { %v11890_v17 = vadd.f32 %v11889_v20, %v11855_v33  ;;  %v11815_v55 = vadd.f32 %v11814_v37, %v11780_v56  ;;  %v21334_v33 = vld [vmem:[#allocation60_spill] sm:$0xff]  ;;  %v10638_v56 = vadd.f32 %v19972_v34, %v10182_v4  ;;  %v21337_v34 = vld [vmem:[#allocation70_spill] sm:$0xff] }
 0x8f0   : > { %v11784_v20 = vmul.f32 %v21334_v33, %v19956_v15  ;;  %v11860_v3 = vmul.f32 %v11783_v13, %v11783_v13 }
 0x8f1   : > { %v11891_v40 = vadd.f32 %v11890_v17, %v11856_v54  ;;  %v11816_v8 = vadd.f32 %v11815_v55, %v11781_v62  ;;  %v10183_v54 = vadd.f32 %v19980_v41, %v19805_v18  ;;  %v20084_v17 = vpop.f32.mrf.mxu0  ;;  %v21336_v62 = vld [vmem:[#allocation67_spill] sm:$0xff]  ;;  %v11787_v41 = vmul.f32 %v21337_v34, %v19970_v32  ;;  %v10569_v55 = vpop.f32.mrf.mxu2 }
 0x8f2   : > { %v11861_v37 = vmul.f32 %v11784_v20, %v11784_v20  ;;  %v11227_v60 = vadd.f32 %v19978_v46, %v10638_v56 }
 0x8f3   : > { %v11892_v31 = vadd.f32 %v11891_v40, %v11857_v36  ;;  %v11817_v50 = vadd.f32 %v11816_v8, %v11782_v22  ;;  %v11786_v40 = vmul.f32 %v21336_v62, %v19964_v26  ;;  %v10639_v7 = vadd.f32 %v19982_v12, %v10183_v54  ;;  %v21338_v12 = vld [vmem:[#allocation72_spill] sm:$0xff] }
 0x8f4   : > { %v11862_v8 = vmul.f32 %v11785_v53, %v11785_v53  ;;  %v10185_v22 = vadd.f32 %v19999_v57, %v19818_v28  ;;  %v11788_v4 = vmul.f32 %v21338_v12, %v19976_v61  ;;  %v20106_v28 = vadd.f32 %v20001_v1, %v11227_v60 }
 0x8f5   : > { %v11893_v59 = vadd.f32 %v11892_v31, %v11858_v49  ;;  %v11818_v49 = vadd.f32 %v11817_v50, %v11783_v13  ;;  %v11863_v33 = vmul.f32 %v11786_v40, %v11786_v40  ;;  %v11864_v50 = vmul.f32 %v11787_v41, %v11787_v41 }
 0x8f6   : > { %v20069_v42 = vpop.f32.mrf.mxu3  ;;  %v10641_v38 = vadd.f32 %v20003_v58, %v10185_v22  ;;  %v10186_v57 = vadd.f32 %v20009_v29, %v19824_v6  ;;  %v11865_v56 = vmul.f32 %v11788_v4, %v11788_v4  ;;  %v21340_v58 = vld [vmem:[#allocation77_spill] sm:$0xff] }
 0x8f7   : > { %v11894_v36 = vadd.f32 %v11893_v59, %v11859_v0  ;;  %v10640_v59 = vadd.f32 %v19992_v44, %v10184_v10  ;;  %v11819_v31 = vadd.f32 %v11818_v49, %v11784_v20  ;;  %v21339_v44 = vld [vmem:[#allocation74_spill] sm:$0xff]  ;;  %v21341_v10 = vld [vmem:[#allocation43_spill] sm:$0xff] }
 0x8f8   : > { %v10187_v1 = vadd.f32 %v20029_v21, %v21341_v10 }
 0x8f9   : > { %v11895_v18 = vadd.f32 %v11894_v36, %v11860_v3  ;;  %v11820_v13 = vadd.f32 %v11819_v31, %v11785_v53  ;;  %v11228_v3 = vadd.f32 %v19988_v30, %v10639_v7  ;;  %v11789_v36 = vmul.f32 %v21339_v44, %v19986_v52  ;;  %v11158_v29 = vpop.f32.mrf.mxu0  ;;  %v21345_v31 = vld [vmem:[#allocation47_spill] sm:$0xff] }
 0x8fa   : > { %v11790_v53 = vmul.f32 %v21340_v58, %v19995_v24  ;;  %v10642_v7 = vadd.f32 %v20013_v19, %v10186_v57  ;;  %v10188_v19 = vadd.f32 %v20047_v2, %v21345_v31  ;;  %v21348_v44 = vld [vmem:[#allocation55_spill] sm:$0xff] }
 0x8fb   : > { %v11896_v0 = vadd.f32 %v11895_v18, %v11861_v37  ;;  %v11821_v20 = vadd.f32 %v11820_v13, %v11786_v40  ;;  %v11229_v37 = vadd.f32 %v19997_v45, %v10640_v59  ;;  %v20114_v30 = vadd.f32 %v20007_v9, %v11228_v3  ;;  %v21342_v18 = vld [vmem:[#allocation39_spill] sm:$0xff]  ;;  %v21344_v59 = vld [vmem:[#allocation73_spill] sm:$0xff] }
 0x8fc   : > { %v11230_v6 = vadd.f32 %v21342_v18, %v10641_v38  ;;  %v11866_v45 = vmul.f32 %v11789_v36, %v11789_v36  ;;  %v10643_v9 = vadd.f32 %v20033_v14, %v10187_v1  ;;  %v11867_v60 = vmul.f32 %v11790_v53, %v11790_v53  ;;  %v21347_v38 = vld [vmem:[#allocation79_spill] sm:$0xff] }
 0x8fd   : > { %v11897_v54 = vadd.f32 %v11896_v0, %v11862_v8  ;;  %v11822_v49 = vadd.f32 %v11821_v20, %v11787_v41  ;;  %v21343_v8 = vld [vmem:[#allocation78_spill] sm:$0xff]  ;;  %v20123_v22 = vadd.f32 %v21344_v59, %v11229_v37  ;;  %v21346_v0 = vld [vmem:[#allocation44_spill] sm:$0xff]  ;;  %v10116_v41 = vpop.f32.mrf.mxu1  ;;  %v11792_v13 = vmul.f32 %v21347_v38, %v20114_v30 }
 0x8fe   : > { %v20088_v51 = vpop.f32.mrf.mxu3  ;;  %v11791_v34 = vmul.f32 %v21343_v8, %v20106_v28  ;;  %v10189_v21 = vadd.f32 %v20065_v25, %v21346_v0  ;;  %v20133_v3 = vadd.f32 %v20039_v23, %v11230_v6  ;;  %v11231_v57 = vadd.f32 %v21348_v44, %v10642_v7  ;;  %v21352_v7 = vld [vmem:[#allocation81_spill] sm:$0xff]  ;;  %v11929_v0 = vld [vmem:[#allocation15] sm:$0xff] }
 0x8ff   : > { %v11898_v46 = vadd.f32 %v11897_v54, %v11863_v33  ;;  %v11823_v33 = vadd.f32 %v11822_v49, %v11788_v4  ;;  %v10644_v54 = vadd.f32 %v20051_v35, %v10188_v19  ;;  %v21349_v4 = vld [vmem:[#allocation80_spill] sm:$0xff]  ;;  %v11232_v23 = vadd.f32 %v20043_v43, %v10643_v9  ;;  %v21351_v35 = vld [vmem:[#allocation50_spill] sm:$0xff]  ;;  %v21353_v43 = vld [vmem:[#allocation65_spill] sm:$0xff]  ;;  %11980 = vmatpush.msra.mxu2 %v11929_v0 }
 0x900   : > { %v10645_v2 = vadd.f32 %v20071_v27, %v10189_v21  ;;  %v11868_v25 = vmul.f32 %v11791_v34, %v11791_v34  ;;  %v11793_v37 = vmul.f32 %v21349_v4, %v20123_v22  ;;  %v20142_v10 = vadd.f32 %v20055_v11, %v11231_v57  ;;  %11960 = vmatpush.msra.mxu1 %v11929_v0  ;;  %v21356_v57 = vld [vmem:[#allocation76_spill] sm:$0xff] }
 0x901   : > { %v11899_v40 = vadd.f32 %v11898_v46, %v11864_v50  ;;  %v10572_v50 = vpop.f32.mrf.mxu2  ;;  %v11824_v14 = vadd.f32 %v11823_v33, %v11789_v36  ;;  %v21350_v46 = vld [vmem:[#allocation46_spill] sm:$0xff]  ;;  %v10191_v1 = vadd.f32 %v10116_v41, %v21351_v35  ;;  %v11869_v49 = vmul.f32 %v11792_v13, %v11792_v13 }
 0x902   : > { %v11794_v27 = vmul.f32 %v21352_v7, %v20133_v3  ;;  %v11870_v8 = vmul.f32 %v11793_v37, %v11793_v37  ;;  %v11795_v9 = vmul.f32 %v21353_v43, %v20142_v10  ;;  %v11234_v19 = vadd.f32 %v20084_v17, %v10645_v2  ;;  %v21354_v41 = vld [vmem:[#allocation22_spill] sm:$0xff]  ;;  %v21355_v17 = vld [vmem:[#allocation24_spill] sm:$0xff] }
 0x903   : > { %v11900_v12 = vadd.f32 %v11899_v40, %v11865_v56  ;;  %v10190_v56 = vadd.f32 %v10113_v63, %v21350_v46  ;;  %v11825_v58 = vadd.f32 %v11824_v14, %v11790_v53  ;;  %v11233_v63 = vadd.f32 %v20061_v39, %v10644_v54 }
 0x904   : > { %v10647_v53 = vadd.f32 %v10572_v50, %v10191_v1  ;;  %v11871_v21 = vmul.f32 %v11794_v27, %v11794_v27  ;;  %v11872_v50 = vmul.f32 %v11795_v9, %v11795_v9  ;;  %v21358_v1 = vld [vmem:[#allocation53_spill] sm:$0xff] }
 0x905   : > { %v11901_v20 = vadd.f32 %v11900_v12, %v11866_v45  ;;  %v10646_v6 = vadd.f32 %v10569_v55, %v10190_v56  ;;  %v11826_v40 = vadd.f32 %v11825_v58, %v11791_v34  ;;  %v20149_v45 = vadd.f32 %v20069_v42, %v11232_v23  ;;  %v11161_v55 = vpop.f32.mrf.mxu0  ;;  %v10118_v42 = vpop.f32.mrf.mxu1 }
 0x906   : > { %v11612_v62 = vpop.f32.mrf.mxu3  ;;  %v20155_v31 = vadd.f32 %v20088_v51, %v11233_v63  ;;  %v10192_v2 = vadd.f32 %v10118_v42, %v21356_v57 }
 0x907   : > { %v11902_v36 = vadd.f32 %v11901_v20, %v11867_v60  ;;  %v11827_v59 = vadd.f32 %v11826_v40, %v11792_v13  ;;  %v11796_v33 = vmul.f32 %v21354_v41, %v20149_v45  ;;  %v20160_v12 = vadd.f32 %v11612_v62, %v11234_v19  ;;  %v21357_v62 = vld [vmem:[#allocation23_spill] sm:$0xff] }
 0x908   : > { %v11235_v60 = vadd.f32 %v11158_v29, %v10646_v6  ;;  %v11236_v13 = vadd.f32 %v11161_v55, %v10647_v53  ;;  %v11797_v14 = vmul.f32 %v21355_v17, %v20155_v31  ;;  %v11920_v17 = vld [vmem:[#allocation13] sm:$0x1] }
 0x909   : > { %v11903_v11 = vadd.f32 %v11902_v36, %v11868_v25  ;;  %v11828_v39 = vadd.f32 %v11827_v59, %v11793_v37  ;;  %v10574_v51 = vpop.f32.mrf.mxu2  ;;  %v11873_v37 = vmul.f32 %v11796_v33, %v11796_v33  ;;  %v11798_v46 = vmul.f32 %v21357_v62, %v20160_v12 }
 0x90a   : > { %v10648_v56 = vadd.f32 %v10574_v51, %v10192_v2  ;;  %v11874_v35 = vmul.f32 %v11797_v14, %v11797_v14  ;;  %v11923_v2 = vmul.f32 2.0, %v11920_v17 }
 0x90b   : > { %v11904_v34 = vadd.f32 %v11903_v11, %v11869_v49  ;;  %v11829_v54 = vadd.f32 %v11828_v39, %v11794_v27  ;;  %v11875_v27 = vmul.f32 %v11798_v46, %v11798_v46 }
 0x90d   : > { %v11905_v38 = vadd.f32 %v11904_v34, %v11870_v8  ;;  %v11830_v4 = vadd.f32 %v11829_v54, %v11795_v9  ;;  %v11163_v40 = vpop.f32.mrf.mxu0 }
 0x90e   : > { %v11614_v18 = vpop.f32.mrf.mxu3  ;;  %v11237_v8 = vadd.f32 %v11163_v40, %v10648_v56 }
 0x90f   : > { %v20164_v44 = vadd.f32 %v11614_v18, %v11235_v60  ;;  %v11906_v20 = vadd.f32 %v11905_v38, %v11871_v21  ;;  %v11831_v23 = vadd.f32 %v11830_v4, %v11796_v33  ;;  %v21359_v18 = vld [vmem:[#allocation68_spill] sm:$0xff]  ;;  %v21360_v21 = vld [vmem:[#allocation25_spill] sm:$0xff]  ;;  %v11921_v4 = vmul.f32 256.0, %v11920_v17 }
 0x911   : > { %v11907_v58 = vadd.f32 %v11906_v20, %v11872_v50  ;;  %v11799_v36 = vmul.f32 %v21358_v1, %v20164_v44  ;;  %v11832_v7 = vadd.f32 %v11831_v23, %v11797_v14 }
 0x913   : > { %v11908_v49 = vadd.f32 %v11907_v58, %v11873_v37  ;;  %v11833_v53 = vadd.f32 %v11832_v7, %v11798_v46  ;;  %v11876_v11 = vmul.f32 %v11799_v36, %v11799_v36  ;;  %v11926_v37 = vmul.f32 %v11920_v17, %v11920_v17 }
 0x915   : > { %v11909_v63 = vadd.f32 %v11908_v49, %v11874_v35  ;;  %v11834_v9 = vadd.f32 %v11833_v53, %v11799_v36  ;;  %v11927_v35 = vmul.f32 256.0, %v11926_v37 }
 0x916   : > { %v11617_v25 = vpop.f32.mrf.mxu3 }
 0x917   : > { %v20169_v29 = vadd.f32 %v11617_v25, %v11236_v13  ;;  %v11910_v43 = vadd.f32 %v11909_v63, %v11875_v27 }
 0x919   : > { %v11800_v6 = vmul.f32 %v21359_v18, %v20169_v29  ;;  %v11911_v55 = vadd.f32 %v11910_v43, %v11876_v11 }
 0x91b   : > { %v11877_v19 = vmul.f32 %v11800_v6, %v11800_v6  ;;  %v11835_v34 = vadd.f32 %v11834_v9, %v11800_v6 }
 0x91d   : > { %v11912_v39 = vadd.f32 %v11911_v55, %v11877_v19 }
 0x91e   : > { %v11619_v59 = vpop.f32.mrf.mxu3 }
 0x91f   : > { %v20175_v0 = vadd.f32 %v11619_v59, %v11237_v8 }
 0x921   : > { %v11801_v42 = vmul.f32 %v21360_v21, %v20175_v0 }
 0x923   : > { %v11836_v41 = vadd.f32 %v11835_v34, %v11801_v42  ;;  %v11878_v33 = vmul.f32 %v11801_v42, %v11801_v42  ;;  %v12001_v34 = vld [vmem:[%s554_s10] sm:$0x1] }
 0x925   : > { %v11837_v60 = vrot.slane %v11836_v41, 4  ;;  %v11913_v38 = vadd.f32 %v11912_v39, %v11878_v33 }
 0x927   : > { %v11838_v13 = vadd.f32 %v11837_v60, %v11836_v41  ;;  %v11914_v51 = vrot.slane %v11913_v38, 4  ;;  %v12005_v41 = vld [vmem:[%s557_s7] sm:$0x1] }
 0x929   : > { %v11839_v54 = vrot.slane %v11838_v13, 2  ;;  %v11915_v50 = vadd.f32 %v11914_v51, %v11913_v38  ;;  %v21362_v38 = vld [vmem:[#allocation64_spill] sm:$0xff]  ;;  %v21363_v51 = vld [vmem:[#allocation27_spill] sm:$0xff] }
 0x92b   : > { %v11840_v14 = vadd.f32 %v11839_v54, %v11838_v13  ;;  %v11916_v57 = vrot.slane %v11915_v50, 2 }
 0x92d   : > { %v11841_v20 = vrot.slane %v11840_v14, 1  ;;  %v11917_v25 = vadd.f32 %v11916_v57, %v11915_v50  ;;  %v21364_v50 = vld [vmem:[#allocation59_spill] sm:$0xff]  ;;  %v21365_v57 = vld [vmem:[#allocation54_spill] sm:$0xff] }
 0x92f   : > { %v11842_v62 = vadd.f32 %v11841_v20, %v11840_v14  ;;  %v11918_v46 = vrot.slane %v11917_v25, 1  ;;  %v21366_v20 = vld [vmem:[#allocation26_spill] sm:$0xff] }
 0x931   : > { %v11919_v56 = vadd.f32 %v11918_v46, %v11917_v25  ;;  %v11924_v58 = vmul.f32 %v11923_v2, %v11842_v62  ;;  %v11922_v23 = vadd.f32 %v11921_v4, %v11842_v62  ;;  %v21367_v4 = vld [vmem:[#allocation30_spill] sm:$0xff]  ;;  %v21368_v46 = vld [vmem:[#allocation71_spill] sm:$0xff] }
 0x933   : > { %11961 = vmatmul.f32.vlgmr.msra.gmra.mxu1 %v11922_v23  ;;  %v11925_v1 = vadd.f32 %v11924_v58, %v11919_v56  ;;  %v21369_v58 = vld [vmem:[#allocation31_spill] sm:$0xff] }
 0x935   : > { %v11928_v36 = vadd.f32 %v11927_v35, %v11925_v1  ;;  %v21370_v35 = vld [vmem:[#allocation28_spill] sm:$0xff] }
 0x937   : > { %11981 = vmatmul.f32.vlgmr.msra.gmra.mxu2 %v11928_v36  ;;  %v21371_v36 = vld [vmem:[#allocation29_spill] sm:$0xff] }
 0x9b0   : > { %v11962_v49 = vpop.f32.mrf.mxu1 }
 0x9b1   : > { %v11985_v7 = vmul.f32 0.001953125, %v11962_v49 }
 0x9b3   : > { %v11987_v18 = vmul.f32 %v11985_v7, %v11985_v7  ;;  %v12003_v42 = vsub.f32 %v11920_v17, %v11985_v7  ;;  %v21372_v7 = vld [vmem:[#allocation33_spill] sm:$0xff] }
 0x9ba   : > { %v11982_v27 = vpop.f32.mrf.mxu2 }
 0x9bb   : > { %v11986_v6 = vmul.f32 0.001953125, %v11982_v27 }
 0x9bd   : > { %v11988_v40 = vsub.f32 %v11986_v6, %v11987_v18  ;;  %v21373_v18 = vld [vmem:[#allocation32_spill] sm:$0xff] }
 0x9bf   : > { %v11989_v63 = vmax.f32 %v11988_v40, 0.0 }
 0x9c1   : > { %v11990_v53 = vadd.f32 1e-05, %v11989_v63  ;;  %v21374_v63 = vld [vmem:[#allocation56_spill] sm:$0xff] }
 0x9c3   : > { %15230 = vrsqrt.f32 %v11990_v53  ;;  %vm11997_vm5 = vweird.f32 %v11990_v53 }
 0x9c9   : > { %v15231_v11 = vpop.eup %15230 }
 0x9ca   : > { %v11992_v8 = vmul.f32 %v15231_v11, %v11990_v53  ;;  %vm11998_vm4 = vweird.f32 %v15231_v11 }
 0x9cb   : > { %vm11999_vm14 = vmor %vm11997_vm5, %vm11998_vm4 }
 0x9cc   : > { %v11993_v59 = vmul.f32 %v15231_v11, %v11992_v8  ;;  %v21376_v8 = vld [vmem:[#allocation37_spill] sm:$0xff] }
 0x9ce   : > { %v11994_v43 = vmul.f32 0.5, %v11993_v59 }
 0x9d0   : > { %v11995_v9 = vsub.f32 1.5, %v11994_v43 }
 0x9d2   : > { %v11996_v19 = vmul.f32 %v15231_v11, %v11995_v9 }
 0x9d4   : > { %v12000_v55 = vsel %vm11999_vm14, %v15231_v11, %v11996_v19  ;;  %v21375_v11 = vld [vmem:[#allocation75_spill] sm:$0xff] }
 0x9d5   : > { %v12002_v21 = vmul.f32 %v12001_v34, %v12000_v55 }
 0x9d7   : > { %v12004_v39 = vmul.f32 %v12003_v42, %v12002_v21  ;;  %v12007_v33 = vperm.slane %v12002_v21, 0 }
 0x9d9   : > { %v12006_v60 = vadd.f32 %v12005_v41, %v12004_v39  ;;  %v12008_v13 = vmul.f32 %v12007_v33, %v21362_v38  ;;  %v12009_v54 = vmul.f32 %v12007_v33, %v21363_v51  ;;  %v12010_v14 = vmul.f32 %v12007_v33, %v21364_v50 }
 0x9da   : > { %v12011_v2 = vmul.f32 %v12007_v33, %v21365_v57  ;;  %v12012_v25 = vmul.f32 %v12007_v33, %v21366_v20  ;;  %v12013_v17 = vmul.f32 %v12007_v33, %v21367_v4  ;;  %v12014_v37 = vmul.f32 %v12007_v33, %v19900_v5 }
 0x9db   : > { %v20194_v62 = vperm.slane %v12006_v60, 0  ;;  %v12015_v56 = vmul.f32 %v12007_v33, %v21368_v46  ;;  %v12016_v23 = vmul.f32 %v12007_v33, %v21369_v58  ;;  %v12017_v1 = vmul.f32 %v12007_v33, %v21370_v35 }
 0x9dc   : > { %v12018_v49 = vmul.f32 %v12007_v33, %v21371_v36  ;;  %v12019_v27 = vmul.f32 %v12007_v33, %v21372_v7  ;;  %v12020_v6 = vmul.f32 %v12007_v33, %v21373_v18  ;;  %v12021_v40 = vmul.f32 %v12007_v33, %v19933_v47 }
 0x9dd   : > { %v12022_v53 = vmul.f32 %v12007_v33, %v21374_v63  ;;  %v12023_v5 = vmul.f32 %v12007_v33, %v21375_v11  ;;  %v12024_v59 = vmul.f32 %v12007_v33, %v21376_v8  ;;  %v12025_v43 = vmul.f32 %v12007_v33, %v19951_v48 }
 0x9de   : > { %v12026_v9 = vmul.f32 %v12007_v33, %v19956_v15  ;;  %v12027_v19 = vmul.f32 %v12007_v33, %v19960_v16  ;;  %v12028_v55 = vmul.f32 %v12007_v33, %v19964_v26  ;;  %v12029_v34 = vmul.f32 %v12007_v33, %v19970_v32 }
 0x9df   : > { %v12030_v21 = vmul.f32 %v12007_v33, %v19976_v61  ;;  %v12031_v47 = vmul.f32 %v12007_v33, %v19986_v52  ;;  %v12032_v42 = vmul.f32 %v12007_v33, %v19995_v24  ;;  %v12033_v39 = vmul.f32 %v12007_v33, %v20106_v28 }
 0x9e0   : > { %v12034_v41 = vmul.f32 %v12007_v33, %v20114_v30  ;;  %v12035_v48 = vmul.f32 %v12007_v33, %v20123_v22  ;;  %v12036_v15 = vmul.f32 %v12007_v33, %v20133_v3  ;;  %v12037_v16 = vmul.f32 %v12007_v33, %v20142_v10 }
 0x9e1   : > { %v12038_v26 = vmul.f32 %v12007_v33, %v20149_v45  ;;  %v12039_v32 = vmul.f32 %v12007_v33, %v20155_v31  ;;  %v12040_v61 = vmul.f32 %v12007_v33, %v20160_v12  ;;  %v12041_v52 = vmul.f32 %v12007_v33, %v20164_v44 }
 0x9e2   : > { %v12042_v24 = vmul.f32 %v12007_v33, %v20169_v29  ;;  %v12043_v28 = vmul.f32 %v12007_v33, %v20175_v0  ;;  %v20226_v30 = vadd.f32 %v20194_v62, %v12008_v13  ;;  %v20229_v22 = vadd.f32 %v20194_v62, %v12009_v54 }
 0x9e3   : > { %v20232_v3 = vadd.f32 %v20194_v62, %v12010_v14  ;;  %v20235_v10 = vadd.f32 %v20194_v62, %v12011_v2  ;;  %v20238_v45 = vadd.f32 %v20194_v62, %v12012_v25  ;;  %v20241_v31 = vadd.f32 %v20194_v62, %v12013_v17 }
 0x9e4   : > { %v20244_v12 = vadd.f32 %v20194_v62, %v12014_v37  ;;  %v20247_v44 = vadd.f32 %v20194_v62, %v12015_v56  ;;  %v20250_v29 = vadd.f32 %v20194_v62, %v12016_v23  ;;  %v20253_v0 = vadd.f32 %v20194_v62, %v12017_v1 }
 0x9e5   : > { %v20256_v33 = vadd.f32 %v20194_v62, %v12018_v49  ;;  %v20259_v60 = vadd.f32 %v20194_v62, %v12019_v27  ;;  %v20262_v38 = vadd.f32 %v20194_v62, %v12020_v6  ;;  %v20265_v13 = vadd.f32 %v20194_v62, %v12021_v40 }
 0x9e6   : > { %v20268_v51 = vadd.f32 %v20194_v62, %v12022_v53  ;;  %v20271_v54 = vadd.f32 %v20194_v62, %v12023_v5  ;;  %v20274_v50 = vadd.f32 %v20194_v62, %v12024_v59  ;;  %v20277_v14 = vadd.f32 %v20194_v62, %v12025_v43 }
 0x9e7   : > { %v20280_v57 = vadd.f32 %v20194_v62, %v12026_v9  ;;  %v20283_v2 = vadd.f32 %v20194_v62, %v12027_v19  ;;  %v20286_v20 = vadd.f32 %v20194_v62, %v12028_v55  ;;  %v20289_v25 = vadd.f32 %v20194_v62, %v12029_v34 }
 0x9e8   : > { %v20292_v4 = vadd.f32 %v20194_v62, %v12030_v21  ;;  %v20295_v17 = vadd.f32 %v20194_v62, %v12031_v47  ;;  %v20298_v37 = vadd.f32 %v20194_v62, %v12032_v42  ;;  %v12083_v46 = vmul.f32 0.5, %v20226_v30 }
 0x9e9   : > { %21377 = vst [vmem:[#allocation82_spill] sm:$0xff] %v20289_v25  ;;  %v20302_v56 = vadd.f32 %v20194_v62, %v12033_v39  ;;  %v20305_v58 = vadd.f32 %v20194_v62, %v12034_v41  ;;  %v20308_v23 = vadd.f32 %v20194_v62, %v12035_v48  ;;  %v12084_v35 = vmul.f32 0.5, %v20229_v22 }
 0x9ea   : > { %21378 = vst [vmem:[#allocation83_spill] sm:$0xff] %v20292_v4  ;;  %v20312_v1 = vadd.f32 %v20194_v62, %v12036_v15  ;;  %v20315_v36 = vadd.f32 %v20194_v62, %v12037_v16  ;;  %v20318_v49 = vadd.f32 %v20194_v62, %v12038_v26  ;;  %v12085_v7 = vmul.f32 0.5, %v20232_v3 }
 0x9eb   : > { %21379 = vst [vmem:[#allocation84_spill] sm:$0xff] %v20295_v17  ;;  %v20322_v27 = vadd.f32 %v20194_v62, %v12039_v32  ;;  %v20325_v18 = vadd.f32 %v20194_v62, %v12040_v61  ;;  %v20328_v6 = vadd.f32 %v20194_v62, %v12041_v52  ;;  %v12086_v40 = vmul.f32 0.5, %v20235_v10 }
 0x9ec   : > { %21380 = vst [vmem:[#allocation85_spill] sm:$0xff] %v20298_v37  ;;  %v20332_v63 = vadd.f32 %v20194_v62, %v12042_v24  ;;  %v20335_v53 = vadd.f32 %v20194_v62, %v12043_v28  ;;  %v12087_v11 = vmul.f32 0.5, %v20238_v45  ;;  %15232 = vtanh.f32 %v12083_v46 }
 0x9ed   : > { %21381 = vst [vmem:[#allocation36_spill] sm:$0xff] %v20302_v56  ;;  %v12088_v5 = vmul.f32 0.5, %v20241_v31  ;;  %v12089_v8 = vmul.f32 0.5, %v20244_v12  ;;  %v12090_v59 = vmul.f32 0.5, %v20247_v44  ;;  %15234 = vtanh.f32 %v12084_v35 }
 0x9ee   : > { %21382 = vst [vmem:[#allocation34_spill] sm:$0xff] %v20305_v58  ;;  %v12091_v43 = vmul.f32 0.5, %v20250_v29  ;;  %v12092_v9 = vmul.f32 0.5, %v20253_v0  ;;  %v12093_v19 = vmul.f32 0.5, %v20256_v33  ;;  %15236 = vtanh.f32 %v12085_v7 }
 0x9ef   : > { %21383 = vst [vmem:[#allocation35_spill] sm:$0xff] %v20308_v23  ;;  %v12094_v62 = vmul.f32 0.5, %v20259_v60  ;;  %v12095_v55 = vmul.f32 0.5, %v20262_v38  ;;  %v12096_v34 = vmul.f32 0.5, %v20265_v13  ;;  %15238 = vtanh.f32 %v12086_v40 }
 0x9f0   : > { %21384 = vst [vmem:[#allocation57_spill] sm:$0xff] %v20312_v1  ;;  %v12097_v21 = vmul.f32 0.5, %v20268_v51  ;;  %v12098_v47 = vmul.f32 0.5, %v20271_v54  ;;  %v12099_v42 = vmul.f32 0.5, %v20274_v50  ;;  %15240 = vtanh.f32 %v12087_v11 }
 0x9f1   : > { %21385 = vst [vmem:[#allocation38_spill] sm:$0xff] %v20315_v36  ;;  %v12100_v39 = vmul.f32 0.5, %v20277_v14  ;;  %v20352_v41 = vmul.f32 0.5, %v20280_v57  ;;  %v20355_v48 = vmul.f32 0.5, %v20283_v2  ;;  %15242 = vtanh.f32 %v12088_v5 }
 0x9f2   : > { %21386 = vst [vmem:[#allocation40_spill] sm:$0xff] %v20318_v49  ;;  %v15233_v15 = vpop.eup %15232  ;;  %v20358_v16 = vmul.f32 0.5, %v20286_v20  ;;  %v20361_v26 = vmul.f32 0.5, %v20289_v25  ;;  %v20364_v32 = vmul.f32 0.5, %v20292_v4  ;;  %15244 = vtanh.f32 %v12089_v8 }
 0x9f3   : > { %21387 = vst [vmem:[#allocation42_spill] sm:$0xff] %v20322_v27  ;;  %v15235_v61 = vpop.eup %15234  ;;  %v20367_v52 = vmul.f32 0.5, %v20295_v17  ;;  %v20370_v24 = vmul.f32 0.5, %v20298_v37  ;;  %15246 = vtanh.f32 %v12090_v59  ;;  %v12155_v28 = vmul.f32 0.5, %v15233_v15 }
 0x9f4   : > { %21388 = vst [vmem:[#allocation41_spill] sm:$0xff] %v20325_v18  ;;  %v15237_v46 = vpop.eup %15236  ;;  %v20373_v35 = vmul.f32 0.5, %v20302_v56  ;;  %v20376_v7 = vmul.f32 0.5, %v20305_v58  ;;  %15248 = vtanh.f32 %v12091_v43  ;;  %v12156_v40 = vmul.f32 0.5, %v15235_v61 }
 0x9f5   : > { %21389 = vst [vmem:[#allocation61_spill] sm:$0xff] %v20328_v6  ;;  %v15239_v11 = vpop.eup %15238  ;;  %v20379_v5 = vmul.f32 0.5, %v20308_v23  ;;  %v20382_v8 = vmul.f32 0.5, %v20312_v1  ;;  %15250 = vtanh.f32 %v12092_v9  ;;  %v12157_v37 = vmul.f32 0.5, %v15237_v46 }
 0x9f6   : > { %21390 = vst [vmem:[#allocation45_spill] sm:$0xff] %v20332_v63  ;;  %v15241_v59 = vpop.eup %15240  ;;  %v20385_v15 = vmul.f32 0.5, %v20315_v36  ;;  %v20388_v56 = vmul.f32 0.5, %v20318_v49  ;;  %15252 = vtanh.f32 %v12093_v19  ;;  %v12158_v58 = vmul.f32 0.5, %v15239_v11 }
 0x9f7   : > { %21391 = vst [vmem:[#allocation63_spill] sm:$0xff] %v20335_v53  ;;  %v15243_v43 = vpop.eup %15242  ;;  %v20391_v61 = vmul.f32 0.5, %v20322_v27  ;;  %15254 = vtanh.f32 %v12094_v62  ;;  %v12159_v23 = vmul.f32 0.5, %v15241_v59  ;;  %v12191_v17 = vadd.f32 0.5, %v12155_v28 }
 0x9f8   : > { %v15245_v1 = vpop.eup %15244  ;;  %v20394_v9 = vmul.f32 0.5, %v20325_v18  ;;  %v20397_v46 = vmul.f32 0.5, %v20328_v6  ;;  %15256 = vtanh.f32 %v12095_v55  ;;  %v12192_v36 = vadd.f32 0.5, %v12156_v40 }
 0x9f9   : > { %v15247_v49 = vpop.eup %15246  ;;  %v20400_v19 = vmul.f32 0.5, %v20332_v63  ;;  %15258 = vtanh.f32 %v12096_v34  ;;  %v12160_v11 = vmul.f32 0.5, %v15243_v43  ;;  %v12193_v27 = vadd.f32 0.5, %v12157_v37 }
 0x9fa   : > { %v15249_v4 = vpop.eup %15248  ;;  %v20403_v62 = vmul.f32 0.5, %v20335_v53  ;;  %15260 = vtanh.f32 %v12097_v21  ;;  %v12161_v28 = vmul.f32 0.5, %v15245_v1  ;;  %v12194_v59 = vadd.f32 0.5, %v12158_v58 }
 0x9fb   : > { %v15251_v18 = vpop.eup %15250  ;;  %15262 = vtanh.f32 %v12098_v47  ;;  %v12162_v6 = vmul.f32 0.5, %v15247_v49  ;;  %v12195_v25 = vadd.f32 0.5, %v12159_v23  ;;  %v20406_v55 = vmul.f32 %v12191_v17, %v20226_v30 }
 0x9fc   : > { %v15253_v40 = vpop.eup %15252  ;;  %15264 = vtanh.f32 %v12099_v42  ;;  %v12163_v63 = vmul.f32 0.5, %v15249_v4  ;;  %v12164_v34 = vmul.f32 0.5, %v15251_v18  ;;  %v20409_v37 = vmul.f32 %v12192_v36, %v20229_v22 }
 0x9fd   : > { %v15255_v43 = vpop.eup %15254  ;;  %15266 = vtanh.f32 %v12100_v39  ;;  %v12165_v53 = vmul.f32 0.5, %v15253_v40  ;;  %v12196_v21 = vadd.f32 0.5, %v12160_v11  ;;  %v20412_v58 = vmul.f32 %v12193_v27, %v20232_v3 }
 0x9fe   : > { %v15257_v1 = vpop.eup %15256  ;;  %15268 = vtanh.f32 %v20352_v41  ;;  %v12166_v23 = vmul.f32 0.5, %v15255_v43  ;;  %v12197_v30 = vadd.f32 0.5, %v12161_v28  ;;  %v20416_v17 = vmul.f32 %v12194_v59, %v20235_v10 }
 0x9ff   : > { %v15259_v4 = vpop.eup %15258  ;;  %15270 = vtanh.f32 %v20355_v48  ;;  %v12167_v22 = vmul.f32 0.5, %v15257_v1  ;;  %v12198_v36 = vadd.f32 0.5, %v12162_v6  ;;  %v20420_v49 = vmul.f32 %v12195_v25, %v20238_v45 }
 0xa00   : > { %v15261_v18 = vpop.eup %15260  ;;  %15272 = vtanh.f32 %v20358_v16  ;;  %v12168_v3 = vmul.f32 0.5, %v15259_v4  ;;  %v12199_v27 = vadd.f32 0.5, %v12163_v63  ;;  %v12200_v47 = vadd.f32 0.5, %v12164_v34 }
 0xa01   : > { %v15263_v42 = vpop.eup %15262  ;;  %15274 = vtanh.f32 %v20361_v26  ;;  %v12169_v39 = vmul.f32 0.5, %v15261_v18  ;;  %v12201_v10 = vadd.f32 0.5, %v12165_v53  ;;  %v20425_v41 = vmul.f32 %v12196_v21, %v20241_v31 }
 0xa02   : > { %v15265_v48 = vpop.eup %15264  ;;  %15276 = vtanh.f32 %v20364_v32  ;;  %v12170_v6 = vmul.f32 0.5, %v15263_v42  ;;  %v12202_v45 = vadd.f32 0.5, %v12166_v23  ;;  %v20429_v25 = vmul.f32 %v12197_v30, %v20244_v12 }
 0xa03   : > { %v15267_v16 = vpop.eup %15266  ;;  %15278 = vtanh.f32 %v20367_v52  ;;  %v12171_v63 = vmul.f32 0.5, %v15265_v48  ;;  %v12203_v11 = vadd.f32 0.5, %v12167_v22  ;;  %v20433_v26 = vmul.f32 %v12198_v36, %v20247_v44 }
 0xa04   : > { %v15269_v53 = vpop.eup %15268  ;;  %15280 = vtanh.f32 %v20370_v24  ;;  %v12204_v31 = vadd.f32 0.5, %v12168_v3  ;;  %v20437_v28 = vmul.f32 %v12199_v27, %v20250_v29  ;;  %v20440_v32 = vmul.f32 %v12200_v47, %v20253_v0 }
 0xa05   : > { %v15271_v12 = vpop.eup %15270  ;;  %15282 = vtanh.f32 %v20373_v35  ;;  %v12172_v59 = vmul.f32 0.5, %v15267_v16  ;;  %v12205_v52 = vadd.f32 0.5, %v12169_v39  ;;  %v20444_v40 = vmul.f32 %v12201_v10, %v20256_v33 }
 0xa06   : > { %v15273_v44 = vpop.eup %15272  ;;  %15284 = vtanh.f32 %v20376_v7  ;;  %v12173_v34 = vmul.f32 0.5, %v15269_v53  ;;  %v12206_v24 = vadd.f32 0.5, %v12170_v6  ;;  %v20448_v43 = vmul.f32 %v12202_v45, %v20259_v60 }
 0xa07   : > { %v15275_v29 = vpop.eup %15274  ;;  %15286 = vtanh.f32 %v20379_v5  ;;  %v12174_v0 = vmul.f32 0.5, %v15271_v12  ;;  %v12207_v21 = vadd.f32 0.5, %v12171_v63  ;;  %v20452_v35 = vmul.f32 %v12203_v11, %v20262_v38 }
 0xa08   : > { %v15277_v1 = vpop.eup %15276  ;;  %15288 = vtanh.f32 %v20382_v8  ;;  %v12175_v33 = vmul.f32 0.5, %v15273_v44  ;;  %v12176_v23 = vmul.f32 0.5, %v15275_v29  ;;  %v20456_v7 = vmul.f32 %v12204_v31, %v20265_v13  ;;  %v21394_v29 = vld [vmem:[#allocation84_spill] sm:$0xff] }
 0xa09   : > { %v15279_v30 = vpop.eup %15278  ;;  %15290 = vtanh.f32 %v20385_v15  ;;  %v12177_v60 = vmul.f32 0.5, %v15277_v1  ;;  %v12208_v4 = vadd.f32 0.5, %v12172_v59  ;;  %v20460_v5 = vmul.f32 %v12205_v52, %v20268_v51  ;;  %v21393_v52 = vld [vmem:[#allocation83_spill] sm:$0xff] }
 0xa0a   : > { %v15281_v22 = vpop.eup %15280  ;;  %15292 = vtanh.f32 %v20388_v56  ;;  %v12178_v38 = vmul.f32 0.5, %v15279_v30  ;;  %v12209_v36 = vadd.f32 0.5, %v12173_v34  ;;  %v20464_v8 = vmul.f32 %v12206_v24, %v20271_v54  ;;  %v21396_v30 = vld [vmem:[#allocation36_spill] sm:$0xff] }
 0xa0b   : > { %v15283_v18 = vpop.eup %15282  ;;  %15294 = vtanh.f32 %v20391_v61  ;;  %v12179_v13 = vmul.f32 0.5, %v15281_v22  ;;  %v12210_v3 = vadd.f32 0.5, %v12174_v0  ;;  %v20468_v15 = vmul.f32 %v12207_v21, %v20274_v50 }
 0xa0c   : > { %v15285_v27 = vpop.eup %15284  ;;  %15296 = vtanh.f32 %v20394_v9  ;;  %v12180_v51 = vmul.f32 0.5, %v15283_v18  ;;  %v12211_v47 = vadd.f32 0.5, %v12175_v33  ;;  %v12212_v56 = vadd.f32 0.5, %v12176_v23  ;;  %v21395_v33 = vld [vmem:[#allocation85_spill] sm:$0xff] }
 0xa0d   : > { %v15287_v42 = vpop.eup %15286  ;;  %15298 = vtanh.f32 %v20397_v46  ;;  %v12181_v54 = vmul.f32 0.5, %v15285_v27  ;;  %v12213_v39 = vadd.f32 0.5, %v12177_v60  ;;  %v20474_v10 = vmul.f32 %v12208_v4, %v20277_v14 }
 0xa0e   : > { %v15289_v61 = vpop.eup %15288  ;;  %15300 = vtanh.f32 %v20400_v19  ;;  %v12182_v50 = vmul.f32 0.5, %v15287_v42  ;;  %v12214_v48 = vadd.f32 0.5, %v12178_v38  ;;  %v20478_v6 = vmul.f32 %v12209_v36, %v20280_v57  ;;  %v21392_v19 = vld [vmem:[#allocation82_spill] sm:$0xff] }
 0xa0f   : > { %v15291_v9 = vpop.eup %15290  ;;  %15302 = vtanh.f32 %v20403_v62  ;;  %v12215_v45 = vadd.f32 0.5, %v12179_v13  ;;  %v12216_v16 = vadd.f32 0.5, %v12180_v51  ;;  %v20482_v46 = vmul.f32 %v12210_v3, %v20283_v2  ;;  %v21398_v3 = vld [vmem:[#allocation35_spill] sm:$0xff] }
 0xa10   : > { %v15293_v63 = vpop.eup %15292  ;;  %v12183_v11 = vmul.f32 0.5, %v15289_v61  ;;  %v12217_v14 = vadd.f32 0.5, %v12181_v54  ;;  %v20485_v53 = vmul.f32 %v12211_v47, %v20286_v20  ;;  %v20488_v31 = vmul.f32 %v12212_v56, %v21392_v19 }
 0xa11   : > { %v15295_v57 = vpop.eup %15294  ;;  %v12184_v12 = vmul.f32 0.5, %v15291_v9  ;;  %v12218_v59 = vadd.f32 0.5, %v12182_v50  ;;  %v12249_v62 = vmul.f32 %v12213_v39, %v21393_v52  ;;  %v14916_v44 = vpack.c.bf16 %v20409_v37, %v20406_v55  ;;  %v21400_v50 = vld [vmem:[#allocation38_spill] sm:$0xff] }
 0xa12   : > { %v15297_v2 = vpop.eup %15296  ;;  %v12185_v34 = vmul.f32 0.5, %v15293_v63  ;;  %v12186_v24 = vmul.f32 0.5, %v15295_v57  ;;  %v12250_v0 = vmul.f32 %v12214_v48, %v21394_v29  ;;  %v14921_v20 = vpack.c.bf16 %v20416_v17, %v20412_v58  ;;  %v21397_v17 = vld [vmem:[#allocation34_spill] sm:$0xff]  ;;  %v21405_v63 = vld [vmem:[#allocation45_spill] sm:$0xff] }
 0xa13   : > { %v15299_v21 = vpop.eup %15298  ;;  %v12187_v1 = vmul.f32 0.5, %v15297_v2  ;;  %v12251_v23 = vmul.f32 %v12215_v45, %v21395_v33  ;;  %v12252_v60 = vmul.f32 %v12216_v16, %v21396_v30  ;;  %14917 = vst [vmem:[%s20500_s16] sm:$0xff] %v14916_v44   ;;  %v14926_v55 = vpack.c.bf16 %v20425_v41, %v20420_v49  ;;  %v21404_v45 = vld [vmem:[#allocation61_spill] sm:$0xff] }
 0xa14   : > { %v15301_v37 = vpop.eup %15300  ;;  %v12188_v4 = vmul.f32 0.5, %v15299_v21  ;;  %v12219_v58 = vadd.f32 0.5, %v12183_v11  ;;  %v12253_v22 = vmul.f32 %v12217_v14, %v21397_v17  ;;  %15003 = vst [vmem:[%s20500_s16 + $0x8] sm:$0xff] %v14921_v20   ;;  %v14931_v38 = vpack.c.bf16 %v20433_v26, %v20429_v25  ;;  %v21406_v14 = vld [vmem:[#allocation63_spill] sm:$0xff] }
 0xa15   : > { %v15303_v36 = vpop.eup %15302  ;;  %v12189_v18 = vmul.f32 0.5, %v15301_v37  ;;  %v12220_v13 = vadd.f32 0.5, %v12184_v12  ;;  %v12254_v27 = vmul.f32 %v12218_v59, %v21398_v3  ;;  %15004 = vst [vmem:[%s20500_s16 + $0x10] sm:$0xff] %v14926_v55   ;;  %v14936_v49 = vpack.c.bf16 %v20440_v32, %v20437_v28 }
 0xa16   : > { %v12190_v41 = vmul.f32 0.5, %v15303_v36  ;;  %v12221_v51 = vadd.f32 0.5, %v12185_v34  ;;  %v12222_v47 = vadd.f32 0.5, %v12186_v24  ;;  %15005 = vst [vmem:[%s20500_s16 + $0x18] sm:$0xff] %v14931_v38   ;;  %v14941_v56 = vpack.c.bf16 %v20448_v43, %v20444_v40  ;;  %v21399_v43 = vld [vmem:[#allocation57_spill] sm:$0xff] }
 0xa17   : > { %v12223_v25 = vadd.f32 0.5, %v12187_v1  ;;  %v12224_v26 = vadd.f32 0.5, %v12188_v4  ;;  %15006 = vst [vmem:[%s20500_s16 + $0x20] sm:$0xff] %v14936_v49   ;;  %v14946_v42 = vpack.c.bf16 %v20456_v7, %v20452_v35  ;;  %v14951_v54 = vpack.c.bf16 %v20464_v8, %v20460_v5  ;;  %v21401_v7 = vld [vmem:[#allocation40_spill] sm:$0xff]  ;;  %v21402_v8 = vld [vmem:[#allocation42_spill] sm:$0xff] }
 0xa18   : > { %v12225_v28 = vadd.f32 0.5, %v12189_v18  ;;  %v12226_v32 = vadd.f32 0.5, %v12190_v41  ;;  %15007 = vst [vmem:[%s20500_s16 + $0x28] sm:$0xff] %v14941_v56   ;;  %v14956_v39 = vpack.c.bf16 %v20474_v10, %v20468_v15  ;;  %v14961_v40 = vpack.c.bf16 %v20482_v46, %v20478_v6  ;;  %v21403_v10 = vld [vmem:[#allocation41_spill] sm:$0xff] }
 0xa19   : > { %v12255_v61 = vmul.f32 %v12219_v58, %v21399_v43  ;;  %v12256_v48 = vmul.f32 %v12220_v13, %v21400_v50  ;;  %15008 = vst [vmem:[%s20500_s16 + $0x30] sm:$0xff] %v14946_v42   ;;  %v14966_v35 = vpack.c.bf16 %v20488_v31, %v20485_v53  ;;  %v12257_v5 = vmul.f32 %v12221_v51, %v21401_v7 }
 0xa1a   : > { %v12258_v9 = vmul.f32 %v12222_v47, %v21402_v8  ;;  %15009 = vst [vmem:[%s20500_s16 + $0x38] sm:$0xff] %v14951_v54   ;;  %v14971_v15 = vpack.c.bf16 %v12250_v0, %v12249_v62  ;;  %v12259_v6 = vmul.f32 %v12223_v25, %v21403_v10  ;;  %v12260_v16 = vmul.f32 %v12224_v26, %v21404_v45 }
 0xa1b   : > { %15010 = vst [vmem:[%s20500_s16 + $0x40] sm:$0xff] %v14956_v39   ;;  %v14976_v46 = vpack.c.bf16 %v12252_v60, %v12251_v23  ;;  %v12261_v11 = vmul.f32 %v12225_v28, %v21405_v63  ;;  %v12262_v53 = vmul.f32 %v12226_v32, %v21406_v14  ;;  %v14981_v19 = vpack.c.bf16 %v12254_v27, %v12253_v22 }
 0xa1c   : > { %15011 = vst [vmem:[%s20500_s16 + $0x48] sm:$0xff] %v14961_v40   ;;  %v14986_v31 = vpack.c.bf16 %v12256_v48, %v12255_v61  ;;  %v14991_v57 = vpack.c.bf16 %v12258_v9, %v12257_v5  ;;  %v14996_v12 = vpack.c.bf16 %v12260_v16, %v12259_v6 }
 0xa1d   : > { %15012 = vst [vmem:[%s20500_s16 + $0x50] sm:$0xff] %v14966_v35   ;;  %v15001_v59 = vpack.c.bf16 %v12262_v53, %v12261_v11 }
 0xa1e   : > { %15013 = vst [vmem:[%s20500_s16 + $0x58] sm:$0xff] %v14971_v15  }
 0xa1f   : > { %15014 = vst [vmem:[%s20500_s16 + $0x60] sm:$0xff] %v14976_v46  }
 0xa20   : > { %15015 = vst [vmem:[%s20500_s16 + $0x68] sm:$0xff] %v14981_v19  }
 0xa21   : > { %15016 = vst [vmem:[%s20500_s16 + $0x70] sm:$0xff] %v14986_v31  }
 0xa22   : > { %15017 = vst [vmem:[%s20500_s16 + $0x78] sm:$0xff] %v14991_v57  }
 0xa23   : > { %15018 = vst [vmem:[%s20500_s16 + $0x80] sm:$0xff] %v14996_v12  }
 0xa24   : > { %15019 = vst [vmem:[%s20500_s16 + $0x88] sm:$0xff] %v15001_v59  }
 0xa25   : > { %15541 = shalt.err (!%p15538_p10)
}
 0xa26   : > { %s15606_s6 = smov 64   ;;  %s15607_s2 = smov 4  }
 0xa27   : > { %15067 = dma.vmem_to_hbm [thread:$0]  (%p15767_p4), %s12349_s13, 2304, %s12351_s23, %s12336_s30, %s15606_s6, %s15606_s6, %s15607_s2  }
 0xa28 PF: > { %s12365_s16 = sand.u32 1, %s15580_s17   ;;  %p21408_p11 = scmp.ge.s32.totalorder %s15592_s20, 2 }
 0xa29   : > { %s12366_s25 = scalar_lea.sflag [#allocation6], %s12365_s16 }
 0xa2a   : > { %p15093_p13 = pnand %p21408_p11, %p15771_p6 }
 0xa2c   : > { %p15094_p0 = pneg %p15093_p13 }
 0xa2e   : > { %15575 = dma.done.wait (%p15094_p0), %s12366_s25, 2304  }
 0xa2f   : > { %15577 = vsyncadd (%p15094_p0), %s12366_s25, 4294964992  ;;  %p27_p2 = scmp.ge.s32.totalorder %s15745_s27, 4   ;;  %s21409_s17 = smov %s15584_s18 }
 0xa30   : > { %s21410_s18 = smov %s15588_s19  ;;  %s21411_s19 = smov %s15756_s26 }
 0xa31   : > { %s21412_s20 = smov %s15745_s27  ;;  %29 = sbr.rel (!%p27_p2) target bundleno = 16 (0x10), region = 145 }
 0xa36   :  { %12372 = vsyncpa [#allocation5], 1 }
 0xa37   :  { %12374 = vsyncpa [#allocation5 + $0x1], 1 }
 0xa38   :  { %12375 = vsyncpa [#allocation8], 1 }
 0xa39   :  { %12376 = vsyncpa [#allocation11], 1 }
 0xa3a   :  { %12377 = vsyncpa [#allocation14], 1 }
 0xa3b   :  { %12378 = vsyncpa [#allocation6], 1 }
 0xa3c   :  { %12380 = vsyncpa [#allocation6 + $0x1], 1 }

</bundles_post_ra>
